<compile_context>
chip_gen: v7x
topology: tpu7x:2x2x1
jax: 0.10.0
libtpu: 0.0.40
codegen_flags: <defaults>
</compile_context>

<pallas_src>
import jax
import jax.numpy as jnp
import numpy as np
from jax.experimental import pallas as pl
from jax.experimental.pallas import tpu as pltpu


_LANE = 128
_BN_EPS = 1e-5
_SPATIAL = 16                            # 16 x 16 patch grid
_NPIX = _SPATIAL * _SPATIAL              # 256 spatial tokens
_P_TOKENS = 1 + _NPIX                    # 257 tokens (cls + patches)
_P_PAD = 264                             # tokens padded to a multiple of 8
_TAPS = 25                               # 5x5 conv taps
_HBUF_OFF = 40                           # spatial row 0 offset (8-aligned, >= 34)
_HBUF_ROWS = 336                         # 40 + 256 + 40


def _round_up(n, m):
    return (n + m - 1) // m * m


# ---------------------------------------------------------------------------
# Kernel 1: per image  fc1 + ReLU + 5x5 conv (im2col) + BN partial statistics
# ---------------------------------------------------------------------------
def _fc1_conv_kernel(x_ref, w1_ref, b1_ref, wc_ref,
                     h_ref, cs_ref, mean_ref, m2_ref,
                     hbuf, slab):
    C = cs_ref.shape[-1]

    # fc1 + ReLU: (264, Din) @ (Din, C), bf16 operands, f32 accumulate.
    h32 = jnp.dot(x_ref[0], w1_ref[...], preferred_element_type=jnp.float32)
    h32 = jnp.maximum(h32 + b1_ref[...], 0.0)              # (264, C) f32
    h_ref[0] = h32.astype(h_ref.dtype)                     # bf16 handoff

    # Zero-padded, flattened 16x16 spatial buffer (VMEM resident).
    # Zero only the halo rows; the middle 256 rows are fully overwritten.
    # Redone every grid step (not once under program_id==0) so it remains
    # correct if the "parallel" batch axis is sharded across cores, each of
    # which has its own scratch and may never execute grid step 0.
    hbuf[pl.ds(0, _HBUF_OFF), :] = jnp.zeros((_HBUF_OFF, C), hbuf.dtype)
    tail = _HBUF_ROWS - _HBUF_OFF - _NPIX
    hbuf[pl.ds(_HBUF_OFF + _NPIX, tail), :] = jnp.zeros((tail, C), hbuf.dtype)
    hbuf[pl.ds(_HBUF_OFF, _NPIX), :] = h32[1:_P_TOKENS, :]

    # 5x5 "same" conv as ONE im2col matmul with K = 25*C:
    # pack 25 masked shifted (256, C) views (bf16) into a (256, 25*C) slab,
    # then a single MXU matmul against the resident (25*C, C) conv weight.
    col = jax.lax.broadcasted_iota(jnp.int32, (_NPIX, C), 0) % _SPATIAL
    masks = {
        ox: jnp.logical_and(col + ox >= 0, col + ox < _SPATIAL)
        for ox in (-2, -1, 1, 2)
    }
    t = 0
    for oy in range(-2, 3):
        for ox in range(-2, 3):
            v = hbuf[pl.ds(_HBUF_OFF + oy * _SPATIAL + ox, _NPIX), :]
            if ox != 0:
                v = jnp.where(masks[ox], v, jnp.zeros_like(v))
            slab[:, pl.ds(t * C, C)] = v.astype(slab.dtype)
            t += 1

    cs = jnp.dot(slab[...], wc_ref[...], preferred_element_type=jnp.float32)
    cs_ref[0] = cs.astype(cs_ref.dtype)                     # (256, C) bf16 handoff

    # Per-image BN partials: per-image mean and centered sum of squares (f32),
    # combined across the batch with a stable parallel-variance formula later.
    mu = jnp.sum(cs, axis=0, keepdims=True) * (1.0 / _NPIX)
    d = cs - mu
    mean_ref[0] = mu
    m2_ref[0] = jnp.sum(d * d, axis=0, keepdims=True)


# ---------------------------------------------------------------------------
# Kernel 2: per image  BN apply + ReLU + cls-concat + residual + fc2
# ---------------------------------------------------------------------------
def _bn_res_fc2_kernel(h_ref, cs_ref, scale_ref, shift_ref, w2_ref, b2_ref,
                       o_ref, x0_buf):
    hf = h_ref[0].astype(jnp.float32)                       # (264, C)
    csb = jnp.maximum(
        cs_ref[0].astype(jnp.float32) * scale_ref[...] + shift_ref[...], 0.0)

    # Single-pass x0 assembly: row 0 = 2*h_cls, rows 1..256 = h + csb,
    # padded tail rows copied from h (sliced off by the wrapper).
    x0_buf[0:1, :] = hf[0:1, :] * 2.0
    x0_buf[pl.ds(1, _NPIX), :] = hf[1:_P_TOKENS, :] + csb
    x0_buf[pl.ds(_P_TOKENS, _P_PAD - _P_TOKENS), :] = hf[_P_TOKENS:, :]

    # fc2: (264, C) @ (C, Dp), bf16 operands, f32 accumulate.
    o_ref[0] = (jnp.dot(x0_buf[...].astype(w2_ref.dtype), w2_ref[...],
                        preferred_element_type=jnp.float32) + b2_ref[...])


# ---------------------------------------------------------------------------
# Parameter preparation: lane-pad channels to 128, bf16 weights, im2col wc,
# fold the conv bias away (cancelled by training-mode BatchNorm).
# ---------------------------------------------------------------------------
def prepare_params(params):
    D, Dh = params["w1"].shape
    Dout = params["w2"].shape[1]
    Din = _round_up(D, _LANE)
    C = _round_up(Dh, _LANE)
    Dp = _round_up(Dout, _LANE)

    def pad2(a, rows, cols):
        return jnp.pad(a, ((0, rows - a.shape[0]), (0, cols - a.shape[1])))

    wc = params["wc"].reshape(_TAPS, Dh, Dh)                # HWIO -> (tap, in, out)
    wc = jnp.pad(wc, ((0, 0), (0, C - Dh), (0, C - Dh)))    # (25, C, C)
    return {
        "w1": pad2(params["w1"], Din, C).astype(jnp.bfloat16),
        "b1": jnp.pad(params["b1"], (0, C - Dh)).reshape(1, C).astype(jnp.float32),
        # im2col layout: rows ordered tap-major, wc_flat[t*C + i, o] = wc[t, i, o].
        "wc": wc.reshape(_TAPS * C, C).astype(jnp.bfloat16),
        # conv bias "bc" intentionally dropped: a per-channel constant added
        # before training-mode BatchNorm is exactly cancelled by the mean.
        "gamma": jnp.pad(params["gamma"], (0, C - Dh)).reshape(1, C).astype(jnp.float32),
        "beta": jnp.pad(params["beta"], (0, C - Dh)).reshape(1, C).astype(jnp.float32),
        "w2": pad2(params["w2"], C, Dp).astype(jnp.bfloat16),
        "b2": jnp.pad(params["b2"], (0, Dp - Dout)).reshape(1, Dp).astype(jnp.float32),
    }


# ---------------------------------------------------------------------------
# Full Adapterconv forward
# ---------------------------------------------------------------------------
@jax.jit
def adapterconv_forward(x, pp):
    B, P, D = x.shape
    assert P == _P_TOKENS, "forward assumes 1 cls token + 16*16 patches"
    Din, C = pp["w1"].shape
    Dp = pp["w2"].shape[1]

    # Lane-pad the feature dim and sublane-pad the token dim; bf16 input.
    x_p = jnp.pad(x, ((0, 0), (0, _P_PAD - P), (0, Din - D))).astype(jnp.bfloat16)

    flops1 = B * (2 * _P_PAD * Din * C + 2 * _NPIX * _TAPS * C * C)
    bytes1 = (x_p.size * 2 + pp["w1"].size * 2 + pp["b1"].size * 4
              + pp["wc"].size * 2
              + B * (_P_PAD * C * 2 + _NPIX * C * 2 + 2 * C * 4))

    # -------- kernel 1: fc1 + ReLU + conv + BN partials (parallel over B) ----
    h, cs, mu_b, m2_b = pl.pallas_call(
        _fc1_conv_kernel,
        out_shape=(
            jax.ShapeDtypeStruct((B, _P_PAD, C), jnp.bfloat16),   # h (bf16 handoff)
            jax.ShapeDtypeStruct((B, _NPIX, C), jnp.bfloat16),    # conv out
            jax.ShapeDtypeStruct((B, 1, C), jnp.float32),         # per-image mean
            jax.ShapeDtypeStruct((B, 1, C), jnp.float32),         # per-image M2
        ),
        grid=(B,),
        in_specs=[
            pl.BlockSpec((1, _P_PAD, Din), lambda b: (b, 0, 0)),
            pl.BlockSpec((Din, C), lambda b: (0, 0)),
            pl.BlockSpec((1, C), lambda b: (0, 0)),
            pl.BlockSpec((_TAPS * C, C), lambda b: (0, 0)),        # resident conv weight
        ],
        out_specs=(
            pl.BlockSpec((1, _P_PAD, C), lambda b: (b, 0, 0)),
            pl.BlockSpec((1, _NPIX, C), lambda b: (b, 0, 0)),
            pl.BlockSpec((1, 1, C), lambda b: (b, 0, 0)),
            pl.BlockSpec((1, 1, C), lambda b: (b, 0, 0)),
        ),
        scratch_shapes=[
            pltpu.VMEM((_HBUF_ROWS, C), jnp.float32),              # zero-haloed spatial buf
            pltpu.VMEM((_NPIX, _TAPS * C), jnp.bfloat16),          # im2col slab
        ],
        compiler_params=pltpu.CompilerParams(
            dimension_semantics=("parallel",)),
        cost_estimate=pl.CostEstimate(flops=int(flops1), transcendentals=0,
                                      bytes_accessed=int(bytes1)),
    )(x_p, pp["w1"], pp["b1"], pp["wc"])

    # -------- BN finalize (tiny XLA glue; stable parallel-variance combine) --
    mu = jnp.mean(mu_b, axis=0)                                    # (1, C)
    m2 = jnp.sum(m2_b, axis=0) + float(_NPIX) * jnp.sum((mu_b - mu) ** 2, axis=0)
    var = m2 / float(B * _NPIX)                                    # biased (training-mode)
    scale = pp["gamma"] * jax.lax.rsqrt(var + _BN_EPS)
    shift = pp["beta"] - mu * scale

    flops2 = B * 2 * _P_PAD * C * Dp
    bytes2 = (B * (_P_PAD * C * 2 + _NPIX * C * 2 + _P_PAD * Dp * 4)
              + pp["w2"].size * 2 + pp["b2"].size * 4 + 2 * C * 4)

    # -------- kernel 2: BN + ReLU + concat/residual + fc2 (parallel over B) --
    out_p = pl.pallas_call(
        _bn_res_fc2_kernel,
        out_shape=jax.ShapeDtypeStruct((B, _P_PAD, Dp), jnp.float32),
        grid=(B,),
        in_specs=[
            pl.BlockSpec((1, _P_PAD, C), lambda b: (b, 0, 0)),
            pl.BlockSpec((1, _NPIX, C), lambda b: (b, 0, 0)),
            pl.BlockSpec((1, C), lambda b: (0, 0)),
            pl.BlockSpec((1, C), lambda b: (0, 0)),
            pl.BlockSpec((C, Dp), lambda b: (0, 0)),
            pl.BlockSpec((1, Dp), lambda b: (0, 0)),
        ],
        out_specs=pl.BlockSpec((1, _P_PAD, Dp), lambda b: (b, 0, 0)),
        scratch_shapes=[pltpu.VMEM((_P_PAD, C), jnp.float32)],     # x0 assembly buf
        compiler_params=pltpu.CompilerParams(
            dimension_semantics=("parallel",)),
        cost_estimate=pl.CostEstimate(flops=int(flops2), transcendentals=0,
                                      bytes_accessed=int(bytes2)),
    )(h, cs, scale, shift, pp["w2"], pp["b2"])

    return out_p[:, :P, :D]


# ---------------------------------------------------------------------------
# Pure-JAX f32 reference for verification (includes the conv bias + real BN)
# ---------------------------------------------------------------------------
def adapterconv_reference(x, params):
    B, P, D = x.shape
    Dh = params["w1"].shape[1]
    h = jnp.maximum(x @ params["w1"] + params["b1"], 0.0)
    hs = h[:, 1:, :].reshape(B, 16, 16, Dh)
    cs = jax.lax.conv_general_dilated(
        hs, params["wc"], (1, 1), "SAME",
        dimension_numbers=("NHWC", "HWIO", "NHWC"),
    ) + params["bc"]
    mean = cs.mean(axis=(0, 1, 2), keepdims=True)
    var = ((cs - mean) ** 2).mean(axis=(0, 1, 2), keepdims=True)
    cs = (cs - mean) * jax.lax.rsqrt(var + _BN_EPS) * params["gamma"] + params["beta"]
    cs = jnp.maximum(cs, 0.0).reshape(B, 256, Dh)
    x0 = jnp.concatenate([h[:, :1, :], cs], axis=1) + h
    return x0 @ params["w2"] + params["b2"]


if __name__ == "__main__":
    B = 2
    D = 32                      # D_features
    Dh = int(D * 0.75)          # D_hidden_features = 24
    P = _P_TOKENS               # 257 tokens (cls + 16x16 patches)

    key = jax.random.PRNGKey(0)
    ks = jax.random.split(key, 8)
    params = {
        "w1": 0.1 * jax.random.normal(ks[0], (D, Dh), jnp.float32),
        "b1": 0.1 * jax.random.normal(ks[1], (Dh,), jnp.float32),
        "wc": 0.1 * jax.random.normal(ks[2], (5, 5, Dh, Dh), jnp.float32),  # HWIO
        "bc": 0.1 * jax.random.normal(ks[3], (Dh,), jnp.float32),
        "gamma": 1.0 + 0.1 * jax.random.normal(ks[4], (Dh,), jnp.float32),
        "beta": 0.1 * jax.random.normal(ks[5], (Dh,), jnp.float32),
        "w2": 0.1 * jax.random.normal(ks[6], (Dh, D), jnp.float32),
        "b2": 0.1 * jax.random.normal(ks[7], (D,), jnp.float32),
    }
    x = jax.random.normal(key, (B, P, D), jnp.float32)

    pp = prepare_params(params)
    out = jax.block_until_ready(adapterconv_forward(x, pp))
    ref = jax.block_until_ready(adapterconv_reference(x, params))

    # bf16 MXU operands (vs f32 reference) -> loosened tolerance.
    np.testing.assert_allclose(np.asarray(out), np.asarray(ref), rtol=5e-2, atol=5e-2)
    print("KERNEL_OK")
</pallas_src>

<mosaic_0001>
module attributes {stable_mosaic.version = 11 : i64} {
  func.func @_fc1_conv_kernel(%arg0: i32, %arg1: memref<1x264x128xbf16, #tpu.memory_space<vmem>>, %arg2: memref<128x128xbf16, #tpu.memory_space<vmem>>, %arg3: memref<1x128xf32, #tpu.memory_space<vmem>>, %arg4: memref<3200x128xbf16, #tpu.memory_space<vmem>>, %arg5: memref<1x264x128xbf16, #tpu.memory_space<vmem>>, %arg6: memref<1x256x128xbf16, #tpu.memory_space<vmem>>, %arg7: memref<1x1x128xf32, #tpu.memory_space<vmem>>, %arg8: memref<1x1x128xf32, #tpu.memory_space<vmem>>, %arg9: memref<336x128xf32, #tpu.memory_space<vmem>>, %arg10: memref<256x3200xbf16, #tpu.memory_space<vmem>>) attributes {dimension_semantics = [#tpu.dimension_semantics<parallel>], iteration_bounds = array<i64: 2>, scalar_prefetch = 0 : i64, scratch_operands = 2 : i64, tpu.core_type = #tpu.core_type<tc>, window_params = [{transform_indices = @transform_0, window_bounds = array<i64: 1, 264, 128>}, {pipeline_mode = #tpu.pipeline_mode<synchronous>, transform_indices = @transform_1, window_bounds = array<i64: 128, 128>}, {pipeline_mode = #tpu.pipeline_mode<synchronous>, transform_indices = @transform_2, window_bounds = array<i64: 1, 128>}, {pipeline_mode = #tpu.pipeline_mode<synchronous>, transform_indices = @transform_3, window_bounds = array<i64: 3200, 128>}, {transform_indices = @transform_4, window_bounds = array<i64: 1, 264, 128>}, {transform_indices = @transform_5, window_bounds = array<i64: 1, 256, 128>}, {transform_indices = @transform_6, window_bounds = array<i64: 1, 1, 128>}, {transform_indices = @transform_7, window_bounds = array<i64: 1, 1, 128>}]} {
    %c0 = arith.constant 0 : index
    %c0_0 = arith.constant 0 : index
    %c0_1 = arith.constant 0 : index
    %0 = vector.load %arg1[%c0, %c0_0, %c0_1] : memref<1x264x128xbf16, #tpu.memory_space<vmem>>, vector<1x264x128xbf16>
    %1 = vector.shape_cast %0 : vector<1x264x128xbf16> to vector<264x128xbf16>
    %c0_2 = arith.constant 0 : index
    %c0_3 = arith.constant 0 : index
    %2 = vector.load %arg2[%c0_2, %c0_3] : memref<128x128xbf16, #tpu.memory_space<vmem>>, vector<128x128xbf16>
    %cst = arith.constant dense<0.000000e+00> : vector<264x128xf32>
    %3 = tpu.matmul %1, %2, %cst {dimension_numbers = #tpu.dot_dimension_numbers<[1], [0], [0], [1], [0, 0, 1, 1], [], []>} : vector<264x128xbf16>, vector<128x128xbf16>, vector<264x128xf32> -> vector<264x128xf32>
    %c0_4 = arith.constant 0 : index
    %c0_5 = arith.constant 0 : index
    %4 = vector.load %arg3[%c0_4, %c0_5] : memref<1x128xf32, #tpu.memory_space<vmem>>, vector<1x128xf32>
    %5 = vector.broadcast %4 : vector<1x128xf32> to vector<264x128xf32>
    %6 = arith.addf %3, %5 : vector<264x128xf32>
    %cst_6 = arith.constant 0.000000e+00 : f32
    %7 = vector.broadcast %cst_6 : f32 to vector<264x128xf32>
    %8 = arith.maximumf %6, %7 : vector<264x128xf32>
    %9 = arith.truncf %8 : vector<264x128xf32> to vector<264x128xbf16>
    %c0_7 = arith.constant 0 : index
    %c0_8 = arith.constant 0 : index
    %c0_9 = arith.constant 0 : index
    %10 = vector.load %arg5[%c0_7, %c0_8, %c0_9] : memref<1x264x128xbf16, #tpu.memory_space<vmem>>, vector<1x264x128xbf16>
    %11 = vector.shape_cast %10 : vector<1x264x128xbf16> to vector<264x128xbf16>
    %12 = vector.shape_cast %9 : vector<264x128xbf16> to vector<1x264x128xbf16>
    tpu.vector_store %arg5[%c0_7, %c0_8, %c0_9], %12 {strides = array<i32>} : memref<1x264x128xbf16, #tpu.memory_space<vmem>>, vector<1x264x128xbf16>,
    %cst_10 = arith.constant 0.000000e+00 : f32
    %13 = vector.broadcast %cst_10 : f32 to vector<40x128xf32>
    %c0_11 = arith.constant 0 : index
    %c0_12 = arith.constant 0 : index
    %14 = vector.load %arg9[%c0_11, %c0_12] : memref<336x128xf32, #tpu.memory_space<vmem>>, vector<40x128xf32>
    tpu.vector_store %arg9[%c0_11, %c0_12], %13 {strides = array<i32>} : memref<336x128xf32, #tpu.memory_space<vmem>>, vector<40x128xf32>,
    %cst_13 = arith.constant 0.000000e+00 : f32
    %15 = vector.broadcast %cst_13 : f32 to vector<40x128xf32>
    %c296 = arith.constant 296 : index
    %c0_14 = arith.constant 0 : index
    %16 = vector.load %arg9[%c296, %c0_14] : memref<336x128xf32, #tpu.memory_space<vmem>>, vector<40x128xf32>
    tpu.vector_store %arg9[%c296, %c0_14], %15 {strides = array<i32>} : memref<336x128xf32, #tpu.memory_space<vmem>>, vector<40x128xf32>,
    %17 = vector.extract_strided_slice %8 {offsets = [1, 0], sizes = [256, 128], strides = [1, 1]} : vector<264x128xf32> to vector<256x128xf32>
    %c40 = arith.constant 40 : index
    %c0_15 = arith.constant 0 : index
    %18 = vector.load %arg9[%c40, %c0_15] : memref<336x128xf32, #tpu.memory_space<vmem>>, vector<256x128xf32>
    tpu.vector_store %arg9[%c40, %c0_15], %17 {strides = array<i32>} : memref<336x128xf32, #tpu.memory_space<vmem>>, vector<256x128xf32>,
    %19 = tpu.iota {dimensions = array<i32: 0>} : vector<256x128xi32>
    %c16_i32 = arith.constant 16 : i32
    %c0_i32 = arith.constant 0 : i32
    %20 = arith.cmpi eq, %c16_i32, %c0_i32 : i32
    %c1_i32 = arith.constant 1 : i32
    %21 = arith.select %20, %c1_i32, %c16_i32 : i32
    %22 = vector.broadcast %21 : i32 to vector<256x128xi32>
    %23 = arith.remsi %19, %22 : vector<256x128xi32>
    %c0_i32_16 = arith.constant 0 : i32
    %24 = vector.broadcast %c0_i32_16 : i32 to vector<256x128xi32>
    %25 = arith.cmpi ne, %23, %24 : vector<256x128xi32>
    %c0_i32_17 = arith.constant 0 : i32
    %26 = vector.broadcast %c0_i32_17 : i32 to vector<256x128xi32>
    %27 = arith.cmpi slt, %23, %26 : vector<256x128xi32>
    %c0_i32_18 = arith.constant 0 : i32
    %28 = arith.cmpi slt, %21, %c0_i32_18 : i32
    %29 = vector.broadcast %28 : i1 to vector<256x128xi1>
    %30 = vector.broadcast %29 : vector<256x128xi1> to vector<256x128xi1>
    %31 = arith.xori %27, %30 : vector<256x128xi1>
    %32 = arith.andi %31, %25 : vector<256x128xi1>
    %33 = vector.broadcast %21 : i32 to vector<256x128xi32>
    %34 = arith.addi %23, %33 : vector<256x128xi32>
    %35 = arith.select %32, %34, %23 : vector<256x128xi1>, vector<256x128xi32>
    %c-2_i32 = arith.constant -2 : i32
    %36 = vector.broadcast %c-2_i32 : i32 to vector<256x128xi32>
    %37 = arith.addi %35, %36 : vector<256x128xi32>
    %c0_i32_19 = arith.constant 0 : i32
    %38 = vector.broadcast %c0_i32_19 : i32 to vector<256x128xi32>
    %39 = arith.cmpi sge, %37, %38 : vector<256x128xi32>
    %c-2_i32_20 = arith.constant -2 : i32
    %40 = vector.broadcast %c-2_i32_20 : i32 to vector<256x128xi32>
    %41 = arith.addi %35, %40 : vector<256x128xi32>
    %c16_i32_21 = arith.constant 16 : i32
    %42 = vector.broadcast %c16_i32_21 : i32 to vector<256x128xi32>
    %43 = arith.cmpi slt, %41, %42 : vector<256x128xi32>
    %44 = arith.andi %39, %43 : vector<256x128xi1>
    %c-1_i32 = arith.constant -1 : i32
    %45 = vector.broadcast %c-1_i32 : i32 to vector<256x128xi32>
    %46 = arith.addi %35, %45 : vector<256x128xi32>
    %c0_i32_22 = arith.constant 0 : i32
    %47 = vector.broadcast %c0_i32_22 : i32 to vector<256x128xi32>
    %48 = arith.cmpi sge, %46, %47 : vector<256x128xi32>
    %c-1_i32_23 = arith.constant -1 : i32
    %49 = vector.broadcast %c-1_i32_23 : i32 to vector<256x128xi32>
    %50 = arith.addi %35, %49 : vector<256x128xi32>
    %c16_i32_24 = arith.constant 16 : i32
    %51 = vector.broadcast %c16_i32_24 : i32 to vector<256x128xi32>
    %52 = arith.cmpi slt, %50, %51 : vector<256x128xi32>
    %53 = arith.andi %48, %52 : vector<256x128xi1>
    %c1_i32_25 = arith.constant 1 : i32
    %54 = vector.broadcast %c1_i32_25 : i32 to vector<256x128xi32>
    %55 = arith.addi %35, %54 : vector<256x128xi32>
    %c0_i32_26 = arith.constant 0 : i32
    %56 = vector.broadcast %c0_i32_26 : i32 to vector<256x128xi32>
    %57 = arith.cmpi sge, %55, %56 : vector<256x128xi32>
    %c1_i32_27 = arith.constant 1 : i32
    %58 = vector.broadcast %c1_i32_27 : i32 to vector<256x128xi32>
    %59 = arith.addi %35, %58 : vector<256x128xi32>
    %c16_i32_28 = arith.constant 16 : i32
    %60 = vector.broadcast %c16_i32_28 : i32 to vector<256x128xi32>
    %61 = arith.cmpi slt, %59, %60 : vector<256x128xi32>
    %62 = arith.andi %57, %61 : vector<256x128xi1>
    %c2_i32 = arith.constant 2 : i32
    %63 = vector.broadcast %c2_i32 : i32 to vector<256x128xi32>
    %64 = arith.addi %35, %63 : vector<256x128xi32>
    %c0_i32_29 = arith.constant 0 : i32
    %65 = vector.broadcast %c0_i32_29 : i32 to vector<256x128xi32>
    %66 = arith.cmpi sge, %64, %65 : vector<256x128xi32>
    %c2_i32_30 = arith.constant 2 : i32
    %67 = vector.broadcast %c2_i32_30 : i32 to vector<256x128xi32>
    %68 = arith.addi %35, %67 : vector<256x128xi32>
    %c16_i32_31 = arith.constant 16 : i32
    %69 = vector.broadcast %c16_i32_31 : i32 to vector<256x128xi32>
    %70 = arith.cmpi slt, %68, %69 : vector<256x128xi32>
    %71 = arith.andi %66, %70 : vector<256x128xi1>
    %c6 = arith.constant 6 : index
    %c0_32 = arith.constant 0 : index
    %72 = vector.load %arg9[%c6, %c0_32] : memref<336x128xf32, #tpu.memory_space<vmem>>, vector<256x128xf32>
    %cst_33 = arith.constant 0.000000e+00 : f32
    %73 = vector.broadcast %cst_33 : f32 to vector<256x128xf32>
    %74 = arith.select %44, %72, %73 : vector<256x128xi1>, vector<256x128xf32>
    %75 = arith.truncf %74 : vector<256x128xf32> to vector<256x128xbf16>
    %c0_34 = arith.constant 0 : index
    %c0_35 = arith.constant 0 : index
    %76 = vector.load %arg10[%c0_34, %c0_35] : memref<256x3200xbf16, #tpu.memory_space<vmem>>, vector<256x128xbf16>
    tpu.vector_store %arg10[%c0_34, %c0_35], %75 {strides = array<i32>} : memref<256x3200xbf16, #tpu.memory_space<vmem>>, vector<256x128xbf16>,
    %c7 = arith.constant 7 : index
    %c0_36 = arith.constant 0 : index
    %77 = vector.load %arg9[%c7, %c0_36] : memref<336x128xf32, #tpu.memory_space<vmem>>, vector<256x128xf32>
    %cst_37 = arith.constant 0.000000e+00 : f32
    %78 = vector.broadcast %cst_37 : f32 to vector<256x128xf32>
    %79 = arith.select %53, %77, %78 : vector<256x128xi1>, vector<256x128xf32>
    %80 = arith.truncf %79 : vector<256x128xf32> to vector<256x128xbf16>
    %c0_38 = arith.constant 0 : index
    %c128 = arith.constant 128 : index
    %81 = vector.load %arg10[%c0_38, %c128] : memref<256x3200xbf16, #tpu.memory_space<vmem>>, vector<256x128xbf16>
    tpu.vector_store %arg10[%c0_38, %c128], %80 {strides = array<i32>} : memref<256x3200xbf16, #tpu.memory_space<vmem>>, vector<256x128xbf16>,
    %c8 = arith.constant 8 : index
    %c0_39 = arith.constant 0 : index
    %82 = vector.load %arg9[%c8, %c0_39] : memref<336x128xf32, #tpu.memory_space<vmem>>, vector<256x128xf32>
    %83 = arith.truncf %82 : vector<256x128xf32> to vector<256x128xbf16>
    %c0_40 = arith.constant 0 : index
    %c256 = arith.constant 256 : index
    %84 = vector.load %arg10[%c0_40, %c256] : memref<256x3200xbf16, #tpu.memory_space<vmem>>, vector<256x128xbf16>
    tpu.vector_store %arg10[%c0_40, %c256], %83 {strides = array<i32>} : memref<256x3200xbf16, #tpu.memory_space<vmem>>, vector<256x128xbf16>,
    %c9 = arith.constant 9 : index
    %c0_41 = arith.constant 0 : index
    %85 = vector.load %arg9[%c9, %c0_41] : memref<336x128xf32, #tpu.memory_space<vmem>>, vector<256x128xf32>
    %cst_42 = arith.constant 0.000000e+00 : f32
    %86 = vector.broadcast %cst_42 : f32 to vector<256x128xf32>
    %87 = arith.select %62, %85, %86 : vector<256x128xi1>, vector<256x128xf32>
    %88 = arith.truncf %87 : vector<256x128xf32> to vector<256x128xbf16>
    %c0_43 = arith.constant 0 : index
    %c384 = arith.constant 384 : index
    %89 = vector.load %arg10[%c0_43, %c384] : memref<256x3200xbf16, #tpu.memory_space<vmem>>, vector<256x128xbf16>
    tpu.vector_store %arg10[%c0_43, %c384], %88 {strides = array<i32>} : memref<256x3200xbf16, #tpu.memory_space<vmem>>, vector<256x128xbf16>,
    %c10 = arith.constant 10 : index
    %c0_44 = arith.constant 0 : index
    %90 = vector.load %arg9[%c10, %c0_44] : memref<336x128xf32, #tpu.memory_space<vmem>>, vector<256x128xf32>
    %cst_45 = arith.constant 0.000000e+00 : f32
    %91 = vector.broadcast %cst_45 : f32 to vector<256x128xf32>
    %92 = arith.select %71, %90, %91 : vector<256x128xi1>, vector<256x128xf32>
    %93 = arith.truncf %92 : vector<256x128xf32> to vector<256x128xbf16>
    %c0_46 = arith.constant 0 : index
    %c512 = arith.constant 512 : index
    %94 = vector.load %arg10[%c0_46, %c512] : memref<256x3200xbf16, #tpu.memory_space<vmem>>, vector<256x128xbf16>
    tpu.vector_store %arg10[%c0_46, %c512], %93 {strides = array<i32>} : memref<256x3200xbf16, #tpu.memory_space<vmem>>, vector<256x128xbf16>,
    %c22 = arith.constant 22 : index
    %c0_47 = arith.constant 0 : index
    %95 = vector.load %arg9[%c22, %c0_47] : memref<336x128xf32, #tpu.memory_space<vmem>>, vector<256x128xf32>
    %cst_48 = arith.constant 0.000000e+00 : f32
    %96 = vector.broadcast %cst_48 : f32 to vector<256x128xf32>
    %97 = arith.select %44, %95, %96 : vector<256x128xi1>, vector<256x128xf32>
    %98 = arith.truncf %97 : vector<256x128xf32> to vector<256x128xbf16>
    %c0_49 = arith.constant 0 : index
    %c640 = arith.constant 640 : index
    %99 = vector.load %arg10[%c0_49, %c640] : memref<256x3200xbf16, #tpu.memory_space<vmem>>, vector<256x128xbf16>
    tpu.vector_store %arg10[%c0_49, %c640], %98 {strides = array<i32>} : memref<256x3200xbf16, #tpu.memory_space<vmem>>, vector<256x128xbf16>,
    %c23 = arith.constant 23 : index
    %c0_50 = arith.constant 0 : index
    %100 = vector.load %arg9[%c23, %c0_50] : memref<336x128xf32, #tpu.memory_space<vmem>>, vector<256x128xf32>
    %cst_51 = arith.constant 0.000000e+00 : f32
    %101 = vector.broadcast %cst_51 : f32 to vector<256x128xf32>
    %102 = arith.select %53, %100, %101 : vector<256x128xi1>, vector<256x128xf32>
    %103 = arith.truncf %102 : vector<256x128xf32> to vector<256x128xbf16>
    %c0_52 = arith.constant 0 : index
    %c768 = arith.constant 768 : index
    %104 = vector.load %arg10[%c0_52, %c768] : memref<256x3200xbf16, #tpu.memory_space<vmem>>, vector<256x128xbf16>
    tpu.vector_store %arg10[%c0_52, %c768], %103 {strides = array<i32>} : memref<256x3200xbf16, #tpu.memory_space<vmem>>, vector<256x128xbf16>,
    %c24 = arith.constant 24 : index
    %c0_53 = arith.constant 0 : index
    %105 = vector.load %arg9[%c24, %c0_53] : memref<336x128xf32, #tpu.memory_space<vmem>>, vector<256x128xf32>
    %106 = arith.truncf %105 : vector<256x128xf32> to vector<256x128xbf16>
    %c0_54 = arith.constant 0 : index
    %c896 = arith.constant 896 : index
    %107 = vector.load %arg10[%c0_54, %c896] : memref<256x3200xbf16, #tpu.memory_space<vmem>>, vector<256x128xbf16>
    tpu.vector_store %arg10[%c0_54, %c896], %106 {strides = array<i32>} : memref<256x3200xbf16, #tpu.memory_space<vmem>>, vector<256x128xbf16>,
    %c25 = arith.constant 25 : index
    %c0_55 = arith.constant 0 : index
    %108 = vector.load %arg9[%c25, %c0_55] : memref<336x128xf32, #tpu.memory_space<vmem>>, vector<256x128xf32>
    %cst_56 = arith.constant 0.000000e+00 : f32
    %109 = vector.broadcast %cst_56 : f32 to vector<256x128xf32>
    %110 = arith.select %62, %108, %109 : vector<256x128xi1>, vector<256x128xf32>
    %111 = arith.truncf %110 : vector<256x128xf32> to vector<256x128xbf16>
    %c0_57 = arith.constant 0 : index
    %c1024 = arith.constant 1024 : index
    %112 = vector.load %arg10[%c0_57, %c1024] : memref<256x3200xbf16, #tpu.memory_space<vmem>>, vector<256x128xbf16>
    tpu.vector_store %arg10[%c0_57, %c1024], %111 {strides = array<i32>} : memref<256x3200xbf16, #tpu.memory_space<vmem>>, vector<256x128xbf16>,
    %c26 = arith.constant 26 : index
    %c0_58 = arith.constant 0 : index
    %113 = vector.load %arg9[%c26, %c0_58] : memref<336x128xf32, #tpu.memory_space<vmem>>, vector<256x128xf32>
    %cst_59 = arith.constant 0.000000e+00 : f32
    %114 = vector.broadcast %cst_59 : f32 to vector<256x128xf32>
    %115 = arith.select %71, %113, %114 : vector<256x128xi1>, vector<256x128xf32>
    %116 = arith.truncf %115 : vector<256x128xf32> to vector<256x128xbf16>
    %c0_60 = arith.constant 0 : index
    %c1152 = arith.constant 1152 : index
    %117 = vector.load %arg10[%c0_60, %c1152] : memref<256x3200xbf16, #tpu.memory_space<vmem>>, vector<256x128xbf16>
    tpu.vector_store %arg10[%c0_60, %c1152], %116 {strides = array<i32>} : memref<256x3200xbf16, #tpu.memory_space<vmem>>, vector<256x128xbf16>,
    %c38 = arith.constant 38 : index
    %c0_61 = arith.constant 0 : index
    %118 = vector.load %arg9[%c38, %c0_61] : memref<336x128xf32, #tpu.memory_space<vmem>>, vector<256x128xf32>
    %cst_62 = arith.constant 0.000000e+00 : f32
    %119 = vector.broadcast %cst_62 : f32 to vector<256x128xf32>
    %120 = arith.select %44, %118, %119 : vector<256x128xi1>, vector<256x128xf32>
    %121 = arith.truncf %120 : vector<256x128xf32> to vector<256x128xbf16>
    %c0_63 = arith.constant 0 : index
    %c1280 = arith.constant 1280 : index
    %122 = vector.load %arg10[%c0_63, %c1280] : memref<256x3200xbf16, #tpu.memory_space<vmem>>, vector<256x128xbf16>
    tpu.vector_store %arg10[%c0_63, %c1280], %121 {strides = array<i32>} : memref<256x3200xbf16, #tpu.memory_space<vmem>>, vector<256x128xbf16>,
    %c39 = arith.constant 39 : index
    %c0_64 = arith.constant 0 : index
    %123 = vector.load %arg9[%c39, %c0_64] : memref<336x128xf32, #tpu.memory_space<vmem>>, vector<256x128xf32>
    %cst_65 = arith.constant 0.000000e+00 : f32
    %124 = vector.broadcast %cst_65 : f32 to vector<256x128xf32>
    %125 = arith.select %53, %123, %124 : vector<256x128xi1>, vector<256x128xf32>
    %126 = arith.truncf %125 : vector<256x128xf32> to vector<256x128xbf16>
    %c0_66 = arith.constant 0 : index
    %c1408 = arith.constant 1408 : index
    %127 = vector.load %arg10[%c0_66, %c1408] : memref<256x3200xbf16, #tpu.memory_space<vmem>>, vector<256x128xbf16>
    tpu.vector_store %arg10[%c0_66, %c1408], %126 {strides = array<i32>} : memref<256x3200xbf16, #tpu.memory_space<vmem>>, vector<256x128xbf16>,
    %c40_67 = arith.constant 40 : index
    %c0_68 = arith.constant 0 : index
    %128 = vector.load %arg9[%c40_67, %c0_68] : memref<336x128xf32, #tpu.memory_space<vmem>>, vector<256x128xf32>
    %129 = arith.truncf %128 : vector<256x128xf32> to vector<256x128xbf16>
    %c0_69 = arith.constant 0 : index
    %c1536 = arith.constant 1536 : index
    %130 = vector.load %arg10[%c0_69, %c1536] : memref<256x3200xbf16, #tpu.memory_space<vmem>>, vector<256x128xbf16>
    tpu.vector_store %arg10[%c0_69, %c1536], %129 {strides = array<i32>} : memref<256x3200xbf16, #tpu.memory_space<vmem>>, vector<256x128xbf16>,
    %c41 = arith.constant 41 : index
    %c0_70 = arith.constant 0 : index
    %131 = vector.load %arg9[%c41, %c0_70] : memref<336x128xf32, #tpu.memory_space<vmem>>, vector<256x128xf32>
    %cst_71 = arith.constant 0.000000e+00 : f32
    %132 = vector.broadcast %cst_71 : f32 to vector<256x128xf32>
    %133 = arith.select %62, %131, %132 : vector<256x128xi1>, vector<256x128xf32>
    %134 = arith.truncf %133 : vector<256x128xf32> to vector<256x128xbf16>
    %c0_72 = arith.constant 0 : index
    %c1664 = arith.constant 1664 : index
    %135 = vector.load %arg10[%c0_72, %c1664] : memref<256x3200xbf16, #tpu.memory_space<vmem>>, vector<256x128xbf16>
    tpu.vector_store %arg10[%c0_72, %c1664], %134 {strides = array<i32>} : memref<256x3200xbf16, #tpu.memory_space<vmem>>, vector<256x128xbf16>,
    %c42 = arith.constant 42 : index
    %c0_73 = arith.constant 0 : index
    %136 = vector.load %arg9[%c42, %c0_73] : memref<336x128xf32, #tpu.memory_space<vmem>>, vector<256x128xf32>
    %cst_74 = arith.constant 0.000000e+00 : f32
    %137 = vector.broadcast %cst_74 : f32 to vector<256x128xf32>
    %138 = arith.select %71, %136, %137 : vector<256x128xi1>, vector<256x128xf32>
    %139 = arith.truncf %138 : vector<256x128xf32> to vector<256x128xbf16>
    %c0_75 = arith.constant 0 : index
    %c1792 = arith.constant 1792 : index
    %140 = vector.load %arg10[%c0_75, %c1792] : memref<256x3200xbf16, #tpu.memory_space<vmem>>, vector<256x128xbf16>
    tpu.vector_store %arg10[%c0_75, %c1792], %139 {strides = array<i32>} : memref<256x3200xbf16, #tpu.memory_space<vmem>>, vector<256x128xbf16>,
    %c54 = arith.constant 54 : index
    %c0_76 = arith.constant 0 : index
    %141 = vector.load %arg9[%c54, %c0_76] : memref<336x128xf32, #tpu.memory_space<vmem>>, vector<256x128xf32>
    %cst_77 = arith.constant 0.000000e+00 : f32
    %142 = vector.broadcast %cst_77 : f32 to vector<256x128xf32>
    %143 = arith.select %44, %141, %142 : vector<256x128xi1>, vector<256x128xf32>
    %144 = arith.truncf %143 : vector<256x128xf32> to vector<256x128xbf16>
    %c0_78 = arith.constant 0 : index
    %c1920 = arith.constant 1920 : index
    %145 = vector.load %arg10[%c0_78, %c1920] : memref<256x3200xbf16, #tpu.memory_space<vmem>>, vector<256x128xbf16>
    tpu.vector_store %arg10[%c0_78, %c1920], %144 {strides = array<i32>} : memref<256x3200xbf16, #tpu.memory_space<vmem>>, vector<256x128xbf16>,
    %c55 = arith.constant 55 : index
    %c0_79 = arith.constant 0 : index
    %146 = vector.load %arg9[%c55, %c0_79] : memref<336x128xf32, #tpu.memory_space<vmem>>, vector<256x128xf32>
    %cst_80 = arith.constant 0.000000e+00 : f32
    %147 = vector.broadcast %cst_80 : f32 to vector<256x128xf32>
    %148 = arith.select %53, %146, %147 : vector<256x128xi1>, vector<256x128xf32>
    %149 = arith.truncf %148 : vector<256x128xf32> to vector<256x128xbf16>
    %c0_81 = arith.constant 0 : index
    %c2048 = arith.constant 2048 : index
    %150 = vector.load %arg10[%c0_81, %c2048] : memref<256x3200xbf16, #tpu.memory_space<vmem>>, vector<256x128xbf16>
    tpu.vector_store %arg10[%c0_81, %c2048], %149 {strides = array<i32>} : memref<256x3200xbf16, #tpu.memory_space<vmem>>, vector<256x128xbf16>,
    %c56 = arith.constant 56 : index
    %c0_82 = arith.constant 0 : index
    %151 = vector.load %arg9[%c56, %c0_82] : memref<336x128xf32, #tpu.memory_space<vmem>>, vector<256x128xf32>
    %152 = arith.truncf %151 : vector<256x128xf32> to vector<256x128xbf16>
    %c0_83 = arith.constant 0 : index
    %c2176 = arith.constant 2176 : index
    %153 = vector.load %arg10[%c0_83, %c2176] : memref<256x3200xbf16, #tpu.memory_space<vmem>>, vector<256x128xbf16>
    tpu.vector_store %arg10[%c0_83, %c2176], %152 {strides = array<i32>} : memref<256x3200xbf16, #tpu.memory_space<vmem>>, vector<256x128xbf16>,
    %c57 = arith.constant 57 : index
    %c0_84 = arith.constant 0 : index
    %154 = vector.load %arg9[%c57, %c0_84] : memref<336x128xf32, #tpu.memory_space<vmem>>, vector<256x128xf32>
    %cst_85 = arith.constant 0.000000e+00 : f32
    %155 = vector.broadcast %cst_85 : f32 to vector<256x128xf32>
    %156 = arith.select %62, %154, %155 : vector<256x128xi1>, vector<256x128xf32>
    %157 = arith.truncf %156 : vector<256x128xf32> to vector<256x128xbf16>
    %c0_86 = arith.constant 0 : index
    %c2304 = arith.constant 2304 : index
    %158 = vector.load %arg10[%c0_86, %c2304] : memref<256x3200xbf16, #tpu.memory_space<vmem>>, vector<256x128xbf16>
    tpu.vector_store %arg10[%c0_86, %c2304], %157 {strides = array<i32>} : memref<256x3200xbf16, #tpu.memory_space<vmem>>, vector<256x128xbf16>,
    %c58 = arith.constant 58 : index
    %c0_87 = arith.constant 0 : index
    %159 = vector.load %arg9[%c58, %c0_87] : memref<336x128xf32, #tpu.memory_space<vmem>>, vector<256x128xf32>
    %cst_88 = arith.constant 0.000000e+00 : f32
    %160 = vector.broadcast %cst_88 : f32 to vector<256x128xf32>
    %161 = arith.select %71, %159, %160 : vector<256x128xi1>, vector<256x128xf32>
    %162 = arith.truncf %161 : vector<256x128xf32> to vector<256x128xbf16>
    %c0_89 = arith.constant 0 : index
    %c2432 = arith.constant 2432 : index
    %163 = vector.load %arg10[%c0_89, %c2432] : memref<256x3200xbf16, #tpu.memory_space<vmem>>, vector<256x128xbf16>
    tpu.vector_store %arg10[%c0_89, %c2432], %162 {strides = array<i32>} : memref<256x3200xbf16, #tpu.memory_space<vmem>>, vector<256x128xbf16>,
    %c70 = arith.constant 70 : index
    %c0_90 = arith.constant 0 : index
    %164 = vector.load %arg9[%c70, %c0_90] : memref<336x128xf32, #tpu.memory_space<vmem>>, vector<256x128xf32>
    %cst_91 = arith.constant 0.000000e+00 : f32
    %165 = vector.broadcast %cst_91 : f32 to vector<256x128xf32>
    %166 = arith.select %44, %164, %165 : vector<256x128xi1>, vector<256x128xf32>
    %167 = arith.truncf %166 : vector<256x128xf32> to vector<256x128xbf16>
    %c0_92 = arith.constant 0 : index
    %c2560 = arith.constant 2560 : index
    %168 = vector.load %arg10[%c0_92, %c2560] : memref<256x3200xbf16, #tpu.memory_space<vmem>>, vector<256x128xbf16>
    tpu.vector_store %arg10[%c0_92, %c2560], %167 {strides = array<i32>} : memref<256x3200xbf16, #tpu.memory_space<vmem>>, vector<256x128xbf16>,
    %c71 = arith.constant 71 : index
    %c0_93 = arith.constant 0 : index
    %169 = vector.load %arg9[%c71, %c0_93] : memref<336x128xf32, #tpu.memory_space<vmem>>, vector<256x128xf32>
    %cst_94 = arith.constant 0.000000e+00 : f32
    %170 = vector.broadcast %cst_94 : f32 to vector<256x128xf32>
    %171 = arith.select %53, %169, %170 : vector<256x128xi1>, vector<256x128xf32>
    %172 = arith.truncf %171 : vector<256x128xf32> to vector<256x128xbf16>
    %c0_95 = arith.constant 0 : index
    %c2688 = arith.constant 2688 : index
    %173 = vector.load %arg10[%c0_95, %c2688] : memref<256x3200xbf16, #tpu.memory_space<vmem>>, vector<256x128xbf16>
    tpu.vector_store %arg10[%c0_95, %c2688], %172 {strides = array<i32>} : memref<256x3200xbf16, #tpu.memory_space<vmem>>, vector<256x128xbf16>,
    %c72 = arith.constant 72 : index
    %c0_96 = arith.constant 0 : index
    %174 = vector.load %arg9[%c72, %c0_96] : memref<336x128xf32, #tpu.memory_space<vmem>>, vector<256x128xf32>
    %175 = arith.truncf %174 : vector<256x128xf32> to vector<256x128xbf16>
    %c0_97 = arith.constant 0 : index
    %c2816 = arith.constant 2816 : index
    %176 = vector.load %arg10[%c0_97, %c2816] : memref<256x3200xbf16, #tpu.memory_space<vmem>>, vector<256x128xbf16>
    tpu.vector_store %arg10[%c0_97, %c2816], %175 {strides = array<i32>} : memref<256x3200xbf16, #tpu.memory_space<vmem>>, vector<256x128xbf16>,
    %c73 = arith.constant 73 : index
    %c0_98 = arith.constant 0 : index
    %177 = vector.load %arg9[%c73, %c0_98] : memref<336x128xf32, #tpu.memory_space<vmem>>, vector<256x128xf32>
    %cst_99 = arith.constant 0.000000e+00 : f32
    %178 = vector.broadcast %cst_99 : f32 to vector<256x128xf32>
    %179 = arith.select %62, %177, %178 : vector<256x128xi1>, vector<256x128xf32>
    %180 = arith.truncf %179 : vector<256x128xf32> to vector<256x128xbf16>
    %c0_100 = arith.constant 0 : index
    %c2944 = arith.constant 2944 : index
    %181 = vector.load %arg10[%c0_100, %c2944] : memref<256x3200xbf16, #tpu.memory_space<vmem>>, vector<256x128xbf16>
    tpu.vector_store %arg10[%c0_100, %c2944], %180 {strides = array<i32>} : memref<256x3200xbf16, #tpu.memory_space<vmem>>, vector<256x128xbf16>,
    %c74 = arith.constant 74 : index
    %c0_101 = arith.constant 0 : index
    %182 = vector.load %arg9[%c74, %c0_101] : memref<336x128xf32, #tpu.memory_space<vmem>>, vector<256x128xf32>
    %cst_102 = arith.constant 0.000000e+00 : f32
    %183 = vector.broadcast %cst_102 : f32 to vector<256x128xf32>
    %184 = arith.select %71, %182, %183 : vector<256x128xi1>, vector<256x128xf32>
    %185 = arith.truncf %184 : vector<256x128xf32> to vector<256x128xbf16>
    %c0_103 = arith.constant 0 : index
    %c3072 = arith.constant 3072 : index
    %186 = vector.load %arg10[%c0_103, %c3072] : memref<256x3200xbf16, #tpu.memory_space<vmem>>, vector<256x128xbf16>
    tpu.vector_store %arg10[%c0_103, %c3072], %185 {strides = array<i32>} : memref<256x3200xbf16, #tpu.memory_space<vmem>>, vector<256x128xbf16>,
    %c0_104 = arith.constant 0 : index
    %c0_105 = arith.constant 0 : index
    %187 = vector.load %arg10[%c0_104, %c0_105] : memref<256x3200xbf16, #tpu.memory_space<vmem>>, vector<256x3200xbf16>
    %c0_106 = arith.constant 0 : index
    %c0_107 = arith.constant 0 : index
    %188 = vector.load %arg4[%c0_106, %c0_107] : memref<3200x128xbf16, #tpu.memory_space<vmem>>, vector<3200x128xbf16>
    %cst_108 = arith.constant dense<0.000000e+00> : vector<256x128xf32>
    %189 = tpu.matmul %187, %188, %cst_108 {dimension_numbers = #tpu.dot_dimension_numbers<[1], [0], [0], [1], [0, 0, 1, 1], [], []>} : vector<256x3200xbf16>, vector<3200x128xbf16>, vector<256x128xf32> -> vector<256x128xf32>
    %190 = arith.truncf %189 : vector<256x128xf32> to vector<256x128xbf16>
    %c0_109 = arith.constant 0 : index
    %c0_110 = arith.constant 0 : index
    %c0_111 = arith.constant 0 : index
    %191 = vector.load %arg6[%c0_109, %c0_110, %c0_111] : memref<1x256x128xbf16, #tpu.memory_space<vmem>>, vector<1x256x128xbf16>
    %192 = vector.shape_cast %191 : vector<1x256x128xbf16> to vector<256x128xbf16>
    %193 = vector.shape_cast %190 : vector<256x128xbf16> to vector<1x256x128xbf16>
    tpu.vector_store %arg6[%c0_109, %c0_110, %c0_111], %193 {strides = array<i32>} : memref<1x256x128xbf16, #tpu.memory_space<vmem>>, vector<1x256x128xbf16>,
    %cst_112 = arith.constant dense<0.000000e+00> : vector<128xf32>
    %194 = vector.multi_reduction <add>, %189, %cst_112 [0] : vector<256x128xf32> to vector<128xf32>
    %195 = vector.shape_cast %194 : vector<128xf32> to vector<1x128xf32>
    %cst_113 = arith.constant 3.906250e-03 : f32
    %196 = vector.broadcast %cst_113 : f32 to vector<1x128xf32>
    %197 = arith.mulf %195, %196 : vector<1x128xf32>
    %198 = vector.broadcast %197 : vector<1x128xf32> to vector<256x128xf32>
    %199 = arith.subf %189, %198 : vector<256x128xf32>
    %c0_114 = arith.constant 0 : index
    %c0_115 = arith.constant 0 : index
    %c0_116 = arith.constant 0 : index
    %200 = vector.load %arg7[%c0_114, %c0_115, %c0_116] : memref<1x1x128xf32, #tpu.memory_space<vmem>>, vector<1x1x128xf32>
    %201 = vector.shape_cast %200 : vector<1x1x128xf32> to vector<1x128xf32>
    %202 = vector.shape_cast %197 : vector<1x128xf32> to vector<1x1x128xf32>
    tpu.vector_store %arg7[%c0_114, %c0_115, %c0_116], %202 {strides = array<i32>} : memref<1x1x128xf32, #tpu.memory_space<vmem>>, vector<1x1x128xf32>,
    %203 = arith.mulf %199, %199 : vector<256x128xf32>
    %cst_117 = arith.constant dense<0.000000e+00> : vector<128xf32>
    %204 = vector.multi_reduction <add>, %203, %cst_117 [0] : vector<256x128xf32> to vector<128xf32>
    %205 = vector.shape_cast %204 : vector<128xf32> to vector<1x128xf32>
    %c0_118 = arith.constant 0 : index
    %c0_119 = arith.constant 0 : index
    %c0_120 = arith.constant 0 : index
    %206 = vector.load %arg8[%c0_118, %c0_119, %c0_120] : memref<1x1x128xf32, #tpu.memory_space<vmem>>, vector<1x1x128xf32>
    %207 = vector.shape_cast %206 : vector<1x1x128xf32> to vector<1x128xf32>
    %208 = vector.shape_cast %205 : vector<1x128xf32> to vector<1x1x128xf32>
    tpu.vector_store %arg8[%c0_118, %c0_119, %c0_120], %208 {strides = array<i32>} : memref<1x1x128xf32, #tpu.memory_space<vmem>>, vector<1x1x128xf32>,
    return
  }
  func.func @transform_0(%arg0: i32) -> (i32, i32, i32) {
    %c0_i32 = arith.constant 0 : i32
    %c0_i32_0 = arith.constant 0 : i32
    %c0_i32_1 = arith.constant 0 : i32
    return %arg0, %c0_i32, %c0_i32_0 : i32, i32, i32
  }
  func.func @transform_1(%arg0: i32) -> (i32, i32) {
    %c0_i32 = arith.constant 0 : i32
    %c0_i32_0 = arith.constant 0 : i32
    %c0_i32_1 = arith.constant 0 : i32
    return %c0_i32, %c0_i32_0 : i32, i32
  }
  func.func @transform_2(%arg0: i32) -> (i32, i32) {
    %c0_i32 = arith.constant 0 : i32
    %c0_i32_0 = arith.constant 0 : i32
    %c0_i32_1 = arith.constant 0 : i32
    return %c0_i32, %c0_i32_0 : i32, i32
  }
  func.func @transform_3(%arg0: i32) -> (i32, i32) {
    %c0_i32 = arith.constant 0 : i32
    %c0_i32_0 = arith.constant 0 : i32
    %c0_i32_1 = arith.constant 0 : i32
    return %c0_i32, %c0_i32_0 : i32, i32
  }
  func.func @transform_4(%arg0: i32) -> (i32, i32, i32) {
    %c0_i32 = arith.constant 0 : i32
    %c0_i32_0 = arith.constant 0 : i32
    %c0_i32_1 = arith.constant 0 : i32
    return %arg0, %c0_i32, %c0_i32_0 : i32, i32, i32
  }
  func.func @transform_5(%arg0: i32) -> (i32, i32, i32) {
    %c0_i32 = arith.constant 0 : i32
    %c0_i32_0 = arith.constant 0 : i32
    %c0_i32_1 = arith.constant 0 : i32
    return %arg0, %c0_i32, %c0_i32_0 : i32, i32, i32
  }
  func.func @transform_6(%arg0: i32) -> (i32, i32, i32) {
    %c0_i32 = arith.constant 0 : i32
    %c0_i32_0 = arith.constant 0 : i32
    %c0_i32_1 = arith.constant 0 : i32
    return %arg0, %c0_i32, %c0_i32_0 : i32, i32, i32
  }
  func.func @transform_7(%arg0: i32) -> (i32, i32, i32) {
    %c0_i32 = arith.constant 0 : i32
    %c0_i32_0 = arith.constant 0 : i32
    %c0_i32_1 = arith.constant 0 : i32
    return %arg0, %c0_i32, %c0_i32_0 : i32, i32, i32
  }
}

module attributes {stable_mosaic.version = 11 : i64} {
  func.func @_bn_res_fc2_kernel(%arg0: i32, %arg1: memref<1x264x128xbf16, #tpu.memory_space<vmem>>, %arg2: memref<1x256x128xbf16, #tpu.memory_space<vmem>>, %arg3: memref<1x128xf32, #tpu.memory_space<vmem>>, %arg4: memref<1x128xf32, #tpu.memory_space<vmem>>, %arg5: memref<128x128xbf16, #tpu.memory_space<vmem>>, %arg6: memref<1x128xf32, #tpu.memory_space<vmem>>, %arg7: memref<1x264x128xf32, #tpu.memory_space<vmem>>, %arg8: memref<264x128xf32, #tpu.memory_space<vmem>>) attributes {dimension_semantics = [#tpu.dimension_semantics<parallel>], iteration_bounds = array<i64: 2>, scalar_prefetch = 0 : i64, scratch_operands = 1 : i64, tpu.core_type = #tpu.core_type<tc>, window_params = [{transform_indices = @transform_0, window_bounds = array<i64: 1, 264, 128>}, {transform_indices = @transform_1, window_bounds = array<i64: 1, 256, 128>}, {pipeline_mode = #tpu.pipeline_mode<synchronous>, transform_indices = @transform_2, window_bounds = array<i64: 1, 128>}, {pipeline_mode = #tpu.pipeline_mode<synchronous>, transform_indices = @transform_3, window_bounds = array<i64: 1, 128>}, {pipeline_mode = #tpu.pipeline_mode<synchronous>, transform_indices = @transform_4, window_bounds = array<i64: 128, 128>}, {pipeline_mode = #tpu.pipeline_mode<synchronous>, transform_indices = @transform_5, window_bounds = array<i64: 1, 128>}, {transform_indices = @transform_6, window_bounds = array<i64: 1, 264, 128>}]} {
    %c0 = arith.constant 0 : index
    %c0_0 = arith.constant 0 : index
    %c0_1 = arith.constant 0 : index
    %0 = vector.load %arg1[%c0, %c0_0, %c0_1] : memref<1x264x128xbf16, #tpu.memory_space<vmem>>, vector<1x264x128xbf16>
    %1 = vector.shape_cast %0 : vector<1x264x128xbf16> to vector<264x128xbf16>
    %2 = arith.extf %1 : vector<264x128xbf16> to vector<264x128xf32>
    %c0_2 = arith.constant 0 : index
    %c0_3 = arith.constant 0 : index
    %c0_4 = arith.constant 0 : index
    %3 = vector.load %arg2[%c0_2, %c0_3, %c0_4] : memref<1x256x128xbf16, #tpu.memory_space<vmem>>, vector<1x256x128xbf16>
    %4 = vector.shape_cast %3 : vector<1x256x128xbf16> to vector<256x128xbf16>
    %5 = arith.extf %4 : vector<256x128xbf16> to vector<256x128xf32>
    %c0_5 = arith.constant 0 : index
    %c0_6 = arith.constant 0 : index
    %6 = vector.load %arg3[%c0_5, %c0_6] : memref<1x128xf32, #tpu.memory_space<vmem>>, vector<1x128xf32>
    %7 = vector.broadcast %6 : vector<1x128xf32> to vector<256x128xf32>
    %8 = arith.mulf %5, %7 : vector<256x128xf32>
    %c0_7 = arith.constant 0 : index
    %c0_8 = arith.constant 0 : index
    %9 = vector.load %arg4[%c0_7, %c0_8] : memref<1x128xf32, #tpu.memory_space<vmem>>, vector<1x128xf32>
    %10 = vector.broadcast %9 : vector<1x128xf32> to vector<256x128xf32>
    %11 = arith.addf %8, %10 : vector<256x128xf32>
    %cst = arith.constant 0.000000e+00 : f32
    %12 = vector.broadcast %cst : f32 to vector<256x128xf32>
    %13 = arith.maximumf %11, %12 : vector<256x128xf32>
    %14 = vector.extract_strided_slice %2 {offsets = [0, 0], sizes = [1, 128], strides = [1, 1]} : vector<264x128xf32> to vector<1x128xf32>
    %cst_9 = arith.constant 2.000000e+00 : f32
    %15 = vector.broadcast %cst_9 : f32 to vector<1x128xf32>
    %16 = arith.mulf %14, %15 : vector<1x128xf32>
    %c0_10 = arith.constant 0 : index
    %c0_11 = arith.constant 0 : index
    %17 = vector.load %arg8[%c0_10, %c0_11] : memref<264x128xf32, #tpu.memory_space<vmem>>, vector<1x128xf32>
    tpu.vector_store %arg8[%c0_10, %c0_11], %16 {strides = array<i32>} : memref<264x128xf32, #tpu.memory_space<vmem>>, vector<1x128xf32>,
    %18 = vector.extract_strided_slice %2 {offsets = [1, 0], sizes = [256, 128], strides = [1, 1]} : vector<264x128xf32> to vector<256x128xf32>
    %19 = arith.addf %18, %13 : vector<256x128xf32>
    %c1 = arith.constant 1 : index
    %c0_12 = arith.constant 0 : index
    %20 = vector.load %arg8[%c1, %c0_12] : memref<264x128xf32, #tpu.memory_space<vmem>>, vector<256x128xf32>
    tpu.vector_store %arg8[%c1, %c0_12], %19 {strides = array<i32>} : memref<264x128xf32, #tpu.memory_space<vmem>>, vector<256x128xf32>,
    %21 = vector.extract_strided_slice %2 {offsets = [257, 0], sizes = [7, 128], strides = [1, 1]} : vector<264x128xf32> to vector<7x128xf32>
    %c257 = arith.constant 257 : index
    %c0_13 = arith.constant 0 : index
    %22 = vector.load %arg8[%c257, %c0_13] : memref<264x128xf32, #tpu.memory_space<vmem>>, vector<7x128xf32>
    tpu.vector_store %arg8[%c257, %c0_13], %21 {strides = array<i32>} : memref<264x128xf32, #tpu.memory_space<vmem>>, vector<7x128xf32>,
    %c0_14 = arith.constant 0 : index
    %c0_15 = arith.constant 0 : index
    %23 = vector.load %arg8[%c0_14, %c0_15] : memref<264x128xf32, #tpu.memory_space<vmem>>, vector<264x128xf32>
    %24 = arith.truncf %23 : vector<264x128xf32> to vector<264x128xbf16>
    %c0_16 = arith.constant 0 : index
    %c0_17 = arith.constant 0 : index
    %25 = vector.load %arg5[%c0_16, %c0_17] : memref<128x128xbf16, #tpu.memory_space<vmem>>, vector<128x128xbf16>
    %cst_18 = arith.constant dense<0.000000e+00> : vector<264x128xf32>
    %26 = tpu.matmul %24, %25, %cst_18 {dimension_numbers = #tpu.dot_dimension_numbers<[1], [0], [0], [1], [0, 0, 1, 1], [], []>} : vector<264x128xbf16>, vector<128x128xbf16>, vector<264x128xf32> -> vector<264x128xf32>
    %c0_19 = arith.constant 0 : index
    %c0_20 = arith.constant 0 : index
    %27 = vector.load %arg6[%c0_19, %c0_20] : memref<1x128xf32, #tpu.memory_space<vmem>>, vector<1x128xf32>
    %28 = vector.broadcast %27 : vector<1x128xf32> to vector<264x128xf32>
    %29 = arith.addf %26, %28 : vector<264x128xf32>
    %c0_21 = arith.constant 0 : index
    %c0_22 = arith.constant 0 : index
    %c0_23 = arith.constant 0 : index
    %30 = vector.load %arg7[%c0_21, %c0_22, %c0_23] : memref<1x264x128xf32, #tpu.memory_space<vmem>>, vector<1x264x128xf32>
    %31 = vector.shape_cast %30 : vector<1x264x128xf32> to vector<264x128xf32>
    %32 = vector.shape_cast %29 : vector<264x128xf32> to vector<1x264x128xf32>
    tpu.vector_store %arg7[%c0_21, %c0_22, %c0_23], %32 {strides = array<i32>} : memref<1x264x128xf32, #tpu.memory_space<vmem>>, vector<1x264x128xf32>,
    return
  }
  func.func @transform_0(%arg0: i32) -> (i32, i32, i32) {
    %c0_i32 = arith.constant 0 : i32
    %c0_i32_0 = arith.constant 0 : i32
    %c0_i32_1 = arith.constant 0 : i32
    return %arg0, %c0_i32, %c0_i32_0 : i32, i32, i32
  }
  func.func @transform_1(%arg0: i32) -> (i32, i32, i32) {
    %c0_i32 = arith.constant 0 : i32
    %c0_i32_0 = arith.constant 0 : i32
    %c0_i32_1 = arith.constant 0 : i32
    return %arg0, %c0_i32, %c0_i32_0 : i32, i32, i32
  }
  func.func @transform_2(%arg0: i32) -> (i32, i32) {
    %c0_i32 = arith.constant 0 : i32
    %c0_i32_0 = arith.constant 0 : i32
    %c0_i32_1 = arith.constant 0 : i32
    return %c0_i32, %c0_i32_0 : i32, i32
  }
  func.func @transform_3(%arg0: i32) -> (i32, i32) {
    %c0_i32 = arith.constant 0 : i32
    %c0_i32_0 = arith.constant 0 : i32
    %c0_i32_1 = arith.constant 0 : i32
    return %c0_i32, %c0_i32_0 : i32, i32
  }
  func.func @transform_4(%arg0: i32) -> (i32, i32) {
    %c0_i32 = arith.constant 0 : i32
    %c0_i32_0 = arith.constant 0 : i32
    %c0_i32_1 = arith.constant 0 : i32
    return %c0_i32, %c0_i32_0 : i32, i32
  }
  func.func @transform_5(%arg0: i32) -> (i32, i32) {
    %c0_i32 = arith.constant 0 : i32
    %c0_i32_0 = arith.constant 0 : i32
    %c0_i32_1 = arith.constant 0 : i32
    return %c0_i32, %c0_i32_0 : i32, i32
  }
  func.func @transform_6(%arg0: i32) -> (i32, i32, i32) {
    %c0_i32 = arith.constant 0 : i32
    %c0_i32_0 = arith.constant 0 : i32
    %c0_i32_1 = arith.constant 0 : i32
    return %arg0, %c0_i32, %c0_i32_0 : i32, i32, i32
  }
}

</mosaic_0001>

<bundles_post_ra>
// kernel: adapterconv_forward.3
= control target key start
LH: loop header
LB: loop body
LE: loop exit
PB: predicated region body
PF: predicated region fallthrough
CT: control target
= control target key end

     0   :  { %s1471_s21 = smov 0   ;;  %s1821_s0 = inlined_call_operand.vmem [shape: bf16[2,264,128], index: 0, kind: input, shape index: {}]   ;;  %s1822_s1 = inlined_call_operand.vmem [shape: bf16[2,256,128], index: 1, kind: input, shape index: {}]   ;;  %s1823_s2 = inlined_call_operand.vmem [shape: f32[1,128], index: 2, kind: input, shape index: {}]   ;;  %s1824_s3 = inlined_call_operand.vmem [shape: f32[1,128], index: 3, kind: input, shape index: {}]   ;;  %s1825_s4 = inlined_call_operand.vmem [shape: bf16[128,128], index: 4, kind: input, shape index: {}]   ;;  %s1826_s5 = inlined_call_operand.vmem [shape: f32[1,128], index: 5, kind: input, shape index: {}]   ;;  %s1827_s6 = inlined_call_operand.vmem [shape: f32[2,264,128], index: 6, kind: output, shape index: {}]  }
   0x1 LB: > { %s1100_s22 = sadd.s32 4294967295, %s1432_s21   ;;  %p1104_p0 = scmp.ge.s32.totalorder %s1432_s21, 1  ;;  %s1432_s21 = sphi %s1471_s21, %s16_s21  }
   0x2   : > { %p222_p1 = scmp.lt.s32.totalorder %s1432_s21, 3 }
   0x4   : > { %p223_p2 = pnand %p1104_p0, %p222_p1 }
   0x5   : > { %v1418_v0 = vld [vmem:[%s1825_s4] sm:$0xff] (!%p223_p2)   ;;  %v1434_v1 = vmov (!%p223_p2), 0.0   ;;  %v1419_v2 = vld [vmem:[%s1825_s4 + $0x8] sm:$0xff] (!%p223_p2)   ;;  %p257_p3 = scmp.lt.s32.totalorder (!%p223_p2), %s1100_s22, 1  ;;  %vm1435_vm0 = vmmov (!%p223_p2), 0   ;;  %v1420_v3 = vld [vmem:[%s1825_s4 + $0x10] sm:$0xff] (!%p223_p2)  }
   0x6   : > { %226 = sbr.rel (%p223_p2) target bundleno = 320 (0x140), region = 44  ;;  %1306 = vmatprep.subr.bf16.mxu0 (!%p223_p2), %v1434_v1  ;;  %1390 = vmatprep.subr.bf16.mxu1 (!%p223_p2), %v1434_v1  ;;  %v1421_v4 = vld [vmem:[%s1825_s4 + $0x18] sm:$0xff] (!%p223_p2)   ;;  %v1522_v7 = vld [vmem:[%s1823_s2] ss:$0 sm:$0xff] (!%p223_p2)  ;;  %vm547_vm1 = vcmask (!%p223_p2), 1040384   ;;  %v1423_v46 = vld [vmem:[%s1825_s4 + $0x28] sm:$0xff] (!%p223_p2)  }
   0x7   : > { %1307 = vmatpush3.bf16.msra.mxu0 (!%p223_p2), %v1418_v0  ;;  %1398 = vmatpush3.bf16.msra.mxu1 (!%p223_p2), %v1418_v0  ;;  %v1538_v15 = vld [vmem:[%s1824_s3] ss:$0 sm:$0xff] (!%p223_p2)  ;;  %v1424_v0 = vld [vmem:[%s1825_s4 + $0x30] sm:$0xff] (!%p223_p2)  }
   0x8   : > { %1308 = vmatprep.subr.bf16.mxu0 (!%p223_p2), %v1434_v1  ;;  %1391 = vmatprep.subr.bf16.mxu1 (!%p223_p2), %v1434_v1  ;;  %v1422_v28 = vld [vmem:[%s1825_s4 + $0x20] sm:$0xff] (!%p223_p2)  }
   0x9   : > { %1322 = vmatprep.mubr.msk.bf16.mxu0 (!%p223_p2), %vm1435_vm0, %v1434_v1  ;;  %1358 = vmatprep.mubr.msk.bf16.mxu1 (!%p223_p2), %vm1435_vm0, %v1434_v1 }
   0xb   : > { %1309 = vmatpush3.bf16.msra.mxu0 (!%p223_p2), %v1419_v2  ;;  %1399 = vmatpush3.bf16.msra.mxu1 (!%p223_p2), %v1419_v2 }
   0xc   : > { %1310 = vmatprep.subr.bf16.mxu0 (!%p223_p2), %v1434_v1  ;;  %1392 = vmatprep.subr.bf16.mxu1 (!%p223_p2), %v1434_v1 }
   0xd   : > { %s1829_s22 = smov (!%p257_p3, %s1100_s22), 1 }
   0xe   : > { %s1406_s29 = smul.u32 132, %s1829_s22  ;;  %s1122_s30 = sshll.u32 %s1829_s22, 7 }
   0xf   : > { %s1513_s14 = scalar_lea.vmem %s1822_s1, %s1122_s30  ;;  %1311 = vmatpush3.bf16.msra.mxu0 %v1420_v3  ;;  %1400 = vmatpush3.bf16.msra.mxu1 %v1420_v3 }
  0x10   : > { %s1508_s11 = scalar_lea.vmem %s1821_s0, %s1406_s29  ;;  %v1188_v6 = vld [vmem:[%s1513_s14] sm:$0xff]   ;;  %v1274_v13 = vld [vmem:[%s1513_s14 + $0x48] sm:$0xff]   ;;  %1312 = vmatprep.subr.bf16.mxu0 %v1434_v1  ;;  %1393 = vmatprep.subr.bf16.mxu1 %v1434_v1  ;;  %v1275_v41 = vld [vmem:[%s1513_s14 + $0x50] sm:$0xff]   ;;  %s1407_s29 = smul.u32 264, %s1829_s22 }
  0x11   : > { %v1516_v5 = vld [vmem:[%s1508_s11] sm:$0xff]   ;;  %v1189_v9 = vunpack.c.l.bf16 %v1188_v6  ;;  %v1190_v10 = vunpack.c.h.bf16 %v1188_v6  ;;  %v1526_v11 = vld [vmem:[%s1508_s11 + $0x48] sm:$0xff]   ;;  %v1225_v17 = vunpack.c.l.bf16 %v1274_v13  ;;  %v1226_v22 = vunpack.c.h.bf16 %v1274_v13  ;;  %v1267_v63 = vld [vmem:[%s1513_s14 + $0x10] sm:$0xff]  }
  0x12   : > { %v1125_v8 = vunpack.c.l.bf16 %v1516_v5  ;;  %v1529_v12 = vld [vmem:[%s1513_s14 + $0x40] sm:$0xff]   ;;  %v1126_v14 = vunpack.c.h.bf16 %v1516_v5  ;;  %v1266_v18 = vld [vmem:[%s1513_s14 + $0x8] sm:$0xff]   ;;  %v1161_v24 = vunpack.c.l.bf16 %v1526_v11  ;;  %v1162_v25 = vunpack.c.h.bf16 %v1526_v11  ;;  %v1260_v5 = vld [vmem:[%s1508_s11 + $0x50] sm:$0xff]   ;;  %s1750_s10 = scalar_lea.vmem %s1827_s6, %s1407_s29 }
  0x13   : > { %v1222_v16 = vunpack.c.h.bf16 %v1529_v12  ;;  %v410_v19 = vmul.f32 %v1189_v9, %v1522_v7  ;;  %v411_v20 = vmul.f32 %v1190_v10, %v1522_v7  ;;  %v1545_v23 = vld [vmem:[%s1508_s11 + $0x8] sm:$0xff]   ;;  %v428_v27 = vmul.f32 %v1225_v17, %v1522_v7  ;;  %1313 = vmatpush3.bf16.msra.mxu0 %v1421_v4  ;;  %1401 = vmatpush3.bf16.msra.mxu1 %v1421_v4  ;;  %v1276_v17 = vld [vmem:[%s1513_s14 + $0x58] sm:$0xff]  }
  0x14   : > { %v513_v21 = vmul.f32 2.0, %v1125_v8  ;;  %v429_v31 = vmul.f32 %v1226_v22, %v1522_v7  ;;  %v1193_v32 = vunpack.c.l.bf16 %v1266_v18  ;;  %1314 = vmatprep.subr.bf16.mxu0 %v1434_v1  ;;  %1394 = vmatprep.subr.bf16.mxu1 %v1434_v1  ;;  %v1129_v35 = vunpack.c.l.bf16 %v1545_v23  ;;  %v1425_v22 = vld [vmem:[%s1825_s4 + $0x38] sm:$0xff]  }
  0x15   : > { %v427_v26 = vmul.f32 %v1222_v16, %v1522_v7  ;;  %v449_v29 = vadd.f32 %v1538_v15, %v410_v19  ;;  %v450_v30 = vadd.f32 %v1538_v15, %v411_v20  ;;  %v467_v34 = vadd.f32 %v1538_v15, %v428_v27 }
  0x16   : > { %514 = vst [vmem:[#allocation2] sm:$0x1] %v513_v21  ;;  %v1194_v36 = vunpack.c.h.bf16 %v1266_v18  ;;  %v468_v39 = vadd.f32 %v1538_v15, %v429_v31  ;;  %v412_v40 = vmul.f32 %v1193_v32, %v1522_v7  ;;  %v1130_v44 = vunpack.c.h.bf16 %v1545_v23 }
  0x17   : > { %v466_v33 = vadd.f32 %v1538_v15, %v427_v26  ;;  %v481_v37 = vmax.f32 %v449_v29, 0.0  ;;  %v482_v38 = vmax.f32 %v450_v30, 0.0  ;;  %v499_v43 = vmax.f32 %v467_v34, 0.0  ;;  %1315 = vmatpush3.bf16.msra.mxu0 %v1422_v28  ;;  %1402 = vmatpush3.bf16.msra.mxu1 %v1422_v28 }
  0x18   : > { %v413_v45 = vmul.f32 %v1194_v36, %v1522_v7  ;;  %v500_v49 = vmax.f32 %v468_v39, 0.0  ;;  %v451_v50 = vadd.f32 %v1538_v15, %v412_v40  ;;  %1316 = vmatprep.subr.bf16.mxu0 %v1434_v1  ;;  %1395 = vmatprep.subr.bf16.mxu1 %v1434_v1  ;;  %v1229_v54 = vunpack.c.l.bf16 %v1275_v41 }
  0x19   : > { %v498_v42 = vmax.f32 %v466_v33, 0.0  ;;  %v548_v47 = vrot.slane %v481_v37, 7  ;;  %v549_v48 = vrot.slane %v482_v38, 7  ;;  %v583_v52 = vrot.slane %v499_v43, 7  ;;  %v1261_v38 = vld [vmem:[%s1508_s11 + $0x58] sm:$0xff]  }
  0x1a   : > { %v452_v53 = vadd.f32 %v1538_v15, %v413_v45  ;;  %v585_v57 = vrot.slane %v500_v49, 7  ;;  %v483_v58 = vmax.f32 %v451_v50, 0.0  ;;  %v1230_v62 = vunpack.c.h.bf16 %v1275_v41  ;;  %v1268_v45 = vld [vmem:[%s1513_s14 + $0x18] sm:$0xff]  }
  0x1b   : > { %v1573_v51 = vrot.slane %v498_v42, 7  ;;  %v550_v55 = vsel %vm547_vm1, %v548_v47, %v549_v48  ;;  %v644_v56 = vadd.f32 %v1125_v8, %v548_v47  ;;  %1317 = vmatpush3.bf16.msra.mxu0 %v1423_v46  ;;  %1403 = vmatpush3.bf16.msra.mxu1 %v1423_v46  ;;  %v430_v6 = vmul.f32 %v1229_v54, %v1522_v7 }
  0x1c   : > { %v1577_v59 = vadd.f32 %v1126_v14, %v550_v55  ;;  %v484_v61 = vmax.f32 %v452_v53, 0.0  ;;  %v586_v2 = vsel %vm547_vm1, %v583_v52, %v585_v57  ;;  %v551_v4 = vrot.slane %v483_v58, 7  ;;  %1318 = vmatprep.subr.bf16.mxu0 %v1434_v1  ;;  %1396 = vmatprep.subr.bf16.mxu1 %v1434_v1  ;;  %v1594_v14 = vld [vmem:[%s1508_s11 + $0x10] sm:$0xff]  }
  0x1d   : > { %v584_v60 = vsel %vm547_vm1, %v1573_v51, %v583_v52  ;;  %677 = vst [vmem:[#allocation2] sm:$0xfe] %v644_v56  ;;  %v663_v8 = vadd.f32 %v1162_v25, %v586_v2  ;;  %v431_v10 = vmul.f32 %v1230_v62, %v1522_v7  ;;  %v469_v13 = vadd.f32 %v1538_v15, %v430_v6 }
  0x1e   : > { %v662_v3 = vadd.f32 %v1161_v24, %v584_v60  ;;  %v553_v9 = vrot.slane %v484_v61, 7  ;;  %v552_v11 = vsel %vm547_vm1, %v549_v48, %v551_v4  ;;  %v1197_v16 = vunpack.c.l.bf16 %v1267_v63 }
  0x1f   : > { %v1598_v19 = vadd.f32 %v1129_v35, %v552_v11  ;;  %v1165_v20 = vunpack.c.l.bf16 %v1260_v5  ;;  %v470_v21 = vadd.f32 %v1538_v15, %v431_v10  ;;  %1319 = vmatpush3.bf16.msra.mxu0 %v1424_v0  ;;  %1404 = vmatpush3.bf16.msra.mxu1 %v1424_v0  ;;  %v501_v24 = vmax.f32 %v469_v13, 0.0 }
  0x20   : > { %v554_v18 = vsel %vm547_vm1, %v551_v4, %v553_v9  ;;  %v1198_v25 = vunpack.c.h.bf16 %v1267_v63  ;;  %v414_v26 = vmul.f32 %v1197_v16, %v1522_v7  ;;  %1320 = vmatprep.subr.bf16.mxu0 %v1434_v1  ;;  %1397 = vmatprep.subr.bf16.mxu1 %v1434_v1  ;;  %v1166_v27 = vunpack.c.h.bf16 %v1260_v5 }
  0x21   : > { %v1604_v23 = vadd.f32 %v1130_v44, %v554_v18  ;;  %v502_v28 = vmax.f32 %v470_v21, 0.0  ;;  %v1133_v29 = vunpack.c.l.bf16 %v1594_v14  ;;  %v1233_v30 = vunpack.c.l.bf16 %v1276_v17 }
  0x22   : > { %v587_v31 = vrot.slane %v501_v24, 7  ;;  %v1134_v32 = vunpack.c.h.bf16 %v1594_v14  ;;  %v415_v33 = vmul.f32 %v1198_v25, %v1522_v7  ;;  %v453_v34 = vadd.f32 %v1538_v15, %v414_v26 }
  0x23   : > { %v753_v36 = vpack.c.bf16 %v663_v8, %v662_v3  ;;  %v589_v37 = vrot.slane %v502_v28, 7  ;;  %v1234_v39 = vunpack.c.h.bf16 %v1276_v17  ;;  %v432_v40 = vmul.f32 %v1233_v30, %v1522_v7  ;;  %1321 = vmatpush3.bf16.msra.mxu0 %v1425_v22  ;;  %1405 = vmatpush3.bf16.msra.mxu1 %v1425_v22  ;;  %v1253_v8 = vld [vmem:[%s1508_s11 + $0x18] sm:$0xff]   ;;  %v1269_v22 = vld [vmem:[%s1513_s14 + $0x20] sm:$0xff]  }
  0x24   : > { %v711_v35 = vld [vmem:[#allocation2] sm:$0xff]  ;;  %v588_v42 = vsel %vm547_vm1, %v585_v57, %v587_v31  ;;  %v454_v43 = vadd.f32 %v1538_v15, %v415_v33  ;;  %v485_v44 = vmax.f32 %v453_v34, 0.0  ;;  %v1169_v54 = vunpack.c.l.bf16 %v1261_v38 }
  0x25   : > { %v744_v41 = vpack.c.bf16 %v1577_v59, %v711_v35  ;;  %v590_v46 = vsel %vm547_vm1, %v587_v31, %v589_v37  ;;  %v664_v47 = vadd.f32 %v1165_v20, %v588_v42  ;;  %v433_v48 = vmul.f32 %v1234_v39, %v1522_v7  ;;  %v1277_v59 = vld [vmem:[%s1513_s14 + $0x60] sm:$0xff]  }
  0x26   : > { %v471_v49 = vadd.f32 %v1538_v15, %v432_v40  ;;  %v665_v50 = vadd.f32 %v1166_v27, %v590_v46  ;;  %v486_v52 = vmax.f32 %v454_v43, 0.0  ;;  %v555_v53 = vrot.slane %v485_v44, 7  ;;  %1359 = vmatmul.mubr.bf16.vlgmr.msra.gmra.mrb[0].mxu1 %v753_v36  ;;  %v1278_v43 = vld [vmem:[%s1513_s14 + $0x68] sm:$0xff]  }
  0x27   : > { %1323 = vmatmul.mubr.bf16.vlgmr.msra.gmra.mrb[0].mxu0 %v744_v41  ;;  %v472_v55 = vadd.f32 %v1538_v15, %v433_v48  ;;  %v1201_v57 = vunpack.c.l.bf16 %v1268_v45  ;;  %v1202_v58 = vunpack.c.h.bf16 %v1268_v45  ;;  %v745_v60 = vpack.c.bf16 %v1604_v23, %v1598_v19  ;;  %1362 = vmatprep.mubr.msk.bf16.mxu1 %vm1435_vm0, %v1434_v1  ;;  %v1262_v19 = vld [vmem:[%s1508_s11 + $0x60] sm:$0xff]  }
  0x28   : > { %v503_v56 = vmax.f32 %v471_v49, 0.0  ;;  %1326 = vmatprep.mubr.msk.bf16.mxu0 %vm1435_vm0, %v1434_v1  ;;  %v556_v61 = vsel %vm547_vm1, %v553_v9, %v555_v53  ;;  %v557_v62 = vrot.slane %v486_v52, 7  ;;  %v1170_v63 = vunpack.c.h.bf16 %v1261_v38  ;;  %v1254_v48 = vld [vmem:[%s1508_s11 + $0x20] sm:$0xff]  }
  0x29   : > { %v1631_v0 = vadd.f32 %v1133_v29, %v556_v61  ;;  %v504_v2 = vmax.f32 %v472_v55, 0.0  ;;  %v416_v4 = vmul.f32 %v1201_v57, %v1522_v7  ;;  %v754_v5 = vpack.c.bf16 %v665_v50, %v664_v47 }
  0x2a   : > { %v591_v3 = vrot.slane %v503_v56, 7  ;;  %v558_v6 = vsel %vm547_vm1, %v555_v53, %v557_v62  ;;  %v417_v10 = vmul.f32 %v1202_v58, %v1522_v7  ;;  %v1237_v11 = vunpack.c.l.bf16 %v1277_v59  ;;  %v1263_v56 = vld [vmem:[%s1508_s11 + $0x68] sm:$0xff]  }
  0x2b   : > { %v649_v13 = vadd.f32 %v1134_v32, %v558_v6  ;;  %v593_v14 = vrot.slane %v504_v2, 7  ;;  %v455_v16 = vadd.f32 %v1538_v15, %v416_v4  ;;  %v1238_v20 = vunpack.c.h.bf16 %v1277_v59 }
  0x2c   : > { %v592_v9 = vsel %vm547_vm1, %v589_v37, %v591_v3  ;;  %v456_v18 = vadd.f32 %v1538_v15, %v417_v10  ;;  %v434_v21 = vmul.f32 %v1237_v11, %v1522_v7  ;;  %v1137_v24 = vunpack.c.l.bf16 %v1253_v8 }
  0x2d   : > { %v666_v17 = vadd.f32 %v1169_v54, %v592_v9  ;;  %v594_v23 = vsel %vm547_vm1, %v591_v3, %v593_v14  ;;  %v1138_v25 = vunpack.c.h.bf16 %v1253_v8  ;;  %v487_v26 = vmax.f32 %v455_v16, 0.0  ;;  %v1279_v16 = vld [vmem:[%s1513_s14 + $0x70] sm:$0xff]  }
  0x2e   : > { %v667_v27 = vadd.f32 %v1170_v63, %v594_v23  ;;  %v488_v28 = vmax.f32 %v456_v18, 0.0  ;;  %v435_v29 = vmul.f32 %v1238_v20, %v1522_v7  ;;  %v473_v30 = vadd.f32 %v1538_v15, %v434_v21  ;;  %1363 = vmatmul.mubr.bf16.gmra.mrb[4].mxu1 %v754_v5  ;;  %v1270_v63 = vld [vmem:[%s1513_s14 + $0x28] sm:$0xff]  }
  0x2f   : > { %1327 = vmatmul.mubr.bf16.gmra.mrb[4].mxu0 %v745_v60  ;;  %v559_v31 = vrot.slane %v487_v26, 7  ;;  %v1173_v32 = vunpack.c.l.bf16 %v1262_v19  ;;  %v1205_v33 = vunpack.c.l.bf16 %v1269_v22  ;;  %v1206_v34 = vunpack.c.h.bf16 %v1269_v22  ;;  %1366 = vmatprep.mubr.msk.bf16.mxu1 %vm1435_vm0, %v1434_v1  ;;  %v1255_v21 = vld [vmem:[%s1508_s11 + $0x28] sm:$0xff]  }
  0x30   : > { %1330 = vmatprep.mubr.msk.bf16.mxu0 %vm1435_vm0, %v1434_v1  ;;  %v561_v35 = vrot.slane %v488_v28, 7  ;;  %v1174_v36 = vunpack.c.h.bf16 %v1262_v19  ;;  %v474_v37 = vadd.f32 %v1538_v15, %v435_v29  ;;  %v505_v38 = vmax.f32 %v473_v30, 0.0  ;;  %v1264_v29 = vld [vmem:[%s1508_s11 + $0x70] sm:$0xff]  }
  0x31   : > { %v746_v39 = vpack.c.bf16 %v649_v13, %v1631_v0  ;;  %v560_v40 = vsel %vm547_vm1, %v557_v62, %v559_v31  ;;  %v418_v41 = vmul.f32 %v1205_v33, %v1522_v7  ;;  %v419_v42 = vmul.f32 %v1206_v34, %v1522_v7 }
  0x32   : > { %v562_v44 = vsel %vm547_vm1, %v559_v31, %v561_v35  ;;  %v650_v45 = vadd.f32 %v1137_v24, %v560_v40  ;;  %v506_v46 = vmax.f32 %v474_v37, 0.0  ;;  %v595_v47 = vrot.slane %v505_v38, 7 }
  0x33   : > { %v755_v49 = vpack.c.bf16 %v667_v27, %v666_v17  ;;  %v651_v50 = vadd.f32 %v1138_v25, %v562_v44  ;;  %v457_v52 = vadd.f32 %v1538_v15, %v418_v41  ;;  %v458_v53 = vadd.f32 %v1538_v15, %v419_v42 }
  0x34   : > { %v596_v54 = vsel %vm547_vm1, %v593_v14, %v595_v47  ;;  %v597_v55 = vrot.slane %v506_v46, 7  ;;  %v1241_v57 = vunpack.c.l.bf16 %v1278_v43  ;;  %v1242_v58 = vunpack.c.h.bf16 %v1278_v43 }
  0x35   : > { %v668_v59 = vadd.f32 %v1173_v32, %v596_v54  ;;  %v1141_v60 = vunpack.c.l.bf16 %v1254_v48  ;;  %v489_v61 = vmax.f32 %v457_v52, 0.0  ;;  %v490_v62 = vmax.f32 %v458_v53, 0.0  ;;  %v1280_v53 = vld [vmem:[%s1513_s14 + $0x78] sm:$0xff]  }
  0x36   : > { %v598_v0 = vsel %vm547_vm1, %v595_v47, %v597_v55  ;;  %v1142_v2 = vunpack.c.h.bf16 %v1254_v48  ;;  %v436_v3 = vmul.f32 %v1241_v57, %v1522_v7  ;;  %v437_v4 = vmul.f32 %v1242_v58, %v1522_v7  ;;  %1367 = vmatmul.mubr.bf16.gmra.mrb[8].mxu1 %v755_v49 }
  0x37   : > { %1331 = vmatmul.mubr.bf16.gmra.mrb[8].mxu0 %v746_v39  ;;  %v669_v5 = vadd.f32 %v1174_v36, %v598_v0  ;;  %v563_v6 = vrot.slane %v489_v61, 7  ;;  %v565_v8 = vrot.slane %v490_v62, 7  ;;  %v1177_v10 = vunpack.c.l.bf16 %v1263_v56  ;;  %1370 = vmatprep.mubr.msk.bf16.mxu1 %vm1435_vm0, %v1434_v1  ;;  %v1271_v39 = vld [vmem:[%s1513_s14 + $0x30] sm:$0xff]  }
  0x38   : > { %1334 = vmatprep.mubr.msk.bf16.mxu0 %vm1435_vm0, %v1434_v1  ;;  %v475_v11 = vadd.f32 %v1538_v15, %v436_v3  ;;  %v476_v13 = vadd.f32 %v1538_v15, %v437_v4  ;;  %v1209_v9 = vunpack.c.l.bf16 %v1270_v63  ;;  %v1210_v14 = vunpack.c.h.bf16 %v1270_v63 }
  0x39   : > { %v747_v17 = vpack.c.bf16 %v651_v50, %v650_v45  ;;  %v564_v18 = vsel %vm547_vm1, %v561_v35, %v563_v6  ;;  %v566_v19 = vsel %vm547_vm1, %v563_v6, %v565_v8  ;;  %v1178_v20 = vunpack.c.h.bf16 %v1263_v56 }
  0x3a   : > { %v652_v22 = vadd.f32 %v1141_v60, %v564_v18  ;;  %v653_v23 = vadd.f32 %v1142_v2, %v566_v19  ;;  %v507_v24 = vmax.f32 %v475_v11, 0.0  ;;  %v508_v25 = vmax.f32 %v476_v13, 0.0  ;;  %v1256_v2 = vld [vmem:[%s1508_s11 + $0x30] sm:$0xff]  }
  0x3b   : > { %v756_v26 = vpack.c.bf16 %v669_v5, %v668_v59  ;;  %v420_v27 = vmul.f32 %v1209_v9, %v1522_v7  ;;  %v421_v28 = vmul.f32 %v1210_v14, %v1522_v7  ;;  %v1245_v30 = vunpack.c.l.bf16 %v1279_v16  ;;  %v1265_v9 = vld [vmem:[%s1508_s11 + $0x78] sm:$0xff]  }
  0x3c   : > { %v599_v31 = vrot.slane %v507_v24, 7  ;;  %v601_v32 = vrot.slane %v508_v25, 7  ;;  %v1145_v33 = vunpack.c.l.bf16 %v1255_v21  ;;  %v1246_v34 = vunpack.c.h.bf16 %v1279_v16  ;;  %v305_v25 = vld [vmem:[%s1508_s11 + $0x80] sm:$0xf] }
  0x3d   : > { %v1146_v35 = vunpack.c.h.bf16 %v1255_v21  ;;  %v459_v36 = vadd.f32 %v1538_v15, %v420_v27  ;;  %v460_v37 = vadd.f32 %v1538_v15, %v421_v28  ;;  %v438_v38 = vmul.f32 %v1245_v30, %v1522_v7 }
  0x3e   : > { %v600_v40 = vsel %vm547_vm1, %v597_v55, %v599_v31  ;;  %v602_v41 = vsel %vm547_vm1, %v599_v31, %v601_v32  ;;  %v1181_v42 = vunpack.c.l.bf16 %v1264_v29  ;;  %v439_v43 = vmul.f32 %v1246_v34, %v1522_v7  ;;  %1371 = vmatmul.mubr.bf16.gmra.mrb[12].mxu1 %v756_v26 }
  0x3f   : > { %1335 = vmatmul.mubr.bf16.gmra.mrb[12].mxu0 %v747_v17  ;;  %v670_v44 = vadd.f32 %v1177_v10, %v600_v40  ;;  %v671_v45 = vadd.f32 %v1178_v20, %v602_v41  ;;  %v491_v46 = vmax.f32 %v459_v36, 0.0  ;;  %v492_v47 = vmax.f32 %v460_v37, 0.0  ;;  %1374 = vmatprep.mubr.msk.bf16.mxu1 %vm1435_vm0, %v1434_v1  ;;  %v1272_v17 = vld [vmem:[%s1513_s14 + $0x38] sm:$0xff]  }
  0x40   : > { %1338 = vmatprep.mubr.msk.bf16.mxu0 %vm1435_vm0, %v1434_v1  ;;  %v477_v48 = vadd.f32 %v1538_v15, %v438_v38  ;;  %v478_v49 = vadd.f32 %v1538_v15, %v439_v43  ;;  %v1213_v50 = vunpack.c.l.bf16 %v1271_v39  ;;  %v1214_v52 = vunpack.c.h.bf16 %v1271_v39 }
  0x41   : > { %v748_v54 = vpack.c.bf16 %v653_v23, %v652_v22  ;;  %v567_v55 = vrot.slane %v491_v46, 7  ;;  %v569_v56 = vrot.slane %v492_v47, 7  ;;  %v1182_v57 = vunpack.c.h.bf16 %v1264_v29  ;;  %v1257_v47 = vld [vmem:[%s1508_s11 + $0x38] sm:$0xff]  }
  0x42   : > { %v509_v58 = vmax.f32 %v477_v48, 0.0  ;;  %v510_v59 = vmax.f32 %v478_v49, 0.0  ;;  %v422_v60 = vmul.f32 %v1213_v50, %v1522_v7  ;;  %v423_v61 = vmul.f32 %v1214_v52, %v1522_v7 }
  0x43   : > { %v757_v62 = vpack.c.bf16 %v671_v45, %v670_v44  ;;  %v568_v63 = vsel %vm547_vm1, %v565_v8, %v567_v55  ;;  %v570_v0 = vsel %vm547_vm1, %v567_v55, %v569_v56  ;;  %v1249_v3 = vunpack.c.l.bf16 %v1280_v53 }
  0x44   : > { %v654_v4 = vadd.f32 %v1145_v33, %v568_v63  ;;  %v655_v5 = vadd.f32 %v1146_v35, %v570_v0  ;;  %v603_v6 = vrot.slane %v509_v58, 7  ;;  %v605_v10 = vrot.slane %v510_v59, 7  ;;  %v1258_v0 = vld [vmem:[%s1508_s11 + $0x40] sm:$0xff]  }
  0x45   : > { %v461_v11 = vadd.f32 %v1538_v15, %v422_v60  ;;  %v462_v13 = vadd.f32 %v1538_v15, %v423_v61  ;;  %v1250_v14 = vunpack.c.h.bf16 %v1280_v53  ;;  %v440_v16 = vmul.f32 %v1249_v3, %v1522_v7 }
  0x46   : > { %v604_v8 = vsel %vm547_vm1, %v601_v32, %v603_v6  ;;  %v606_v18 = vsel %vm547_vm1, %v603_v6, %v605_v10  ;;  %v1149_v19 = vunpack.c.l.bf16 %v1256_v2  ;;  %v1150_v20 = vunpack.c.h.bf16 %v1256_v2  ;;  %1375 = vmatmul.mubr.bf16.gmra.mrb[16].mxu1 %v757_v62 }
  0x47   : > { %1339 = vmatmul.mubr.bf16.gmra.mrb[16].mxu0 %v748_v54  ;;  %v672_v21 = vadd.f32 %v1181_v42, %v604_v8  ;;  %v673_v22 = vadd.f32 %v1182_v57, %v606_v18  ;;  %v493_v23 = vmax.f32 %v461_v11, 0.0  ;;  %v494_v24 = vmax.f32 %v462_v13, 0.0  ;;  %1378 = vmatprep.mubr.msk.bf16.mxu1 %vm1435_vm0, %v1434_v1 }
  0x48   : > { %1342 = vmatprep.mubr.msk.bf16.mxu0 %vm1435_vm0, %v1434_v1  ;;  %v1185_v26 = vunpack.c.l.bf16 %v1265_v9  ;;  %v441_v27 = vmul.f32 %v1250_v14, %v1522_v7  ;;  %v479_v28 = vadd.f32 %v1538_v15, %v440_v16  ;;  %v1217_v29 = vunpack.c.l.bf16 %v1272_v17 }
  0x49   : > { %v749_v30 = vpack.c.bf16 %v655_v5, %v654_v4  ;;  %v571_v31 = vrot.slane %v493_v23, 7  ;;  %v573_v32 = vrot.slane %v494_v24, 7  ;;  %v1218_v33 = vunpack.c.h.bf16 %v1272_v17 }
  0x4a   : > { %v480_v34 = vadd.f32 %v1538_v15, %v441_v27  ;;  %v511_v35 = vmax.f32 %v479_v28, 0.0  ;;  %v424_v36 = vmul.f32 %v1217_v29, %v1522_v7  ;;  %v338_v37 = vunpack.c.l.bf16 %v305_v25 }
  0x4b   : > { %v758_v38 = vpack.c.bf16 %v673_v22, %v672_v21  ;;  %v572_v39 = vsel %vm547_vm1, %v569_v56, %v571_v31  ;;  %v574_v40 = vsel %vm547_vm1, %v571_v31, %v573_v32  ;;  %v425_v41 = vmul.f32 %v1218_v33, %v1522_v7 }
  0x4c   : > { %v656_v42 = vadd.f32 %v1149_v19, %v572_v39  ;;  %v657_v43 = vadd.f32 %v1150_v20, %v574_v40  ;;  %v512_v44 = vmax.f32 %v480_v34, 0.0  ;;  %v607_v45 = vrot.slane %v511_v35, 7  ;;  %710 = vst [vmem:[#allocation2 + $0x100] sm:$0xfe] %v338_v37 }
  0x4d   : > { %v1186_v46 = vunpack.c.h.bf16 %v1265_v9  ;;  %v463_v48 = vadd.f32 %v1538_v15, %v424_v36  ;;  %v464_v49 = vadd.f32 %v1538_v15, %v425_v41  ;;  %v1221_v50 = vunpack.c.l.bf16 %v1529_v12 }
  0x4e   : > { %v608_v52 = vsel %vm547_vm1, %v605_v10, %v607_v45  ;;  %v609_v53 = vrot.slane %v512_v44, 7  ;;  %1379 = vmatmul.mubr.bf16.gmra.mrb[20].mxu1 %v758_v38  ;;  %v1153_v12 = vunpack.c.l.bf16 %v1257_v47  ;;  %v1154_v59 = vunpack.c.h.bf16 %v1257_v47 }
  0x4f   : > { %1343 = vmatmul.mubr.bf16.gmra.mrb[20].mxu0 %v749_v30  ;;  %v674_v54 = vadd.f32 %v1185_v26, %v608_v52  ;;  %v495_v55 = vmax.f32 %v463_v48, 0.0  ;;  %v496_v56 = vmax.f32 %v464_v49, 0.0  ;;  %v426_v57 = vmul.f32 %v1221_v50, %v1522_v7  ;;  %1382 = vmatprep.mubr.msk.bf16.mxu1 %vm1435_vm0, %v1434_v1 }
  0x50   : > { %1346 = vmatprep.mubr.msk.bf16.mxu0 %vm1435_vm0, %v1434_v1  ;;  %v610_v58 = vsel %vm547_vm1, %v607_v45, %v609_v53  ;;  %v676_v60 = vadd.f32 %v609_v53, %v338_v37  ;;  %v750_v3 = vpack.c.bf16 %v657_v43, %v656_v42  ;;  %v1157_v13 = vunpack.c.l.bf16 %v1258_v0 }
  0x51   : > { %v675_v61 = vadd.f32 %v1186_v46, %v610_v58  ;;  %v575_v62 = vrot.slane %v495_v55, 7  ;;  %v577_v63 = vrot.slane %v496_v56, 7  ;;  %v465_v2 = vadd.f32 %v1538_v15, %v426_v57 }
  0x52   : > { %709 = vst [vmem:[#allocation2 + $0x100] sm:$0x1] %v676_v60  ;;  %v1158_v9 = vunpack.c.h.bf16 %v1258_v0 }
  0x53   : > { %v759_v7 = vpack.c.bf16 %v675_v61, %v674_v54  ;;  %v576_v4 = vsel %vm547_vm1, %v573_v32, %v575_v62  ;;  %v578_v5 = vsel %vm547_vm1, %v575_v62, %v577_v63  ;;  %v497_v6 = vmax.f32 %v465_v2, 0.0 }
  0x54   : > { %v658_v10 = vadd.f32 %v1153_v12, %v576_v4  ;;  %v659_v11 = vadd.f32 %v1154_v59, %v578_v5 }
  0x55   : > { %v579_v14 = vrot.slane %v497_v6, 7 }
  0x56   : > { %1383 = vmatmul.mubr.bf16.gmra.mrb[24].mxu1 %v759_v7  ;;  %v751_v19 = vpack.c.bf16 %v659_v11, %v658_v10 }
  0x57   : > { %1347 = vmatmul.mubr.bf16.gmra.mrb[24].mxu0 %v750_v3  ;;  %v580_v16 = vsel %vm547_vm1, %v577_v63, %v579_v14  ;;  %v582_v15 = vsel %vm547_vm1, %v579_v14, %v1573_v51  ;;  %1386 = vmatprep.mubr.msk.bf16.mxu1 %vm1435_vm0, %v1434_v1  ;;  %v1745_v51 = vld [vmem:[%s1826_s5] ss:$0 sm:$0xff] }
  0x58   : > { %1350 = vmatprep.mubr.msk.bf16.mxu0 %vm1435_vm0, %v1434_v1  ;;  %v660_v17 = vadd.f32 %v1157_v13, %v580_v16  ;;  %v661_v8 = vadd.f32 %v1158_v9, %v582_v15 }
  0x59   : > { %v743_v18 = vld [vmem:[#allocation2 + $0x100] sm:$0xff] }
  0x5a   : > { %v760_v20 = vpack.c.bf16 %v743_v18, %v743_v18  ;;  %v752_v21 = vpack.c.bf16 %v661_v8, %v660_v17 }
  0x5e   : > { %1387 = vmatmul.mubr.bf16.gmra.mrb[28].mxu1 %v760_v20 }
  0x5f   : > { %1351 = vmatmul.mubr.bf16.gmra.mrb[28].mxu0 %v751_v19 }
  0x60   : > { %1354 = vmatprep.mubr.msk.bf16.mxu0 %vm1435_vm0, %v1434_v1 }
  0x67   : > { %1355 = vmatmul.mubr.bf16.gmra.mrb[32].mxu0 %v752_v21 }
  0xf9   : > { %v938_v23 = vpop.f32.mrb[0].mxu1 }
  0xfa   : > { %v866_v22 = vpop.f32.mrb[0].mxu0  ;;  %v939_v25 = vadd.f32 %v1745_v51, %v938_v23  ;;  %v1360_v26 = vpop.f32.mrb[1].mxu1 }
  0xfb   : > { %v867_v1 = vadd.f32 %v1745_v51, %v866_v22  ;;  %v1324_v24 = vpop.f32.mrb[1].mxu0  ;;  %v941_v28 = vpop.f32.mrb[2].mxu1 }
  0xfc   : > { %v869_v27 = vpop.f32.mrb[2].mxu0  ;;  %1018 = vst [vmem:[%s1750_s10 + $0x90] sm:$0xff] %v939_v25  ;;  %v942_v31 = vadd.f32 %v1745_v51, %v941_v28  ;;  %v1361_v32 = vpop.f32.mrb[3].mxu1 }
  0xfd   : > { %1000 = vst [vmem:[%s1750_s10] sm:$0xff] %v867_v1  ;;  %v870_v29 = vadd.f32 %v1745_v51, %v869_v27  ;;  %v1325_v30 = vpop.f32.mrb[3].mxu0 }
  0xfe   : > { %1019 = vst [vmem:[%s1750_s10 + $0x98] sm:$0xff] %v942_v31 }
  0xff   : > { %1001 = vst [vmem:[%s1750_s10 + $0x8] sm:$0xff] %v870_v29 }
 0x101   : > { %v946_v34 = vpop.f32.mrb[4].mxu1 }
 0x102   : > { %v874_v33 = vpop.f32.mrb[4].mxu0  ;;  %v947_v37 = vadd.f32 %v1745_v51, %v946_v34  ;;  %v1364_v38 = vpop.f32.mrb[5].mxu1 }
 0x103   : > { %v875_v35 = vadd.f32 %v1745_v51, %v874_v33  ;;  %v1328_v36 = vpop.f32.mrb[5].mxu0  ;;  %v949_v40 = vpop.f32.mrb[6].mxu1 }
 0x104   : > { %v877_v39 = vpop.f32.mrb[6].mxu0  ;;  %1020 = vst [vmem:[%s1750_s10 + $0xa0] sm:$0xff] %v947_v37  ;;  %v950_v43 = vadd.f32 %v1745_v51, %v949_v40  ;;  %v1365_v44 = vpop.f32.mrb[7].mxu1 }
 0x105   : > { %1002 = vst [vmem:[%s1750_s10 + $0x10] sm:$0xff] %v875_v35  ;;  %v878_v41 = vadd.f32 %v1745_v51, %v877_v39  ;;  %v1329_v42 = vpop.f32.mrb[7].mxu0 }
 0x106   : > { %1021 = vst [vmem:[%s1750_s10 + $0xa8] sm:$0xff] %v950_v43 }
 0x107   : > { %1003 = vst [vmem:[%s1750_s10 + $0x18] sm:$0xff] %v878_v41 }
 0x109   : > { %v954_v46 = vpop.f32.mrb[8].mxu1 }
 0x10a   : > { %v882_v45 = vpop.f32.mrb[8].mxu0  ;;  %v955_v49 = vadd.f32 %v1745_v51, %v954_v46  ;;  %v1368_v50 = vpop.f32.mrb[9].mxu1 }
 0x10b   : > { %v883_v47 = vadd.f32 %v1745_v51, %v882_v45  ;;  %v1332_v48 = vpop.f32.mrb[9].mxu0  ;;  %v957_v53 = vpop.f32.mrb[10].mxu1 }
 0x10c   : > { %v885_v52 = vpop.f32.mrb[10].mxu0  ;;  %1022 = vst [vmem:[%s1750_s10 + $0xb0] sm:$0xff] %v955_v49  ;;  %v958_v56 = vadd.f32 %v1745_v51, %v957_v53  ;;  %v1369_v57 = vpop.f32.mrb[11].mxu1 }
 0x10d   : > { %1004 = vst [vmem:[%s1750_s10 + $0x20] sm:$0xff] %v883_v47  ;;  %v886_v54 = vadd.f32 %v1745_v51, %v885_v52  ;;  %v1333_v55 = vpop.f32.mrb[11].mxu0 }
 0x10e   : > { %1023 = vst [vmem:[%s1750_s10 + $0xb8] sm:$0xff] %v958_v56 }
 0x10f   : > { %1005 = vst [vmem:[%s1750_s10 + $0x28] sm:$0xff] %v886_v54 }
 0x111   : > { %v962_v12 = vpop.f32.mrb[12].mxu1 }
 0x112   : > { %v890_v58 = vpop.f32.mrb[12].mxu0  ;;  %v963_v61 = vadd.f32 %v1745_v51, %v962_v12  ;;  %v1372_v62 = vpop.f32.mrb[13].mxu1 }
 0x113   : > { %v891_v59 = vadd.f32 %v1745_v51, %v890_v58  ;;  %v1336_v60 = vpop.f32.mrb[13].mxu0  ;;  %v965_v0 = vpop.f32.mrb[14].mxu1 }
 0x114   : > { %v893_v63 = vpop.f32.mrb[14].mxu0  ;;  %1024 = vst [vmem:[%s1750_s10 + $0xc0] sm:$0xff] %v963_v61  ;;  %v966_v7 = vadd.f32 %v1745_v51, %v965_v0  ;;  %v1373_v4 = vpop.f32.mrb[15].mxu1 }
 0x115   : > { %1006 = vst [vmem:[%s1750_s10 + $0x30] sm:$0xff] %v891_v59  ;;  %v894_v2 = vadd.f32 %v1745_v51, %v893_v63  ;;  %v1337_v3 = vpop.f32.mrb[15].mxu0 }
 0x116   : > { %1025 = vst [vmem:[%s1750_s10 + $0xc8] sm:$0xff] %v966_v7 }
 0x117   : > { %1007 = vst [vmem:[%s1750_s10 + $0x38] sm:$0xff] %v894_v2 }
 0x119   : > { %v970_v6 = vpop.f32.mrb[16].mxu1 }
 0x11a   : > { %v898_v5 = vpop.f32.mrb[16].mxu0  ;;  %v971_v13 = vadd.f32 %v1745_v51, %v970_v6  ;;  %v1376_v9 = vpop.f32.mrb[17].mxu1 }
 0x11b   : > { %v899_v10 = vadd.f32 %v1745_v51, %v898_v5  ;;  %v1340_v11 = vpop.f32.mrb[17].mxu0  ;;  %v973_v16 = vpop.f32.mrb[18].mxu1 }
 0x11c   : > { %v901_v14 = vpop.f32.mrb[18].mxu0  ;;  %1026 = vst [vmem:[%s1750_s10 + $0xd0] sm:$0xff] %v971_v13  ;;  %v974_v8 = vadd.f32 %v1745_v51, %v973_v16  ;;  %v1377_v18 = vpop.f32.mrb[19].mxu1 }
 0x11d   : > { %1008 = vst [vmem:[%s1750_s10 + $0x40] sm:$0xff] %v899_v10  ;;  %v902_v15 = vadd.f32 %v1745_v51, %v901_v14  ;;  %v1341_v17 = vpop.f32.mrb[19].mxu0 }
 0x11e   : > { %1027 = vst [vmem:[%s1750_s10 + $0xd8] sm:$0xff] %v974_v8 }
 0x11f   : > { %1009 = vst [vmem:[%s1750_s10 + $0x48] sm:$0xff] %v902_v15 }
 0x121   : > { %v978_v20 = vpop.f32.mrb[20].mxu1 }
 0x122   : > { %v906_v19 = vpop.f32.mrb[20].mxu0  ;;  %v979_v23 = vadd.f32 %v1745_v51, %v978_v20  ;;  %v1380_v1 = vpop.f32.mrb[21].mxu1 }
 0x123   : > { %v907_v21 = vadd.f32 %v1745_v51, %v906_v19  ;;  %v1344_v22 = vpop.f32.mrb[21].mxu0  ;;  %v981_v25 = vpop.f32.mrb[22].mxu1 }
 0x124   : > { %v909_v24 = vpop.f32.mrb[22].mxu0  ;;  %1028 = vst [vmem:[%s1750_s10 + $0xe0] sm:$0xff] %v979_v23  ;;  %v982_v28 = vadd.f32 %v1745_v51, %v981_v25  ;;  %v1381_v29 = vpop.f32.mrb[23].mxu1 }
 0x125   : > { %1010 = vst [vmem:[%s1750_s10 + $0x50] sm:$0xff] %v907_v21  ;;  %v910_v26 = vadd.f32 %v1745_v51, %v909_v24  ;;  %v1345_v27 = vpop.f32.mrb[23].mxu0 }
 0x126   : > { %1029 = vst [vmem:[%s1750_s10 + $0xe8] sm:$0xff] %v982_v28 }
 0x127   : > { %1011 = vst [vmem:[%s1750_s10 + $0x58] sm:$0xff] %v910_v26 }
 0x129   : > { %v986_v31 = vpop.f32.mrb[24].mxu1 }
 0x12a   : > { %v914_v30 = vpop.f32.mrb[24].mxu0  ;;  %v987_v34 = vadd.f32 %v1745_v51, %v986_v31  ;;  %v1384_v35 = vpop.f32.mrb[25].mxu1 }
 0x12b   : > { %v915_v32 = vadd.f32 %v1745_v51, %v914_v30  ;;  %v1348_v33 = vpop.f32.mrb[25].mxu0  ;;  %v989_v37 = vpop.f32.mrb[26].mxu1 }
 0x12c   : > { %v917_v36 = vpop.f32.mrb[26].mxu0  ;;  %1030 = vst [vmem:[%s1750_s10 + $0xf0] sm:$0xff] %v987_v34  ;;  %v990_v40 = vadd.f32 %v1745_v51, %v989_v37  ;;  %v1385_v41 = vpop.f32.mrb[27].mxu1 }
 0x12d   : > { %1012 = vst [vmem:[%s1750_s10 + $0x60] sm:$0xff] %v915_v32  ;;  %v918_v38 = vadd.f32 %v1745_v51, %v917_v36  ;;  %v1349_v39 = vpop.f32.mrb[27].mxu0 }
 0x12e   : > { %1031 = vst [vmem:[%s1750_s10 + $0xf8] sm:$0xff] %v990_v40 }
 0x12f   : > { %1013 = vst [vmem:[%s1750_s10 + $0x68] sm:$0xff] %v918_v38 }
 0x131   : > { %v994_v43 = vpop.f32.mrb[28].mxu1 }
 0x132   : > { %v922_v42 = vpop.f32.mrb[28].mxu0  ;;  %v995_v46 = vadd.f32 %v1745_v51, %v994_v43  ;;  %v1388_v47 = vpop.f32.mrb[29].mxu1 }
 0x133   : > { %v923_v44 = vadd.f32 %v1745_v51, %v922_v42  ;;  %v1352_v45 = vpop.f32.mrb[29].mxu0  ;;  %v997_v49 = vpop.f32.mrb[30].mxu1 }
 0x134   : > { %v925_v48 = vpop.f32.mrb[30].mxu0  ;;  %1032 = vst [vmem:[%s1750_s10 + $0x100] sm:$0xff] %v995_v46  ;;  %v1389_v53 = vpop.f32.mrb[31].mxu1 }
 0x135   : > { %1014 = vst [vmem:[%s1750_s10 + $0x70] sm:$0xff] %v923_v44  ;;  %v926_v50 = vadd.f32 %v1745_v51, %v925_v48  ;;  %v1353_v52 = vpop.f32.mrb[31].mxu0 }
 0x137   : > { %1015 = vst [vmem:[%s1750_s10 + $0x78] sm:$0xff] %v926_v50 }
 0x13a   : > { %v930_v54 = vpop.f32.mrb[32].mxu0 }
 0x13b   : > { %v931_v55 = vadd.f32 %v1745_v51, %v930_v54  ;;  %v1356_v56 = vpop.f32.mrb[33].mxu0 }
 0x13c   : > { %v933_v57 = vpop.f32.mrb[34].mxu0 }
 0x13d   : > { %1016 = vst [vmem:[%s1750_s10 + $0x80] sm:$0xff] %v931_v55  ;;  %v934_v58 = vadd.f32 %v1745_v51, %v933_v57  ;;  %v1357_v12 = vpop.f32.mrb[35].mxu0 }
 0x13f   : > { %1017 = vst [vmem:[%s1750_s10 + $0x88] sm:$0xff] %v934_v58 }
 0x140 PF: > { %s16_s21 = sadd.s32 1, %s1432_s21  }
 0x141   : > { %p13_p4 = scmp.ge.s32.totalorder %s16_s21, 4  }
 0x143   :  { %15 = sbr.rel (!%p13_p4) target bundleno = 1 (0x1), region = 77 }

// kernel: adapterconv_forward.2
= control target key start
LH: loop header
LB: loop body
LE: loop exit
PB: predicated region body
PF: predicated region fallthrough
CT: control target
= control target key end

     0   :  { %13 = vsyncpa [#allocation5], 0  ;;  %s12037_s24 = smov 0   ;;  %s14948_s0 = inlined_call_operand.vmem [shape: bf16[2,264,128], index: 0, kind: input, shape index: {}]   ;;  %s14949_s1 = inlined_call_operand.vmem [shape: bf16[128,128], index: 1, kind: input, shape index: {}]   ;;  %s14950_s2 = inlined_call_operand.vmem [shape: f32[1,128], index: 2, kind: input, shape index: {}]   ;;  %s14951_s3 = inlined_call_operand.hbm [shape: bf16[3200,128], index: 3, kind: input, shape index: {}]   ;;  %s14952_s4 = inlined_call_operand.vmem [shape: bf16[2,264,128], index: 4, kind: output, shape index: {0}]   ;;  %s14953_s5 = inlined_call_operand.vmem [shape: bf16[2,256,128], index: 5, kind: output, shape index: {1}]   ;;  %s14954_s6 = inlined_call_operand.vmem [shape: f32[2,1,128], index: 6, kind: output, shape index: {2}]   ;;  %s14955_s7 = inlined_call_operand.vmem [shape: f32[2,1,128], index: 7, kind: output, shape index: {3}]  }
   0x1 LB: > { %s12043_s25 = sadd.s32 4294967295, %s11989_s24   ;;  %p8653_p0 = scmp.ge.s32.totalorder %s11989_s24, 1  ;;  %s11989_s24 = sphi %s12037_s24, %s19_s24  }
   0x2   : > { %p217_p1 = scmp.lt.s32.totalorder %s11989_s24, 3  ;;  %s11991_s26 = smov [#allocation4]  }
   0x3   : > { %s235_s27 = sshll.u32 %s11991_s26, 4  ;;  %p14956_p3 = scmp.eq.s32.totalorder %s12043_s25, 0  ;;  %s236_s27 = int_to_ptr.vmem [resolvable:$true] %s235_s27 }
   0x4   : > { %p12047_p2 = pnand %p8653_p0, %p217_p1  ;;  %s11951_s9 = scalar_lea.hbm %s14951_s3, 25600 }
   0x5   : > { %p11952_p6 = scmp.ne.s32.totalorder %s14951_s3, %s11951_s9  ;;  %p11958_p10 = scmp.lt.u32.totalorder %s11951_s9, %s14951_s3 }
   0x6   : > { %s15248_s28 = scalar_select %p12047_p2, 1, 0 }
   0x7   : > { %p11701_p4 = pneg %p12047_p2 }
   0x9   : > { %p12056_p5 = pnand %p14956_p3, %p11701_p4 }
   0xb   : > { %p11953_p7 = pneg %p12056_p5 }
   0xd   : > { %p11954_p8 = pnand %p11953_p7, %p11952_p6 }
   0xf   : > { %p11955_p9 = pneg %p11954_p8 }
  0x11   : > { %p11960_p11 = pnand %p11958_p10, %p11955_p9 }
  0x13   : > { %11963 = shalt.err (!%p11960_p11)
}
  0x14   : > { %s11964_s14 = scalar_lea.vmem %s236_s27, 25600  ;;  %p11972_p1 = scmp.lt.s32.totalorder %s236_s27, %s236_s27 }
  0x15   : > { %p11965_p12 = scmp.ne.s32.totalorder %s236_s27, %s11964_s14  ;;  %p11973_p4 = scmp.lt.s32.totalorder %s11964_s14, %s11964_s14 }
  0x17   : > { %p11967_p13 = pnand %p11965_p12, %p11953_p7  ;;  %p11974_p3 = por %p11973_p4, %p11972_p1 }
  0x19   : > { %p11968_p0 = pneg %p11967_p13 }
  0x1b   : > { %p11975_p2 = pnand %p11974_p3, %p11968_p0 }
  0x1d   : > { %11978 = shalt.err (!%p11975_p2)
}
  0x1e   : > { %s11992_s15 = smov 64   ;;  %s11993_s16 = smov 4  }
  0x1f   : > { %11704 = dma.hbm_to_vmem [thread:$0]  (!%p12056_p5), %s14951_s3, 25600, %s236_s27, [#allocation5], %s11992_s15, %s11992_s15, %s11993_s16  }
  0x20   : > { %p15250_p6 = scmp.ne.s32.totalorder %s15248_s28, 0 }
  0x22   : > { %259 = sbr.rel (%p15250_p6) target bundleno = 1497 (0x5d9), region = 36 }
  0x29   : > { %p15251_p8 = scmp.eq.s32.totalorder %s12043_s25, 0 }
  0x2b   : > { %11984 = dma.done.wait (%p15251_p8), [#allocation5], 25600   ;;  %p15252_p7 = pmov %p15251_p8 }
  0x2c   : > { %v11994_v0 = vmov 0.0   ;;  %vm11995_vm0 = vmmov 0   ;;  %p302_p2 = scmp.lt.s32.totalorder %s12043_s25, 1  ;;  %v11721_v1 = vld [vmem:[%s14949_s1] sm:$0xff]   ;;  %v11722_v2 = vld [vmem:[%s14949_s1 + $0x8] sm:$0xff]   ;;  %v11723_v3 = vld [vmem:[%s14949_s1 + $0x10] sm:$0xff]   ;;  %v938_v19 = vlaneseq }
  0x2d   : > { %11986 = vsyncadd (%p15252_p7), [#allocation5], 4294941696  ;;  %11564 = vmatprep.subr.bf16.mxu0 %v11994_v0  ;;  %895 = vst [vmem:[#allocation2] sm:$0xff] %v11994_v0  ;;  %11580 = vmatprep.mubr.msk.bf16.mxu0 %vm11995_vm0, %v11994_v0  ;;  %v11724_v4 = vld [vmem:[%s14949_s1 + $0x18] sm:$0xff]   ;;  %v11725_v5 = vld [vmem:[%s14949_s1 + $0x20] sm:$0xff]   ;;  %vm14998_vm2 = vmmov 1  }
  0x2e   : > { %896 = vst [vmem:[#allocation2 + $0x8] sm:$0xff] %v11994_v0  ;;  %897 = vst [vmem:[#allocation2 + $0x10] sm:$0xff] %v11994_v0  ;;  %s16062_s25 = smov (!%p302_p2, %s12043_s25), 1  ;;  %11565 = vmatpush3.bf16.msra.mxu0 %v11721_v1  ;;  %v11726_v6 = vld [vmem:[%s14949_s1 + $0x28] sm:$0xff]   ;;  %v11727_v7 = vld [vmem:[%s14949_s1 + $0x30] sm:$0xff]   ;;  %v12142_v25 = vshrl.u32 %v938_v19, 7 }
  0x2f   : > { %898 = vst [vmem:[#allocation2 + $0x18] sm:$0xff] %v11994_v0  ;;  %899 = vst [vmem:[#allocation2 + $0x20] sm:$0xff] %v11994_v0  ;;  %11566 = vmatprep.subr.bf16.mxu0 %v11994_v0  ;;  %s11696_s23 = smul.u32 132, %s16062_s25  ;;  %v11744_v8 = vld [vmem:[#allocation4 + $0x40] sm:$0xff]   ;;  %v11746_v11 = vld [vmem:[#allocation4 + $0x48] sm:$0xff]   ;;  %v15253_v45 = vmov 0  ;;  %s319_s10 = scalar_lea.vmem %s14954_s6, %s16062_s25 }
  0x30   : > { %900 = vst [vmem:[#allocation2 + $0x128] sm:$0xff] %v11994_v0  ;;  %901 = vst [vmem:[#allocation2 + $0x130] sm:$0xff] %v11994_v0  ;;  %v11728_v9 = vld [vmem:[%s14949_s1 + $0x38] sm:$0xff]   ;;  %10196 = vmatprep.subr.bf16.mxu1 %v11744_v8  ;;  %v11747_v12 = vld [vmem:[#allocation4 + $0x8] sm:$0xff]   ;;  %v975_v30 = vand.u32 15, %v12142_v25  ;;  %v15256_v53 = vmov 0  ;;  %s322_s13 = scalar_lea.vmem %s14955_s7, %s16062_s25 }
  0x31   : > { %902 = vst [vmem:[#allocation2 + $0x138] sm:$0xff] %v11994_v0  ;;  %903 = vst [vmem:[#allocation2 + $0x140] sm:$0xff] %v11994_v0  ;;  %s12116_s30 = scalar_lea.vmem %s14948_s0, %s11696_s23  ;;  %v11745_v10 = vld [vmem:[#allocation4] sm:$0xff]   ;;  %v11748_v14 = vld [vmem:[#allocation4 + $0x50] sm:$0xff]   ;;  %v941_v61 = vadd.s32 16, %v12142_v25  ;;  %s12250_s22 = scalar_lea.vmem %s14952_s4, %s11696_s23 }
  0x32   : > { %904 = vst [vmem:[#allocation2 + $0x148] sm:$0xff] %v11994_v0  ;;  %11567 = vmatpush3.bf16.msra.mxu0 %v11722_v2  ;;  %10197 = vmatpush3.bf16.msra.mxu1 %v11745_v10  ;;  %v11729_v13 = vld [vmem:[%s12116_s30] sm:$0xff]   ;;  %v11749_v15 = vld [vmem:[#allocation4 + $0x10] sm:$0xff]   ;;  %v11750_v16 = vld [vmem:[#allocation4 + $0x140] sm:$0xff]   ;;  %v1483_v35 = vadd.s32 4294967295, %v975_v30  ;;  %v1355_v39 = vadd.s32 4294967294, %v975_v30 }
  0x33   : > { %11568 = vmatprep.subr.bf16.mxu0 %v11994_v0  ;;  %10198 = vmatprep.subr.bf16.mxu1 %v11746_v11  ;;  %v11751_v17 = vld [vmem:[#allocation4 + $0x58] sm:$0xff]   ;;  %v11752_v18 = vld [vmem:[#allocation4 + $0x100] sm:$0xff]   ;;  %v11754_v21 = vld [vmem:[#allocation4 + $0x148] sm:$0xff]   ;;  %v989_v62 = vand.u32 15, %v941_v61  ;;  %v15259_v10 = vmov 0  ;;  %s8955_s27 = sshll.u32 %s16062_s25, 7 }
  0x34   : > { %v11753_v20 = vld [vmem:[#allocation4 + $0x18] sm:$0xff]   ;;  %v11755_v22 = vld [vmem:[#allocation4 + $0x60] sm:$0xff]   ;;  %v11730_v23 = vld [vmem:[%s12116_s30 + $0x8] sm:$0xff]   ;;  %vm1515_vm1 = vcmp.ge.s32.totalorder %v1483_v35, 0  ;;  %vm1387_vm4 = vcmp.ge.s32.totalorder %v1355_v39, 0 }
  0x35   : > { %v11756_v24 = vld [vmem:[#allocation4 + $0x108] sm:$0xff]   ;;  %v11757_v26 = vld [vmem:[#allocation4 + $0x20] sm:$0xff]   ;;  %v11758_v27 = vld [vmem:[#allocation4 + $0x150] sm:$0xff]  }
  0x36   : > { %11569 = vmatpush3.bf16.msra.mxu0 %v11723_v3  ;;  %10199 = vmatpush3.bf16.msra.mxu1 %v11747_v12  ;;  %v11759_v28 = vld [vmem:[#allocation4 + $0x68] sm:$0xff]   ;;  %v11760_v29 = vld [vmem:[#allocation4 + $0x110] sm:$0xff]   ;;  %v11762_v32 = vld [vmem:[#allocation4 + $0x158] sm:$0xff]   ;;  %v1485_v3 = vadd.s32 4294967295, %v989_v62 }
  0x37   : > { %11570 = vmatprep.subr.bf16.mxu0 %v11994_v0  ;;  %10200 = vmatprep.subr.bf16.mxu1 %v11748_v14  ;;  %v11761_v31 = vld [vmem:[#allocation4 + $0x28] sm:$0xff]   ;;  %v11763_v33 = vld [vmem:[#allocation4 + $0x70] sm:$0xff]   ;;  %v11764_v34 = vld [vmem:[#allocation4 + $0x118] sm:$0xff]   ;;  %v15262_v14 = vmov 0 }
  0x38   : > { %v11731_v36 = vld [vmem:[%s12116_s30 + $0x10] sm:$0xff]   ;;  %v11765_v37 = vld [vmem:[#allocation4 + $0x30] sm:$0xff]   ;;  %v11767_v38 = vld [vmem:[#allocation4 + $0x160] sm:$0xff]   ;;  %vm1517_vm6 = vcmp.ge.s32.totalorder %v1485_v3, 0 }
  0x39   : > { %v11768_v40 = vld [vmem:[#allocation4 + $0x78] sm:$0xff]   ;;  %v11769_v41 = vld [vmem:[#allocation4 + $0x120] sm:$0xff]   ;;  %vm12151_vm3 = vmpackc.low %vm14998_vm2, %vm1515_vm1 }
  0x3a   : > { %11571 = vmatpush3.bf16.msra.mxu0 %v11724_v4  ;;  %10201 = vmatpush3.bf16.msra.mxu1 %v11749_v15  ;;  %v11770_v42 = vld [vmem:[#allocation4 + $0x38] sm:$0xff]   ;;  %v15254_v45 = vsel %vm12151_vm3, 4294967295, %v15253_v45  ;;  %v11771_v47 = vld [vmem:[#allocation4 + $0x168] sm:$0xff]   ;;  %v11732_v48 = vld [vmem:[%s12116_s30 + $0x18] sm:$0xff]  }
  0x3b   : > { %11572 = vmatprep.subr.bf16.mxu0 %v11994_v0  ;;  %10202 = vmatprep.subr.bf16.mxu1 %v11751_v17  ;;  %v1963_v43 = vld [vmem:[#allocation2 + $0x7] sm:$0xff]  ;;  %v1964_v44 = vld [vmem:[#allocation2 + $0xf] sm:$0xff]  ;;  %15255 = vst [vmem:[#allocation7_spill] sm:$0xff] %v15254_v45  ;;  %v11772_v52 = vld [vmem:[#allocation4 + $0x128] sm:$0xff]  }
  0x3c   : > { %v9212_v46 = vpack.c.bf16 %v1964_v44, %v1963_v43  ;;  %v1867_v49 = vld [vmem:[#allocation2 + $0x6] sm:$0xff]  ;;  %v1868_v50 = vld [vmem:[#allocation2 + $0xe] sm:$0xff]  ;;  %vm12159_vm5 = vmpackc.low %vm14998_vm2, %vm1387_vm4 }
  0x3d   : > { %v9215_v51 = vpack.c.bf16 %v1868_v50, %v1867_v49  ;;  %v15257_v53 = vsel %vm12159_vm5, 4294967295, %v15256_v53  ;;  %v11733_v54 = vld [vmem:[%s12116_s30 + $0x20] sm:$0xff]   ;;  %v11734_v55 = vld [vmem:[%s12116_s30 + $0x28] sm:$0xff]   ;;  %v11735_v56 = vld [vmem:[%s12116_s30 + $0x30] sm:$0xff]  }
  0x3e   : > { %11573 = vmatpush3.bf16.msra.mxu0 %v11725_v5  ;;  %10203 = vmatpush3.bf16.msra.mxu1 %v11753_v20  ;;  %15258 = vst [vmem:[#allocation8_spill] sm:$0xff] %v15257_v53  ;;  %v11736_v57 = vld [vmem:[%s12116_s30 + $0x38] sm:$0xff]   ;;  %v11737_v58 = vld [vmem:[%s12116_s30 + $0x40] sm:$0xff]   ;;  %v11738_v59 = vld [vmem:[%s12116_s30 + $0x48] sm:$0xff]  }
  0x3f   : > { %11574 = vmatprep.subr.bf16.mxu0 %v11994_v0  ;;  %10204 = vmatprep.subr.bf16.mxu1 %v11755_v22  ;;  %v11739_v60 = vld [vmem:[%s12116_s30 + $0x50] sm:$0xff]   ;;  %v11740_v63 = vld [vmem:[%s12116_s30 + $0x58] sm:$0xff]   ;;  %v11776_v1 = vld [vmem:[#allocation4 + $0x170] sm:$0xff]  }
  0x40   : > { %9213 = vmatprep.mubr.msk.bf16.mxu1 %vm12151_vm3, %v9212_v46  ;;  %v11777_v2 = vld [vmem:[#allocation4 + $0x130] sm:$0xff]   ;;  %v1965_v4 = vld [vmem:[#allocation2 + $0x17] sm:$0xff]  ;;  %vm12191_vm7 = vmpackc.low %vm14998_vm2, %vm1517_vm6 }
  0x41   : > { %v1966_v5 = vld [vmem:[#allocation2 + $0x1f] sm:$0xff]  ;;  %v1869_v8 = vld [vmem:[#allocation2 + $0x16] sm:$0xff]  ;;  %v15260_v10 = vsel %vm12191_vm7, 4294967295, %v15259_v10  ;;  %v11778_v11 = vld [vmem:[#allocation4 + $0x178] sm:$0xff]  }
  0x42   : > { %11575 = vmatpush3.bf16.msra.mxu0 %v11726_v6  ;;  %10205 = vmatpush3.bf16.msra.mxu1 %v11757_v26  ;;  %v1357_v6 = vadd.s32 4294967294, %v989_v62  ;;  %15261 = vst [vmem:[#allocation9_spill] sm:$0xff] %v15260_v10  ;;  %v11779_v15 = vld [vmem:[#allocation4 + $0x138] sm:$0xff]   ;;  %v11775_v17 = vld [vmem:[#allocation4 + $0x80] sm:$0xff]   ;;  %v11780_v19 = vld [vmem:[#allocation4 + $0xc8] sm:$0xff]   ;;  %v945_v62 = vadd.s32 48, %v12142_v25 }
  0x43   : > { %11576 = vmatprep.subr.bf16.mxu0 %v11994_v0  ;;  %10206 = vmatprep.subr.bf16.mxu1 %v11759_v28  ;;  %v11743_v20 = vld [vmem:[%s12116_s30 + $0x70] sm:$0xff]   ;;  %v11946_v22 = vld [vmem:[#allocation2] sm:$0xff]  ;;  %v11789_v39 = vld [vmem:[#allocation4 + $0xa8] sm:$0xff]  }
  0x44   : > { %vm1389_vm8 = vcmp.ge.s32.totalorder %v1357_v6, 0  ;;  %v11782_v26 = vld [vmem:[#allocation4 + $0xd0] sm:$0xff]   ;;  %v2219_v30 = vld [vmem:[#allocation2 + $0xa] sm:$0xff]  ;;  %v11794_v44 = vld [vmem:[#allocation4 + $0x248] sm:$0xff]  }
  0x45   : > { %vm12198_vm9 = vmpackc.low %vm14998_vm2, %vm1389_vm8  ;;  %v11783_v28 = vld [vmem:[#allocation4 + $0x90] sm:$0xff]   ;;  %v11785_v35 = vld [vmem:[#allocation4 + $0x98] sm:$0xff]  }
  0x46   : > { %11577 = vmatpush3.bf16.msra.mxu0 %v11727_v7  ;;  %10207 = vmatpush3.bf16.msra.mxu1 %v11761_v31  ;;  %v9218_v7 = vpack.c.bf16 %v1966_v5, %v1965_v4  ;;  %v15263_v14 = vsel %vm12198_vm9, 4294967295, %v15262_v14  ;;  %v2220_v31 = vld [vmem:[#allocation2 + $0x12] sm:$0xff]  ;;  %v11800_v49 = vld [vmem:[#allocation4 + $0x258] sm:$0xff]   ;;  %v11809_v6 = vld [vmem:[#allocation4 + $0x230] sm:$0xff]  }
  0x47   : > { %11578 = vmatprep.subr.bf16.mxu0 %v11994_v0  ;;  %10208 = vmatprep.subr.bf16.mxu1 %v11763_v33  ;;  %15264 = vst [vmem:[#allocation10_spill] sm:$0xff] %v15263_v14  ;;  %v15265_v33 = vmov 0  ;;  %v11793_v43 = vld [vmem:[#allocation4 + $0x200] sm:$0xff]   ;;  %v11795_v46 = vld [vmem:[#allocation4 + $0x208] sm:$0xff]   ;;  %v11796_v50 = vld [vmem:[#allocation4 + $0xf8] sm:$0xff]   ;;  %v15372_v14 = vmov 0 }
  0x48   : > { %v11806_v4 = vld [vmem:[#allocation4 + $0x1c0] sm:$0xff]  }
  0x4a   : > { %11579 = vmatpush3.bf16.msra.mxu0 %v11728_v9  ;;  %10209 = vmatpush3.bf16.msra.mxu1 %v11765_v37  ;;  %v1870_v9 = vld [vmem:[#allocation2 + $0x1e] sm:$0xff]  ;;  %v11787_v37 = vld [vmem:[#allocation4 + $0xa0] sm:$0xff]  }
  0x4b   : > { %10420 = vmatprep.subr.bf16.mxu0 %v11750_v16  ;;  %10210 = vmatprep.subr.bf16.mxu1 %v11768_v40  ;;  %v9221_v12 = vpack.c.bf16 %v1870_v9, %v1869_v8  ;;  %v11741_v16 = vld [vmem:[%s12116_s30 + $0x60] sm:$0xff]   ;;  %v11790_v40 = vld [vmem:[#allocation4 + $0xf0] sm:$0xff]  }
  0x4d   : > { %11581 = vmatmul.mubr.bf16.vlgmr.msra.gmra.mrb[0].mxu0 %v11729_v13  ;;  %v11773_v13 = vld [vmem:[#allocation4 + $0xc0] sm:$0xff]  }
  0x4e   : > { %11584 = vmatprep.mubr.msk.bf16.mxu0 %vm11995_vm0, %v11994_v0  ;;  %10421 = vmatpush3.bf16.msra.mxu0 %v11752_v18  ;;  %v11742_v18 = vld [vmem:[%s12116_s30 + $0x68] sm:$0xff]  }
  0x4f   : > { %10422 = vmatprep.subr.bf16.mxu0 %v11754_v21  ;;  %10211 = vmatpush3.bf16.msra.mxu1 %v11770_v42  ;;  %v11781_v21 = vld [vmem:[#allocation4 + $0x88] sm:$0xff]   ;;  %v11791_v42 = vld [vmem:[#allocation4 + $0xb0] sm:$0xff]  }
  0x50   : > { %10308 = vmatprep.subr.bf16.mxu1 %v11773_v13  ;;  %v1017_v13 = vand.u32 15, %v945_v62 }
  0x52   : > { %10423 = vmatpush3.bf16.msra.mxu0 %v11756_v24  ;;  %9216 = vmatmul.mubr.msk.bf16.vlgmr.msra.gmra.mrb[0].mxu1 %vm12159_vm5, %v9215_v51  ;;  %v12216_v24 = vadd.s32 8, %v12142_v25  ;;  %v11801_v51 = vld [vmem:[#allocation4 + $0x218] sm:$0xff]  }
  0x53   : > { %10424 = vmatprep.subr.bf16.mxu0 %v11758_v27  ;;  %9219 = vmatprep.mubr.msk.bf16.mxu1 %vm12191_vm7, %v9218_v7 }
  0x54   : > { %10309 = vmatpush3.bf16.msra.mxu1 %v11775_v17  ;;  %v15009_v27 = vand.u32 15, %v12216_v24 }
  0x55   : > { %11585 = vmatmul.mubr.bf16.gmra.mrb[4].mxu0 %v11730_v23  ;;  %10310 = vmatprep.subr.bf16.mxu1 %v11780_v19  ;;  %v11766_v23 = vld [vmem:[%s12116_s30 + $0x78] sm:$0xff]  }
  0x56   : > { %11588 = vmatprep.mubr.msk.bf16.mxu0 %vm11995_vm0, %v11994_v0  ;;  %10425 = vmatpush3.bf16.msra.mxu0 %v11760_v29  ;;  %v1740_v29 = vadd.s32 2, %v15009_v27 }
  0x57   : > { %10426 = vmatprep.subr.bf16.mxu0 %v11762_v32  ;;  %v9359_v32 = vpack.c.bf16 %v2220_v31, %v2219_v30 }
  0x58   : > { %10311 = vmatpush3.bf16.msra.mxu1 %v11781_v21  ;;  %vm1804_vm10 = vcmp.lt.s32.totalorder %v1740_v29, 16  ;;  %v12255_v21 = vadd.s32 40, %v12142_v25 }
  0x59   : > { %10312 = vmatprep.subr.bf16.mxu1 %v11782_v26  ;;  %vm12226_vm11 = vmpackc.low %vm1804_vm10, %vm14998_vm2  ;;  %v947_v26 = vadd.s32 64, %v12142_v25 }
  0x5a   : > { %10427 = vmatpush3.bf16.msra.mxu0 %v11764_v34  ;;  %9222 = vmatmul.mubr.msk.bf16.gmra.mrb[4].mxu1 %vm12198_vm9, %v9221_v12  ;;  %v15266_v33 = vsel %vm12226_vm11, 4294967295, %v15265_v33  ;;  %v11784_v34 = vld [vmem:[#allocation4 + $0xd8] sm:$0xff]  }
  0x5b   : > { %10428 = vmatprep.subr.bf16.mxu0 %v11767_v38  ;;  %15267 = vst [vmem:[#allocation11_spill] sm:$0xff] %v15266_v33  ;;  %v11788_v38 = vld [vmem:[#allocation4 + $0xe8] sm:$0xff]   ;;  %v11830_v33 = vld [vmem:[#allocation4 + $0x350] sm:$0xff]  }
  0x5c   : > { %10313 = vmatpush3.bf16.msra.mxu1 %v11783_v28 }
  0x5d   : > { %11589 = vmatmul.mubr.bf16.gmra.mrb[8].mxu0 %v11731_v36  ;;  %10314 = vmatprep.subr.bf16.mxu1 %v11784_v34  ;;  %v11786_v36 = vld [vmem:[#allocation4 + $0xe0] sm:$0xff]   ;;  %v15007_v34 = vand.u32 15, %v12255_v21 }
  0x5e   : > { %11592 = vmatprep.mubr.msk.bf16.mxu0 %vm11995_vm0, %v11994_v0  ;;  %10429 = vmatpush3.bf16.msra.mxu0 %v11769_v41  ;;  %v11792_v41 = vld [vmem:[#allocation4 + $0x240] sm:$0xff]  }
  0x5f   : > { %10430 = vmatprep.subr.bf16.mxu0 %v11771_v47  ;;  %v11798_v47 = vld [vmem:[#allocation4 + $0x250] sm:$0xff]  }
  0x60   : > { %10315 = vmatpush3.bf16.msra.mxu1 %v11785_v35 }
  0x61   : > { %10316 = vmatprep.subr.bf16.mxu1 %v11786_v36  ;;  %v15268_v36 = vmov 0 }
  0x62   : > { %10431 = vmatpush3.bf16.msra.mxu0 %v11772_v52  ;;  %v11802_v52 = vld [vmem:[#allocation4 + $0x260] sm:$0xff]  }
  0x63   : > { %10432 = vmatprep.subr.bf16.mxu0 %v11776_v1 }
  0x64   : > { %10317 = vmatpush3.bf16.msra.mxu1 %v11787_v37  ;;  %v1031_v37 = vand.u32 15, %v947_v26 }
  0x65   : > { %11593 = vmatmul.mubr.bf16.gmra.mrb[12].mxu0 %v11732_v48  ;;  %10318 = vmatprep.subr.bf16.mxu1 %v11788_v38  ;;  %v11799_v48 = vld [vmem:[#allocation4 + $0x210] sm:$0xff]  }
  0x66   : > { %11596 = vmatprep.mubr.msk.bf16.mxu0 %vm11995_vm0, %v11994_v0  ;;  %10433 = vmatpush3.bf16.msra.mxu0 %v11777_v2 }
  0x67   : > { %10434 = vmatprep.subr.bf16.mxu0 %v11778_v11 }
  0x68   : > { %10319 = vmatpush3.bf16.msra.mxu1 %v11789_v39 }
  0x69   : > { %10320 = vmatprep.subr.bf16.mxu1 %v11790_v40  ;;  %v15270_v40 = vmov 0 }
  0x6a   : > { %10435 = vmatpush3.bf16.msra.mxu0 %v11779_v15  ;;  %v11811_v15 = vld [vmem:[#allocation4 + $0x238] sm:$0xff]  }
  0x6b   : > { %10644 = vmatprep.subr.bf16.mxu0 %v11792_v41  ;;  %v2221_v41 = vld [vmem:[#allocation2 + $0x1a] sm:$0xff] }
  0x6c   : > { %10321 = vmatpush3.bf16.msra.mxu1 %v11791_v42 }
  0x6d   : > { %11597 = vmatmul.mubr.bf16.gmra.mrb[16].mxu0 %v11733_v54  ;;  %10322 = vmatprep.subr.bf16.mxu1 %v11796_v50  ;;  %v11797_v54 = vld [vmem:[#allocation4 + $0xb8] sm:$0xff]   ;;  %v15276_v50 = vmov 0 }
  0x6e   : > { %11600 = vmatprep.mubr.msk.bf16.mxu0 %vm11995_vm0, %v11994_v0 }
  0x70   : > { %10323 = vmatpush3.bf16.msra.mxu1 %v11797_v54 }
  0x71   : > { %10532 = vmatprep.subr.bf16.mxu1 %v11806_v4 }
  0x75   : > { %11601 = vmatmul.mubr.bf16.gmra.mrb[20].mxu0 %v11734_v55  ;;  %v11803_v55 = vld [vmem:[#allocation4 + $0x220] sm:$0xff]  }
  0x76   : > { %11604 = vmatprep.mubr.msk.bf16.mxu0 %vm11995_vm0, %v11994_v0 }
  0x7d   : > { %11605 = vmatmul.mubr.bf16.gmra.mrb[24].mxu0 %v11735_v56  ;;  %v11804_v56 = vld [vmem:[#allocation4 + $0x268] sm:$0xff]  }
  0x7e   : > { %11608 = vmatprep.mubr.msk.bf16.mxu0 %vm11995_vm0, %v11994_v0 }
  0x85   : > { %11609 = vmatmul.mubr.bf16.gmra.mrb[28].mxu0 %v11736_v57  ;;  %v11805_v57 = vld [vmem:[#allocation4 + $0x228] sm:$0xff]  }
  0x86   : > { %11612 = vmatprep.mubr.msk.bf16.mxu0 %vm11995_vm0, %v11994_v0 }
  0x8d   : > { %11613 = vmatmul.mubr.bf16.gmra.mrb[32].mxu0 %v11737_v58  ;;  %v943_v58 = vadd.s32 32, %v12142_v25 }
  0x8e   : > { %11616 = vmatprep.mubr.msk.bf16.mxu0 %vm11995_vm0, %v11994_v0 }
  0x8f   : > { %v1003_v3 = vand.u32 15, %v943_v58 }
  0x91   : > { %v1487_v17 = vadd.s32 4294967295, %v1003_v3 }
  0x93   : > { %vm1519_vm12 = vcmp.ge.s32.totalorder %v1487_v17, 0 }
  0x94   : > { %vm12263_vm15 = vmpackc.low %vm14998_vm2, %vm1519_vm12 }
  0x95   : > { %11617 = vmatmul.mubr.bf16.gmra.mrb[36].mxu0 %v11738_v59  ;;  %v12236_v59 = vld [vmem:[%s14950_s2] ss:$0 sm:$0xff]  ;;  %v15269_v36 = vsel %vm12263_vm15, 4294967295, %v15268_v36 }
  0x96   : > { %11620 = vmatprep.mubr.msk.bf16.mxu0 %vm11995_vm0, %v11994_v0 }
  0x9d   : > { %11621 = vmatmul.mubr.bf16.gmra.mrb[40].mxu0 %v11739_v60  ;;  %v12239_v60 = vadd.s32 24, %v12142_v25 }
  0x9e   : > { %11624 = vmatprep.mubr.msk.bf16.mxu0 %vm11995_vm0, %v11994_v0 }
  0x9f   : > { %v15008_v11 = vand.u32 15, %v12239_v60 }
  0xa5   : > { %11625 = vmatmul.mubr.bf16.gmra.mrb[44].mxu0 %v11740_v63  ;;  %v11808_v63 = vld [vmem:[#allocation4 + $0x270] sm:$0xff]  }
  0xa6   : > { %11628 = vmatprep.mubr.msk.bf16.mxu0 %vm11995_vm0, %v11994_v0 }
  0xad   : > { %11629 = vmatmul.mubr.bf16.gmra.mrb[48].mxu0 %v11741_v16 }
  0xae   : > { %11632 = vmatprep.mubr.msk.bf16.mxu0 %vm11995_vm0, %v11994_v0 }
  0xb5   : > { %11633 = vmatmul.mubr.bf16.gmra.mrb[52].mxu0 %v11742_v18  ;;  %v1359_v18 = vadd.s32 4294967294, %v1003_v3 }
  0xb6   : > { %11636 = vmatprep.mubr.msk.bf16.mxu0 %vm11995_vm0, %v11994_v0  ;;  %v11774_v0 = vld [vmem:[%s12116_s30 + $0x80] ss:$0 sps:$4 sm:$0xff]   ;;  %s14660_s30 = scalar_lea.vmem %s14953_s5, %s8955_s27 }
  0xb7   : > { %vm1391_vm13 = vcmp.ge.s32.totalorder %v1359_v18, 0  ;;  %v15284_v18 = vmov 0 }
  0xb8   : > { %vm12268_vm1 = vmpackc.low %vm14998_vm2, %vm1391_vm13 }
  0xb9   : > { %v15271_v40 = vsel %vm12268_vm1, 4294967295, %v15270_v40 }
  0xba   : > { %15272 = vst [vmem:[#allocation12_spill] sm:$0xff] %v15271_v40 }
  0xbd   : > { %11637 = vmatmul.mubr.bf16.gmra.mrb[56].mxu0 %v11743_v20  ;;  %v1742_v20 = vadd.s32 2, %v15008_v11  ;;  %v12560_v11 = vadd.s32 184, %v12142_v25 }
  0xbe   : > { %11640 = vmatprep.mubr.msk.bf16.mxu0 %vm11995_vm0, %v11946_v22 }
  0xbf   : > { %vm1806_vm14 = vcmp.lt.s32.totalorder %v1742_v20, 16  ;;  %v12321_v20 = vadd.s32 72, %v12142_v25 }
  0xc0   : > { %vm12273_vm4 = vmpackc.low %vm1806_vm14, %vm14998_vm2 }
  0xc5   : > { %11641 = vmatmul.mubr.bf16.gmra.mrb[60].mxu0 %v11766_v23  ;;  %v1489_v23 = vadd.s32 4294967295, %v1017_v13 }
  0xc6   : > { %11644 = vmatprep.mubr.msk.bf16.mxu0 %vm11995_vm0, %v11946_v22 }
  0xc7   : > { %vm1521_vm0 = vcmp.ge.s32.totalorder %v1489_v23, 0 }
  0xc8   : > { %vm12281_vm6 = vmpackc.low %vm14998_vm2, %vm1521_vm0 }
  0xc9   : > { %v15277_v50 = vsel %vm12281_vm6, 4294967295, %v15276_v50 }
  0xcd   : > { %11645 = vmatmul.mubr.bf16.gmra.mrb[64].mxu0 %v11774_v0 }
  0xce   : > { %9357 = vmatprep.mubr.msk.bf16.mxu0 %vm12159_vm5, %v9221_v12  ;;  %v11810_v12 = vld [vmem:[#allocation4 + $0x278] sm:$0xff]  }
  0xd5   : > { %9360 = vmatmul.mubr.msk.bf16.vlgmr.msra.gmra.mrb[68].mxu0 %vm12226_vm11, %v9359_v32 }
  0xd6   : > { %10645 = vmatpush3.bf16.msra.mxu0 %v11793_v43 }
  0xd7   : > { %10646 = vmatprep.subr.bf16.mxu0 %v11794_v44 }
  0xda   : > { %10647 = vmatpush3.bf16.msra.mxu0 %v11795_v46  ;;  %v15273_v46 = vmov 0 }
  0xdb   : > { %10648 = vmatprep.subr.bf16.mxu0 %v11798_v47  ;;  %v15274_v46 = vsel %vm12273_vm4, 4294967295, %v15273_v46  ;;  %v1361_v47 = vadd.s32 4294967294, %v1017_v13  ;;  %v1363_v13 = vadd.s32 4294967294, %v1031_v37 }
  0xdc   : > { %15275 = vst [vmem:[#allocation13_spill] sm:$0xff] %v15274_v46 }
  0xdd   : > { %vm1393_vm8 = vcmp.ge.s32.totalorder %v1361_v47, 0  ;;  %v15291_v47 = vmov 0 }
  0xde   : > { %10649 = vmatpush3.bf16.msra.mxu0 %v11799_v48  ;;  %vm12304_vm13 = vmpackc.low %vm14998_vm2, %vm1393_vm8  ;;  %vm1395_vm8 = vcmp.ge.s32.totalorder %v1363_v13, 0 }
  0xdf   : > { %10650 = vmatprep.subr.bf16.mxu0 %v11800_v49 }
  0xe2   : > { %10651 = vmatpush3.bf16.msra.mxu0 %v11801_v51  ;;  %v1744_v51 = vadd.s32 2, %v15007_v34  ;;  %v15349_v34 = vmov 0 }
  0xe3   : > { %10652 = vmatprep.subr.bf16.mxu0 %v11802_v52  ;;  %v12288_v52 = vadd.s32 56, %v12142_v25 }
  0xe4   : > { %vm1808_vm10 = vcmp.lt.s32.totalorder %v1744_v51, 16 }
  0xe5   : > { %v14997_v3 = vand.u32 15, %v12288_v52  ;;  %vm12309_vm14 = vmpackc.low %vm1808_vm10, %vm14998_vm2 }
  0xe6   : > { %10653 = vmatpush3.bf16.msra.mxu0 %v11803_v55 }
  0xe7   : > { %10654 = vmatprep.subr.bf16.mxu0 %v11804_v56  ;;  %v1491_v56 = vadd.s32 4294967295, %v1031_v37  ;;  %v14996_v37 = vand.u32 15, %v12321_v20 }
  0xe9   : > { %vm1523_vm12 = vcmp.ge.s32.totalorder %v1491_v56, 0  ;;  %v1748_v56 = vadd.s32 2, %v14996_v37 }
  0xea   : > { %10655 = vmatpush3.bf16.msra.mxu0 %v11805_v57  ;;  %v949_v57 = vadd.s32 80, %v12142_v25  ;;  %vm12314_vm0 = vmpackc.low %vm14998_vm2, %vm1523_vm12 }
  0xeb   : > { %10656 = vmatprep.subr.bf16.mxu0 %v11808_v63  ;;  %v15285_v18 = vsel %vm12314_vm0, 4294967295, %v15284_v18 }
  0xec   : > { %v1045_v4 = vand.u32 15, %v949_v57  ;;  %15286 = vst [vmem:[#allocation16_spill] sm:$0xff] %v15285_v18  ;;  %v12357_v57 = vadd.s32 88, %v12142_v25 }
  0xee   : > { %10657 = vmatpush3.bf16.msra.mxu0 %v11809_v6  ;;  %v1493_v26 = vadd.s32 4294967295, %v1045_v4 }
  0xef   : > { %10658 = vmatprep.subr.bf16.mxu0 %v11810_v12  ;;  %v15281_v12 = vmov 0 }
  0xf0   : > { %v15282_v12 = vsel %vm12309_vm14, 4294967295, %v15281_v12  ;;  %vm1525_vm12 = vcmp.ge.s32.totalorder %v1493_v26, 0  ;;  %v15300_v26 = vmov 0 }
  0xf1   : > { %15283 = vst [vmem:[#allocation15_spill] sm:$0xff] %v15282_v12  ;;  %vm12350_vm5 = vmpackc.low %vm14998_vm2, %vm1525_vm12  ;;  %v15421_v12 = vmov 0 }
  0xf2   : > { %10659 = vmatpush3.bf16.msra.mxu0 %v11811_v15 }
 0x120   : > { %v562_v61 = vpop.f32.mrb[0].mxu0 }
 0x121   : > { %v563_v1 = vadd.f32 %v12236_v59, %v562_v61  ;;  %v11582_v2 = vpop.f32.mrb[1].mxu0 }
 0x122   : > { %v565_v5 = vpop.f32.mrb[2].mxu0 }
 0x123   : > { %v696_v7 = vmax.f32 %v563_v1, 0.0  ;;  %v566_v8 = vadd.f32 %v12236_v59, %v565_v5  ;;  %v11583_v9 = vpop.f32.mrb[3].mxu0 }
 0x125   : > { %905 = vst [vmem:[#allocation2 + $0x27] sm:$0xfe] %v696_v7  ;;  %v697_v16 = vmax.f32 %v566_v8, 0.0 }
 0x127   : > { %v9024_v19 = vpack.c.bf16 %v697_v16, %v696_v7  ;;  %906 = vst [vmem:[#allocation2 + $0x2f] sm:$0xff] %v697_v16  ;;  %v15278_v7 = vmov 0 }
 0x128   : > { %v570_v22 = vpop.f32.mrb[4].mxu0  ;;  %v15279_v7 = vsel %vm12304_vm13, 4294967295, %v15278_v7 }
 0x129   : > { %9025 = vst [vmem:[%s12250_s22] sm:$0xff] %v9024_v19   ;;  %v571_v0 = vadd.f32 %v12236_v59, %v570_v22  ;;  %v11586_v28 = vpop.f32.mrb[5].mxu0  ;;  %15280 = vst [vmem:[#allocation14_spill] sm:$0xff] %v15279_v7  ;;  %v1746_v19 = vadd.s32 2, %v14997_v3 }
 0x12a   : > { %v573_v29 = vpop.f32.mrb[6].mxu0 }
 0x12b   : > { %v698_v30 = vmax.f32 %v571_v0, 0.0  ;;  %v574_v31 = vadd.f32 %v12236_v59, %v573_v29  ;;  %v11587_v32 = vpop.f32.mrb[7].mxu0  ;;  %v951_v0 = vadd.s32 96, %v12142_v25  ;;  %vm1810_vm10 = vcmp.lt.s32.totalorder %v1746_v19, 16 }
 0x12c   : > { %v1967_v35 = vld [vmem:[#allocation2 + $0x27] sm:$0xff] }
 0x12d   : > { %907 = vst [vmem:[#allocation2 + $0x37] sm:$0xff] %v698_v30  ;;  %v699_v38 = vmax.f32 %v574_v31, 0.0  ;;  %v9224_v39 = vpack.c.bf16 %v697_v16, %v1967_v35  ;;  %v2222_v42 = vld [vmem:[#allocation2 + $0x22] sm:$0xff] }
 0x12e   : > { %v2317_v43 = vld [vmem:[#allocation2 + $0x26] sm:$0xff]  ;;  %v2318_v44 = vld [vmem:[#allocation2 + $0x2e] sm:$0xff]  ;;  %v9365_v55 = vpack.c.bf16 %v2222_v42, %v2221_v41  ;;  %v15288_v41 = vmov 0 }
 0x12f   : > { %v9029_v48 = vpack.c.bf16 %v699_v38, %v698_v30  ;;  %908 = vst [vmem:[#allocation2 + $0x3f] sm:$0xff] %v699_v38  ;;  %9225 = vmatprep.mubr.msk.bf16.mxu1 %vm12263_vm15, %v9224_v39  ;;  %v9362_v49 = vpack.c.bf16 %v2318_v44, %v2317_v43  ;;  %v3115_v15 = vld [vmem:[#allocation2 + $0x2a] sm:$0xff]  ;;  %v1059_v38 = vand.u32 15, %v951_v0 }
 0x130   : > { %v578_v54 = vpop.f32.mrb[8].mxu0 }
 0x131   : > { %9181 = vst [vmem:[%s12250_s22 + $0x8] sm:$0xff] %v9029_v48   ;;  %v579_v58 = vadd.f32 %v12236_v59, %v578_v54  ;;  %v11590_v61 = vpop.f32.mrb[9].mxu0  ;;  %9363 = vmatprep.mubr.msk.bf16.mxu0 %vm12198_vm9, %v9362_v49  ;;  %9228 = vmatmul.mubr.msk.bf16.gmra.mrb[8].mxu1 %vm12268_vm1, %v9362_v49  ;;  %vm12345_vm9 = vmpackc.low %vm1810_vm10, %vm14998_vm2  ;;  %vm1812_vm10 = vcmp.lt.s32.totalorder %v1748_v56, 16  ;;  %v1367_v0 = vadd.s32 4294967294, %v1059_v38 }
 0x132   : > { %v581_v62 = vpop.f32.mrb[10].mxu0  ;;  %9366 = vmatmul.mubr.msk.bf16.gmra.mrb[72].mxu0 %vm12273_vm4, %v9365_v55  ;;  %9231 = vmatprep.mubr.msk.bf16.mxu1 %vm12281_vm6, %v9029_v48  ;;  %v15292_v47 = vsel %vm12345_vm9, 4294967295, %v15291_v47  ;;  %v1365_v48 = vadd.s32 4294967294, %v1045_v4  ;;  %v15294_v55 = vmov 0 }
 0x133   : > { %v700_v63 = vmax.f32 %v579_v58, 0.0  ;;  %v582_v1 = vadd.f32 %v12236_v59, %v581_v62  ;;  %v11591_v2 = vpop.f32.mrb[11].mxu0  ;;  %15293 = vst [vmem:[#allocation19_spill] sm:$0xff] %v15292_v47  ;;  %v15295_v55 = vsel %vm12350_vm5, 4294967295, %v15294_v55  ;;  %v1495_v62 = vadd.s32 4294967295, %v1059_v38 }
 0x134   : > { %v3116_v5 = vld [vmem:[#allocation2 + $0x32] sm:$0xff]  ;;  %15296 = vst [vmem:[#allocation20_spill] sm:$0xff] %v15295_v55  ;;  %v955_v38 = vadd.s32 128, %v12142_v25  ;;  %v15425_v47 = vmov 0 }
 0x135   : > { %909 = vst [vmem:[#allocation2 + $0x47] sm:$0xff] %v700_v63  ;;  %v701_v6 = vmax.f32 %v582_v1, 0.0  ;;  %v2319_v8 = vld [vmem:[#allocation2 + $0x36] sm:$0xff]  ;;  %v12323_v22 = vpack.c.bf16 %v3116_v5, %v3115_v15  ;;  %vm1527_vm12 = vcmp.ge.s32.totalorder %v1495_v62, 0 }
 0x136   : > { %v2320_v9 = vld [vmem:[#allocation2 + $0x3e] sm:$0xff] }
 0x137   : > { %v9034_v16 = vpack.c.bf16 %v701_v6, %v700_v63  ;;  %910 = vst [vmem:[#allocation2 + $0x4f] sm:$0xff] %v701_v6  ;;  %v9368_v17 = vpack.c.bf16 %v2320_v9, %v2319_v8  ;;  %15287 = vst [vmem:[#allocation17_spill] sm:$0xff] %v12323_v22  ;;  %v2225_v54 = vld [vmem:[#allocation2 + $0x3a] sm:$0xff]  ;;  %v953_v63 = vadd.s32 112, %v12142_v25  ;;  %v14995_v9 = vand.u32 15, %v12357_v57 }
 0x138   : > { %v586_v23 = vpop.f32.mrb[12].mxu0  ;;  %v2129_v46 = vld [vmem:[#allocation2 + $0x39] sm:$0xff] }
 0x139   : > { %9182 = vst [vmem:[%s12250_s22 + $0x10] sm:$0xff] %v9034_v16   ;;  %v587_v28 = vadd.f32 %v12236_v59, %v586_v23  ;;  %v11594_v29 = vpop.f32.mrb[13].mxu0  ;;  %9369 = vmatprep.mubr.msk.bf16.mxu0 %vm12268_vm1, %v9368_v17  ;;  %9234 = vmatmul.mubr.msk.bf16.gmra.mrb[12].mxu1 %vm12304_vm13, %v9368_v17  ;;  %vm12340_vm1 = vmpackc.low %vm14998_vm2, %vm1395_vm8  ;;  %vm1397_vm8 = vcmp.ge.s32.totalorder %v1365_v48, 0  ;;  %v1073_v13 = vand.u32 15, %v953_v63  ;;  %v15306_v63 = vmov 0 }
 0x13a   : > { %v589_v30 = vpop.f32.mrb[14].mxu0  ;;  %9372 = vmatmul.mubr.msk.bf16.gmra.mrb[76].mxu0 %vm12309_vm14, %v12323_v22  ;;  %9237 = vmatprep.mubr.msk.bf16.mxu1 %vm12314_vm0, %v9034_v16  ;;  %v15289_v41 = vsel %vm12340_vm1, 4294967295, %v15288_v41  ;;  %v15297_v16 = vmov 0  ;;  %vm12383_vm0 = vmpackc.low %vm14998_vm2, %vm1527_vm12 }
 0x13b   : > { %v702_v31 = vmax.f32 %v587_v28, 0.0  ;;  %v590_v32 = vadd.f32 %v12236_v59, %v589_v30  ;;  %v11595_v35 = vpop.f32.mrb[15].mxu0  ;;  %15290 = vst [vmem:[#allocation18_spill] sm:$0xff] %v15289_v41 }
 0x13c   : > { %v2226_v42 = vld [vmem:[#allocation2 + $0x42] sm:$0xff]  ;;  %v12390_v35 = vadd.s32 104, %v12142_v25 }
 0x13d   : > { %911 = vst [vmem:[#allocation2 + $0x57] sm:$0xff] %v702_v31  ;;  %v703_v39 = vmax.f32 %v590_v32, 0.0  ;;  %v2321_v43 = vld [vmem:[#allocation2 + $0x46] sm:$0xff]  ;;  %v9377_v61 = vpack.c.bf16 %v2226_v42, %v2225_v54  ;;  %v1750_v32 = vadd.s32 2, %v14995_v9 }
 0x13e   : > { %v2322_v44 = vld [vmem:[#allocation2 + $0x4e] sm:$0xff] }
 0x13f   : > { %v9039_v49 = vpack.c.bf16 %v703_v39, %v702_v31  ;;  %912 = vst [vmem:[#allocation2 + $0x5f] sm:$0xff] %v703_v39  ;;  %v9374_v51 = vpack.c.bf16 %v2322_v44, %v2321_v43  ;;  %v2227_v30 = vld [vmem:[#allocation2 + $0x4a] sm:$0xff]  ;;  %v15303_v31 = vmov 0  ;;  %v1497_v43 = vadd.s32 4294967295, %v1073_v13 }
 0x140   : > { %v594_v58 = vpop.f32.mrb[16].mxu0  ;;  %v15304_v31 = vsel %vm12383_vm0, 4294967295, %v15303_v31 }
 0x141   : > { %9183 = vst [vmem:[%s12250_s22 + $0x18] sm:$0xff] %v9039_v49   ;;  %v595_v1 = vadd.f32 %v12236_v59, %v594_v58  ;;  %v11598_v2 = vpop.f32.mrb[17].mxu0  ;;  %9375 = vmatprep.mubr.msk.bf16.mxu0 %vm12304_vm13, %v9374_v51  ;;  %9240 = vmatmul.mubr.msk.bf16.gmra.mrb[16].mxu1 %vm12340_vm1, %v9374_v51  ;;  %vm12373_vm13 = vmpackc.low %vm14998_vm2, %vm1397_vm8  ;;  %vm1399_vm8 = vcmp.ge.s32.totalorder %v1367_v0, 0  ;;  %v14994_v58 = vand.u32 15, %v12390_v35  ;;  %vm1529_vm12 = vcmp.ge.s32.totalorder %v1497_v43, 0 }
 0x142   : > { %v597_v4 = vpop.f32.mrb[18].mxu0  ;;  %9378 = vmatmul.mubr.msk.bf16.gmra.mrb[80].mxu0 %vm12345_vm9, %v9377_v61  ;;  %9243 = vmatprep.mubr.msk.bf16.mxu1 %vm12350_vm5, %v9039_v49  ;;  %v15298_v16 = vsel %vm12373_vm13, 4294967295, %v15297_v16  ;;  %vm12378_vm5 = vmpackc.low %vm1812_vm10, %vm14998_vm2  ;;  %15305 = vst [vmem:[#allocation23_spill] sm:$0xff] %v15304_v31  ;;  %vm1814_vm10 = vcmp.lt.s32.totalorder %v1750_v32, 16  ;;  %v1087_v61 = vand.u32 15, %v955_v38  ;;  %v12423_v0 = vadd.s32 120, %v12142_v25 }
 0x143   : > { %v704_v5 = vmax.f32 %v595_v1, 0.0  ;;  %v598_v6 = vadd.f32 %v12236_v59, %v597_v4  ;;  %v11599_v8 = vpop.f32.mrb[19].mxu0  ;;  %15299 = vst [vmem:[#allocation21_spill] sm:$0xff] %v15298_v16  ;;  %v15301_v26 = vsel %vm12378_vm5, 4294967295, %v15300_v26  ;;  %vm12416_vm6 = vmpackc.low %vm14998_vm2, %vm1529_vm12 }
 0x144   : > { %v2228_v17 = vld [vmem:[#allocation2 + $0x52] sm:$0xff]  ;;  %15302 = vst [vmem:[#allocation22_spill] sm:$0xff] %v15301_v26 }
 0x145   : > { %913 = vst [vmem:[#allocation2 + $0x67] sm:$0xff] %v704_v5  ;;  %v705_v15 = vmax.f32 %v598_v6, 0.0  ;;  %v2323_v19 = vld [vmem:[#allocation2 + $0x56] sm:$0xff]  ;;  %v9383_v42 = vpack.c.bf16 %v2228_v17, %v2227_v30  ;;  %v1369_v6 = vadd.s32 4294967294, %v1073_v13  ;;  %v1499_v30 = vadd.s32 4294967295, %v1087_v61 }
 0x146   : > { %v2324_v23 = vld [vmem:[#allocation2 + $0x5e] sm:$0xff]  ;;  %v957_v13 = vadd.s32 144, %v12142_v25  ;;  %v11857_v26 = vld [vmem:[#allocation4 + $0x400] sm:$0xff]  }
 0x147   : > { %v9044_v28 = vpack.c.bf16 %v705_v15, %v704_v5  ;;  %914 = vst [vmem:[#allocation2 + $0x6f] sm:$0xff] %v705_v15  ;;  %v9380_v29 = vpack.c.bf16 %v2324_v23, %v2323_v19  ;;  %v15309_v5 = vmov 0  ;;  %v2229_v17 = vld [vmem:[#allocation2 + $0x5a] sm:$0xff]  ;;  %v15312_v19 = vmov 0 }
 0x148   : > { %v602_v39 = vpop.f32.mrb[20].mxu0  ;;  %v15313_v19 = vsel %vm12416_vm6, 4294967295, %v15312_v19  ;;  %v1752_v23 = vadd.s32 2, %v14994_v58  ;;  %vm1531_vm12 = vcmp.ge.s32.totalorder %v1499_v30, 0 }
 0x149   : > { %9184 = vst [vmem:[%s12250_s22 + $0x20] sm:$0xff] %v9044_v28   ;;  %v603_v44 = vadd.f32 %v12236_v59, %v602_v39  ;;  %v11602_v48 = vpop.f32.mrb[21].mxu0  ;;  %9381 = vmatprep.mubr.msk.bf16.mxu0 %vm12340_vm1, %v9380_v29  ;;  %9246 = vmatmul.mubr.msk.bf16.gmra.mrb[20].mxu1 %vm12373_vm13, %v9380_v29  ;;  %vm12406_vm1 = vmpackc.low %vm14998_vm2, %vm1399_vm8  ;;  %vm1401_vm8 = vcmp.ge.s32.totalorder %v1369_v6, 0 }
 0x14a   : > { %v605_v49 = vpop.f32.mrb[22].mxu0  ;;  %9384 = vmatmul.mubr.msk.bf16.gmra.mrb[84].mxu0 %vm12378_vm5, %v9383_v42  ;;  %9249 = vmatprep.mubr.msk.bf16.mxu1 %vm12383_vm0, %v9044_v28  ;;  %v15307_v63 = vsel %vm12406_vm1, 4294967295, %v15306_v63  ;;  %vm12411_vm0 = vmpackc.low %vm1814_vm10, %vm14998_vm2  ;;  %15314 = vst [vmem:[#allocation26_spill] sm:$0xff] %v15313_v19  ;;  %vm1816_vm10 = vcmp.lt.s32.totalorder %v1752_v23, 16  ;;  %v14993_v48 = vand.u32 15, %v12423_v0 }
 0x14b   : > { %v706_v51 = vmax.f32 %v603_v44, 0.0  ;;  %v606_v54 = vadd.f32 %v12236_v59, %v605_v49  ;;  %v11603_v56 = vpop.f32.mrb[23].mxu0  ;;  %15308 = vst [vmem:[#allocation24_spill] sm:$0xff] %v15307_v63  ;;  %v15310_v5 = vsel %vm12411_vm0, 4294967295, %v15309_v5  ;;  %v1101_v49 = vand.u32 15, %v957_v13  ;;  %vm12449_vm15 = vmpackc.low %vm14998_vm2, %vm1531_vm12 }
 0x14c   : > { %v2230_v1 = vld [vmem:[#allocation2 + $0x62] sm:$0xff]  ;;  %15311 = vst [vmem:[#allocation25_spill] sm:$0xff] %v15310_v5  ;;  %v1754_v23 = vadd.s32 2, %v14993_v48  ;;  %v15339_v48 = vmov 0  ;;  %v15360_v63 = vmov 0 }
 0x14d   : > { %915 = vst [vmem:[#allocation2 + $0x77] sm:$0xff] %v706_v51  ;;  %v707_v62 = vmax.f32 %v606_v54, 0.0  ;;  %v2325_v2 = vld [vmem:[#allocation2 + $0x66] sm:$0xff]  ;;  %v9389_v29 = vpack.c.bf16 %v2230_v1, %v2229_v17  ;;  %v15315_v54 = vmov 0  ;;  %v15321_v17 = vmov 0 }
 0x14e   : > { %v2326_v4 = vld [vmem:[#allocation2 + $0x6e] sm:$0xff]  ;;  %v15322_v17 = vsel %vm12449_vm15, 4294967295, %v15321_v17  ;;  %v1501_v13 = vadd.s32 4294967295, %v1101_v49 }
 0x14f   : > { %v9049_v8 = vpack.c.bf16 %v707_v62, %v706_v51  ;;  %916 = vst [vmem:[#allocation2 + $0x7f] sm:$0xff] %v707_v62  ;;  %v9386_v15 = vpack.c.bf16 %v2326_v4, %v2325_v2  ;;  %v15318_v2 = vmov 0  ;;  %v1371_v4 = vadd.s32 4294967294, %v1087_v61  ;;  %15323 = vst [vmem:[#allocation29_spill] sm:$0xff] %v15322_v17 }
 0x150   : > { %v610_v28 = vpop.f32.mrb[24].mxu0  ;;  %v959_v61 = vadd.s32 160, %v12142_v25  ;;  %vm1533_vm12 = vcmp.ge.s32.totalorder %v1501_v13, 0 }
 0x151   : > { %9185 = vst [vmem:[%s12250_s22 + $0x28] sm:$0xff] %v9049_v8   ;;  %v611_v32 = vadd.f32 %v12236_v59, %v610_v28  ;;  %v11606_v39 = vpop.f32.mrb[25].mxu0  ;;  %9387 = vmatprep.mubr.msk.bf16.mxu0 %vm12373_vm13, %v9386_v15  ;;  %9252 = vmatmul.mubr.msk.bf16.gmra.mrb[24].mxu1 %vm12406_vm1, %v9386_v15  ;;  %vm12439_vm13 = vmpackc.low %vm14998_vm2, %vm1401_vm8  ;;  %v2231_v15 = vld [vmem:[#allocation2 + $0x6a] sm:$0xff]  ;;  %v12456_v28 = vadd.s32 136, %v12142_v25  ;;  %vm1403_vm8 = vcmp.ge.s32.totalorder %v1371_v4, 0 }
 0x152   : > { %v613_v42 = vpop.f32.mrb[26].mxu0  ;;  %9390 = vmatmul.mubr.msk.bf16.gmra.mrb[88].mxu0 %vm12411_vm0, %v9389_v29  ;;  %9255 = vmatprep.mubr.msk.bf16.mxu1 %vm12416_vm6, %v9049_v8  ;;  %v15316_v54 = vsel %vm12439_vm13, 4294967295, %v15315_v54  ;;  %vm12444_vm6 = vmpackc.low %vm1816_vm10, %vm14998_vm2  ;;  %vm1818_vm10 = vcmp.lt.s32.totalorder %v1754_v23, 16  ;;  %v1373_v23 = vadd.s32 4294967294, %v1101_v49  ;;  %v961_v49 = vadd.s32 176, %v12142_v25 }
 0x153   : > { %v708_v43 = vmax.f32 %v611_v32, 0.0  ;;  %v614_v38 = vadd.f32 %v12236_v59, %v613_v42  ;;  %v11607_v44 = vpop.f32.mrb[27].mxu0  ;;  %15317 = vst [vmem:[#allocation27_spill] sm:$0xff] %v15316_v54  ;;  %v15319_v2 = vsel %vm12444_vm6, 4294967295, %v15318_v2  ;;  %vm12482_vm7 = vmpackc.low %vm14998_vm2, %vm1533_vm12 }
 0x154   : > { %v2232_v56 = vld [vmem:[#allocation2 + $0x72] sm:$0xff]  ;;  %15320 = vst [vmem:[#allocation28_spill] sm:$0xff] %v15319_v2 }
 0x155   : > { %917 = vst [vmem:[#allocation2 + $0x87] sm:$0xff] %v708_v43  ;;  %v709_v51 = vmax.f32 %v614_v38, 0.0  ;;  %v2327_v62 = vld [vmem:[#allocation2 + $0x76] sm:$0xff]  ;;  %v9395_v30 = vpack.c.bf16 %v2232_v56, %v2231_v15  ;;  %v1115_v56 = vand.u32 15, %v959_v61  ;;  %v15327_v15 = vmov 0 }
 0x156   : > { %v2328_v1 = vld [vmem:[#allocation2 + $0x7e] sm:$0xff]  ;;  %v15330_v61 = vmov 0 }
 0x157   : > { %v9054_v6 = vpack.c.bf16 %v709_v51, %v708_v43  ;;  %918 = vst [vmem:[#allocation2 + $0x8f] sm:$0xff] %v709_v51  ;;  %v9392_v8 = vpack.c.bf16 %v2328_v1, %v2327_v62  ;;  %v14988_v51 = vand.u32 15, %v12456_v28  ;;  %v15324_v1 = vmov 0  ;;  %v2233_v13 = vld [vmem:[#allocation2 + $0x7a] sm:$0xff] }
 0x158   : > { %v618_v29 = vpop.f32.mrb[28].mxu0  ;;  %v15331_v61 = vsel %vm12482_vm7, 4294967295, %v15330_v61 }
 0x159   : > { %9186 = vst [vmem:[%s12250_s22 + $0x30] sm:$0xff] %v9054_v6   ;;  %v619_v32 = vadd.f32 %v12236_v59, %v618_v29  ;;  %v11610_v39 = vpop.f32.mrb[29].mxu0  ;;  %9393 = vmatprep.mubr.msk.bf16.mxu0 %vm12406_vm1, %v9392_v8  ;;  %9258 = vmatmul.mubr.msk.bf16.gmra.mrb[28].mxu1 %vm12439_vm13, %v9392_v8  ;;  %vm12472_vm1 = vmpackc.low %vm14998_vm2, %vm1403_vm8  ;;  %vm1405_vm8 = vcmp.ge.s32.totalorder %v1373_v23, 0 }
 0x15a   : > { %v621_v42 = vpop.f32.mrb[30].mxu0  ;;  %9396 = vmatmul.mubr.msk.bf16.gmra.mrb[92].mxu0 %vm12444_vm6, %v9395_v30  ;;  %9261 = vmatprep.mubr.msk.bf16.mxu1 %vm12449_vm15, %v9054_v6  ;;  %v15325_v1 = vsel %vm12472_vm1, 4294967295, %v15324_v1  ;;  %vm12477_vm15 = vmpackc.low %vm1818_vm10, %vm14998_vm2  ;;  %15332 = vst [vmem:[#allocation32_spill] sm:$0xff] %v15331_v61  ;;  %v12489_v39 = vadd.s32 152, %v12142_v25 }
 0x15b   : > { %v710_v43 = vmax.f32 %v619_v32, 0.0  ;;  %v622_v38 = vadd.f32 %v12236_v59, %v621_v42  ;;  %v11611_v44 = vpop.f32.mrb[31].mxu0  ;;  %15326 = vst [vmem:[#allocation30_spill] sm:$0xff] %v15325_v1  ;;  %v15328_v15 = vsel %vm12477_vm15, 4294967295, %v15327_v15  ;;  %v1756_v32 = vadd.s32 2, %v14988_v51 }
 0x15c   : > { %v2234_v8 = vld [vmem:[#allocation2 + $0x82] sm:$0xff]  ;;  %15329 = vst [vmem:[#allocation31_spill] sm:$0xff] %v15328_v15  ;;  %v1503_v44 = vadd.s32 4294967295, %v1115_v56  ;;  %v12565_v1 = vadd.s32 208, %v12142_v25 }
 0x15d   : > { %919 = vst [vmem:[#allocation2 + $0x97] sm:$0xff] %v710_v43  ;;  %v711_v62 = vmax.f32 %v622_v38, 0.0  ;;  %v2329_v6 = vld [vmem:[#allocation2 + $0x86] sm:$0xff]  ;;  %v9401_v38 = vpack.c.bf16 %v2234_v8, %v2233_v13  ;;  %vm1820_vm10 = vcmp.lt.s32.totalorder %v1756_v32, 16  ;;  %v1375_v32 = vadd.s32 4294967294, %v1115_v56 }
 0x15e   : > { %v2330_v4 = vld [vmem:[#allocation2 + $0x8e] sm:$0xff]  ;;  %vm1535_vm12 = vcmp.ge.s32.totalorder %v1503_v44, 0  ;;  %v12526_v56 = vadd.s32 192, %v12142_v25 }
 0x15f   : > { %v9059_v29 = vpack.c.bf16 %v711_v62, %v710_v43  ;;  %920 = vst [vmem:[#allocation2 + $0x9f] sm:$0xff] %v711_v62  ;;  %v9398_v30 = vpack.c.bf16 %v2330_v4, %v2329_v6 }
 0x160   : > { %v626_v42 = vpop.f32.mrb[32].mxu0 }
 0x161   : > { %9187 = vst [vmem:[%s12250_s22 + $0x38] sm:$0xff] %v9059_v29   ;;  %v627_v43 = vadd.f32 %v12236_v59, %v626_v42  ;;  %v11614_v62 = vpop.f32.mrb[33].mxu0  ;;  %9399 = vmatprep.mubr.msk.bf16.mxu0 %vm12439_vm13, %v9398_v30  ;;  %9264 = vmatmul.mubr.msk.bf16.gmra.mrb[32].mxu1 %vm12472_vm1, %v9398_v30  ;;  %v15004_v42 = vand.u32 15, %v12489_v39  ;;  %vm12505_vm13 = vmpackc.low %vm14998_vm2, %vm1405_vm8  ;;  %v15333_v30 = vmov 0 }
 0x162   : > { %v629_v6 = vpop.f32.mrb[34].mxu0  ;;  %9402 = vmatmul.mubr.msk.bf16.gmra.mrb[96].mxu0 %vm12477_vm15, %v9401_v38  ;;  %9267 = vmatprep.mubr.msk.bf16.mxu1 %vm12482_vm7, %v9059_v29  ;;  %v1129_v62 = vand.u32 15, %v961_v49  ;;  %v15334_v30 = vsel %vm12505_vm13, 4294967295, %v15333_v30  ;;  %vm12510_vm7 = vmpackc.low %vm1820_vm10, %vm14998_vm2  ;;  %vm1407_vm10 = vcmp.ge.s32.totalorder %v1375_v32, 0 }
 0x163   : > { %v712_v8 = vmax.f32 %v627_v43, 0.0  ;;  %v630_v4 = vadd.f32 %v12236_v59, %v629_v6  ;;  %v11615_v13 = vpop.f32.mrb[35].mxu0  ;;  %15335 = vst [vmem:[#allocation33_spill] sm:$0xff] %v15334_v30  ;;  %v15336_v43 = vmov 0  ;;  %v12515_v6 = vadd.s32 168, %v12142_v25  ;;  %vm12519_vm8 = vmpackc.low %vm14998_vm2, %vm1535_vm12 }
 0x164   : > { %v2236_v38 = vld [vmem:[#allocation2 + $0x92] sm:$0xff]  ;;  %v15337_v43 = vsel %vm12510_vm7, 4294967295, %v15336_v43  ;;  %v2235_v13 = vld [vmem:[#allocation2 + $0x8a] sm:$0xff]  ;;  %v15340_v48 = vsel %vm12519_vm8, 4294967295, %v15339_v48  ;;  %v1758_v58 = vadd.s32 2, %v15004_v42  ;;  %v1505_v3 = vadd.s32 4294967295, %v1129_v62 }
 0x165   : > { %921 = vst [vmem:[#allocation2 + $0xa7] sm:$0xff] %v712_v8  ;;  %v713_v51 = vmax.f32 %v630_v4, 0.0  ;;  %v2331_v29 = vld [vmem:[#allocation2 + $0x96] sm:$0xff]  ;;  %15338 = vst [vmem:[#allocation34_spill] sm:$0xff] %v15337_v43  ;;  %v9407_v37 = vpack.c.bf16 %v2236_v38, %v2235_v13  ;;  %v15015_v38 = vand.u32 15, %v12515_v6  ;;  %v10212_v13 = vpop.f32.mrb[0].mxu1 }
 0x166   : > { %v2332_v23 = vld [vmem:[#allocation2 + $0x9e] sm:$0xff]  ;;  %15341 = vst [vmem:[#allocation35_spill] sm:$0xff] %v15340_v48  ;;  %vm1822_vm12 = vcmp.lt.s32.totalorder %v1758_v58, 16  ;;  %vm1537_vm2 = vcmp.ge.s32.totalorder %v1505_v3, 0  ;;  %v1377_v58 = vadd.s32 4294967294, %v1129_v62 }
 0x167   : > { %v9064_v49 = vpack.c.bf16 %v713_v51, %v712_v8  ;;  %922 = vst [vmem:[#allocation2 + $0xaf] sm:$0xff] %v713_v51  ;;  %v9404_v4 = vpack.c.bf16 %v2332_v23, %v2331_v29 }
 0x168   : > { %v634_v9 = vpop.f32.mrb[36].mxu0 }
 0x169   : > { %9188 = vst [vmem:[%s12250_s22 + $0x40] sm:$0xff] %v9064_v49   ;;  %v635_v51 = vadd.f32 %v12236_v59, %v634_v9  ;;  %v11618_v8 = vpop.f32.mrb[37].mxu0  ;;  %9405 = vmatprep.mubr.msk.bf16.mxu0 %vm12472_vm1, %v9404_v4  ;;  %9270 = vmatmul.mubr.msk.bf16.gmra.mrb[36].mxu1 %vm12505_vm13, %v9404_v4  ;;  %vm15342_vm1 = vmmov 1  }
 0x16a   : > { %v637_v44 = vpop.f32.mrb[38].mxu0  ;;  %9408 = vmatmul.mubr.msk.bf16.gmra.mrb[100].mxu0 %vm12510_vm7, %v9407_v37  ;;  %9273 = vmatprep.mubr.msk.bf16.mxu1 %vm12519_vm8, %v9064_v49  ;;  %v1143_v8 = vand.u32 15, %v12526_v56  ;;  %vm12542_vm3 = vmpackc.low %vm15342_vm1, %vm1407_vm10  ;;  %v15343_v37 = vmov 0  ;;  %v1760_v56 = vadd.s32 2, %v15015_v38  ;;  %v1157_v38 = vand.u32 15, %v12565_v1 }
 0x16b   : > { %v714_v29 = vmax.f32 %v635_v51, 0.0  ;;  %v638_v9 = vadd.f32 %v12236_v59, %v637_v44  ;;  %v11619_v23 = vpop.f32.mrb[39].mxu0  ;;  %v15344_v37 = vsel %vm12542_vm3, 4294967295, %v15343_v37  ;;  %vm12547_vm8 = vmpackc.low %vm1822_vm12, %vm15342_vm1  ;;  %v15346_v51 = vmov 0 }
 0x16c   : > { %15345 = vst [vmem:[#allocation36_spill] sm:$0xff] %v15344_v37  ;;  %v2238_v49 = vld [vmem:[#allocation2 + $0xa2] sm:$0xff]  ;;  %v15347_v51 = vsel %vm12547_vm8, 4294967295, %v15346_v51  ;;  %v2237_v23 = vld [vmem:[#allocation2 + $0x9a] sm:$0xff]  ;;  %vm12555_vm10 = vmpackc.low %vm15342_vm1, %vm1537_vm2  ;;  %v1507_v62 = vadd.s32 4294967295, %v1143_v8  ;;  %vm1409_vm2 = vcmp.ge.s32.totalorder %v1377_v58, 0 }
 0x16d   : > { %923 = vst [vmem:[#allocation2 + $0xb7] sm:$0xff] %v714_v29  ;;  %v715_v4 = vmax.f32 %v638_v9, 0.0  ;;  %v2333_v32 = vld [vmem:[#allocation2 + $0xa6] sm:$0xff]  ;;  %15348 = vst [vmem:[#allocation37_spill] sm:$0xff] %v15347_v51  ;;  %v15350_v34 = vsel %vm12555_vm10, 4294967295, %v15349_v34  ;;  %v12562_v22 = vpack.c.bf16 %v2238_v49, %v2237_v23  ;;  %vm1824_vm12 = vcmp.lt.s32.totalorder %v1760_v56, 16 }
 0x16e   : > { %v2334_v42 = vld [vmem:[#allocation2 + $0xae] sm:$0xff]  ;;  %15351 = vst [vmem:[#allocation38_spill] sm:$0xff] %v15350_v34  ;;  %v15353_v58 = vmov 0  ;;  %v1379_v1 = vadd.s32 4294967294, %v1143_v8  ;;  %v12605_v56 = vadd.s32 200, %v12142_v25  ;;  %v1509_v8 = vadd.s32 4294967295, %v1157_v38 }
 0x16f   : > { %v9069_v44 = vpack.c.bf16 %v715_v4, %v714_v29  ;;  %924 = vst [vmem:[#allocation2 + $0xbf] sm:$0xff] %v715_v4  ;;  %v9410_v9 = vpack.c.bf16 %v2334_v42, %v2333_v32  ;;  %v10213_v4 = vpop.f32.mrb[1].mxu1  ;;  %v2239_v23 = vld [vmem:[#allocation2 + $0xaa] sm:$0xff] }
 0x170   : > { %v642_v27 = vpop.f32.mrb[40].mxu0  ;;  %v15375_v53 = vand.u32 15, %v12605_v56 }
 0x171   : > { %9189 = vst [vmem:[%s12250_s22 + $0x48] sm:$0xff] %v9069_v44   ;;  %v643_v42 = vadd.f32 %v12236_v59, %v642_v27  ;;  %v11622_v29 = vpop.f32.mrb[41].mxu0  ;;  %9411 = vmatprep.mubr.msk.bf16.mxu0 %vm12505_vm13, %v9410_v9  ;;  %9276 = vmatmul.mubr.msk.bf16.gmra.mrb[40].mxu1 %vm12542_vm3, %v9410_v9  ;;  %v10215_v9 = vpop.f32.mrb[2].mxu1  ;;  %vm1539_vm13 = vcmp.ge.s32.totalorder %v1507_v62, 0 }
 0x172   : > { %v645_v3 = vpop.f32.mrb[42].mxu0  ;;  %9414 = vmatmul.mubr.msk.bf16.gmra.mrb[104].mxu0 %vm12547_vm8, %v12562_v22  ;;  %9279 = vmatprep.mubr.msk.bf16.mxu1 %vm12555_vm10, %v9069_v44  ;;  %v12580_v29 = vadd.f32 %v10213_v4, %v10212_v13  ;;  %v10216_v30 = vpop.f32.mrb[3].mxu1  ;;  %vm12584_vm10 = vmpackc.low %vm15342_vm1, %vm1409_vm2  ;;  %v15357_v13 = vmov 0 }
 0x173   : > { %v716_v49 = vmax.f32 %v643_v42, 0.0  ;;  %v646_v27 = vadd.f32 %v12236_v59, %v645_v3  ;;  %v11623_v32 = vpop.f32.mrb[43].mxu0  ;;  %v15354_v58 = vsel %vm12584_vm10, 4294967295, %v15353_v58  ;;  %v12588_v42 = vadd.f32 %v10216_v30, %v10215_v9  ;;  %vm12592_vm8 = vmpackc.low %vm1824_vm12, %vm15342_vm1 }
 0x174   : > { %15352 = vst [vmem:[#allocation39_spill] sm:$0xff] %v12580_v29  ;;  %15355 = vst [vmem:[#allocation40_spill] sm:$0xff] %v15354_v58  ;;  %v2240_v44 = vld [vmem:[#allocation2 + $0xb2] sm:$0xff]  ;;  %v15358_v13 = vsel %vm12592_vm8, 4294967295, %v15357_v13  ;;  %v15363_v30 = vand.u32 15, %v12560_v11  ;;  %v12685_v58 = vadd.s32 232, %v12142_v25 }
 0x175   : > { %925 = vst [vmem:[#allocation2 + $0xc7] sm:$0xff] %v716_v49  ;;  %v717_v54 = vmax.f32 %v646_v27, 0.0  ;;  %15356 = vst [vmem:[#allocation41_spill] sm:$0xff] %v12588_v42  ;;  %v2335_v3 = vld [vmem:[#allocation2 + $0xb6] sm:$0xff]  ;;  %v12607_v41 = vpack.c.bf16 %v2240_v44, %v2239_v23  ;;  %v10218_v23 = vpop.f32.mrb[4].mxu1  ;;  %v15394_v29 = vand.u32 15, %v12216_v24 }
 0x176   : > { %v2336_v32 = vld [vmem:[#allocation2 + $0xbe] sm:$0xff]  ;;  %15359 = vst [vmem:[#allocation42_spill] sm:$0xff] %v15358_v13  ;;  %vm12598_vm2 = vmpackc.low %vm15342_vm1, %vm1539_vm13  ;;  %v1762_v9 = vadd.s32 2, %v15363_v30  ;;  %vm1411_vm13 = vcmp.ge.s32.totalorder %v1379_v1, 0  ;;  %v15365_v1 = vmov 0 }
 0x177   : > { %v9074_v4 = vpack.c.bf16 %v717_v54, %v716_v49  ;;  %926 = vst [vmem:[#allocation2 + $0xcf] sm:$0xff] %v717_v54  ;;  %v9416_v27 = vpack.c.bf16 %v2336_v32, %v2335_v3  ;;  %v15361_v63 = vsel %vm12598_vm2, 4294967295, %v15360_v63  ;;  %v12610_v54 = vadd.s32 224, %v12142_v25  ;;  %v2241_v30 = vld [vmem:[#allocation2 + $0xba] sm:$0xff]  ;;  %v12740_v24 = vld [vmem:[%s14950_s2] ss:$0 sm:$0xff] }
 0x178   : > { %15362 = vst [vmem:[#allocation43_spill] sm:$0xff] %v15361_v63  ;;  %v650_v16 = vpop.f32.mrb[44].mxu0  ;;  %vm1826_vm12 = vcmp.lt.s32.totalorder %v1762_v9, 16  ;;  %v1764_v63 = vadd.s32 2, %v15375_v53  ;;  %v1612_v48 = vadd.s32 1, %v15394_v29  ;;  %v2123_v29 = vld [vmem:[#allocation2 + $0x9] sm:$0xff] }
 0x179   : > { %9190 = vst [vmem:[%s12250_s22 + $0x50] sm:$0xff] %v9074_v4   ;;  %v651_v62 = vadd.f32 %v12236_v59, %v650_v16  ;;  %v11626_v49 = vpop.f32.mrb[45].mxu0  ;;  %9417 = vmatprep.mubr.msk.bf16.mxu0 %vm12542_vm3, %v9416_v27  ;;  %9282 = vmatmul.mubr.msk.bf16.gmra.mrb[44].mxu1 %vm12584_vm10, %v9416_v27  ;;  %vm1541_vm3 = vcmp.ge.s32.totalorder %v1509_v8, 0  ;;  %v1171_v27 = vand.u32 15, %v12610_v54  ;;  %v1381_v54 = vadd.s32 4294967294, %v1157_v38 }
 0x17a   : > { %v653_v3 = vpop.f32.mrb[46].mxu0  ;;  %9420 = vmatmul.mubr.msk.bf16.gmra.mrb[108].mxu0 %vm12592_vm8, %v12607_v41  ;;  %9285 = vmatprep.mubr.msk.bf16.mxu1 %vm12598_vm2, %v9074_v4  ;;  %v10219_v49 = vpop.f32.mrb[5].mxu1  ;;  %vm12629_vm2 = vmpackc.low %vm15342_vm1, %vm1411_vm13 }
 0x17b   : > { %v718_v44 = vmax.f32 %v651_v62, 0.0  ;;  %v654_v16 = vadd.f32 %v12236_v59, %v653_v3  ;;  %v11627_v32 = vpop.f32.mrb[47].mxu0  ;;  %v12626_v37 = vadd.f32 %v10219_v49, %v10218_v23  ;;  %v10221_v7 = vpop.f32.mrb[6].mxu1  ;;  %v15366_v1 = vsel %vm12629_vm2, 4294967295, %v15365_v1  ;;  %vm12634_vm8 = vmpackc.low %vm1826_vm12, %vm15342_vm1 }
 0x17c   : > { %15367 = vst [vmem:[#allocation45_spill] sm:$0xff] %v15366_v1  ;;  %v2242_v4 = vld [vmem:[#allocation2 + $0xc2] sm:$0xff]  ;;  %v10222_v62 = vpop.f32.mrb[7].mxu1  ;;  %v15368_v32 = vmov 0  ;;  %vm12642_vm13 = vmpackc.low %vm15342_vm1, %vm1541_vm3  ;;  %vm1413_vm3 = vcmp.ge.s32.totalorder %v1381_v54, 0  ;;  %vm1828_vm12 = vcmp.lt.s32.totalorder %v1764_v63, 16 }
 0x17d   : > { %15364 = vst [vmem:[#allocation44_spill] sm:$0xff] %v12626_v37  ;;  %927 = vst [vmem:[#allocation2 + $0xd7] sm:$0xff] %v718_v44  ;;  %v719_v40 = vmax.f32 %v654_v16, 0.0  ;;  %v2337_v3 = vld [vmem:[#allocation2 + $0xc6] sm:$0xff]  ;;  %v15369_v32 = vsel %vm12634_vm8, 4294967295, %v15368_v32  ;;  %v12638_v23 = vadd.f32 %v10222_v62, %v10221_v7  ;;  %v15373_v14 = vsel %vm12642_vm13, 4294967295, %v15372_v14 }
 0x17e   : > { %v2338_v9 = vld [vmem:[#allocation2 + $0xce] sm:$0xff]  ;;  %15370 = vst [vmem:[#allocation46_spill] sm:$0xff] %v15369_v32  ;;  %15374 = vst [vmem:[#allocation48_spill] sm:$0xff] %v15373_v14  ;;  %v12649_v37 = vadd.s32 216, %v12142_v25  ;;  %v12651_v38 = vpack.c.bf16 %v2242_v4, %v2241_v30  ;;  %v1511_v7 = vadd.s32 4294967295, %v1171_v27  ;;  %v1383_v63 = vadd.s32 4294967294, %v1171_v27 }
 0x17f   : > { %15371 = vst [vmem:[#allocation47_spill] sm:$0xff] %v12638_v23  ;;  %v9079_v49 = vpack.c.bf16 %v719_v40, %v718_v44  ;;  %928 = vst [vmem:[#allocation2 + $0xdf] sm:$0xff] %v719_v40  ;;  %v9422_v16 = vpack.c.bf16 %v2338_v9, %v2337_v3  ;;  %v969_v40 = vadd.s32 240, %v12142_v25 }
 0x180   : > { %v658_v42 = vpop.f32.mrb[48].mxu0  ;;  %v15064_v62 = vand.u32 15, %v12649_v37  ;;  %vm12668_vm7 = vmpackc.low %vm15342_vm1, %vm1413_vm3 }
 0x181   : > { %9191 = vst [vmem:[%s12250_s22 + $0x58] sm:$0xff] %v9079_v49   ;;  %v659_v8 = vadd.f32 %v12236_v59, %v658_v42  ;;  %v11630_v44 = vpop.f32.mrb[49].mxu0  ;;  %9423 = vmatprep.mubr.msk.bf16.mxu0 %vm12584_vm10, %v9422_v16  ;;  %9288 = vmatmul.mubr.msk.bf16.gmra.mrb[48].mxu1 %vm12629_vm2, %v9422_v16  ;;  %vm1543_vm10 = vcmp.ge.s32.totalorder %v1511_v7, 0  ;;  %v1185_v3 = vand.u32 15, %v969_v40  ;;  %v15376_v16 = vmov 0  ;;  %v2243_v40 = vld [vmem:[#allocation2 + $0xca] sm:$0xff] }
 0x182   : > { %v661_v53 = vpop.f32.mrb[50].mxu0  ;;  %9426 = vmatmul.mubr.msk.bf16.gmra.mrb[112].mxu0 %vm12634_vm8, %v12651_v38  ;;  %9291 = vmatprep.mubr.msk.bf16.mxu1 %vm12642_vm13, %v9079_v49  ;;  %v15377_v16 = vsel %vm12668_vm7, 4294967295, %v15376_v16  ;;  %vm12673_vm13 = vmpackc.low %vm1828_vm12, %vm15342_vm1 }
 0x183   : > { %v720_v30 = vmax.f32 %v659_v8, 0.0  ;;  %v662_v4 = vadd.f32 %v12236_v59, %v661_v53  ;;  %v11631_v42 = vpop.f32.mrb[51].mxu0  ;;  %15378 = vst [vmem:[#allocation49_spill] sm:$0xff] %v15377_v16  ;;  %v15379_v8 = vmov 0  ;;  %vm12678_vm8 = vmpackc.low %vm15342_vm1, %vm1543_vm10  ;;  %v1513_v34 = vadd.s32 4294967295, %v1185_v3 }
 0x184   : > { %v2244_v44 = vld [vmem:[#allocation2 + $0xd2] sm:$0xff]  ;;  %v15380_v8 = vsel %vm12673_vm13, 4294967295, %v15379_v8  ;;  %v1766_v42 = vadd.s32 2, %v15064_v62  ;;  %vm1415_vm10 = vcmp.ge.s32.totalorder %v1383_v63, 0 }
 0x185   : > { %929 = vst [vmem:[#allocation2 + $0xe7] sm:$0xff] %v720_v30  ;;  %v721_v9 = vmax.f32 %v662_v4, 0.0  ;;  %v2339_v49 = vld [vmem:[#allocation2 + $0xd6] sm:$0xff]  ;;  %15381 = vst [vmem:[#allocation50_spill] sm:$0xff] %v15380_v8  ;;  %v15382_v4 = vmov 0  ;;  %v12687_v23 = vpack.c.bf16 %v2244_v44, %v2243_v40  ;;  %v15081_v40 = vand.u32 15, %v12685_v58 }
 0x186   : > { %v2340_v54 = vld [vmem:[#allocation2 + $0xde] sm:$0xff]  ;;  %v15383_v4 = vsel %vm12678_vm8, 4294967295, %v15382_v4  ;;  %vm1830_vm3 = vcmp.lt.s32.totalorder %v1766_v42, 16  ;;  %vm1545_vm12 = vcmp.ge.s32.totalorder %v1513_v34, 0  ;;  %v1385_v42 = vadd.s32 4294967294, %v1185_v3 }
 0x187   : > { %v9084_v53 = vpack.c.bf16 %v721_v9, %v720_v30  ;;  %930 = vst [vmem:[#allocation2 + $0xef] sm:$0xff] %v721_v9  ;;  %v9428_v7 = vpack.c.bf16 %v2340_v54, %v2339_v49  ;;  %15384 = vst [vmem:[#allocation51_spill] sm:$0xff] %v15383_v4  ;;  %v11824_v9 = vld [vmem:[#allocation4 + $0x340] sm:$0xff]   ;;  %v12724_v3 = vadd.s32 248, %v12142_v25 }
 0x188   : > { %v666_v14 = vpop.f32.mrb[52].mxu0  ;;  %10868 = vmatprep.subr.bf16.mxu0 %v11824_v9  ;;  %v2245_v9 = vld [vmem:[#allocation2 + $0xda] sm:$0xff] }
 0x189   : > { %9192 = vst [vmem:[%s12250_s22 + $0x60] sm:$0xff] %v9084_v53   ;;  %v667_v27 = vadd.f32 %v12236_v59, %v666_v14  ;;  %v11634_v30 = vpop.f32.mrb[53].mxu0  ;;  %9429 = vmatprep.mubr.msk.bf16.mxu0 %vm12629_vm2, %v9428_v7  ;;  %9294 = vmatmul.mubr.msk.bf16.gmra.mrb[52].mxu1 %vm12668_vm7, %v9428_v7  ;;  %vm12703_vm2 = vmpackc.low %vm15342_vm1, %vm1415_vm10  ;;  %vm1417_vm10 = vcmp.ge.s32.totalorder %v1385_v42, 0  ;;  %v15395_v42 = vmov 0 }
 0x18a   : > { %v669_v49 = vpop.f32.mrb[54].mxu0  ;;  %9432 = vmatmul.mubr.msk.bf16.gmra.mrb[116].mxu0 %vm12673_vm13, %v12687_v23  ;;  %9297 = vmatprep.mubr.msk.bf16.mxu1 %vm12678_vm8, %v9084_v53  ;;  %v15385_v30 = vmov 0  ;;  %vm12708_vm8 = vmpackc.low %vm1830_vm3, %vm15342_vm1 }
 0x18b   : > { %v722_v44 = vmax.f32 %v667_v27, 0.0  ;;  %v670_v14 = vadd.f32 %v12236_v59, %v669_v49  ;;  %v11635_v54 = vpop.f32.mrb[55].mxu0  ;;  %v15386_v30 = vsel %vm12703_vm2, 4294967295, %v15385_v30  ;;  %v15388_v27 = vmov 0  ;;  %vm12713_vm13 = vmpackc.low %vm15342_vm1, %vm1545_vm12 }
 0x18c   : > { %15387 = vst [vmem:[#allocation52_spill] sm:$0xff] %v15386_v30  ;;  %v2246_v62 = vld [vmem:[#allocation2 + $0xe2] sm:$0xff]  ;;  %v15389_v27 = vsel %vm12708_vm8, 4294967295, %v15388_v27  ;;  %v1768_v54 = vadd.s32 2, %v15081_v40  ;;  %vm1676_vm12 = vcmp.lt.s32.totalorder %v1612_v48, 16 }
 0x18d   : > { %931 = vst [vmem:[#allocation2 + $0xf7] sm:$0xff] %v722_v44  ;;  %v723_v7 = vmax.f32 %v670_v14, 0.0  ;;  %v2341_v53 = vld [vmem:[#allocation2 + $0xe6] sm:$0xff]  ;;  %15390 = vst [vmem:[#allocation53_spill] sm:$0xff] %v15389_v27  ;;  %v15391_v14 = vmov 0  ;;  %v12719_v4 = vpack.c.bf16 %v2246_v62, %v2245_v9 }
 0x18e   : > { %v2342_v63 = vld [vmem:[#allocation2 + $0xee] sm:$0xff]  ;;  %v15392_v14 = vsel %vm12713_vm13, 4294967295, %v15391_v14  ;;  %vm1832_vm3 = vcmp.lt.s32.totalorder %v1768_v54, 16  ;;  %v15398_v54 = vmov 0 }
 0x18f   : > { %v9089_v49 = vpack.c.bf16 %v723_v7, %v722_v44  ;;  %932 = vst [vmem:[#allocation2 + $0xff] sm:$0xff] %v723_v7  ;;  %v9434_v34 = vpack.c.bf16 %v2342_v63, %v2341_v53  ;;  %15393 = vst [vmem:[#allocation54_spill] sm:$0xff] %v15392_v14  ;;  %v15086_v63 = vand.u32 15, %v12724_v3 }
 0x190   : > { %v674_v1 = vpop.f32.mrb[56].mxu0 }
 0x191   : > { %9193 = vst [vmem:[%s12250_s22 + $0x68] sm:$0xff] %v9089_v49   ;;  %v675_v44 = vadd.f32 %v12236_v59, %v674_v1  ;;  %v11638_v7 = vpop.f32.mrb[57].mxu0  ;;  %9435 = vmatprep.mubr.msk.bf16.mxu0 %vm12668_vm7, %v9434_v34  ;;  %9300 = vmatmul.mubr.msk.bf16.gmra.mrb[56].mxu1 %vm12703_vm2, %v9434_v34  ;;  %v2124_v1 = vld [vmem:[#allocation2 + $0x11] sm:$0xff]  ;;  %vm12745_vm7 = vmpackc.low %vm15342_vm1, %vm1417_vm10  ;;  %v1770_v16 = vadd.s32 2, %v15086_v63  ;;  %v2126_v63 = vld [vmem:[#allocation2 + $0x21] sm:$0xff] }
 0x192   : > { %v677_v53 = vpop.f32.mrb[58].mxu0  ;;  %9438 = vmatmul.mubr.msk.bf16.gmra.mrb[120].mxu0 %vm12708_vm8, %v12719_v4  ;;  %9303 = vmatprep.mubr.msk.bf16.mxu1 %vm12713_vm13, %v9089_v49  ;;  %v15396_v42 = vsel %vm12745_vm7, 4294967295, %v15395_v42  ;;  %vm12750_vm13 = vmpackc.low %vm1832_vm3, %vm15342_vm1  ;;  %v9308_v7 = vpack.c.bf16 %v2124_v1, %v2123_v29 }
 0x193   : > { %v724_v25 = vmax.f32 %v675_v44, 0.0  ;;  %v678_v59 = vadd.f32 %v12740_v24, %v677_v53  ;;  %v11639_v62 = vpop.f32.mrb[59].mxu0  ;;  %15397 = vst [vmem:[#allocation55_spill] sm:$0xff] %v15396_v42  ;;  %v15399_v54 = vsel %vm12750_vm13, 4294967295, %v15398_v54  ;;  %vm12755_vm8 = vmpackc.low %vm1676_vm12, %vm15342_vm1  ;;  %vm1834_vm10 = vcmp.lt.s32.totalorder %v1770_v16, 16 }
 0x194   : > { %v2248_v49 = vld [vmem:[#allocation2 + $0xf2] sm:$0xff]  ;;  %15400 = vst [vmem:[#allocation56_spill] sm:$0xff] %v15399_v54  ;;  %v2247_v62 = vld [vmem:[#allocation2 + $0xea] sm:$0xff]  ;;  %vm12781_vm12 = vmpackc.low %vm1834_vm10, %vm15342_vm1 }
 0x195   : > { %933 = vst [vmem:[#allocation2 + $0x107] sm:$0xff] %v724_v25  ;;  %v725_v34 = vmax.f32 %v678_v59, 0.0  ;;  %v2343_v9 = vld [vmem:[#allocation2 + $0xf6] sm:$0xff]  ;;  %v15401_v59 = vmov 0  ;;  %v12759_v40 = vpack.c.bf16 %v2248_v49, %v2247_v62 }
 0x196   : > { %v2344_v44 = vld [vmem:[#allocation2 + $0xfe] sm:$0xff]  ;;  %v15402_v59 = vsel %vm12755_vm8, 4294967295, %v15401_v59 }
 0x197   : > { %v9094_v48 = vpack.c.bf16 %v725_v34, %v724_v25  ;;  %934 = vst [vmem:[#allocation2 + $0x10f] sm:$0xff] %v725_v34  ;;  %v9440_v53 = vpack.c.bf16 %v2344_v44, %v2343_v9  ;;  %15403 = vst [vmem:[#allocation57_spill] sm:$0xff] %v15402_v59  ;;  %v15404_v25 = vand.u32 15, %v12239_v60  ;;  %v2667_v62 = vld [vmem:[#allocation2 + $0x1a] sm:$0xff] }
 0x198   : > { %v682_v14 = vpop.f32.mrb[60].mxu0  ;;  %v11948_v60 = vld [vmem:[#allocation2] sm:$0xff] }
 0x199   : > { %9194 = vst [vmem:[%s12250_s22 + $0x70] sm:$0xff] %v9094_v48   ;;  %9441 = vmatprep.mubr.msk.bf16.mxu0 %vm12703_vm2, %v9440_v53  ;;  %9306 = vmatmul.mubr.msk.bf16.gmra.mrb[60].mxu1 %vm12745_vm7, %v9440_v53  ;;  %v1614_v29 = vadd.s32 1, %v15404_v25  ;;  %v683_v1 = vadd.f32 %v12740_v24, %v682_v14  ;;  %v11642_v34 = vpop.f32.mrb[61].mxu0  ;;  %v2125_v53 = vld [vmem:[#allocation2 + $0x19] sm:$0xff]  ;;  %v12777_v25 = vpack.c.bf16 %v11948_v60, %v11948_v60 }
 0x19a   : > { %9444 = vmatmul.mubr.msk.bf16.gmra.mrb[124].mxu0 %vm12750_vm13, %v12759_v40  ;;  %9309 = vmatprep.mubr.msk.bf16.mxu1 %vm12755_vm8, %v9308_v7  ;;  %v685_v49 = vpop.f32.mrb[62].mxu0  ;;  %v11807_v34 = vld [vmem:[#allocation4 + $0x180] sm:$0xff]   ;;  %v2668_v7 = vld [vmem:[#allocation2 + $0x22] sm:$0xff]  ;;  %v2249_v19 = vld [vmem:[#allocation2 + $0xfa] sm:$0xff]  ;;  %v9311_v16 = vpack.c.bf16 %v2126_v63, %v2125_v53 }
 0x19b   : > { %v726_v9 = vmax.f32 %v683_v1, 0.0  ;;  %v686_v44 = vadd.f32 %v12740_v24, %v685_v49  ;;  %v11643_v48 = vpop.f32.mrb[63].mxu0  ;;  %vm1678_vm3 = vcmp.lt.s32.totalorder %v1614_v29, 16  ;;  %v15405_v49 = vmov 0  ;;  %v11814_v63 = vld [vmem:[#allocation4 + $0x1d0] sm:$0xff]  }
 0x19c   : > { %v2250_v14 = vld [vmem:[#allocation2 + $0x102] sm:$0xff]  ;;  %v15406_v49 = vsel %vm12781_vm12, 4294967295, %v15405_v49  ;;  %vm12788_vm2 = vmpackc.low %vm1678_vm3, %vm15342_vm1  ;;  %v15408_v29 = vmov 0 }
 0x19d   : > { %935 = vst [vmem:[#allocation2 + $0x117] sm:$0xff] %v726_v9  ;;  %v727_v30 = vmax.f32 %v686_v44, 0.0  ;;  %v2345_v61 = vld [vmem:[#allocation2 + $0x106] sm:$0xff]  ;;  %15407 = vst [vmem:[#allocation58_spill] sm:$0xff] %v15406_v49  ;;  %v12785_v60 = vpack.c.bf16 %v2250_v14, %v2249_v19  ;;  %v15409_v29 = vsel %vm12788_vm2, 4294967295, %v15408_v29  ;;  %v15411_v44 = vand.u32 15, %v12255_v21 }
 0x19e   : > { %v2346_v17 = vld [vmem:[#allocation2 + $0x10e] sm:$0xff]  ;;  %15410 = vst [vmem:[#allocation59_spill] sm:$0xff] %v15409_v29  ;;  %v11813_v21 = vld [vmem:[#allocation4 + $0x188] sm:$0xff]  }
 0x19f   : > { %v9446_v1 = vpack.c.bf16 %v2346_v17, %v2345_v61  ;;  %v9099_v48 = vpack.c.bf16 %v727_v30, %v726_v9  ;;  %936 = vst [vmem:[#allocation2 + $0x11f] sm:$0xff] %v727_v30  ;;  %v1616_v31 = vadd.s32 1, %v15411_v44  ;;  %v11812_v17 = vld [vmem:[#allocation4 + $0x1c8] sm:$0xff]   ;;  %v9500_v9 = vpack.c.bf16 %v2668_v7, %v2667_v62  ;;  %v11815_v44 = vld [vmem:[#allocation4 + $0x190] sm:$0xff]  }
 0x1a0   : > { %v690_v61 = vpop.f32.mrb[64].mxu0  ;;  %v3024_v29 = vld [vmem:[#allocation2 + $0x51] sm:$0xff] }
 0x1a1   : > { %9447 = vmatprep.mubr.msk.bf16.mxu0 %vm12745_vm7, %v9446_v1  ;;  %6301 = vmatmul.mubr.bf16.vlgmr.msra.gmra.mrb[64].mxu1 %v12777_v25  ;;  %9195 = vst [vmem:[%s12250_s22 + $0x78] sm:$0xff] %v9099_v48   ;;  %v691_v19 = vadd.f32 %v12740_v24, %v690_v61  ;;  %v11646_v30 = vpop.f32.mrb[65].mxu0  ;;  %vm1680_vm10 = vcmp.lt.s32.totalorder %v1616_v31, 16  ;;  %v2128_v24 = vld [vmem:[#allocation2 + $0x31] sm:$0xff]  ;;  %v15412_v48 = vmov 0  ;;  %v15415_v31 = vand.u32 15, %v12288_v52 }
 0x1a2   : > { %9450 = vmatmul.mubr.msk.bf16.gmra.mrb[128].mxu0 %vm12781_vm12, %v12785_v60  ;;  %10533 = vmatpush3.bf16.msra.mxu1 %v11807_v34  ;;  %v693_v14 = vpop.f32.mrb[66].mxu0  ;;  %v2670_v1 = vld [vmem:[#allocation2 + $0x32] sm:$0xff]  ;;  %v2127_v34 = vld [vmem:[#allocation2 + $0x29] sm:$0xff]  ;;  %vm12807_vm3 = vmpackc.low %vm1680_vm10, %vm15342_vm1 }
 0x1a3   : > { %9312 = vmatprep.mubr.msk.bf16.mxu1 %vm12788_vm2, %v9311_v16  ;;  %9501 = vmatprep.mubr.msk.bf16.mxu0 %vm12226_vm11, %v9500_v9  ;;  %v728_v53 = vmax.f32 %v691_v19, 0.0  ;;  %v11647_v62 = vpop.f32.mrb[67].mxu0  ;;  %v15413_v48 = vsel %vm12807_vm3, 4294967295, %v15412_v48  ;;  %v12812_v61 = vpack.c.bf16 %v2128_v24, %v2127_v34  ;;  %v2669_v9 = vld [vmem:[#allocation2 + $0x2a] sm:$0xff] }
 0x1a4   : > { %10534 = vmatprep.subr.bf16.mxu1 %v11812_v17  ;;  %15414 = vst [vmem:[#allocation60_spill] sm:$0xff] %v15413_v48  ;;  %v1618_v17 = vadd.s32 1, %v15415_v31  ;;  %v11816_v19 = vld [vmem:[#allocation4 + $0x1d8] sm:$0xff]   ;;  %v11825_v14 = vld [vmem:[#allocation4 + $0x300] sm:$0xff]   ;;  %v11826_v62 = vld [vmem:[#allocation4 + $0x348] sm:$0xff]  }
 0x1a5   : > { %v8988_v7 = vpack.c.bf16 %v728_v53, %v728_v53  ;;  %937 = vst [vmem:[#allocation2 + $0x127] sm:$0x1] %v728_v53  ;;  %v11817_v52 = vld [vmem:[#allocation4 + $0x198] sm:$0xff]   ;;  %v2064_v34 = vld [vmem:[#allocation2 + $0x30] sm:$0xff] }
 0x1a6   : > { %10535 = vmatpush3.bf16.msra.mxu1 %v11813_v21  ;;  %v9506_v21 = vpack.c.bf16 %v2670_v1, %v2669_v9  ;;  %vm1682_vm10 = vcmp.lt.s32.totalorder %v1618_v17, 16  ;;  %v11818_v1 = vld [vmem:[#allocation4 + $0x1e0] sm:$0xff]   ;;  %v2130_v31 = vld [vmem:[#allocation2 + $0x41] sm:$0xff] }
 0x1a7   : > { %10536 = vmatprep.subr.bf16.mxu1 %v11814_v63  ;;  %894 = vst [vmem:[%s12250_s22 + $0x80] sm:$0xf] %v8988_v7  ;;  %v11819_v17 = vld [vmem:[#allocation4 + $0x1a0] sm:$0xff]  }
 0x1a8   : > { %v10436_v30 = vpop.f32.mrb[68].mxu0 }
 0x1a9   : > { %6309 = vmatmul.mubr.bf16.gmra.mrb[68].mxu1 %v12777_v25  ;;  %v10437_v53 = vpop.f32.mrb[69].mxu0 }
 0x1aa   : > { %9504 = vmatmul.mubr.msk.bf16.vlgmr.msra.gmra.mrb[132].mxu0 %vm12755_vm8, %v9311_v16  ;;  %9315 = vmatprep.mubr.msk.bf16.mxu1 %vm12807_vm3, %v12812_v61  ;;  %v12822_v63 = vadd.f32 %v10437_v53, %v10436_v30  ;;  %v10439_v24 = vpop.f32.mrb[70].mxu0  ;;  %v11827_v16 = vld [vmem:[#allocation4 + $0x308] sm:$0xff]   ;;  %v2063_v30 = vld [vmem:[#allocation2 + $0x28] sm:$0xff] }
 0x1ab   : > { %9507 = vmatprep.mubr.msk.bf16.mxu0 %vm12273_vm4, %v9506_v21  ;;  %10537 = vmatpush3.bf16.msra.mxu1 %v11815_v44  ;;  %v10440_v7 = vpop.f32.mrb[71].mxu0  ;;  %v2672_v53 = vld [vmem:[#allocation2 + $0x42] sm:$0xff]  ;;  %v12828_v42 = vpack.c.bf16 %v2064_v34, %v2063_v30  ;;  %vm12831_vm4 = vmpackc.low %vm1682_vm10, %vm15342_vm1  ;;  %v15417_v44 = vmov 0  ;;  %v2671_v21 = vld [vmem:[#allocation2 + $0x3a] sm:$0xff] }
 0x1ac   : > { %10538 = vmatprep.subr.bf16.mxu1 %v11816_v19  ;;  %v12826_v9 = vadd.f32 %v10440_v7, %v10439_v24  ;;  %10869 = vmatpush3.bf16.msra.mxu0 %v11825_v14  ;;  %v15418_v44 = vsel %vm12831_vm4, 4294967295, %v15417_v44  ;;  %v12835_v19 = vpack.c.bf16 %v2130_v31, %v2129_v46  ;;  %v15420_v14 = vand.u32 15, %v12321_v20  ;;  %v11831_v7 = vld [vmem:[#allocation4 + $0x310] sm:$0xff]   ;;  %v11832_v30 = vld [vmem:[#allocation4 + $0x358] sm:$0xff]   ;;  %v11821_v46 = vld [vmem:[#allocation4 + $0x1a8] sm:$0xff]  }
 0x1ad   : > { %10870 = vmatprep.subr.bf16.mxu0 %v11826_v62  ;;  %15419 = vst [vmem:[#allocation62_spill] sm:$0xff] %v15418_v44  ;;  %v11820_v62 = vld [vmem:[#allocation4 + $0x1e8] sm:$0xff]   ;;  %v9512_v34 = vpack.c.bf16 %v2672_v53, %v2671_v21  ;;  %v2066_v20 = vld [vmem:[#allocation2 + $0x40] sm:$0xff] }
 0x1ae   : > { %15416 = vst [vmem:[#allocation61_spill] sm:$0xff] %v12826_v9  ;;  %v1620_v24 = vadd.s32 1, %v15420_v14  ;;  %v2065_v31 = vld [vmem:[#allocation2 + $0x38] sm:$0xff]  ;;  %v2131_v14 = vld [vmem:[#allocation2 + $0x49] sm:$0xff] }
 0x1af   : > { %10539 = vmatpush3.bf16.msra.mxu1 %v11817_v52  ;;  %v11822_v52 = vld [vmem:[#allocation4 + $0x1f0] sm:$0xff]   ;;  %v2674_v53 = vld [vmem:[#allocation2 + $0x52] sm:$0xff]  ;;  %v12848_v21 = vpack.c.bf16 %v2066_v20, %v2065_v31 }
 0x1b0   : > { %10540 = vmatprep.subr.bf16.mxu1 %v11818_v1  ;;  %10871 = vmatpush3.bf16.msra.mxu0 %v11827_v16  ;;  %vm1684_vm10 = vcmp.lt.s32.totalorder %v1620_v24, 16  ;;  %v2132_v1 = vld [vmem:[#allocation2 + $0x51] sm:$0xff] }
 0x1b1   : > { %6317 = vmatmul.mubr.bf16.gmra.mrb[72].mxu1 %v12828_v42  ;;  %10872 = vmatprep.subr.bf16.mxu0 %v11830_v33  ;;  %v11833_v33 = vld [vmem:[#allocation4 + $0x318] sm:$0xff]   ;;  %v11834_v16 = vld [vmem:[#allocation4 + $0x360] sm:$0xff]   ;;  %vm12851_vm11 = vmpackc.low %vm1684_vm10, %vm15342_vm1  ;;  %v9320_v24 = vpack.c.bf16 %v2132_v1, %v2131_v14 }
 0x1b2   : > { %9510 = vmatmul.mubr.msk.bf16.gmra.mrb[136].mxu0 %vm12788_vm2, %v12812_v61  ;;  %9318 = vmatprep.mubr.msk.bf16.mxu1 %vm12831_vm4, %v12835_v19  ;;  %v15422_v12 = vsel %vm12851_vm11, 4294967295, %v15421_v12  ;;  %v11835_v9 = vld [vmem:[#allocation4 + $0x320] sm:$0xff]   ;;  %v11836_v31 = vld [vmem:[#allocation4 + $0x368] sm:$0xff]   ;;  %v2134_v1 = vld [vmem:[#allocation2 + $0x61] sm:$0xff] }
 0x1b3   : > { %9513 = vmatprep.mubr.msk.bf16.mxu0 %vm12309_vm14, %v9512_v34  ;;  %10541 = vmatpush3.bf16.msra.mxu1 %v11819_v17  ;;  %15423 = vst [vmem:[#allocation63_spill] sm:$0xff] %v15422_v12  ;;  %v11823_v17 = vld [vmem:[#allocation4 + $0x1b0] sm:$0xff]  }
 0x1b4   : > { %10542 = vmatprep.subr.bf16.mxu1 %v11820_v62  ;;  %10873 = vmatpush3.bf16.msra.mxu0 %v11831_v7  ;;  %v2673_v62 = vld [vmem:[#allocation2 + $0x4a] sm:$0xff]  ;;  %v15424_v7 = vand.u32 15, %v12357_v57  ;;  %v2676_v14 = vld [vmem:[#allocation2 + $0x62] sm:$0xff] }
 0x1b5   : > { %10874 = vmatprep.subr.bf16.mxu0 %v11832_v30  ;;  %v11828_v30 = vld [vmem:[#allocation4 + $0x1f8] sm:$0xff]   ;;  %v9518_v20 = vpack.c.bf16 %v2674_v53, %v2673_v62 }
 0x1b6   : > { %v1622_v34 = vadd.s32 1, %v15424_v7  ;;  %v11829_v57 = vld [vmem:[#allocation4 + $0x1b8] sm:$0xff]   ;;  %v2133_v7 = vld [vmem:[#allocation2 + $0x59] sm:$0xff] }
 0x1b7   : > { %10543 = vmatpush3.bf16.msra.mxu1 %v11821_v46  ;;  %v2068_v46 = vld [vmem:[#allocation2 + $0x50] sm:$0xff]  ;;  %v2067_v53 = vld [vmem:[#allocation2 + $0x48] sm:$0xff] }
 0x1b8   : > { %10544 = vmatprep.subr.bf16.mxu1 %v11822_v52  ;;  %10875 = vmatpush3.bf16.msra.mxu0 %v11833_v33  ;;  %vm1686_vm10 = vcmp.lt.s32.totalorder %v1622_v34, 16  ;;  %v11837_v52 = vld [vmem:[#allocation4 + $0x328] sm:$0xff]   ;;  %v11838_v33 = vld [vmem:[#allocation4 + $0x2c0] sm:$0xff]   ;;  %v12865_v62 = vpack.c.bf16 %v2068_v46, %v2067_v53  ;;  %v11842_v46 = vld [vmem:[#allocation4 + $0x378] sm:$0xff]  }
 0x1b9   : > { %6325 = vmatmul.mubr.bf16.gmra.mrb[76].mxu1 %v12848_v21  ;;  %10876 = vmatprep.subr.bf16.mxu0 %v11834_v16  ;;  %v11840_v16 = vld [vmem:[#allocation4 + $0x370] sm:$0xff]   ;;  %vm12868_vm14 = vmpackc.low %vm1686_vm10, %vm15342_vm1 }
 0x1ba   : > { %9516 = vmatmul.mubr.msk.bf16.gmra.mrb[140].mxu0 %vm12807_vm3, %v12835_v19  ;;  %9321 = vmatprep.mubr.msk.bf16.mxu1 %vm12851_vm11, %v9320_v24  ;;  %v15426_v47 = vsel %vm12868_vm14, 4294967295, %v15425_v47  ;;  %v2675_v34 = vld [vmem:[#allocation2 + $0x5a] sm:$0xff] }
 0x1bb   : > { %9519 = vmatprep.mubr.msk.bf16.mxu0 %vm12345_vm9, %v9518_v20  ;;  %10545 = vmatpush3.bf16.msra.mxu1 %v11823_v17  ;;  %15427 = vst [vmem:[#allocation64_spill] sm:$0xff] %v15426_v47  ;;  %v9323_v17 = vpack.c.bf16 %v2134_v1, %v2133_v7  ;;  %v11841_v20 = vld [vmem:[#allocation4 + $0x330] sm:$0xff]   ;;  %v2678_v1 = vld [vmem:[#allocation2 + $0x72] sm:$0xff]  ;;  %v2677_v7 = vld [vmem:[#allocation2 + $0x6a] sm:$0xff] }
 0x1bc   : > { %10546 = vmatprep.subr.bf16.mxu1 %v11828_v30  ;;  %10877 = vmatpush3.bf16.msra.mxu0 %v11835_v9  ;;  %v15428_v9 = vand.u32 15, %v12390_v35  ;;  %v11843_v35 = vld [vmem:[#allocation4 + $0x338] sm:$0xff]  }
 0x1bd   : > { %10878 = vmatprep.subr.bf16.mxu0 %v11836_v31  ;;  %v9524_v31 = vpack.c.bf16 %v2676_v14, %v2675_v34  ;;  %v15432_v34 = vand.u32 15, %v12423_v0  ;;  %v3031_v47 = vld [vmem:[#allocation2 + $0x89] sm:$0xff] }
 0x1be   : > { %v1624_v30 = vadd.s32 1, %v15428_v9 }
 0x1bf   : > { %10547 = vmatpush3.bf16.msra.mxu1 %v11829_v57  ;;  %v2070_v57 = vld [vmem:[#allocation2 + $0x60] sm:$0xff]  ;;  %v1626_v9 = vadd.s32 1, %v15432_v34 }
 0x1c0   : > { %10879 = vmatpush3.bf16.msra.mxu0 %v11837_v52  ;;  %10756 = vmatprep.subr.bf16.mxu1 %v11838_v33  ;;  %vm1688_vm10 = vcmp.lt.s32.totalorder %v1624_v30, 16  ;;  %v2136_v52 = vld [vmem:[#allocation2 + $0x71] sm:$0xff]  ;;  %v9530_v30 = vpack.c.bf16 %v2678_v1, %v2677_v7  ;;  %v15436_v1 = vand.u32 15, %v12456_v28  ;;  %v2074_v34 = vld [vmem:[#allocation2 + $0x80] sm:$0xff]  ;;  %v15437_v28 = vmov 0 }
 0x1c1   : > { %6333 = vmatmul.mubr.bf16.gmra.mrb[80].mxu1 %v12865_v62  ;;  %10880 = vmatprep.subr.bf16.mxu0 %v11840_v16  ;;  %v2069_v33 = vld [vmem:[#allocation2 + $0x58] sm:$0xff]  ;;  %v2135_v16 = vld [vmem:[#allocation2 + $0x69] sm:$0xff]  ;;  %vm12884_vm9 = vmpackc.low %vm1688_vm10, %vm15342_vm1  ;;  %vm1690_vm10 = vcmp.lt.s32.totalorder %v1626_v9, 16 }
 0x1c2   : > { %9522 = vmatmul.mubr.msk.bf16.gmra.mrb[144].mxu0 %vm12831_vm4, %v9320_v24  ;;  %9324 = vmatprep.mubr.msk.bf16.mxu1 %vm12868_vm14, %v9323_v17  ;;  %v12881_v53 = vpack.c.bf16 %v2070_v57, %v2069_v33  ;;  %v15429_v24 = vmov 0  ;;  %v9326_v14 = vpack.c.bf16 %v2136_v52, %v2135_v16  ;;  %v2680_v57 = vld [vmem:[#allocation2 + $0x82] sm:$0xff]  ;;  %v2137_v52 = vld [vmem:[#allocation2 + $0x79] sm:$0xff]  ;;  %v1628_v16 = vadd.s32 1, %v15436_v1  ;;  %v2140_v9 = vld [vmem:[#allocation2 + $0x91] sm:$0xff] }
 0x1c3   : > { %9525 = vmatprep.mubr.msk.bf16.mxu0 %vm12378_vm5, %v9524_v31  ;;  %v15430_v24 = vsel %vm12884_vm9, 4294967295, %v15429_v24  ;;  %v2138_v31 = vld [vmem:[#allocation2 + $0x81] sm:$0xff]  ;;  %vm12898_vm5 = vmpackc.low %vm1690_vm10, %vm15342_vm1  ;;  %v2076_v1 = vld [vmem:[#allocation2 + $0x90] sm:$0xff] }
 0x1c4   : > { %10881 = vmatpush3.bf16.msra.mxu0 %v11841_v20  ;;  %15431 = vst [vmem:[#allocation65_spill] sm:$0xff] %v15430_v24  ;;  %v2072_v20 = vld [vmem:[#allocation2 + $0x70] sm:$0xff]  ;;  %v9329_v33 = vpack.c.bf16 %v2138_v31, %v2137_v52  ;;  %vm1692_vm10 = vcmp.lt.s32.totalorder %v1628_v16, 16  ;;  %v2142_v16 = vld [vmem:[#allocation2 + $0xa1] sm:$0xff] }
 0x1c5   : > { %10882 = vmatprep.subr.bf16.mxu0 %v11842_v46  ;;  %v2071_v46 = vld [vmem:[#allocation2 + $0x68] sm:$0xff] }
 0x1c6   : > { %v2097_v0 = vpack.c.bf16 %v2072_v20, %v2071_v46  ;;  %v2682_v20 = vld [vmem:[#allocation2 + $0x92] sm:$0xff]  ;;  %v2139_v46 = vld [vmem:[#allocation2 + $0x89] sm:$0xff] }
 0x1c8   : > { %10883 = vmatpush3.bf16.msra.mxu0 %v11843_v35  ;;  %v15433_v35 = vmov 0 }
 0x1c9   : > { %6341 = vmatmul.mubr.bf16.gmra.mrb[84].mxu1 %v12881_v53  ;;  %v15434_v35 = vsel %vm12898_vm5, 4294967295, %v15433_v35 }
 0x1ca   : > { %9528 = vmatmul.mubr.msk.bf16.gmra.mrb[148].mxu0 %vm12851_vm11, %v9323_v17  ;;  %9327 = vmatprep.mubr.msk.bf16.mxu1 %vm12884_vm9, %v9326_v14  ;;  %15435 = vst [vmem:[#allocation66_spill] sm:$0xff] %v15434_v35  ;;  %v2679_v17 = vld [vmem:[#allocation2 + $0x7a] sm:$0xff] }
 0x1cb   : > { %9531 = vmatprep.mubr.msk.bf16.mxu0 %vm12411_vm0, %v9530_v30  ;;  %v9536_v7 = vpack.c.bf16 %v2680_v57, %v2679_v17  ;;  %v2073_v30 = vld [vmem:[#allocation2 + $0x78] sm:$0xff]  ;;  %vm12911_vm0 = vmpackc.low %vm1692_vm10, %vm15342_vm1  ;;  %v9332_v57 = vpack.c.bf16 %v2140_v9, %v2139_v46 }
 0x1cc   : > { %v2098_v31 = vpack.c.bf16 %v2074_v34, %v2073_v30  ;;  %v15438_v28 = vsel %vm12911_vm0, 4294967295, %v15437_v28  ;;  %v2141_v9 = vld [vmem:[#allocation2 + $0x99] sm:$0xff]  ;;  %v2144_v46 = vld [vmem:[#allocation2 + $0xb1] sm:$0xff] }
 0x1cd   : > { %15439 = vst [vmem:[#allocation67_spill] sm:$0xff] %v15438_v28  ;;  %v9335_v30 = vpack.c.bf16 %v2142_v16, %v2141_v9  ;;  %v2146_v16 = vld [vmem:[#allocation2 + $0xc1] sm:$0xff]  ;;  %v2145_v9 = vld [vmem:[#allocation2 + $0xb9] sm:$0xff] }
 0x1d1   : > { %6349 = vmatmul.mubr.bf16.gmra.mrb[88].mxu1 %v2097_v0  ;;  %v15440_v0 = vand.u32 15, %v12489_v39  ;;  %v15441_v39 = vmov 0 }
 0x1d2   : > { %9534 = vmatmul.mubr.msk.bf16.gmra.mrb[152].mxu0 %vm12868_vm14, %v9326_v14  ;;  %9330 = vmatprep.mubr.msk.bf16.mxu1 %vm12898_vm5, %v9329_v33  ;;  %v2681_v14 = vld [vmem:[#allocation2 + $0x8a] sm:$0xff] }
 0x1d3   : > { %9537 = vmatprep.mubr.msk.bf16.mxu0 %vm12444_vm6, %v9536_v7  ;;  %v1630_v52 = vadd.s32 1, %v15440_v0  ;;  %v9542_v17 = vpack.c.bf16 %v2682_v20, %v2681_v14  ;;  %v2075_v7 = vld [vmem:[#allocation2 + $0x88] sm:$0xff]  ;;  %v2077_v14 = vld [vmem:[#allocation2 + $0x98] sm:$0xff] }
 0x1d4   : > { %v2099_v34 = vpack.c.bf16 %v2076_v1, %v2075_v7  ;;  %v2079_v7 = vld [vmem:[#allocation2 + $0xa8] sm:$0xff] }
 0x1d5   : > { %vm1694_vm10 = vcmp.lt.s32.totalorder %v1630_v52, 16  ;;  %v2143_v52 = vld [vmem:[#allocation2 + $0xa9] sm:$0xff] }
 0x1d6   : > { %vm12924_vm6 = vmpackc.low %vm1694_vm10, %vm15342_vm1 }
 0x1d7   : > { %v15442_v39 = vsel %vm12924_vm6, 4294967295, %v15441_v39 }
 0x1d8   : > { %15443 = vst [vmem:[#allocation68_spill] sm:$0xff] %v15442_v39 }
 0x1d9   : > { %6357 = vmatmul.mubr.bf16.gmra.mrb[92].mxu1 %v2098_v31  ;;  %v2078_v31 = vld [vmem:[#allocation2 + $0xa0] sm:$0xff] }
 0x1da   : > { %9540 = vmatmul.mubr.msk.bf16.gmra.mrb[156].mxu0 %vm12884_vm9, %v9329_v33  ;;  %9333 = vmatprep.mubr.msk.bf16.mxu1 %vm12911_vm0, %v9332_v57  ;;  %v15444_v33 = vand.u32 15, %v12515_v6  ;;  %v2100_v0 = vpack.c.bf16 %v2078_v31, %v2077_v14  ;;  %v15446_v6 = vmov 0  ;;  %v2148_v31 = vld [vmem:[#allocation2 + $0xd1] sm:$0xff] }
 0x1db   : > { %9543 = vmatprep.mubr.msk.bf16.mxu0 %vm12477_vm15, %v9542_v17  ;;  %vm15445_vm15 = vnez %v15337_v43  ;;  %v9338_v17 = vpack.c.bf16 %v2144_v46, %v2143_v52  ;;  %v2081_v46 = vld [vmem:[#allocation2 + $0xb8] sm:$0xff] }
 0x1dc   : > { %v1632_v20 = vadd.s32 1, %v15444_v33  ;;  %v9341_v33 = vpack.c.bf16 %v2146_v16, %v2145_v9  ;;  %v15464_v9 = vand.u32 15, %v12685_v58 }
 0x1de   : > { %vm1696_vm10 = vcmp.lt.s32.totalorder %v1632_v20, 16 }
 0x1df   : > { %vm12938_vm7 = vmpackc.low %vm1696_vm10, %vm15342_vm1 }
 0x1e0   : > { %v15447_v6 = vsel %vm12938_vm7, 4294967295, %v15446_v6 }
 0x1e1   : > { %6365 = vmatmul.mubr.bf16.gmra.mrb[96].mxu1 %v2099_v34  ;;  %15448 = vst [vmem:[#allocation69_spill] sm:$0xff] %v15447_v6 }
 0x1e2   : > { %9546 = vmatmul.mubr.msk.bf16.gmra.mrb[160].mxu0 %vm12898_vm5, %v9332_v57  ;;  %9336 = vmatprep.mubr.msk.bf16.mxu1 %vm12924_vm6, %v9335_v30  ;;  %v15449_v57 = vand.u32 15, %v12560_v11  ;;  %v15451_v11 = vmov 0 }
 0x1e3   : > { %9549 = vmatprep.mubr.msk.bf16.mxu0 %vm15445_vm15, %v12562_v22  ;;  %vm15450_vm15 = vnez %v15347_v51  ;;  %v2080_v22 = vld [vmem:[#allocation2 + $0xb0] sm:$0xff] }
 0x1e4   : > { %v1634_v1 = vadd.s32 1, %v15449_v57  ;;  %v2101_v34 = vpack.c.bf16 %v2080_v22, %v2079_v7  ;;  %v2083_v22 = vld [vmem:[#allocation2 + $0xc8] sm:$0xff]  ;;  %v2149_v7 = vld [vmem:[#allocation2 + $0xd9] sm:$0xff] }
 0x1e6   : > { %vm1698_vm10 = vcmp.lt.s32.totalorder %v1634_v1, 16  ;;  %v2150_v1 = vld [vmem:[#allocation2 + $0xe1] sm:$0xff] }
 0x1e7   : > { %vm12952_vm5 = vmpackc.low %vm1698_vm10, %vm15342_vm1 }
 0x1e8   : > { %v15452_v11 = vsel %vm12952_vm5, 4294967295, %v15451_v11 }
 0x1e9   : > { %6373 = vmatmul.mubr.bf16.gmra.mrb[100].mxu1 %v2100_v0  ;;  %15453 = vst [vmem:[#allocation70_spill] sm:$0xff] %v15452_v11  ;;  %v2147_v0 = vld [vmem:[#allocation2 + $0xc9] sm:$0xff] }
 0x1ea   : > { %9552 = vmatmul.mubr.msk.bf16.gmra.mrb[164].mxu0 %vm12911_vm0, %v9335_v30  ;;  %9339 = vmatprep.mubr.msk.bf16.mxu1 %vm12938_vm7, %v9338_v17  ;;  %v15454_v30 = vand.u32 15, %v12605_v56  ;;  %v15456_v56 = vmov 0  ;;  %v9344_v52 = vpack.c.bf16 %v2148_v31, %v2147_v0  ;;  %v2152_v31 = vld [vmem:[#allocation2 + $0xf1] sm:$0xff] }
 0x1eb   : > { %9555 = vmatprep.mubr.msk.bf16.mxu0 %vm15450_vm15, %v12607_v41  ;;  %vm15455_vm15 = vnez %v15358_v13  ;;  %v2082_v41 = vld [vmem:[#allocation2 + $0xc0] sm:$0xff]  ;;  %v2085_v0 = vld [vmem:[#allocation2 + $0xd8] sm:$0xff] }
 0x1ec   : > { %v1636_v20 = vadd.s32 1, %v15454_v30  ;;  %v2102_v14 = vpack.c.bf16 %v2082_v41, %v2081_v46  ;;  %v2086_v30 = vld [vmem:[#allocation2 + $0xe0] sm:$0xff] }
 0x1ee   : > { %vm1700_vm10 = vcmp.lt.s32.totalorder %v1636_v20, 16 }
 0x1ef   : > { %vm12966_vm0 = vmpackc.low %vm1700_vm10, %vm15342_vm1 }
 0x1f0   : > { %v15457_v56 = vsel %vm12966_vm0, 4294967295, %v15456_v56 }
 0x1f1   : > { %6381 = vmatmul.mubr.bf16.gmra.mrb[104].mxu1 %v2101_v34  ;;  %15458 = vst [vmem:[#allocation71_spill] sm:$0xff] %v15457_v56  ;;  %v9347_v34 = vpack.c.bf16 %v2150_v1, %v2149_v7  ;;  %v2151_v1 = vld [vmem:[#allocation2 + $0xe9] sm:$0xff] }
 0x1f2   : > { %9558 = vmatmul.mubr.msk.bf16.gmra.mrb[168].mxu0 %vm12924_vm6, %v9338_v17  ;;  %9342 = vmatprep.mubr.msk.bf16.mxu1 %vm12952_vm5, %v9341_v33  ;;  %v15459_v17 = vand.u32 15, %v12649_v37  ;;  %v15461_v37 = vmov 0  ;;  %v9350_v7 = vpack.c.bf16 %v2152_v31, %v2151_v1 }
 0x1f3   : > { %9561 = vmatprep.mubr.msk.bf16.mxu0 %vm15455_vm15, %v12651_v38  ;;  %vm15460_vm15 = vnez %v15369_v32  ;;  %v2084_v38 = vld [vmem:[#allocation2 + $0xd0] sm:$0xff] }
 0x1f4   : > { %v1638_v57 = vadd.s32 1, %v15459_v17  ;;  %v2103_v16 = vpack.c.bf16 %v2084_v38, %v2083_v22  ;;  %v2104_v38 = vpack.c.bf16 %v2086_v30, %v2085_v0  ;;  %v11856_v30 = vld [vmem:[#allocation4 + $0x440] sm:$0xff]  }
 0x1f5   : > { %11092 = vmatprep.subr.bf16.mxu0 %v11856_v30 }
 0x1f6   : > { %vm1702_vm10 = vcmp.lt.s32.totalorder %v1638_v57, 16 }
 0x1f7   : > { %vm12980_vm6 = vmpackc.low %vm1702_vm10, %vm15342_vm1 }
 0x1f8   : > { %v15462_v37 = vsel %vm12980_vm6, 4294967295, %v15461_v37 }
 0x1f9   : > { %6389 = vmatmul.mubr.bf16.gmra.mrb[108].mxu1 %v2102_v14  ;;  %15463 = vst [vmem:[#allocation72_spill] sm:$0xff] %v15462_v37  ;;  %v15541_v37 = vld [vmem:[#allocation51_spill] sm:$0xff] }
 0x1fa   : > { %9564 = vmatmul.mubr.msk.bf16.gmra.mrb[172].mxu0 %vm12938_vm7, %v9341_v33  ;;  %9345 = vmatprep.mubr.msk.bf16.mxu1 %vm12966_vm0, %v9344_v52  ;;  %v1640_v33 = vadd.s32 1, %v15464_v9  ;;  %v15469_v9 = vand.u32 15, %v12724_v3 }
 0x1fb   : > { %9567 = vmatprep.mubr.msk.bf16.mxu0 %vm15460_vm15, %v12687_v23  ;;  %vm15465_vm15 = vnez %v15380_v8 }
 0x1fc   : > { %vm1704_vm10 = vcmp.lt.s32.totalorder %v1640_v33, 16  ;;  %v1642_v33 = vadd.s32 1, %v15469_v9  ;;  %v2153_v9 = vld [vmem:[#allocation2 + $0xf9] sm:$0xff] }
 0x201   : > { %6397 = vmatmul.mubr.bf16.gmra.mrb[112].mxu1 %v2103_v16 }
 0x202   : > { %9570 = vmatmul.mubr.msk.bf16.gmra.mrb[176].mxu0 %vm12952_vm5, %v9344_v52  ;;  %9348 = vmatprep.mubr.msk.bf16.mxu1 %vm12980_vm6, %v9347_v34  ;;  %vm12998_vm5 = vmpackc.low %vm1704_vm10, %vm15342_vm1  ;;  %vm15470_vm10 = vnez %v15389_v27 }
 0x203   : > { %9573 = vmatprep.mubr.msk.bf16.mxu0 %vm15465_vm15, %v12719_v4  ;;  %v15466_v4 = vmov 0  ;;  %vm1706_vm15 = vcmp.lt.s32.totalorder %v1642_v33, 16 }
 0x204   : > { %v10224_v23 = vpop.f32.mrb[8].mxu1  ;;  %v15467_v4 = vsel %vm12998_vm5, 4294967295, %v15466_v4 }
 0x205   : > { %v10442_v20 = vpop.f32.mrb[72].mxu0  ;;  %v10225_v41 = vpop.f32.mrb[9].mxu1  ;;  %15468 = vst [vmem:[#allocation73_spill] sm:$0xff] %v15467_v4 }
 0x206   : > { %v12993_v46 = vadd.f32 %v10225_v41, %v10224_v23  ;;  %v10443_v58 = vpop.f32.mrb[73].mxu0  ;;  %v10227_v14 = vpop.f32.mrb[10].mxu1  ;;  %v2088_v41 = vld [vmem:[#allocation2 + $0xf0] sm:$0xff] }
 0x207   : > { %v12995_v17 = vadd.f32 %v10443_v58, %v10442_v20  ;;  %v10445_v52 = vpop.f32.mrb[74].mxu0  ;;  %v10228_v57 = vpop.f32.mrb[11].mxu1  ;;  %v2154_v58 = vld [vmem:[#allocation2 + $0x101] sm:$0xff] }
 0x208   : > { %v13002_v22 = vadd.f32 %v10228_v57, %v10227_v14  ;;  %v10446_v16 = vpop.f32.mrb[75].mxu0  ;;  %v9353_v27 = vpack.c.bf16 %v2154_v58, %v2153_v9 }
 0x209   : > { %v13006_v23 = vadd.f32 %v10446_v16, %v10445_v52  ;;  %6405 = vmatmul.mubr.bf16.gmra.mrb[116].mxu1 %v2104_v38 }
 0x20a   : > { %9576 = vmatmul.mubr.msk.bf16.gmra.mrb[180].mxu0 %vm12966_vm0, %v9347_v34  ;;  %9351 = vmatprep.mubr.msk.bf16.mxu1 %vm12998_vm5, %v9350_v7  ;;  %v2087_v34 = vld [vmem:[#allocation2 + $0xe8] sm:$0xff] }
 0x20b   : > { %9579 = vmatprep.mubr.msk.bf16.mxu0 %vm15470_vm10, %v12759_v40  ;;  %v2105_v16 = vpack.c.bf16 %v2088_v41, %v2087_v34  ;;  %vm13020_vm10 = vmpackc.low %vm1706_vm15, %vm15342_vm1  ;;  %v15471_v40 = vmov 0  ;;  %vm15475_vm15 = vnez %v15254_v45  ;;  %vm15480_vm1 = vnez %v15260_v10 }
 0x20c   : > { %v10230_v20 = vpop.f32.mrb[12].mxu1  ;;  %v15472_v40 = vsel %vm13020_vm10, 4294967295, %v15471_v40 }
 0x20d   : > { %v10448_v3 = vpop.f32.mrb[76].mxu0  ;;  %v10231_v31 = vpop.f32.mrb[13].mxu1  ;;  %15473 = vst [vmem:[#allocation74_spill] sm:$0xff] %v15472_v40  ;;  %v11876_v40 = vld [vmem:[#allocation4 + $0x3c8] sm:$0xff]  }
 0x20e   : > { %v13015_v14 = vadd.f32 %v10231_v31, %v10230_v20  ;;  %v10449_v0 = vpop.f32.mrb[77].mxu0  ;;  %v10233_v52 = vpop.f32.mrb[14].mxu1 }
 0x20f   : > { %v13017_v57 = vadd.f32 %v10449_v0, %v10448_v3  ;;  %v10451_v38 = vpop.f32.mrb[78].mxu0  ;;  %v10234_v1 = vpop.f32.mrb[15].mxu1  ;;  %v2090_v3 = vld [vmem:[#allocation2 + $0x100] sm:$0xff] }
 0x210   : > { %v13024_v33 = vadd.f32 %v10234_v1, %v10233_v52  ;;  %v10452_v30 = vpop.f32.mrb[79].mxu0  ;;  %v2697_v1 = vld [vmem:[#allocation2 + $0x10a] sm:$0xff] }
 0x211   : > { %v13026_v20 = vadd.f32 %v10452_v30, %v10451_v38  ;;  %6413 = vmatmul.mubr.bf16.gmra.mrb[120].mxu1 %v2105_v16  ;;  %v2089_v38 = vld [vmem:[#allocation2 + $0xf8] sm:$0xff] }
 0x212   : > { %9582 = vmatmul.mubr.msk.bf16.gmra.mrb[184].mxu0 %vm12980_vm6, %v9350_v7  ;;  %9354 = vmatprep.mubr.msk.bf16.mxu1 %vm13020_vm10, %v9353_v27  ;;  %v2698_v16 = vld [vmem:[#allocation2 + $0x112] sm:$0xff]  ;;  %v13039_v8 = vpack.c.bf16 %v2090_v3, %v2089_v38 }
 0x213   : > { %9585 = vmatprep.mubr.msk.bf16.mxu0 %vm12750_vm13, %v12785_v60  ;;  %vm15519_vm13 = vnez %v15442_v39 }
 0x214   : > { %v10236_v41 = vpop.f32.mrb[16].mxu1 }
 0x215   : > { %v10454_v31 = vpop.f32.mrb[80].mxu0  ;;  %v10237_v0 = vpop.f32.mrb[17].mxu1 }
 0x216   : > { %v13035_v52 = vadd.f32 %v10237_v0, %v10236_v41  ;;  %v10455_v58 = vpop.f32.mrb[81].mxu0  ;;  %v10239_v34 = vpop.f32.mrb[18].mxu1  ;;  %v9590_v41 = vpack.c.bf16 %v2698_v16, %v2697_v1  ;;  %v2411_v0 = vld [vmem:[#allocation2 + $0x17] sm:$0xff] }
 0x217   : > { %v13037_v9 = vadd.f32 %v10455_v58, %v10454_v31  ;;  %v10457_v7 = vpop.f32.mrb[82].mxu0  ;;  %v10240_v30 = vpop.f32.mrb[19].mxu1  ;;  %v2412_v31 = vld [vmem:[#allocation2 + $0x1f] sm:$0xff]  ;;  %v11839_v16 = vld [vmem:[#allocation4 + $0x280] sm:$0xff]  }
 0x218   : > { %v13041_v32 = vadd.f32 %v10240_v30, %v10239_v34  ;;  %v10458_v60 = vpop.f32.mrb[83].mxu0  ;;  %v9452_v38 = vpack.c.bf16 %v2412_v31, %v2411_v0  ;;  %v2601_v30 = vld [vmem:[#allocation2 + $0x109] sm:$0xff]  ;;  %v11846_v0 = vld [vmem:[#allocation4 + $0x2d0] sm:$0xff]  }
 0x219   : > { %v13043_v54 = vadd.f32 %v10458_v60, %v10457_v7  ;;  %6421 = vmatmul.mubr.bf16.gmra.mrb[124].mxu1 %v13039_v8  ;;  %v2602_v7 = vld [vmem:[#allocation2 + $0x111] sm:$0xff] }
 0x21a   : > { %9588 = vmatmul.mubr.msk.bf16.gmra.mrb[188].mxu0 %vm12998_vm5, %v9353_v27  ;;  %6622 = vmatprep.mubr.bf16.mxu1 %v12777_v25  ;;  %v13057_v49 = vpack.c.bf16 %v2602_v7, %v2601_v30  ;;  %v2413_v7 = vld [vmem:[#allocation2 + $0x27] sm:$0xff] }
 0x21b   : > { %9591 = vmatprep.mubr.msk.bf16.mxu0 %vm12781_vm12, %v9590_v41  ;;  %v11844_v41 = vld [vmem:[#allocation4 + $0x2c8] sm:$0xff]   ;;  %vm15512_vm12 = vnez %v15438_v28 }
 0x21c   : > { %v10242_v3 = vpop.f32.mrb[20].mxu1 }
 0x21d   : > { %v10460_v58 = vpop.f32.mrb[84].mxu0  ;;  %v10243_v34 = vpop.f32.mrb[21].mxu1 }
 0x21e   : > { %v13051_v60 = vadd.f32 %v10243_v34, %v10242_v3  ;;  %v10461_v13 = vpop.f32.mrb[85].mxu0  ;;  %v10245_v1 = vpop.f32.mrb[22].mxu1  ;;  %v2414_v3 = vld [vmem:[#allocation2 + $0x2f] sm:$0xff] }
 0x21f   : > { %v13053_v51 = vadd.f32 %v10461_v13, %v10460_v58  ;;  %v10463_v27 = vpop.f32.mrb[86].mxu0  ;;  %v10246_v25 = vpop.f32.mrb[23].mxu1  ;;  %v11845_v13 = vld [vmem:[#allocation4 + $0x288] sm:$0xff]  }
 0x220   : > { %v13055_v43 = vadd.f32 %v10246_v25, %v10245_v1  ;;  %v10464_v15 = vpop.f32.mrb[87].mxu0  ;;  %v13074_v25 = vpack.c.bf16 %v2414_v3, %v2413_v7  ;;  %v2416_v3 = vld [vmem:[#allocation2 + $0x3f] sm:$0xff] }
 0x221   : > { %v13059_v2 = vadd.f32 %v10464_v15, %v10463_v27  ;;  %9453 = vmatmul.mubr.msk.bf16.vlgmr.msra.gmra.mrb[128].mxu1 %vm15475_vm15, %v9452_v38  ;;  %v11862_v7 = vld [vmem:[#allocation4 + $0x450] sm:$0xff]  }
 0x222   : > { %15474 = vst [vmem:[#allocation75_spill] sm:$0xff] %v13055_v43  ;;  %9594 = vmatmul.mubr.msk.bf16.gmra.mrb[192].mxu0 %vm13020_vm10, %v13057_v49  ;;  %10757 = vmatpush3.bf16.msra.mxu1 %v11839_v16 }
 0x223   : > { %6630 = vmatprep.mubr.bf16.mxu1 %v12828_v42  ;;  %9693 = vmatprep.mubr.msk.bf16.mxu0 %vm12755_vm8, %v12812_v61  ;;  %v11847_v61 = vld [vmem:[#allocation4 + $0x290] sm:$0xff]   ;;  %vm15505_vm8 = vnez %v15434_v35 }
 0x224   : > { %v10248_v31 = vpop.f32.mrb[24].mxu1  ;;  %10758 = vmatprep.subr.bf16.mxu1 %v11844_v41  ;;  %v11848_v41 = vld [vmem:[#allocation4 + $0x2d8] sm:$0xff]  }
 0x225   : > { %v10466_v15 = vpop.f32.mrb[88].mxu0  ;;  %v10249_v58 = vpop.f32.mrb[25].mxu1 }
 0x226   : > { %v13070_v34 = vadd.f32 %v10249_v58, %v10248_v31  ;;  %v10467_v38 = vpop.f32.mrb[89].mxu0  ;;  %v10251_v30 = vpop.f32.mrb[26].mxu1  ;;  %10759 = vmatpush3.bf16.msra.mxu1 %v11845_v13  ;;  %v11858_v13 = vld [vmem:[#allocation4 + $0x448] sm:$0xff]  }
 0x227   : > { %v13072_v1 = vadd.f32 %v10467_v38, %v10466_v15  ;;  %v10469_v16 = vpop.f32.mrb[90].mxu0  ;;  %v10252_v27 = vpop.f32.mrb[27].mxu1  ;;  %10760 = vmatprep.subr.bf16.mxu1 %v11846_v0  ;;  %v11849_v0 = vld [vmem:[#allocation4 + $0x298] sm:$0xff]   ;;  %v11859_v15 = vld [vmem:[#allocation4 + $0x408] sm:$0xff]  }
 0x228   : > { %15476 = vst [vmem:[#allocation76_spill] sm:$0xff] %v13070_v34  ;;  %v13076_v59 = vadd.f32 %v10252_v27, %v10251_v30  ;;  %v10470_v5 = vpop.f32.mrb[91].mxu0  ;;  %v2958_v30 = vld [vmem:[#allocation2 + $0x40] sm:$0xff]  ;;  %v2415_v27 = vld [vmem:[#allocation2 + $0x37] sm:$0xff] }
 0x229   : > { %15477 = vst [vmem:[#allocation77_spill] sm:$0xff] %v13072_v1  ;;  %v13078_v43 = vadd.f32 %v10470_v5, %v10469_v16  ;;  %9456 = vmatmul.mubr.msk.bf16.gmra.mrb[132].mxu1 %vm15480_vm1, %v13074_v25  ;;  %v11850_v5 = vld [vmem:[#allocation4 + $0x2e0] sm:$0xff]   ;;  %v9458_v34 = vpack.c.bf16 %v2416_v3, %v2415_v27  ;;  %v11864_v3 = vld [vmem:[#allocation4 + $0x458] sm:$0xff]  }
 0x22a   : > { %15478 = vst [vmem:[#allocation78_spill] sm:$0xff] %v13076_v59  ;;  %7106 = vmatmul.mubr.bf16.vlgmr.msra.gmra.mrb[196].mxu0 %v12828_v42  ;;  %6638 = vmatprep.mubr.bf16.mxu1 %v12848_v21  ;;  %v3026_v27 = vld [vmem:[#allocation2 + $0x61] sm:$0xff] }
 0x22b   : > { %15479 = vst [vmem:[#allocation79_spill] sm:$0xff] %v13078_v43  ;;  %9696 = vmatprep.mubr.msk.bf16.mxu0 %vm12788_vm2, %v12835_v19  ;;  %10761 = vmatpush3.bf16.msra.mxu1 %v11847_v61  ;;  %vm15483_vm2 = vnez %v15269_v36 }
 0x22c   : > { %v10254_v31 = vpop.f32.mrb[28].mxu1  ;;  %10762 = vmatprep.subr.bf16.mxu1 %v11848_v41  ;;  %11093 = vmatpush3.bf16.msra.mxu0 %v11857_v26  ;;  %v2957_v41 = vld [vmem:[#allocation2 + $0x38] sm:$0xff]  ;;  %v11851_v26 = vld [vmem:[#allocation4 + $0x2a0] sm:$0xff]  }
 0x22d   : > { %v10472_v58 = vpop.f32.mrb[92].mxu0  ;;  %v10255_v38 = vpop.f32.mrb[29].mxu1  ;;  %11094 = vmatprep.subr.bf16.mxu0 %v11858_v13  ;;  %v2988_v1 = vpack.c.bf16 %v2958_v30, %v2957_v41  ;;  %v3023_v13 = vld [vmem:[#allocation2 + $0x49] sm:$0xff] }
 0x22e   : > { %v13088_v42 = vadd.f32 %v10255_v38, %v10254_v31  ;;  %v10473_v21 = vpop.f32.mrb[93].mxu0  ;;  %v10257_v16 = vpop.f32.mrb[30].mxu1  ;;  %v11852_v31 = vld [vmem:[#allocation4 + $0x2e8] sm:$0xff]   ;;  %v11863_v38 = vld [vmem:[#allocation4 + $0x410] sm:$0xff]  }
 0x22f   : > { %v13090_v19 = vadd.f32 %v10473_v21, %v10472_v58  ;;  %v10475_v61 = vpop.f32.mrb[94].mxu0  ;;  %v10258_v59 = vpop.f32.mrb[31].mxu1  ;;  %10763 = vmatpush3.bf16.msra.mxu1 %v11849_v0  ;;  %v9698_v58 = vpack.c.bf16 %v3024_v29, %v3023_v13  ;;  %v11866_v29 = vld [vmem:[#allocation4 + $0x460] sm:$0xff]  }
 0x230   : > { %15481 = vst [vmem:[#allocation80_spill] sm:$0xff] %v13088_v42  ;;  %v13092_v43 = vadd.f32 %v10258_v59, %v10257_v16  ;;  %v10476_v10 = vpop.f32.mrb[95].mxu0  ;;  %10764 = vmatprep.subr.bf16.mxu1 %v11850_v5  ;;  %11095 = vmatpush3.bf16.msra.mxu0 %v11859_v15  ;;  %v11853_v59 = vld [vmem:[#allocation4 + $0x2a8] sm:$0xff]   ;;  %v2418_v5 = vld [vmem:[#allocation2 + $0x4f] sm:$0xff]  ;;  %v11854_v15 = vld [vmem:[#allocation4 + $0x2f0] sm:$0xff]  }
 0x231   : > { %v13094_v42 = vadd.f32 %v10476_v10, %v10475_v61  ;;  %9459 = vmatmul.mubr.msk.bf16.gmra.mrb[136].mxu1 %vm15483_vm2, %v9458_v34  ;;  %11096 = vmatprep.subr.bf16.mxu0 %v11862_v7  ;;  %v11865_v10 = vld [vmem:[#allocation4 + $0x418] sm:$0xff]   ;;  %v2960_v34 = vld [vmem:[#allocation2 + $0x50] sm:$0xff] }
 0x232   : > { %15482 = vst [vmem:[#allocation81_spill] sm:$0xff] %v13092_v43  ;;  %7114 = vmatmul.mubr.bf16.gmra.mrb[200].mxu0 %v2988_v1  ;;  %6646 = vmatprep.mubr.bf16.mxu1 %v12865_v62  ;;  %v2417_v16 = vld [vmem:[#allocation2 + $0x47] sm:$0xff] }
 0x233   : > { %9699 = vmatprep.mubr.msk.bf16.mxu0 %vm12807_vm3, %v9698_v58  ;;  %10765 = vmatpush3.bf16.msra.mxu1 %v11851_v26  ;;  %v9461_v13 = vpack.c.bf16 %v2418_v5, %v2417_v16  ;;  %vm15488_vm3 = vnez %v15277_v50  ;;  %v11868_v5 = vld [vmem:[#allocation4 + $0x468] sm:$0xff]   ;;  %v2962_v16 = vld [vmem:[#allocation2 + $0x60] sm:$0xff] }
 0x234   : > { %v10260_v0 = vpop.f32.mrb[32].mxu1  ;;  %10766 = vmatprep.subr.bf16.mxu1 %v11852_v31  ;;  %11097 = vmatpush3.bf16.msra.mxu0 %v11863_v38  ;;  %v2959_v31 = vld [vmem:[#allocation2 + $0x48] sm:$0xff]  ;;  %v11855_v38 = vld [vmem:[#allocation4 + $0x2b0] sm:$0xff]  }
 0x235   : > { %v10478_v30 = vpop.f32.mrb[96].mxu0  ;;  %v10261_v21 = vpop.f32.mrb[33].mxu1  ;;  %11098 = vmatprep.subr.bf16.mxu0 %v11864_v3  ;;  %v2989_v43 = vpack.c.bf16 %v2960_v34, %v2959_v31  ;;  %v3025_v3 = vld [vmem:[#allocation2 + $0x59] sm:$0xff] }
 0x236   : > { %v13101_v7 = vadd.f32 %v10261_v21, %v10260_v0  ;;  %v10479_v1 = vpop.f32.mrb[97].mxu0  ;;  %v10263_v62 = vpop.f32.mrb[34].mxu1  ;;  %v11860_v0 = vld [vmem:[#allocation4 + $0x2f8] sm:$0xff]   ;;  %v11867_v21 = vld [vmem:[#allocation4 + $0x420] sm:$0xff]   ;;  %v2420_v34 = vld [vmem:[#allocation2 + $0x5f] sm:$0xff] }
 0x237   : > { %v13103_v61 = vadd.f32 %v10479_v1, %v10478_v30  ;;  %v10481_v41 = vpop.f32.mrb[98].mxu0  ;;  %v10264_v26 = vpop.f32.mrb[35].mxu1  ;;  %10767 = vmatpush3.bf16.msra.mxu1 %v11853_v59  ;;  %v9701_v30 = vpack.c.bf16 %v3026_v27, %v3025_v3  ;;  %v11861_v59 = vld [vmem:[#allocation4 + $0x2b8] sm:$0xff]   ;;  %v2518_v27 = vld [vmem:[#allocation2 + $0x70] sm:$0xff] }
 0x238   : > { %15484 = vst [vmem:[#allocation82_spill] sm:$0xff] %v13101_v7  ;;  %v13105_v58 = vadd.f32 %v10264_v26, %v10263_v62  ;;  %v10482_v48 = vpop.f32.mrb[99].mxu0  ;;  %10768 = vmatprep.subr.bf16.mxu1 %v11854_v15  ;;  %11099 = vmatpush3.bf16.msra.mxu0 %v11865_v10  ;;  %v11870_v10 = vld [vmem:[#allocation4 + $0x3c0] sm:$0xff]  }
 0x239   : > { %15485 = vst [vmem:[#allocation83_spill] sm:$0xff] %v13103_v61  ;;  %v13107_v7 = vadd.f32 %v10482_v48, %v10481_v41  ;;  %9462 = vmatmul.mubr.msk.bf16.gmra.mrb[140].mxu1 %vm15488_vm3, %v9461_v13  ;;  %11100 = vmatprep.subr.bf16.mxu0 %v11866_v29  ;;  %v11869_v48 = vld [vmem:[#allocation4 + $0x428] sm:$0xff]   ;;  %v11872_v29 = vld [vmem:[#allocation4 + $0x470] sm:$0xff]   ;;  %v3027_v61 = vld [vmem:[#allocation2 + $0x69] sm:$0xff] }
 0x23a   : > { %15486 = vst [vmem:[#allocation84_spill] sm:$0xff] %v13105_v58  ;;  %7122 = vmatmul.mubr.bf16.gmra.mrb[204].mxu0 %v2989_v43  ;;  %6654 = vmatprep.mubr.bf16.mxu1 %v12881_v53  ;;  %v2419_v26 = vld [vmem:[#allocation2 + $0x57] sm:$0xff] }
 0x23b   : > { %15487 = vst [vmem:[#allocation85_spill] sm:$0xff] %v13107_v7  ;;  %9702 = vmatprep.mubr.msk.bf16.mxu0 %vm12831_vm4, %v9701_v30  ;;  %10769 = vmatpush3.bf16.msra.mxu1 %v11855_v38  ;;  %v3028_v13 = vld [vmem:[#allocation2 + $0x71] sm:$0xff]  ;;  %v2517_v30 = vld [vmem:[#allocation2 + $0x68] sm:$0xff]  ;;  %vm15489_vm4 = vnez %v15285_v18 }
 0x23c   : > { %v10266_v15 = vpop.f32.mrb[36].mxu1  ;;  %10770 = vmatprep.subr.bf16.mxu1 %v11860_v0  ;;  %11101 = vmatpush3.bf16.msra.mxu0 %v11867_v21  ;;  %v9464_v0 = vpack.c.bf16 %v2420_v34, %v2419_v26  ;;  %v2961_v21 = vld [vmem:[#allocation2 + $0x58] sm:$0xff]  ;;  %v11874_v34 = vld [vmem:[#allocation4 + $0x478] sm:$0xff]  }
 0x23d   : > { %v10484_v1 = vpop.f32.mrb[100].mxu0  ;;  %v10267_v62 = vpop.f32.mrb[37].mxu1  ;;  %11102 = vmatprep.subr.bf16.mxu0 %v11868_v5  ;;  %v2990_v7 = vpack.c.bf16 %v2962_v16, %v2961_v21  ;;  %v2544_v5 = vpack.c.bf16 %v2518_v27, %v2517_v30  ;;  %v2422_v16 = vld [vmem:[#allocation2 + $0x6f] sm:$0xff]  ;;  %v15593_v18 = vld [vmem:[#allocation24_spill] sm:$0xff] }
 0x23e   : > { %v13114_v43 = vadd.f32 %v10267_v62, %v10266_v15  ;;  %v10485_v53 = vpop.f32.mrb[101].mxu0  ;;  %v10269_v41 = vpop.f32.mrb[38].mxu1  ;;  %v11873_v15 = vld [vmem:[#allocation4 + $0x430] sm:$0xff]   ;;  %v11875_v27 = vld [vmem:[#allocation4 + $0x438] sm:$0xff]  }
 0x23f   : > { %v13116_v31 = vadd.f32 %v10485_v53, %v10484_v1  ;;  %v10487_v38 = vpop.f32.mrb[102].mxu0  ;;  %v10270_v3 = vpop.f32.mrb[39].mxu1  ;;  %10771 = vmatpush3.bf16.msra.mxu1 %v11861_v59  ;;  %v9704_v1 = vpack.c.bf16 %v3028_v13, %v3027_v61  ;;  %v2520_v53 = vld [vmem:[#allocation2 + $0x80] sm:$0xff] }
 0x240   : > { %v13118_v44 = vadd.f32 %v10270_v3, %v10269_v41  ;;  %v10488_v58 = vpop.f32.mrb[103].mxu0  ;;  %11103 = vmatpush3.bf16.msra.mxu0 %v11869_v48  ;;  %10980 = vmatprep.subr.bf16.mxu1 %v11870_v10  ;;  %v2421_v61 = vld [vmem:[#allocation2 + $0x67] sm:$0xff] }
 0x241   : > { %v13120_v62 = vadd.f32 %v10488_v58, %v10487_v38  ;;  %9465 = vmatmul.mubr.msk.bf16.gmra.mrb[144].mxu1 %vm15489_vm4, %v9464_v0  ;;  %11104 = vmatprep.subr.bf16.mxu0 %v11872_v29  ;;  %v3030_v29 = vld [vmem:[#allocation2 + $0x81] sm:$0xff]  ;;  %v9467_v3 = vpack.c.bf16 %v2422_v16, %v2421_v61  ;;  %v2519_v0 = vld [vmem:[#allocation2 + $0x78] sm:$0xff] }
 0x242   : > { %7130 = vmatmul.mubr.bf16.gmra.mrb[208].mxu0 %v2990_v7  ;;  %6662 = vmatprep.mubr.bf16.mxu1 %v2544_v5  ;;  %v2424_v16 = vld [vmem:[#allocation2 + $0x7f] sm:$0xff]  ;;  %v2423_v61 = vld [vmem:[#allocation2 + $0x77] sm:$0xff] }
 0x243   : > { %9705 = vmatprep.mubr.msk.bf16.mxu0 %vm12851_vm11, %v9704_v1  ;;  %v3029_v1 = vld [vmem:[#allocation2 + $0x79] sm:$0xff]  ;;  %vm15492_vm11 = vnez %v15295_v55  ;;  %v15603_v55 = vld [vmem:[#allocation27_spill] sm:$0xff] }
 0x244   : > { %v10272_v59 = vpop.f32.mrb[40].mxu1  ;;  %11105 = vmatpush3.bf16.msra.mxu0 %v11873_v15  ;;  %v2545_v15 = vpack.c.bf16 %v2520_v53, %v2519_v0  ;;  %v2521_v0 = vld [vmem:[#allocation2 + $0x88] sm:$0xff] }
 0x245   : > { %v10490_v48 = vpop.f32.mrb[104].mxu0  ;;  %v10273_v10 = vpop.f32.mrb[41].mxu1  ;;  %11106 = vmatprep.subr.bf16.mxu0 %v11874_v34  ;;  %v9707_v34 = vpack.c.bf16 %v3030_v29, %v3029_v1 }
 0x246   : > { %v13126_v58 = vadd.f32 %v10273_v10, %v10272_v59  ;;  %v10491_v41 = vpop.f32.mrb[105].mxu0  ;;  %v10275_v26 = vpop.f32.mrb[42].mxu1 }
 0x247   : > { %v13128_v13 = vadd.f32 %v10491_v41, %v10490_v48  ;;  %v10493_v7 = vpop.f32.mrb[106].mxu0  ;;  %v10276_v38 = vpop.f32.mrb[43].mxu1  ;;  %v2522_v41 = vld [vmem:[#allocation2 + $0x90] sm:$0xff] }
 0x248   : > { %15490 = vst [vmem:[#allocation86_spill] sm:$0xff] %v13126_v58  ;;  %v13130_v21 = vadd.f32 %v10276_v38, %v10275_v26  ;;  %v10494_v30 = vpop.f32.mrb[107].mxu0  ;;  %11107 = vmatpush3.bf16.msra.mxu0 %v11875_v27  ;;  %v15497_v58 = vld [vmem:[#allocation23_spill] sm:$0xff] }
 0x249   : > { %v13132_v12 = vadd.f32 %v10494_v30, %v10493_v7  ;;  %9468 = vmatmul.mubr.msk.bf16.gmra.mrb[148].mxu1 %vm15492_vm11, %v9467_v3  ;;  %v3032_v7 = vld [vmem:[#allocation2 + $0x91] sm:$0xff] }
 0x24a   : > { %15491 = vst [vmem:[#allocation87_spill] sm:$0xff] %v13130_v21  ;;  %7138 = vmatmul.mubr.bf16.gmra.mrb[212].mxu0 %v2544_v5  ;;  %6670 = vmatprep.mubr.bf16.mxu1 %v2545_v15  ;;  %v9470_v5 = vpack.c.bf16 %v2424_v16, %v2423_v61 }
 0x24b   : > { %9708 = vmatprep.mubr.msk.bf16.mxu0 %vm12868_vm14, %v9707_v34  ;;  %v2546_v34 = vpack.c.bf16 %v2522_v41, %v2521_v0  ;;  %vm15498_vm14 = vnez %v15497_v58  ;;  %v3034_v0 = vld [vmem:[#allocation2 + $0xa1] sm:$0xff] }
 0x24c   : > { %v10278_v59 = vpop.f32.mrb[44].mxu1 }
 0x24d   : > { %v10496_v48 = vpop.f32.mrb[108].mxu0  ;;  %v10279_v10 = vpop.f32.mrb[45].mxu1 }
 0x24e   : > { %v13138_v26 = vadd.f32 %v10279_v10, %v10278_v59  ;;  %v10497_v53 = vpop.f32.mrb[109].mxu0  ;;  %v10281_v27 = vpop.f32.mrb[46].mxu1  ;;  %v9710_v59 = vpack.c.bf16 %v3032_v7, %v3031_v47  ;;  %v2426_v10 = vld [vmem:[#allocation2 + $0x8f] sm:$0xff]  ;;  %v2523_v7 = vld [vmem:[#allocation2 + $0x98] sm:$0xff] }
 0x24f   : > { %v13140_v38 = vadd.f32 %v10497_v53, %v10496_v48  ;;  %v10499_v3 = vpop.f32.mrb[110].mxu0  ;;  %v10282_v29 = vpop.f32.mrb[47].mxu1 }
 0x250   : > { %15493 = vst [vmem:[#allocation88_spill] sm:$0xff] %v13138_v26  ;;  %v13142_v30 = vadd.f32 %v10282_v29, %v10281_v27  ;;  %v10500_v1 = vpop.f32.mrb[111].mxu0  ;;  %v2524_v27 = vld [vmem:[#allocation2 + $0xa0] sm:$0xff] }
 0x251   : > { %15494 = vst [vmem:[#allocation89_spill] sm:$0xff] %v13140_v38  ;;  %v13144_v21 = vadd.f32 %v10500_v1, %v10499_v3  ;;  %9471 = vmatmul.mubr.msk.bf16.gmra.mrb[152].mxu1 %vm15498_vm14, %v9470_v5  ;;  %v2425_v3 = vld [vmem:[#allocation2 + $0x87] sm:$0xff]  ;;  %v2547_v24 = vpack.c.bf16 %v2524_v27, %v2523_v7  ;;  %v3033_v26 = vld [vmem:[#allocation2 + $0x99] sm:$0xff]  ;;  %v3036_v7 = vld [vmem:[#allocation2 + $0xb1] sm:$0xff] }
 0x252   : > { %15495 = vst [vmem:[#allocation90_spill] sm:$0xff] %v13142_v30  ;;  %7146 = vmatmul.mubr.bf16.gmra.mrb[216].mxu0 %v2545_v15  ;;  %6678 = vmatprep.mubr.bf16.mxu1 %v2546_v34  ;;  %v9473_v15 = vpack.c.bf16 %v2426_v10, %v2425_v3  ;;  %v15503_v38 = vld [vmem:[#allocation26_spill] sm:$0xff] }
 0x253   : > { %15496 = vst [vmem:[#allocation91_spill] sm:$0xff] %v13144_v21  ;;  %9711 = vmatprep.mubr.msk.bf16.mxu0 %vm12884_vm9, %v9710_v59  ;;  %vm15504_vm9 = vnez %v15503_v38 }
 0x254   : > { %v10284_v48 = vpop.f32.mrb[48].mxu1 }
 0x255   : > { %v10502_v16 = vpop.f32.mrb[112].mxu0  ;;  %v10285_v53 = vpop.f32.mrb[49].mxu1 }
 0x256   : > { %v13150_v61 = vadd.f32 %v10285_v53, %v10284_v48  ;;  %v10503_v41 = vpop.f32.mrb[113].mxu0  ;;  %v10287_v29 = vpop.f32.mrb[50].mxu1  ;;  %v9713_v48 = vpack.c.bf16 %v3034_v0, %v3033_v26  ;;  %v2428_v53 = vld [vmem:[#allocation2 + $0x9f] sm:$0xff]  ;;  %v2525_v0 = vld [vmem:[#allocation2 + $0xa8] sm:$0xff] }
 0x257   : > { %v13152_v1 = vadd.f32 %v10503_v41, %v10502_v16  ;;  %v10505_v5 = vpop.f32.mrb[114].mxu0  ;;  %v10288_v47 = vpop.f32.mrb[51].mxu1 }
 0x258   : > { %15499 = vst [vmem:[#allocation92_spill] sm:$0xff] %v13150_v61  ;;  %v13154_v30 = vadd.f32 %v10288_v47, %v10287_v29  ;;  %v10506_v59 = vpop.f32.mrb[115].mxu0  ;;  %v2526_v29 = vld [vmem:[#allocation2 + $0xb0] sm:$0xff] }
 0x259   : > { %15500 = vst [vmem:[#allocation93_spill] sm:$0xff] %v13152_v1  ;;  %v13156_v21 = vadd.f32 %v10506_v59, %v10505_v5  ;;  %9474 = vmatmul.mubr.msk.bf16.gmra.mrb[156].mxu1 %vm15504_vm9, %v9473_v15  ;;  %v2427_v5 = vld [vmem:[#allocation2 + $0x97] sm:$0xff]  ;;  %v2548_v35 = vpack.c.bf16 %v2526_v29, %v2525_v0  ;;  %v3035_v61 = vld [vmem:[#allocation2 + $0xa9] sm:$0xff]  ;;  %v15510_v1 = vld [vmem:[#allocation29_spill] sm:$0xff] }
 0x25a   : > { %15501 = vst [vmem:[#allocation94_spill] sm:$0xff] %v13154_v30  ;;  %7154 = vmatmul.mubr.bf16.gmra.mrb[220].mxu0 %v2546_v34  ;;  %6686 = vmatprep.mubr.bf16.mxu1 %v2547_v24  ;;  %v9476_v34 = vpack.c.bf16 %v2428_v53, %v2427_v5  ;;  %v3038_v0 = vld [vmem:[#allocation2 + $0xc1] sm:$0xff] }
 0x25b   : > { %15502 = vst [vmem:[#allocation95_spill] sm:$0xff] %v13156_v21  ;;  %9714 = vmatprep.mubr.msk.bf16.mxu0 %vm15505_vm8, %v9713_v48  ;;  %vm15511_vm8 = vnez %v15510_v1 }
 0x25c   : > { %v10290_v16 = vpop.f32.mrb[52].mxu1 }
 0x25d   : > { %v10508_v10 = vpop.f32.mrb[116].mxu0  ;;  %v10291_v41 = vpop.f32.mrb[53].mxu1 }
 0x25e   : > { %v13162_v3 = vadd.f32 %v10291_v41, %v10290_v16  ;;  %v10509_v27 = vpop.f32.mrb[117].mxu0  ;;  %v10293_v47 = vpop.f32.mrb[54].mxu1  ;;  %v9716_v16 = vpack.c.bf16 %v3036_v7, %v3035_v61  ;;  %v2430_v41 = vld [vmem:[#allocation2 + $0xaf] sm:$0xff]  ;;  %v2527_v7 = vld [vmem:[#allocation2 + $0xb8] sm:$0xff] }
 0x25f   : > { %v13164_v59 = vadd.f32 %v10509_v27, %v10508_v10  ;;  %v10511_v15 = vpop.f32.mrb[118].mxu0  ;;  %v10294_v26 = vpop.f32.mrb[55].mxu1 }
 0x260   : > { %15506 = vst [vmem:[#allocation96_spill] sm:$0xff] %v13162_v3  ;;  %v13166_v30 = vadd.f32 %v10294_v26, %v10293_v47  ;;  %v10512_v48 = vpop.f32.mrb[119].mxu0  ;;  %v2528_v47 = vld [vmem:[#allocation2 + $0xc0] sm:$0xff] }
 0x261   : > { %15507 = vst [vmem:[#allocation97_spill] sm:$0xff] %v13164_v59  ;;  %v13168_v21 = vadd.f32 %v10512_v48, %v10511_v15  ;;  %9477 = vmatmul.mubr.msk.bf16.gmra.mrb[160].mxu1 %vm15511_vm8, %v9476_v34  ;;  %v2429_v15 = vld [vmem:[#allocation2 + $0xa7] sm:$0xff]  ;;  %v2549_v28 = vpack.c.bf16 %v2528_v47, %v2527_v7  ;;  %v3037_v3 = vld [vmem:[#allocation2 + $0xb9] sm:$0xff]  ;;  %v3040_v7 = vld [vmem:[#allocation2 + $0xd1] sm:$0xff] }
 0x262   : > { %15508 = vst [vmem:[#allocation98_spill] sm:$0xff] %v13166_v30  ;;  %7162 = vmatmul.mubr.bf16.gmra.mrb[224].mxu0 %v2547_v24  ;;  %6694 = vmatprep.mubr.bf16.mxu1 %v2548_v35  ;;  %v9479_v24 = vpack.c.bf16 %v2430_v41, %v2429_v15  ;;  %v15517_v59 = vld [vmem:[#allocation32_spill] sm:$0xff] }
 0x263   : > { %15509 = vst [vmem:[#allocation99_spill] sm:$0xff] %v13168_v21  ;;  %9717 = vmatprep.mubr.msk.bf16.mxu0 %vm15512_vm12, %v9716_v16  ;;  %vm15518_vm12 = vnez %v15517_v59  ;;  %v15528_v59 = vld [vmem:[#allocation38_spill] sm:$0xff] }
 0x264   : > { %v10296_v10 = vpop.f32.mrb[56].mxu1 }
 0x265   : > { %v10514_v53 = vpop.f32.mrb[120].mxu0  ;;  %v10297_v27 = vpop.f32.mrb[57].mxu1 }
 0x266   : > { %v13174_v5 = vadd.f32 %v10297_v27, %v10296_v10  ;;  %v10515_v29 = vpop.f32.mrb[121].mxu0  ;;  %v10299_v26 = vpop.f32.mrb[58].mxu1  ;;  %v9719_v10 = vpack.c.bf16 %v3038_v0, %v3037_v3  ;;  %v2432_v27 = vld [vmem:[#allocation2 + $0xbf] sm:$0xff]  ;;  %v2529_v0 = vld [vmem:[#allocation2 + $0xc8] sm:$0xff] }
 0x267   : > { %v13176_v48 = vadd.f32 %v10515_v29, %v10514_v53  ;;  %v10517_v34 = vpop.f32.mrb[122].mxu0  ;;  %v10300_v61 = vpop.f32.mrb[59].mxu1 }
 0x268   : > { %15513 = vst [vmem:[#allocation100_spill] sm:$0xff] %v13174_v5  ;;  %v13178_v30 = vadd.f32 %v10300_v61, %v10299_v26  ;;  %v10518_v16 = vpop.f32.mrb[123].mxu0  ;;  %v2530_v26 = vld [vmem:[#allocation2 + $0xd0] sm:$0xff] }
 0x269   : > { %15514 = vst [vmem:[#allocation101_spill] sm:$0xff] %v13176_v48  ;;  %v13180_v21 = vadd.f32 %v10518_v16, %v10517_v34  ;;  %9480 = vmatmul.mubr.msk.bf16.gmra.mrb[164].mxu1 %vm15518_vm12, %v9479_v24  ;;  %v2431_v34 = vld [vmem:[#allocation2 + $0xb7] sm:$0xff]  ;;  %v2550_v39 = vpack.c.bf16 %v2530_v26, %v2529_v0  ;;  %v3039_v5 = vld [vmem:[#allocation2 + $0xc9] sm:$0xff] }
 0x26a   : > { %15515 = vst [vmem:[#allocation102_spill] sm:$0xff] %v13178_v30  ;;  %7170 = vmatmul.mubr.bf16.gmra.mrb[228].mxu0 %v2548_v35  ;;  %6702 = vmatprep.mubr.bf16.mxu1 %v2549_v28  ;;  %v9482_v35 = vpack.c.bf16 %v2432_v27, %v2431_v34  ;;  %v15524_v48 = vld [vmem:[#allocation35_spill] sm:$0xff]  ;;  %v2433_v0 = vld [vmem:[#allocation2 + $0xc7] sm:$0xff] }
 0x26b   : > { %15516 = vst [vmem:[#allocation103_spill] sm:$0xff] %v13180_v21  ;;  %9720 = vmatprep.mubr.msk.bf16.mxu0 %vm15519_vm13, %v9719_v10  ;;  %vm15525_vm13 = vnez %v15524_v48 }
 0x26c   : > { %v10302_v53 = vpop.f32.mrb[60].mxu1 }
 0x26d   : > { %v10520_v41 = vpop.f32.mrb[124].mxu0  ;;  %v10303_v29 = vpop.f32.mrb[61].mxu1 }
 0x26e   : > { %v13186_v15 = vadd.f32 %v10303_v29, %v10302_v53  ;;  %v10521_v47 = vpop.f32.mrb[125].mxu0  ;;  %v10305_v61 = vpop.f32.mrb[62].mxu1  ;;  %v9722_v53 = vpack.c.bf16 %v3040_v7, %v3039_v5  ;;  %v2434_v29 = vld [vmem:[#allocation2 + $0xcf] sm:$0xff] }
 0x26f   : > { %v13188_v16 = vadd.f32 %v10521_v47, %v10520_v41  ;;  %v10523_v24 = vpop.f32.mrb[126].mxu0  ;;  %v10306_v3 = vpop.f32.mrb[63].mxu1  ;;  %v9485_v5 = vpack.c.bf16 %v2434_v29, %v2433_v0  ;;  %v15526_v7 = vld [vmem:[#allocation39_spill] sm:$0xff] }
 0x270   : > { %15520 = vst [vmem:[#allocation104_spill] sm:$0xff] %v13186_v15  ;;  %v13190_v30 = vadd.f32 %v10306_v3, %v10305_v61  ;;  %v10524_v10 = vpop.f32.mrb[127].mxu0  ;;  %v2532_v61 = vld [vmem:[#allocation2 + $0xe0] sm:$0xff]  ;;  %v2534_v0 = vld [vmem:[#allocation2 + $0xf0] sm:$0xff] }
 0x271   : > { %15521 = vst [vmem:[#allocation105_spill] sm:$0xff] %v13188_v16  ;;  %v13192_v21 = vadd.f32 %v10524_v10, %v10523_v24  ;;  %9483 = vmatmul.mubr.msk.bf16.gmra.mrb[168].mxu1 %vm15525_vm13, %v9482_v35  ;;  %v3042_v24 = vld [vmem:[#allocation2 + $0xe1] sm:$0xff]  ;;  %v3041_v16 = vld [vmem:[#allocation2 + $0xd9] sm:$0xff]  ;;  %vm15532_vm13 = vnez %v15452_v11 }
 0x272   : > { %15522 = vst [vmem:[#allocation106_spill] sm:$0xff] %v13190_v30  ;;  %7178 = vmatmul.mubr.bf16.gmra.mrb[232].mxu0 %v2549_v28  ;;  %6710 = vmatprep.mubr.bf16.mxu1 %v2550_v39  ;;  %v2531_v28 = vld [vmem:[#allocation2 + $0xd8] sm:$0xff] }
 0x273   : > { %15523 = vst [vmem:[#allocation107_spill] sm:$0xff] %v13192_v21  ;;  %9723 = vmatprep.mubr.msk.bf16.mxu0 %vm12938_vm7, %v9722_v53  ;;  %v2551_v21 = vpack.c.bf16 %v2532_v61, %v2531_v28  ;;  %vm15529_vm7 = vnez %v15528_v59  ;;  %v15533_v61 = vld [vmem:[#allocation61_spill] sm:$0xff] }
 0x274   : > { %v10324_v41 = vpop.f32.mrb[64].mxu1 }
 0x275   : > { %v10526_v27 = vpop.f32.mrb[128].mxu0  ;;  %v10325_v47 = vpop.f32.mrb[65].mxu1 }
 0x276   : > { %v10326_v34 = vadd.f32 %v10325_v47, %v10324_v41  ;;  %v10527_v3 = vpop.f32.mrb[129].mxu0  ;;  %v10327_v26 = vpop.f32.mrb[66].mxu1  ;;  %v9725_v41 = vpack.c.bf16 %v3042_v24, %v3041_v16  ;;  %v15530_v47 = vld [vmem:[#allocation41_spill] sm:$0xff] }
 0x277   : > { %v13198_v10 = vadd.f32 %v10527_v3, %v10526_v27  ;;  %v10529_v30 = vpop.f32.mrb[130].mxu0  ;;  %v10328_v35 = vpop.f32.mrb[67].mxu1 }
 0x278   : > { %v6303_v15 = vadd.f32 %v10326_v34, %v15526_v7  ;;  %v10329_v6 = vadd.f32 %v10328_v35, %v10327_v26  ;;  %v10530_v53 = vpop.f32.mrb[131].mxu0  ;;  %v2436_v34 = vld [vmem:[#allocation2 + $0xdf] sm:$0xff]  ;;  %v2533_v7 = vld [vmem:[#allocation2 + $0xe8] sm:$0xff] }
 0x279   : > { %v13201_v48 = vadd.f32 %v10530_v53, %v10529_v30  ;;  %9486 = vmatmul.mubr.msk.bf16.gmra.mrb[172].mxu1 %vm15529_vm7, %v9485_v5  ;;  %v15535_v53 = vld [vmem:[#allocation44_spill] sm:$0xff] }
 0x27a   : > { %v6306_v1 = vadd.f32 %v10329_v6, %v15530_v47  ;;  %7186 = vmatmul.mubr.bf16.gmra.mrb[236].mxu0 %v2550_v39  ;;  %6718 = vmatprep.mubr.bf16.mxu1 %v2551_v21  ;;  %v13207_v27 = vadd.f32 %v12822_v63, %v6303_v15  ;;  %v2435_v6 = vld [vmem:[#allocation2 + $0xd7] sm:$0xff] }
 0x27b   : > { %15527 = vst [vmem:[#allocation39_spill] sm:$0xff] %v13201_v48  ;;  %9726 = vmatprep.mubr.msk.bf16.mxu0 %vm15532_vm13, %v9725_v41  ;;  %v3044_v39 = vld [vmem:[#allocation2 + $0xf1] sm:$0xff]  ;;  %v9488_v28 = vpack.c.bf16 %v2436_v34, %v2435_v6 }
 0x27c   : > { %15531 = vst [vmem:[#allocation38_spill] sm:$0xff] %v13207_v27  ;;  %v10330_v29 = vpop.f32.mrb[68].mxu1  ;;  %v13212_v3 = vadd.f32 %v15533_v61, %v6306_v1  ;;  %v2552_v1 = vpack.c.bf16 %v2534_v0, %v2533_v7  ;;  %v3043_v61 = vld [vmem:[#allocation2 + $0xe9] sm:$0xff] }
 0x27d   : > { %v10660_v30 = vpop.f32.mrb[132].mxu0  ;;  %v10331_v26 = vpop.f32.mrb[69].mxu1  ;;  %v15536_v27 = vld [vmem:[#allocation43_spill] sm:$0xff] }
 0x27e   : > { %15534 = vst [vmem:[#allocation41_spill] sm:$0xff] %v13212_v3  ;;  %v10332_v35 = vadd.f32 %v10331_v26, %v10330_v29  ;;  %v10661_v16 = vpop.f32.mrb[133].mxu0  ;;  %v10333_v24 = vpop.f32.mrb[70].mxu1  ;;  %vm15537_vm13 = vnez %v15536_v27  ;;  %v9728_v29 = vpack.c.bf16 %v3044_v39, %v3043_v61  ;;  %v15538_v26 = vld [vmem:[#allocation47_spill] sm:$0xff]  ;;  %v3045_v61 = vld [vmem:[#allocation2 + $0xf9] sm:$0xff] }
 0x27f   : > { %v13214_v5 = vadd.f32 %v10661_v16, %v10660_v30  ;;  %v10663_v63 = vpop.f32.mrb[134].mxu0  ;;  %v10334_v15 = vpop.f32.mrb[71].mxu1 }
 0x280   : > { %v6311_v41 = vadd.f32 %v10332_v35, %v15535_v53  ;;  %v10335_v47 = vadd.f32 %v10334_v15, %v10333_v24  ;;  %v10664_v11 = vpop.f32.mrb[135].mxu0  ;;  %v2438_v35 = vld [vmem:[#allocation2 + $0xef] sm:$0xff]  ;;  %v3046_v15 = vld [vmem:[#allocation2 + $0x101] sm:$0xff] }
 0x281   : > { %v13217_v3 = vadd.f32 %v10664_v11, %v10663_v63  ;;  %9489 = vmatmul.mubr.msk.bf16.gmra.mrb[176].mxu1 %vm15537_vm13, %v9488_v28  ;;  %v2437_v63 = vld [vmem:[#allocation2 + $0xe7] sm:$0xff] }
 0x282   : > { %v6314_v48 = vadd.f32 %v10335_v47, %v15538_v26  ;;  %7194 = vmatmul.mubr.bf16.gmra.mrb[240].mxu0 %v2551_v21  ;;  %6726 = vmatprep.mubr.bf16.mxu1 %v2552_v1  ;;  %v13223_v30 = vadd.f32 %v12995_v17, %v6311_v41  ;;  %v9491_v7 = vpack.c.bf16 %v2438_v35, %v2437_v63  ;;  %v11888_v35 = vld [vmem:[#allocation4 + $0x540] sm:$0xff]  }
 0x283   : > { %9729 = vmatprep.mubr.msk.bf16.mxu0 %vm12966_vm0, %v9728_v29  ;;  %11316 = vmatprep.subr.bf16.mxu0 %v11888_v35 }
 0x284   : > { %v10336_v34 = vpop.f32.mrb[72].mxu1  ;;  %v13228_v0 = vadd.f32 %v13006_v23, %v6314_v48  ;;  %v15539_v23 = vld [vmem:[#allocation48_spill] sm:$0xff]  ;;  %v9731_v48 = vpack.c.bf16 %v3046_v15, %v3045_v61 }
 0x285   : > { %v10666_v11 = vpop.f32.mrb[136].mxu0  ;;  %v10337_v16 = vpop.f32.mrb[73].mxu1  ;;  %vm15540_vm0 = vnez %v15539_v23 }
 0x286   : > { %v10338_v24 = vadd.f32 %v10337_v16, %v10336_v34  ;;  %v10667_v6 = vpop.f32.mrb[137].mxu0  ;;  %v10339_v39 = vpop.f32.mrb[74].mxu1 }
 0x287   : > { %v13230_v21 = vadd.f32 %v10667_v6, %v10666_v11  ;;  %v10669_v28 = vpop.f32.mrb[138].mxu0  ;;  %v10340_v17 = vpop.f32.mrb[75].mxu1  ;;  %v2440_v11 = vld [vmem:[#allocation2 + $0xff] sm:$0xff] }
 0x288   : > { %v6319_v53 = vadd.f32 %v10338_v24, %v12993_v46  ;;  %v10341_v41 = vadd.f32 %v10340_v17, %v10339_v39  ;;  %v10670_v47 = vpop.f32.mrb[139].mxu0  ;;  %v2982_v39 = vld [vmem:[#allocation2 + $0x100] sm:$0xff] }
 0x289   : > { %v13233_v29 = vadd.f32 %v10670_v47, %v10669_v28  ;;  %9492 = vmatmul.mubr.msk.bf16.gmra.mrb[180].mxu1 %vm15540_vm0, %v9491_v7 }
 0x28a   : > { %v6322_v26 = vadd.f32 %v10341_v41, %v13002_v22  ;;  %7202 = vmatmul.mubr.bf16.gmra.mrb[244].mxu0 %v2552_v1  ;;  %6734 = vmatprep.mubr.bf16.mxu1 %v13039_v8  ;;  %v13240_v34 = vadd.f32 %v13017_v57, %v6319_v53  ;;  %v2537_v22 = vld [vmem:[#allocation2 + $0x108] sm:$0xff]  ;;  %v2538_v1 = vld [vmem:[#allocation2 + $0x110] sm:$0xff]  ;;  %v2981_v41 = vld [vmem:[#allocation2 + $0xf8] sm:$0xff] }
 0x28b   : > { %9732 = vmatprep.mubr.msk.bf16.mxu0 %vm12980_vm6, %v9731_v48  ;;  %v2439_v57 = vld [vmem:[#allocation2 + $0xf7] sm:$0xff]  ;;  %v3000_v48 = vpack.c.bf16 %v2982_v39, %v2981_v41  ;;  %vm15542_vm6 = vnez %v15541_v37 }
 0x28c   : > { %v10342_v46 = vpop.f32.mrb[76].mxu1  ;;  %v13245_v16 = vadd.f32 %v13026_v20, %v6322_v26  ;;  %v9494_v53 = vpack.c.bf16 %v2440_v11, %v2439_v57  ;;  %v2554_v26 = vpack.c.bf16 %v2538_v1, %v2537_v22  ;;  %v2441_v11 = vld [vmem:[#allocation2 + $0x107] sm:$0xff]  ;;  %v11908_v37 = vld [vmem:[#allocation4 + $0x4c8] sm:$0xff]  }
 0x28d   : > { %v10672_v24 = vpop.f32.mrb[140].mxu0  ;;  %v10343_v6 = vpop.f32.mrb[77].mxu1  ;;  %v3050_v57 = vld [vmem:[#allocation2 + $0x121] sm:$0xff] }
 0x28e   : > { %v10344_v63 = vadd.f32 %v10343_v6, %v10342_v46  ;;  %v10673_v8 = vpop.f32.mrb[141].mxu0  ;;  %v10345_v15 = vpop.f32.mrb[78].mxu1  ;;  %v2442_v6 = vld [vmem:[#allocation2 + $0x10f] sm:$0xff] }
 0x28f   : > { %v13247_v28 = vadd.f32 %v10673_v8, %v10672_v24  ;;  %v10675_v17 = vpop.f32.mrb[142].mxu0  ;;  %v10346_v7 = vpop.f32.mrb[79].mxu1 }
 0x290   : > { %v6327_v47 = vadd.f32 %v10344_v63, %v13015_v14  ;;  %v10347_v20 = vadd.f32 %v10346_v7, %v10345_v15  ;;  %v10676_v61 = vpop.f32.mrb[143].mxu0  ;;  %v3049_v15 = vld [vmem:[#allocation2 + $0x119] sm:$0xff] }
 0x291   : > { %v13250_v35 = vadd.f32 %v10676_v61, %v10675_v17  ;;  %9495 = vmatmul.mubr.msk.bf16.gmra.mrb[184].mxu1 %vm15542_vm6, %v9494_v53  ;;  %v9497_v53 = vpack.c.bf16 %v2442_v6, %v2441_v11  ;;  %v9737_v61 = vpack.c.bf16 %v3050_v57, %v3049_v15  ;;  %v2862_v15 = vld [vmem:[#allocation2 + $0x3f] sm:$0xff] }
 0x292   : > { %v6330_v46 = vadd.f32 %v10347_v20, %v13024_v33  ;;  %7210 = vmatmul.mubr.bf16.gmra.mrb[248].mxu0 %v3000_v48  ;;  %6742 = vmatprep.mubr.bf16.mxu1 %v2554_v26  ;;  %v13256_v24 = vadd.f32 %v13037_v9, %v6327_v47 }
 0x293   : > { %9735 = vmatprep.mubr.msk.bf16.mxu0 %vm12998_vm5, %v13057_v49 }
 0x294   : > { %v10348_v14 = vpop.f32.mrb[80].mxu1  ;;  %v13262_v39 = vadd.f32 %v13043_v54, %v6330_v46  ;;  %v15543_v54 = vld [vmem:[#allocation54_spill] sm:$0xff] }
 0x295   : > { %v10678_v22 = vpop.f32.mrb[144].mxu0  ;;  %v10349_v1 = vpop.f32.mrb[81].mxu1  ;;  %vm15544_vm5 = vnez %v15543_v54  ;;  %v3757_v54 = vld [vmem:[#allocation2 + $0x57] sm:$0xff] }
 0x296   : > { %v10350_v63 = vadd.f32 %v10349_v1, %v10348_v14  ;;  %v10679_v8 = vpop.f32.mrb[145].mxu0  ;;  %v10351_v33 = vpop.f32.mrb[82].mxu1  ;;  %v2764_v14 = vld [vmem:[#allocation2 + $0x2e] sm:$0xff]  ;;  %v2763_v1 = vld [vmem:[#allocation2 + $0x26] sm:$0xff] }
 0x297   : > { %v13264_v17 = vadd.f32 %v10679_v8, %v10678_v22  ;;  %v10681_v9 = vpop.f32.mrb[146].mxu0  ;;  %v10352_v7 = vpop.f32.mrb[83].mxu1 }
 0x298   : > { %v6335_v49 = vadd.f32 %v10350_v63, %v13035_v52  ;;  %v10353_v41 = vadd.f32 %v10352_v7, %v10351_v33  ;;  %v10682_v47 = vpop.f32.mrb[147].mxu0 }
 0x299   : > { %v13267_v20 = vadd.f32 %v10682_v47, %v10681_v9  ;;  %9498 = vmatmul.mubr.msk.bf16.gmra.mrb[188].mxu1 %vm15544_vm5, %v9497_v53  ;;  %v9599_v53 = vpack.c.bf16 %v2764_v14, %v2763_v1  ;;  %v11877_v14 = vld [vmem:[#allocation4 + $0x388] sm:$0xff]   ;;  %v15551_v1 = vld [vmem:[#allocation77_spill] sm:$0xff] }
 0x29a   : > { %v6338_v48 = vadd.f32 %v10353_v41, %v13041_v32  ;;  %7218 = vmatmul.mubr.bf16.gmra.mrb[252].mxu0 %v2554_v26  ;;  %9597 = vmatprep.mubr.msk.bf16.mxu1 %vm15475_vm15, %v13074_v25  ;;  %v13276_v46 = vadd.f32 %v13053_v51, %v6335_v49  ;;  %v2985_v32 = vld [vmem:[#allocation2 + $0x118] sm:$0xff]  ;;  %v2986_v26 = vld [vmem:[#allocation2 + $0x120] sm:$0xff]  ;;  %v11871_v25 = vld [vmem:[#allocation4 + $0x380] sm:$0xff]  }
 0x29b   : > { %9738 = vmatprep.mubr.msk.bf16.mxu0 %vm13020_vm10, %v9737_v61  ;;  %v3404_v51 = vld [vmem:[#allocation2 + $0x40] sm:$0xff]  ;;  %v3002_v47 = vpack.c.bf16 %v2986_v26, %v2985_v32  ;;  %v2861_v61 = vld [vmem:[#allocation2 + $0x37] sm:$0xff] }
 0x29c   : > { %v10354_v52 = vpop.f32.mrb[84].mxu1  ;;  %v13281_v11 = vadd.f32 %v13059_v2, %v6338_v48  ;;  %v3403_v48 = vld [vmem:[#allocation2 + $0x38] sm:$0xff]  ;;  %v11878_v32 = vld [vmem:[#allocation4 + $0x3d0] sm:$0xff]  }
 0x29d   : > { %v10684_v6 = vpop.f32.mrb[148].mxu0  ;;  %v10355_v22 = vpop.f32.mrb[85].mxu1  ;;  %v3435_v56 = vpack.c.bf16 %v3404_v51, %v3403_v48 }
 0x29e   : > { %15545 = vst [vmem:[#allocation61_spill] sm:$0xff] %v13281_v11  ;;  %v10356_v63 = vadd.f32 %v10355_v22, %v10354_v52  ;;  %v10685_v8 = vpop.f32.mrb[149].mxu0  ;;  %v10357_v33 = vpop.f32.mrb[86].mxu1  ;;  %v15548_v52 = vld [vmem:[#allocation8_spill] sm:$0xff]  ;;  %v9602_v22 = vpack.c.bf16 %v2862_v15, %v2861_v61  ;;  %v15558_v11 = vld [vmem:[#allocation10_spill] sm:$0xff] }
 0x29f   : > { %v13283_v57 = vadd.f32 %v10685_v8, %v10684_v6  ;;  %v10687_v9 = vpop.f32.mrb[150].mxu0  ;;  %v10358_v7 = vpop.f32.mrb[87].mxu1  ;;  %vm15549_vm10 = vnez %v15548_v52  ;;  %v15550_v6 = vld [vmem:[#allocation75_spill] sm:$0xff] }
 0x2a0   : > { %v6343_v49 = vadd.f32 %v10356_v63, %v13051_v60  ;;  %v10359_v2 = vadd.f32 %v10358_v7, %v10357_v33  ;;  %v10688_v41 = vpop.f32.mrb[151].mxu0  ;;  %v2766_v33 = vld [vmem:[#allocation2 + $0x3e] sm:$0xff] }
 0x2a1   : > { %15546 = vst [vmem:[#allocation44_spill] sm:$0xff] %v13283_v57  ;;  %v13286_v4 = vadd.f32 %v10688_v41, %v10687_v9  ;;  %9600 = vmatmul.mubr.msk.bf16.vlgmr.msra.gmra.mrb[192].mxu1 %vm15549_vm10, %v9599_v53  ;;  %v15554_v9 = vld [vmem:[#allocation79_spill] sm:$0xff]  ;;  %v3405_v57 = vld [vmem:[#allocation2 + $0x48] sm:$0xff]  ;;  %vm15559_vm10 = vnez %v15558_v11 }
 0x2a2   : > { %v6346_v8 = vadd.f32 %v10359_v2, %v15550_v6  ;;  %7226 = vmatmul.mubr.bf16.gmra.mrb[0].mxu0 %v3002_v47  ;;  %10981 = vmatpush3.bf16.msra.mxu1 %v11871_v25  ;;  %v13292_v60 = vadd.f32 %v15551_v1, %v6343_v49  ;;  %v2864_v53 = vld [vmem:[#allocation2 + $0x4f] sm:$0xff]  ;;  %v2863_v1 = vld [vmem:[#allocation2 + $0x47] sm:$0xff] }
 0x2a3   : > { %15547 = vst [vmem:[#allocation43_spill] sm:$0xff] %v13286_v4  ;;  %9603 = vmatprep.mubr.msk.bf16.mxu1 %vm15480_vm1, %v9602_v22  ;;  %7427 = vmatprep.mubr.bf16.mxu0 %v3435_v56  ;;  %v2765_v47 = vld [vmem:[#allocation2 + $0x36] sm:$0xff]  ;;  %v9608_v4 = vpack.c.bf16 %v2864_v53, %v2863_v1  ;;  %v2768_v53 = vld [vmem:[#allocation2 + $0x4e] sm:$0xff]  ;;  %v2767_v1 = vld [vmem:[#allocation2 + $0x46] sm:$0xff] }
 0x2a4   : > { %15552 = vst [vmem:[#allocation47_spill] sm:$0xff] %v13292_v60  ;;  %v10360_v26 = vpop.f32.mrb[88].mxu1  ;;  %10982 = vmatprep.subr.bf16.mxu1 %v11876_v40  ;;  %v13297_v7 = vadd.f32 %v15554_v9, %v6346_v8  ;;  %v3406_v49 = vld [vmem:[#allocation2 + $0x50] sm:$0xff]  ;;  %v9605_v6 = vpack.c.bf16 %v2766_v33, %v2765_v47  ;;  %v11879_v40 = vld [vmem:[#allocation4 + $0x390] sm:$0xff]   ;;  %v15556_v60 = vld [vmem:[#allocation76_spill] sm:$0xff] }
 0x2a5   : > { %v10690_v15 = vpop.f32.mrb[152].mxu0  ;;  %v10361_v51 = vpop.f32.mrb[89].mxu1 }
 0x2a6   : > { %15555 = vst [vmem:[#allocation48_spill] sm:$0xff] %v13297_v7  ;;  %v10362_v2 = vadd.f32 %v10361_v51, %v10360_v26  ;;  %v10691_v25 = vpop.f32.mrb[153].mxu0  ;;  %v10363_v41 = vpop.f32.mrb[90].mxu1  ;;  %10983 = vmatpush3.bf16.msra.mxu1 %v11877_v14  ;;  %v11880_v26 = vld [vmem:[#allocation4 + $0x3d8] sm:$0xff]   ;;  %v11889_v51 = vld [vmem:[#allocation4 + $0x500] sm:$0xff]   ;;  %v3436_v14 = vpack.c.bf16 %v3406_v49, %v3405_v57  ;;  %v11891_v57 = vld [vmem:[#allocation4 + $0x508] sm:$0xff]  }
 0x2a7   : > { %v13299_v61 = vadd.f32 %v10691_v25, %v10690_v15  ;;  %v10693_v48 = vpop.f32.mrb[154].mxu0  ;;  %v10364_v56 = vpop.f32.mrb[91].mxu1  ;;  %10984 = vmatprep.subr.bf16.mxu1 %v11878_v32  ;;  %v11890_v15 = vld [vmem:[#allocation4 + $0x548] sm:$0xff]   ;;  %v15560_v25 = vld [vmem:[#allocation78_spill] sm:$0xff] }
 0x2a8   : > { %v6351_v8 = vadd.f32 %v10362_v2, %v15556_v60  ;;  %v10365_v9 = vadd.f32 %v10364_v56, %v10363_v41  ;;  %v10694_v7 = vpop.f32.mrb[155].mxu0  ;;  %v11881_v32 = vld [vmem:[#allocation4 + $0x398] sm:$0xff]   ;;  %v11882_v2 = vld [vmem:[#allocation4 + $0x3e0] sm:$0xff]   ;;  %v2866_v49 = vld [vmem:[#allocation2 + $0x5f] sm:$0xff] }
 0x2a9   : > { %v13302_v52 = vadd.f32 %v10694_v7, %v10693_v48  ;;  %9606 = vmatmul.mubr.msk.bf16.gmra.mrb[196].mxu1 %vm15559_vm10, %v9605_v6  ;;  %v11894_v48 = vld [vmem:[#allocation4 + $0x550] sm:$0xff]  }
 0x2aa   : > { %v6354_v33 = vadd.f32 %v10365_v9, %v15560_v25  ;;  %9837 = vmatmul.mubr.msk.bf16.vlgmr.msra.gmra.mrb[4].mxu0 %vm15475_vm15, %v9602_v22  ;;  %9609 = vmatprep.mubr.msk.bf16.mxu1 %vm15483_vm2, %v9608_v4  ;;  %v13312_v60 = vadd.f32 %v13090_v19, %v6351_v8  ;;  %v11883_v25 = vld [vmem:[#allocation4 + $0x3a0] sm:$0xff]  }
 0x2ab   : > { %15557 = vst [vmem:[#allocation75_spill] sm:$0xff] %v13302_v52  ;;  %7435 = vmatprep.mubr.bf16.mxu0 %v3436_v14  ;;  %10985 = vmatpush3.bf16.msra.mxu1 %v11879_v40  ;;  %v3408_v40 = vld [vmem:[#allocation2 + $0x60] sm:$0xff]  ;;  %v9611_v14 = vpack.c.bf16 %v2768_v53, %v2767_v1  ;;  %v11896_v53 = vld [vmem:[#allocation4 + $0x558] sm:$0xff]  }
 0x2ac   : > { %15561 = vst [vmem:[#allocation77_spill] sm:$0xff] %v13312_v60  ;;  %v10366_v7 = vpop.f32.mrb[92].mxu1  ;;  %10986 = vmatprep.subr.bf16.mxu1 %v11880_v26  ;;  %11317 = vmatpush3.bf16.msra.mxu0 %v11889_v51  ;;  %v13315_v41 = vadd.f32 %v13094_v42, %v6354_v33  ;;  %v2865_v51 = vld [vmem:[#allocation2 + $0x57] sm:$0xff] }
 0x2ad   : > { %v10696_v47 = vpop.f32.mrb[156].mxu0  ;;  %v10367_v22 = vpop.f32.mrb[93].mxu1  ;;  %11318 = vmatprep.subr.bf16.mxu0 %v11890_v15  ;;  %v15564_v42 = vld [vmem:[#allocation80_spill] sm:$0xff]  ;;  %v9614_v52 = vpack.c.bf16 %v2866_v49, %v2865_v51 }
 0x2ae   : > { %15562 = vst [vmem:[#allocation79_spill] sm:$0xff] %v13315_v41  ;;  %v10368_v56 = vadd.f32 %v10367_v22, %v10366_v7  ;;  %v10697_v19 = vpop.f32.mrb[157].mxu0  ;;  %v10369_v6 = vpop.f32.mrb[94].mxu1  ;;  %v3407_v15 = vld [vmem:[#allocation2 + $0x58] sm:$0xff]  ;;  %v11895_v22 = vld [vmem:[#allocation4 + $0x510] sm:$0xff]  }
 0x2af   : > { %v13317_v8 = vadd.f32 %v10697_v19, %v10696_v47  ;;  %v10699_v9 = vpop.f32.mrb[158].mxu0  ;;  %v10370_v26 = vpop.f32.mrb[95].mxu1  ;;  %10987 = vmatpush3.bf16.msra.mxu1 %v11881_v32  ;;  %v11884_v7 = vld [vmem:[#allocation4 + $0x3e8] sm:$0xff]   ;;  %v3437_v19 = vpack.c.bf16 %v3408_v40, %v3407_v15  ;;  %v15568_v32 = vld [vmem:[#allocation81_spill] sm:$0xff] }
 0x2b0   : > { %v6359_v33 = vadd.f32 %v10368_v56, %v15564_v42  ;;  %v10371_v41 = vadd.f32 %v10370_v26, %v10369_v6  ;;  %v10700_v60 = vpop.f32.mrb[159].mxu0  ;;  %10988 = vmatprep.subr.bf16.mxu1 %v11882_v2  ;;  %11319 = vmatpush3.bf16.msra.mxu0 %v11891_v57  ;;  %v15566_v47 = vld [vmem:[#allocation12_spill] sm:$0xff]  ;;  %v15569_v2 = vld [vmem:[#allocation83_spill] sm:$0xff]  ;;  %v11886_v6 = vld [vmem:[#allocation4 + $0x3f0] sm:$0xff]  }
 0x2b1   : > { %15563 = vst [vmem:[#allocation76_spill] sm:$0xff] %v13317_v8  ;;  %v13320_v45 = vadd.f32 %v10700_v60, %v10699_v9  ;;  %vm15567_vm15 = vnez %v15566_v47  ;;  %11320 = vmatprep.subr.bf16.mxu0 %v11894_v48  ;;  %v11885_v60 = vld [vmem:[#allocation4 + $0x3a8] sm:$0xff]   ;;  %v11897_v48 = vld [vmem:[#allocation4 + $0x518] sm:$0xff]   ;;  %v15571_v40 = vld [vmem:[#allocation85_spill] sm:$0xff] }
 0x2b2   : > { %9612 = vmatmul.mubr.msk.bf16.gmra.mrb[200].mxu1 %vm15567_vm15, %v9611_v14  ;;  %v6362_v1 = vadd.f32 %v10371_v41, %v15568_v32  ;;  %9840 = vmatmul.mubr.msk.bf16.gmra.mrb[8].mxu0 %vm15480_vm1, %v9608_v4  ;;  %v13330_v49 = vadd.f32 %v15569_v2, %v6359_v33  ;;  %v2770_v56 = vld [vmem:[#allocation2 + $0x5e] sm:$0xff]  ;;  %v2868_v26 = vld [vmem:[#allocation2 + $0x6f] sm:$0xff] }
 0x2b3   : > { %15565 = vst [vmem:[#allocation10_spill] sm:$0xff] %v13320_v45  ;;  %9615 = vmatprep.mubr.msk.bf16.mxu1 %vm15488_vm3, %v9614_v52  ;;  %7443 = vmatprep.mubr.bf16.mxu0 %v3437_v19  ;;  %v11898_v14 = vld [vmem:[#allocation4 + $0x560] sm:$0xff]  }
 0x2b4   : > { %15570 = vst [vmem:[#allocation78_spill] sm:$0xff] %v13330_v49  ;;  %10989 = vmatpush3.bf16.msra.mxu1 %v11883_v25  ;;  %v10372_v57 = vpop.f32.mrb[96].mxu1  ;;  %11321 = vmatpush3.bf16.msra.mxu0 %v11895_v22  ;;  %v13333_v41 = vadd.f32 %v15571_v40, %v6362_v1  ;;  %v2769_v15 = vld [vmem:[#allocation2 + $0x56] sm:$0xff]  ;;  %v2867_v22 = vld [vmem:[#allocation2 + $0x67] sm:$0xff] }
 0x2b5   : > { %10990 = vmatprep.subr.bf16.mxu1 %v11884_v7  ;;  %v10702_v9 = vpop.f32.mrb[160].mxu0  ;;  %v10373_v4 = vpop.f32.mrb[97].mxu1  ;;  %11322 = vmatprep.subr.bf16.mxu0 %v11896_v53  ;;  %v3410_v25 = vld [vmem:[#allocation2 + $0x70] sm:$0xff]  ;;  %v9617_v2 = vpack.c.bf16 %v2770_v56, %v2769_v15  ;;  %v11887_v49 = vld [vmem:[#allocation4 + $0x3b0] sm:$0xff]   ;;  %v15573_v1 = vld [vmem:[#allocation82_spill] sm:$0xff]  ;;  %v9620_v63 = vpack.c.bf16 %v2868_v26, %v2867_v22 }
 0x2b6   : > { %15572 = vst [vmem:[#allocation80_spill] sm:$0xff] %v13333_v41  ;;  %v10374_v51 = vadd.f32 %v10373_v4, %v10372_v57  ;;  %v10703_v42 = vpop.f32.mrb[161].mxu0  ;;  %v10375_v33 = vpop.f32.mrb[98].mxu1  ;;  %v3409_v53 = vld [vmem:[#allocation2 + $0x68] sm:$0xff]  ;;  %v11899_v4 = vld [vmem:[#allocation4 + $0x520] sm:$0xff]   ;;  %v11900_v56 = vld [vmem:[#allocation4 + $0x568] sm:$0xff]  }
 0x2b7   : > { %v13335_v19 = vadd.f32 %v10703_v42, %v10702_v9  ;;  %v10705_v32 = vpop.f32.mrb[162].mxu0  ;;  %v10376_v7 = vpop.f32.mrb[99].mxu1  ;;  %v11892_v57 = vld [vmem:[#allocation4 + $0x3f8] sm:$0xff]   ;;  %v3438_v42 = vpack.c.bf16 %v3410_v25, %v3409_v53  ;;  %v2870_v25 = vld [vmem:[#allocation2 + $0x7f] sm:$0xff] }
 0x2b8   : > { %10991 = vmatpush3.bf16.msra.mxu1 %v11885_v60  ;;  %v6367_v40 = vadd.f32 %v10374_v51, %v15573_v1  ;;  %v10377_v41 = vadd.f32 %v10376_v7, %v10375_v33  ;;  %v10706_v45 = vpop.f32.mrb[163].mxu0  ;;  %11323 = vmatpush3.bf16.msra.mxu0 %v11897_v48  ;;  %v15574_v9 = vld [vmem:[#allocation14_spill] sm:$0xff]  ;;  %v15576_v60 = vld [vmem:[#allocation84_spill] sm:$0xff]  ;;  %v11902_v51 = vld [vmem:[#allocation4 + $0x4c0] sm:$0xff]  }
 0x2b9   : > { %10992 = vmatprep.subr.bf16.mxu1 %v11886_v6  ;;  %v13338_v8 = vadd.f32 %v10706_v45, %v10705_v32  ;;  %vm15575_vm1 = vnez %v15574_v9  ;;  %11324 = vmatprep.subr.bf16.mxu0 %v11898_v14  ;;  %v11893_v45 = vld [vmem:[#allocation4 + $0x3b8] sm:$0xff]   ;;  %v11901_v14 = vld [vmem:[#allocation4 + $0x528] sm:$0xff]   ;;  %v11904_v32 = vld [vmem:[#allocation4 + $0x570] sm:$0xff]  }
 0x2ba   : > { %9618 = vmatmul.mubr.msk.bf16.gmra.mrb[204].mxu1 %vm15575_vm1, %v9617_v2  ;;  %v6370_v15 = vadd.f32 %v10377_v41, %v15576_v60  ;;  %9843 = vmatmul.mubr.msk.bf16.gmra.mrb[12].mxu0 %vm15483_vm2, %v9614_v52  ;;  %v13348_v6 = vadd.f32 %v13116_v31, %v6367_v40  ;;  %v2772_v26 = vld [vmem:[#allocation2 + $0x6e] sm:$0xff]  ;;  %v2771_v22 = vld [vmem:[#allocation2 + $0x66] sm:$0xff] }
 0x2bb   : > { %9621 = vmatprep.mubr.msk.bf16.mxu1 %vm15489_vm4, %v9620_v63  ;;  %7451 = vmatprep.mubr.bf16.mxu0 %v3438_v42 }
 0x2bc   : > { %10993 = vmatpush3.bf16.msra.mxu1 %v11887_v49  ;;  %v10378_v48 = vpop.f32.mrb[100].mxu1  ;;  %11325 = vmatpush3.bf16.msra.mxu0 %v11899_v4  ;;  %v13351_v41 = vadd.f32 %v13120_v62, %v6370_v15  ;;  %v3412_v49 = vld [vmem:[#allocation2 + $0x80] sm:$0xff]  ;;  %v2869_v4 = vld [vmem:[#allocation2 + $0x77] sm:$0xff] }
 0x2bd   : > { %10994 = vmatprep.subr.bf16.mxu1 %v11892_v57  ;;  %v10708_v33 = vpop.f32.mrb[164].mxu0  ;;  %v10379_v52 = vpop.f32.mrb[101].mxu1  ;;  %11326 = vmatprep.subr.bf16.mxu0 %v11900_v56  ;;  %v9623_v57 = vpack.c.bf16 %v2772_v26, %v2771_v22  ;;  %v9626_v15 = vpack.c.bf16 %v2870_v25, %v2869_v4  ;;  %v11905_v56 = vld [vmem:[#allocation4 + $0x530] sm:$0xff]   ;;  %v2773_v22 = vld [vmem:[#allocation2 + $0x76] sm:$0xff] }
 0x2be   : > { %15577 = vst [vmem:[#allocation12_spill] sm:$0xff] %v13351_v41  ;;  %v10380_v7 = vadd.f32 %v10379_v52, %v10378_v48  ;;  %v10709_v31 = vpop.f32.mrb[165].mxu0  ;;  %v10381_v2 = vpop.f32.mrb[102].mxu1  ;;  %v3411_v41 = vld [vmem:[#allocation2 + $0x78] sm:$0xff]  ;;  %v15578_v52 = vld [vmem:[#allocation18_spill] sm:$0xff] }
 0x2bf   : > { %v13353_v1 = vadd.f32 %v10709_v31, %v10708_v33  ;;  %v10711_v40 = vpop.f32.mrb[166].mxu0  ;;  %v10382_v53 = vpop.f32.mrb[103].mxu1  ;;  %vm15579_vm2 = vnez %v15578_v52  ;;  %v3439_v33 = vpack.c.bf16 %v3412_v49, %v3411_v41  ;;  %v11906_v31 = vld [vmem:[#allocation4 + $0x578] sm:$0xff]   ;;  %v3414_v49 = vld [vmem:[#allocation2 + $0x90] sm:$0xff] }
 0x2c0   : > { %10995 = vmatpush3.bf16.msra.mxu1 %v11893_v45  ;;  %v6375_v62 = vadd.f32 %v10380_v7, %v13114_v43  ;;  %v10383_v42 = vadd.f32 %v10382_v53, %v10381_v2  ;;  %v10712_v60 = vpop.f32.mrb[167].mxu0  ;;  %11327 = vmatpush3.bf16.msra.mxu0 %v11901_v14  ;;  %v2774_v14 = vld [vmem:[#allocation2 + $0x7e] sm:$0xff]  ;;  %v2871_v4 = vld [vmem:[#allocation2 + $0x87] sm:$0xff] }
 0x2c1   : > { %11204 = vmatprep.subr.bf16.mxu1 %v11902_v51  ;;  %v13356_v48 = vadd.f32 %v10712_v60, %v10711_v40  ;;  %11328 = vmatprep.subr.bf16.mxu0 %v11904_v32  ;;  %v11907_v51 = vld [vmem:[#allocation4 + $0x538] sm:$0xff]  }
 0x2c2   : > { %9624 = vmatmul.mubr.msk.bf16.gmra.mrb[208].mxu1 %vm15579_vm2, %v9623_v57  ;;  %v6378_v26 = vadd.f32 %v10383_v42, %v13118_v44  ;;  %9846 = vmatmul.mubr.msk.bf16.gmra.mrb[16].mxu0 %vm15488_vm3, %v9620_v63  ;;  %v13366_v43 = vadd.f32 %v13128_v13, %v6375_v62  ;;  %v2872_v44 = vld [vmem:[#allocation2 + $0x8f] sm:$0xff]  ;;  %v9629_v57 = vpack.c.bf16 %v2774_v14, %v2773_v22  ;;  %v15586_v14 = vld [vmem:[#allocation89_spill] sm:$0xff] }
 0x2c3   : > { %9627 = vmatprep.mubr.msk.bf16.mxu1 %vm15492_vm11, %v9626_v15  ;;  %7459 = vmatprep.mubr.bf16.mxu0 %v3439_v33  ;;  %v15581_v62 = vld [vmem:[#allocation86_spill] sm:$0xff] }
 0x2c4   : > { %v10384_v45 = vpop.f32.mrb[104].mxu1  ;;  %11329 = vmatpush3.bf16.msra.mxu0 %v11905_v56  ;;  %v13369_v41 = vadd.f32 %v13132_v12, %v6378_v26  ;;  %v9632_v56 = vpack.c.bf16 %v2872_v44, %v2871_v4  ;;  %v3413_v33 = vld [vmem:[#allocation2 + $0x88] sm:$0xff] }
 0x2c5   : > { %v10714_v25 = vpop.f32.mrb[168].mxu0  ;;  %v10385_v32 = vpop.f32.mrb[105].mxu1  ;;  %11330 = vmatprep.subr.bf16.mxu0 %v11906_v31  ;;  %v15583_v31 = vld [vmem:[#allocation21_spill] sm:$0xff] }
 0x2c6   : > { %v10386_v7 = vadd.f32 %v10385_v32, %v10384_v45  ;;  %v10715_v63 = vpop.f32.mrb[169].mxu0  ;;  %v10387_v2 = vpop.f32.mrb[106].mxu1  ;;  %vm15584_vm3 = vnez %v15583_v31  ;;  %v3440_v45 = vpack.c.bf16 %v3414_v49, %v3413_v33  ;;  %v15585_v32 = vld [vmem:[#allocation87_spill] sm:$0xff]  ;;  %v2874_v49 = vld [vmem:[#allocation2 + $0x9f] sm:$0xff] }
 0x2c7   : > { %v13371_v40 = vadd.f32 %v10715_v63, %v10714_v25  ;;  %v10717_v13 = vpop.f32.mrb[170].mxu0  ;;  %v10388_v53 = vpop.f32.mrb[107].mxu1  ;;  %v15588_v63 = vld [vmem:[#allocation91_spill] sm:$0xff] }
 0x2c8   : > { %v6383_v42 = vadd.f32 %v10386_v7, %v15581_v62  ;;  %v10389_v60 = vadd.f32 %v10388_v53, %v10387_v2  ;;  %v10718_v12 = vpop.f32.mrb[171].mxu0  ;;  %11331 = vmatpush3.bf16.msra.mxu0 %v11907_v51  ;;  %v2776_v51 = vld [vmem:[#allocation2 + $0x8e] sm:$0xff]  ;;  %v2775_v62 = vld [vmem:[#allocation2 + $0x86] sm:$0xff] }
 0x2c9   : > { %15580 = vst [vmem:[#allocation81_spill] sm:$0xff] %v13371_v40  ;;  %v13374_v26 = vadd.f32 %v10718_v12, %v10717_v13 }
 0x2ca   : > { %9630 = vmatmul.mubr.msk.bf16.gmra.mrb[212].mxu1 %vm15584_vm3, %v9629_v57  ;;  %v6386_v25 = vadd.f32 %v10389_v60, %v15585_v32  ;;  %9849 = vmatmul.mubr.msk.bf16.gmra.mrb[20].mxu0 %vm15489_vm4, %v9626_v15  ;;  %v13384_v7 = vadd.f32 %v15586_v14, %v6383_v42  ;;  %v3416_v15 = vld [vmem:[#allocation2 + $0xa0] sm:$0xff]  ;;  %v9635_v42 = vpack.c.bf16 %v2776_v51, %v2775_v62  ;;  %v2873_v32 = vld [vmem:[#allocation2 + $0x97] sm:$0xff] }
 0x2cb   : > { %15582 = vst [vmem:[#allocation83_spill] sm:$0xff] %v13374_v26  ;;  %9633 = vmatprep.mubr.msk.bf16.mxu1 %vm15498_vm14, %v9632_v56  ;;  %7467 = vmatprep.mubr.bf16.mxu0 %v3440_v45  ;;  %v15591_v45 = vld [vmem:[#allocation88_spill] sm:$0xff]  ;;  %vm15594_vm4 = vnez %v15593_v18  ;;  %v15596_v51 = vld [vmem:[#allocation93_spill] sm:$0xff] }
 0x2cc   : > { %15587 = vst [vmem:[#allocation85_spill] sm:$0xff] %v13384_v7  ;;  %v10390_v44 = vpop.f32.mrb[108].mxu1  ;;  %v13387_v2 = vadd.f32 %v15588_v63, %v6386_v25  ;;  %v9638_v25 = vpack.c.bf16 %v2874_v49, %v2873_v32  ;;  %v3415_v63 = vld [vmem:[#allocation2 + $0x98] sm:$0xff] }
 0x2cd   : > { %v10720_v22 = vpop.f32.mrb[172].mxu0  ;;  %v10391_v13 = vpop.f32.mrb[109].mxu1 }
 0x2ce   : > { %15589 = vst [vmem:[#allocation82_spill] sm:$0xff] %v13387_v2  ;;  %v10392_v53 = vadd.f32 %v10391_v13, %v10390_v44  ;;  %v10721_v57 = vpop.f32.mrb[173].mxu0  ;;  %v10393_v4 = vpop.f32.mrb[110].mxu1  ;;  %v3441_v44 = vpack.c.bf16 %v3416_v15, %v3415_v63  ;;  %v15595_v13 = vld [vmem:[#allocation90_spill] sm:$0xff] }
 0x2cf   : > { %v13389_v60 = vadd.f32 %v10721_v57, %v10720_v22  ;;  %v10723_v12 = vpop.f32.mrb[174].mxu0  ;;  %v10394_v33 = vpop.f32.mrb[111].mxu1  ;;  %v2876_v15 = vld [vmem:[#allocation2 + $0xaf] sm:$0xff] }
 0x2d0   : > { %v6391_v14 = vadd.f32 %v10392_v53, %v15591_v45  ;;  %v10395_v7 = vadd.f32 %v10394_v33, %v10393_v4  ;;  %v10724_v26 = vpop.f32.mrb[175].mxu0  ;;  %v2778_v53 = vld [vmem:[#allocation2 + $0x9e] sm:$0xff] }
 0x2d1   : > { %15590 = vst [vmem:[#allocation14_spill] sm:$0xff] %v13389_v60  ;;  %v13392_v2 = vadd.f32 %v10724_v26, %v10723_v12  ;;  %v15598_v26 = vld [vmem:[#allocation95_spill] sm:$0xff] }
 0x2d2   : > { %9636 = vmatmul.mubr.msk.bf16.gmra.mrb[216].mxu1 %vm15594_vm4, %v9635_v42  ;;  %v6394_v40 = vadd.f32 %v10395_v7, %v15595_v13  ;;  %9852 = vmatmul.mubr.msk.bf16.gmra.mrb[24].mxu0 %vm15492_vm11, %v9632_v56  ;;  %v13402_v22 = vadd.f32 %v15596_v51, %v6391_v14  ;;  %v2777_v42 = vld [vmem:[#allocation2 + $0x96] sm:$0xff]  ;;  %v2875_v13 = vld [vmem:[#allocation2 + $0xa7] sm:$0xff]  ;;  %vm15604_vm11 = vnez %v15603_v55 }
 0x2d3   : > { %15592 = vst [vmem:[#allocation84_spill] sm:$0xff] %v13392_v2  ;;  %9639 = vmatprep.mubr.msk.bf16.mxu1 %vm15504_vm9, %v9638_v25  ;;  %7475 = vmatprep.mubr.bf16.mxu0 %v3441_v44  ;;  %v3418_v56 = vld [vmem:[#allocation2 + $0xb0] sm:$0xff]  ;;  %v9641_v14 = vpack.c.bf16 %v2778_v53, %v2777_v42  ;;  %v15601_v44 = vld [vmem:[#allocation92_spill] sm:$0xff]  ;;  %v15607_v53 = vld [vmem:[#allocation97_spill] sm:$0xff] }
 0x2d4   : > { %15597 = vst [vmem:[#allocation18_spill] sm:$0xff] %v13402_v22  ;;  %v10396_v49 = vpop.f32.mrb[112].mxu1  ;;  %v13405_v57 = vadd.f32 %v15598_v26, %v6394_v40  ;;  %v9644_v40 = vpack.c.bf16 %v2876_v15, %v2875_v13  ;;  %v3417_v26 = vld [vmem:[#allocation2 + $0xa8] sm:$0xff] }
 0x2d5   : > { %v10726_v4 = vpop.f32.mrb[176].mxu0  ;;  %v10397_v62 = vpop.f32.mrb[113].mxu1  ;;  %v2779_v13 = vld [vmem:[#allocation2 + $0xa6] sm:$0xff] }
 0x2d6   : > { %15599 = vst [vmem:[#allocation86_spill] sm:$0xff] %v13405_v57  ;;  %v10398_v12 = vadd.f32 %v10397_v62, %v10396_v49  ;;  %v10727_v7 = vpop.f32.mrb[177].mxu0  ;;  %v10399_v33 = vpop.f32.mrb[114].mxu1  ;;  %v3442_v49 = vpack.c.bf16 %v3418_v56, %v3417_v26  ;;  %v15605_v62 = vld [vmem:[#allocation94_spill] sm:$0xff]  ;;  %v2878_v56 = vld [vmem:[#allocation2 + $0xbf] sm:$0xff] }
 0x2d7   : > { %v13407_v32 = vadd.f32 %v10727_v7, %v10726_v4  ;;  %v10729_v45 = vpop.f32.mrb[178].mxu0  ;;  %v10400_v63 = vpop.f32.mrb[115].mxu1  ;;  %v2780_v7 = vld [vmem:[#allocation2 + $0xae] sm:$0xff] }
 0x2d8   : > { %v6399_v51 = vadd.f32 %v10398_v12, %v15601_v44  ;;  %v10401_v22 = vadd.f32 %v10400_v63, %v10399_v33  ;;  %v10730_v2 = vpop.f32.mrb[179].mxu0 }
 0x2d9   : > { %15600 = vst [vmem:[#allocation21_spill] sm:$0xff] %v13407_v32  ;;  %v13410_v57 = vadd.f32 %v10730_v2, %v10729_v45  ;;  %v15609_v2 = vld [vmem:[#allocation99_spill] sm:$0xff]  ;;  %v15614_v32 = vld [vmem:[#allocation30_spill] sm:$0xff] }
 0x2da   : > { %9642 = vmatmul.mubr.msk.bf16.gmra.mrb[220].mxu1 %vm15604_vm11, %v9641_v14  ;;  %v6402_v60 = vadd.f32 %v10401_v22, %v15605_v62  ;;  %9855 = vmatmul.mubr.msk.bf16.gmra.mrb[28].mxu0 %vm15498_vm14, %v9638_v25  ;;  %v13420_v12 = vadd.f32 %v15607_v53, %v6399_v51  ;;  %v3420_v25 = vld [vmem:[#allocation2 + $0xc0] sm:$0xff]  ;;  %v9647_v51 = vpack.c.bf16 %v2780_v7, %v2779_v13  ;;  %v2877_v53 = vld [vmem:[#allocation2 + $0xb7] sm:$0xff] }
 0x2db   : > { %15602 = vst [vmem:[#allocation87_spill] sm:$0xff] %v13410_v57  ;;  %9645 = vmatprep.mubr.msk.bf16.mxu1 %vm15511_vm8, %v9644_v40  ;;  %7483 = vmatprep.mubr.bf16.mxu0 %v3442_v49  ;;  %v15612_v49 = vld [vmem:[#allocation96_spill] sm:$0xff]  ;;  %vm15615_vm14 = vnez %v15614_v32  ;;  %v15618_v7 = vld [vmem:[#allocation101_spill] sm:$0xff] }
 0x2dc   : > { %15608 = vst [vmem:[#allocation89_spill] sm:$0xff] %v13420_v12  ;;  %v10402_v15 = vpop.f32.mrb[116].mxu1  ;;  %v13423_v33 = vadd.f32 %v15609_v2, %v6402_v60  ;;  %v9650_v60 = vpack.c.bf16 %v2878_v56, %v2877_v53  ;;  %v3419_v2 = vld [vmem:[#allocation2 + $0xb8] sm:$0xff] }
 0x2dd   : > { %v10732_v42 = vpop.f32.mrb[180].mxu0  ;;  %v10403_v45 = vpop.f32.mrb[117].mxu1  ;;  %v2781_v53 = vld [vmem:[#allocation2 + $0xb6] sm:$0xff] }
 0x2de   : > { %15610 = vst [vmem:[#allocation91_spill] sm:$0xff] %v13423_v33  ;;  %v10404_v63 = vadd.f32 %v10403_v45, %v10402_v15  ;;  %v10733_v22 = vpop.f32.mrb[181].mxu0  ;;  %v10405_v14 = vpop.f32.mrb[118].mxu1  ;;  %v3443_v15 = vpack.c.bf16 %v3420_v25, %v3419_v2  ;;  %v15616_v45 = vld [vmem:[#allocation98_spill] sm:$0xff] }
 0x2df   : > { %v13425_v44 = vadd.f32 %v10733_v22, %v10732_v42  ;;  %v10735_v26 = vpop.f32.mrb[182].mxu0  ;;  %v10406_v62 = vpop.f32.mrb[119].mxu1  ;;  %v2782_v22 = vld [vmem:[#allocation2 + $0xbe] sm:$0xff]  ;;  %v2880_v25 = vld [vmem:[#allocation2 + $0xcf] sm:$0xff] }
 0x2e0   : > { %v6407_v12 = vadd.f32 %v10404_v63, %v15612_v49  ;;  %v10407_v57 = vadd.f32 %v10406_v62, %v10405_v14  ;;  %v10736_v58 = vpop.f32.mrb[183].mxu0 }
 0x2e1   : > { %15611 = vst [vmem:[#allocation88_spill] sm:$0xff] %v13425_v44  ;;  %v13428_v33 = vadd.f32 %v10736_v58, %v10735_v26  ;;  %v15620_v58 = vld [vmem:[#allocation103_spill] sm:$0xff]  ;;  %v15625_v44 = vld [vmem:[#allocation33_spill] sm:$0xff] }
 0x2e2   : > { %9648 = vmatmul.mubr.msk.bf16.gmra.mrb[224].mxu1 %vm15615_vm14, %v9647_v51  ;;  %v6410_v55 = vadd.f32 %v10407_v57, %v15616_v45  ;;  %9858 = vmatmul.mubr.msk.bf16.gmra.mrb[32].mxu0 %vm15504_vm9, %v9644_v40  ;;  %v13438_v63 = vadd.f32 %v15618_v7, %v6407_v12  ;;  %v3422_v40 = vld [vmem:[#allocation2 + $0xd0] sm:$0xff]  ;;  %v9653_v12 = vpack.c.bf16 %v2782_v22, %v2781_v53  ;;  %v2879_v7 = vld [vmem:[#allocation2 + $0xc7] sm:$0xff] }
 0x2e3   : > { %15613 = vst [vmem:[#allocation24_spill] sm:$0xff] %v13428_v33  ;;  %9651 = vmatprep.mubr.msk.bf16.mxu1 %vm15518_vm12, %v9650_v60  ;;  %7491 = vmatprep.mubr.bf16.mxu0 %v3443_v15  ;;  %v15623_v15 = vld [vmem:[#allocation100_spill] sm:$0xff]  ;;  %vm15626_vm9 = vnez %v15625_v44  ;;  %v15630_v22 = vld [vmem:[#allocation105_spill] sm:$0xff] }
 0x2e4   : > { %15619 = vst [vmem:[#allocation90_spill] sm:$0xff] %v13438_v63  ;;  %v10408_v56 = vpop.f32.mrb[120].mxu1  ;;  %v13441_v14 = vadd.f32 %v15620_v58, %v6410_v55  ;;  %v9656_v55 = vpack.c.bf16 %v2880_v25, %v2879_v7  ;;  %v3421_v58 = vld [vmem:[#allocation2 + $0xc8] sm:$0xff] }
 0x2e5   : > { %v10738_v13 = vpop.f32.mrb[184].mxu0  ;;  %v10409_v26 = vpop.f32.mrb[121].mxu1  ;;  %v2783_v7 = vld [vmem:[#allocation2 + $0xc6] sm:$0xff] }
 0x2e6   : > { %15621 = vst [vmem:[#allocation93_spill] sm:$0xff] %v13441_v14  ;;  %v10410_v62 = vadd.f32 %v10409_v26, %v10408_v56  ;;  %v10739_v57 = vpop.f32.mrb[185].mxu0  ;;  %v10411_v51 = vpop.f32.mrb[122].mxu1  ;;  %v3444_v56 = vpack.c.bf16 %v3422_v40, %v3421_v58  ;;  %v15627_v26 = vld [vmem:[#allocation102_spill] sm:$0xff]  ;;  %v2882_v40 = vld [vmem:[#allocation2 + $0xdf] sm:$0xff] }
 0x2e7   : > { %v13443_v49 = vadd.f32 %v10739_v57, %v10738_v13  ;;  %v10741_v2 = vpop.f32.mrb[186].mxu0  ;;  %v10412_v45 = vpop.f32.mrb[123].mxu1  ;;  %v15628_v13 = vld [vmem:[#allocation35_spill] sm:$0xff] }
 0x2e8   : > { %v6415_v63 = vadd.f32 %v10410_v62, %v15623_v15  ;;  %v10413_v33 = vadd.f32 %v10412_v45, %v10411_v51  ;;  %v10742_v38 = vpop.f32.mrb[187].mxu0  ;;  %vm15629_vm14 = vnez %v15628_v13  ;;  %v2784_v57 = vld [vmem:[#allocation2 + $0xce] sm:$0xff] }
 0x2e9   : > { %15622 = vst [vmem:[#allocation95_spill] sm:$0xff] %v13443_v49  ;;  %v13446_v14 = vadd.f32 %v10742_v38, %v10741_v2  ;;  %v15632_v38 = vld [vmem:[#allocation107_spill] sm:$0xff]  ;;  %v15636_v49 = vld [vmem:[#allocation36_spill] sm:$0xff] }
 0x2ea   : > { %9654 = vmatmul.mubr.msk.bf16.gmra.mrb[228].mxu1 %vm15626_vm9, %v9653_v12  ;;  %v6418_v32 = vadd.f32 %v10413_v33, %v15627_v26  ;;  %9861 = vmatmul.mubr.msk.bf16.gmra.mrb[36].mxu0 %vm15511_vm8, %v9650_v60  ;;  %v13456_v62 = vadd.f32 %v15630_v22, %v6415_v63  ;;  %v3424_v60 = vld [vmem:[#allocation2 + $0xe0] sm:$0xff]  ;;  %v9659_v63 = vpack.c.bf16 %v2784_v57, %v2783_v7  ;;  %v2881_v22 = vld [vmem:[#allocation2 + $0xd7] sm:$0xff]  ;;  %v2884_v7 = vld [vmem:[#allocation2 + $0xef] sm:$0xff] }
 0x2eb   : > { %15624 = vst [vmem:[#allocation92_spill] sm:$0xff] %v13446_v14  ;;  %9657 = vmatprep.mubr.msk.bf16.mxu1 %vm15629_vm14, %v9656_v55  ;;  %7499 = vmatprep.mubr.bf16.mxu0 %v3444_v56  ;;  %v15634_v56 = vld [vmem:[#allocation104_spill] sm:$0xff]  ;;  %vm15637_vm8 = vnez %v15636_v49 }
 0x2ec   : > { %15631 = vst [vmem:[#allocation94_spill] sm:$0xff] %v13456_v62  ;;  %v10414_v25 = vpop.f32.mrb[124].mxu1  ;;  %v13459_v51 = vadd.f32 %v15632_v38, %v6418_v32  ;;  %v9662_v32 = vpack.c.bf16 %v2882_v40, %v2881_v22  ;;  %v3423_v38 = vld [vmem:[#allocation2 + $0xd8] sm:$0xff] }
 0x2ed   : > { %v10744_v53 = vpop.f32.mrb[188].mxu0  ;;  %v10415_v2 = vpop.f32.mrb[125].mxu1  ;;  %v2786_v40 = vld [vmem:[#allocation2 + $0xde] sm:$0xff] }
 0x2ee   : > { %15633 = vst [vmem:[#allocation97_spill] sm:$0xff] %v13459_v51  ;;  %v10416_v45 = vadd.f32 %v10415_v2, %v10414_v25  ;;  %v10745_v33 = vpop.f32.mrb[189].mxu0  ;;  %v10417_v12 = vpop.f32.mrb[126].mxu1  ;;  %v3445_v25 = vpack.c.bf16 %v3424_v60, %v3423_v38  ;;  %v15638_v2 = vld [vmem:[#allocation106_spill] sm:$0xff] }
 0x2ef   : > { %v13461_v15 = vadd.f32 %v10745_v33, %v10744_v53  ;;  %v10747_v58 = vpop.f32.mrb[190].mxu0  ;;  %v10418_v26 = vpop.f32.mrb[127].mxu1  ;;  %v15642_v38 = vld [vmem:[#allocation38_spill] sm:$0xff] }
 0x2f0   : > { %v6423_v62 = vadd.f32 %v10416_v45, %v15634_v56  ;;  %v10419_v14 = vadd.f32 %v10418_v26, %v10417_v12  ;;  %v10748_v4 = vpop.f32.mrb[191].mxu0  ;;  %v2785_v26 = vld [vmem:[#allocation2 + $0xd6] sm:$0xff] }
 0x2f1   : > { %v13464_v51 = vadd.f32 %v10748_v4, %v10747_v58  ;;  %v15640_v4 = vld [vmem:[#allocation39_spill] sm:$0xff] }
 0x2f2   : > { %9660 = vmatmul.mubr.msk.bf16.gmra.mrb[232].mxu1 %vm15637_vm8, %v9659_v63  ;;  %v6426_v44 = vadd.f32 %v10419_v14, %v15638_v2  ;;  %9864 = vmatmul.mubr.msk.bf16.gmra.mrb[40].mxu0 %vm15518_vm12, %v9656_v55  ;;  %v13474_v57 = vadd.f32 %v13198_v10, %v6423_v62  ;;  %v3426_v55 = vld [vmem:[#allocation2 + $0xf0] sm:$0xff]  ;;  %v9665_v10 = vpack.c.bf16 %v2786_v40, %v2785_v26  ;;  %v2883_v62 = vld [vmem:[#allocation2 + $0xe7] sm:$0xff] }
 0x2f3   : > { %15635 = vst [vmem:[#allocation99_spill] sm:$0xff] %v13464_v51  ;;  %9663 = vmatprep.mubr.msk.bf16.mxu1 %vm15529_vm7, %v9662_v32  ;;  %7507 = vmatprep.mubr.bf16.mxu0 %v3445_v25  ;;  %v15643_v51 = vld [vmem:[#allocation40_spill] sm:$0xff] }
 0x2f4   : > { %15639 = vst [vmem:[#allocation96_spill] sm:$0xff] %v13474_v57  ;;  %v10548_v53 = vpop.f32.mrb[128].mxu1  ;;  %v13477_v45 = vadd.f32 %v15640_v4, %v6426_v44  ;;  %v9668_v44 = vpack.c.bf16 %v2884_v7, %v2883_v62  ;;  %v3425_v4 = vld [vmem:[#allocation2 + $0xe8] sm:$0xff]  ;;  %vm15644_vm12 = vnez %v15643_v51 }
 0x2f5   : > { %v10750_v33 = vpop.f32.mrb[192].mxu0  ;;  %v10549_v12 = vpop.f32.mrb[129].mxu1  ;;  %v2788_v7 = vld [vmem:[#allocation2 + $0xee] sm:$0xff] }
 0x2f6   : > { %15641 = vst [vmem:[#allocation98_spill] sm:$0xff] %v13477_v45  ;;  %v10550_v60 = vadd.f32 %v10549_v12, %v10548_v53  ;;  %v10751_v14 = vpop.f32.mrb[193].mxu0  ;;  %v10551_v58 = vpop.f32.mrb[130].mxu1  ;;  %v3446_v53 = vpack.c.bf16 %v3426_v55, %v3425_v4  ;;  %v15645_v12 = vld [vmem:[#allocation41_spill] sm:$0xff] }
 0x2f7   : > { %v13479_v63 = vadd.f32 %v10751_v14, %v10750_v33  ;;  %v10753_v22 = vpop.f32.mrb[194].mxu0  ;;  %v10552_v56 = vpop.f32.mrb[131].mxu1 }
 0x2f8   : > { %v6625_v25 = vadd.f32 %v10550_v60, %v15642_v38  ;;  %v10553_v2 = vadd.f32 %v10552_v56, %v10551_v58  ;;  %v10754_v57 = vpop.f32.mrb[195].mxu0  ;;  %v2886_v58 = vld [vmem:[#allocation2 + $0xff] sm:$0xff] }
 0x2f9   : > { %v13482_v45 = vadd.f32 %v10754_v57, %v10753_v22  ;;  %v2787_v56 = vld [vmem:[#allocation2 + $0xe6] sm:$0xff] }
 0x2fa   : > { %9666 = vmatmul.mubr.msk.bf16.gmra.mrb[236].mxu1 %vm15644_vm12, %v9665_v10  ;;  %v6628_v42 = vadd.f32 %v10553_v2, %v15645_v12  ;;  %9867 = vmatmul.mubr.msk.bf16.gmra.mrb[44].mxu0 %vm15629_vm14, %v9662_v32  ;;  %v13492_v40 = vadd.f32 %v13214_v5, %v6625_v25  ;;  %v3428_v32 = vld [vmem:[#allocation2 + $0x100] sm:$0xff]  ;;  %v9671_v5 = vpack.c.bf16 %v2788_v7, %v2787_v56  ;;  %v2885_v25 = vld [vmem:[#allocation2 + $0xf7] sm:$0xff]  ;;  %v2888_v56 = vld [vmem:[#allocation2 + $0x10f] sm:$0xff] }
 0x2fb   : > { %9669 = vmatprep.mubr.msk.bf16.mxu1 %vm15537_vm13, %v9668_v44  ;;  %7515 = vmatprep.mubr.bf16.mxu0 %v3446_v53 }
 0x2fc   : > { %v10554_v33 = vpop.f32.mrb[132].mxu1  ;;  %v13495_v57 = vadd.f32 %v13217_v3, %v6628_v42  ;;  %v9674_v3 = vpack.c.bf16 %v2886_v58, %v2885_v25  ;;  %v3427_v42 = vld [vmem:[#allocation2 + $0xf8] sm:$0xff] }
 0x2fd   : > { %v10884_v60 = vpop.f32.mrb[196].mxu0  ;;  %v10555_v14 = vpop.f32.mrb[133].mxu1 }
 0x2fe   : > { %15646 = vst [vmem:[#allocation101_spill] sm:$0xff] %v13495_v57  ;;  %v10556_v26 = vadd.f32 %v10555_v14, %v10554_v33  ;;  %v10885_v55 = vpop.f32.mrb[197].mxu0  ;;  %v10557_v22 = vpop.f32.mrb[134].mxu1  ;;  %v15647_v57 = vld [vmem:[#allocation45_spill] sm:$0xff]  ;;  %v3447_v33 = vpack.c.bf16 %v3428_v32, %v3427_v42 }
 0x2ff   : > { %v13497_v10 = vadd.f32 %v10885_v55, %v10884_v60  ;;  %v10887_v62 = vpop.f32.mrb[198].mxu0  ;;  %v10558_v38 = vpop.f32.mrb[135].mxu1  ;;  %vm15648_vm14 = vnez %v15647_v57  ;;  %v2790_v60 = vld [vmem:[#allocation2 + $0xfe] sm:$0xff]  ;;  %v3242_v57 = vld [vmem:[#allocation2 + $0x12e] sm:$0xff] }
 0x300   : > { %v6633_v2 = vadd.f32 %v10556_v26, %v13223_v30  ;;  %v10559_v4 = vadd.f32 %v10558_v38, %v10557_v22  ;;  %v10888_v53 = vpop.f32.mrb[199].mxu0  ;;  %v2887_v22 = vld [vmem:[#allocation2 + $0x107] sm:$0xff] }
 0x301   : > { %v13500_v12 = vadd.f32 %v10888_v53, %v10887_v62  ;;  %v3429_v38 = vld [vmem:[#allocation2 + $0x108] sm:$0xff] }
 0x302   : > { %9672 = vmatmul.mubr.msk.bf16.gmra.mrb[240].mxu1 %vm15648_vm14, %v9671_v5  ;;  %v6636_v14 = vadd.f32 %v10559_v4, %v13228_v0  ;;  %9870 = vmatmul.mubr.msk.bf16.gmra.mrb[48].mxu0 %vm15529_vm7, %v9668_v44  ;;  %v13510_v30 = vadd.f32 %v13230_v21, %v6633_v2  ;;  %v2789_v44 = vld [vmem:[#allocation2 + $0xf6] sm:$0xff] }
 0x303   : > { %9675 = vmatprep.mubr.msk.bf16.mxu1 %vm15540_vm0, %v9674_v3  ;;  %7523 = vmatprep.mubr.bf16.mxu0 %v3447_v33  ;;  %v3430_v5 = vld [vmem:[#allocation2 + $0x110] sm:$0xff]  ;;  %v9677_v4 = vpack.c.bf16 %v2790_v60, %v2789_v44  ;;  %v9680_v33 = vpack.c.bf16 %v2888_v56, %v2887_v22 }
 0x304   : > { %v10560_v7 = vpop.f32.mrb[136].mxu1  ;;  %v13513_v58 = vadd.f32 %v13233_v29, %v6636_v14  ;;  %v2792_v22 = vld [vmem:[#allocation2 + $0x10e] sm:$0xff] }
 0x305   : > { %v10890_v26 = vpop.f32.mrb[200].mxu0  ;;  %v10561_v55 = vpop.f32.mrb[137].mxu1 }
 0x306   : > { %15649 = vst [vmem:[#allocation103_spill] sm:$0xff] %v13513_v58  ;;  %v10562_v0 = vadd.f32 %v10561_v55, %v10560_v7  ;;  %v10891_v32 = vpop.f32.mrb[201].mxu0  ;;  %v10563_v62 = vpop.f32.mrb[138].mxu1  ;;  %v15650_v58 = vld [vmem:[#allocation49_spill] sm:$0xff]  ;;  %v3448_v7 = vpack.c.bf16 %v3430_v5, %v3429_v38 }
 0x307   : > { %v13515_v25 = vadd.f32 %v10891_v32, %v10890_v26  ;;  %v10893_v21 = vpop.f32.mrb[202].mxu0  ;;  %v10564_v2 = vpop.f32.mrb[139].mxu1  ;;  %vm15651_vm7 = vnez %v15650_v58  ;;  %v2889_v32 = vld [vmem:[#allocation2 + $0x117] sm:$0xff]  ;;  %v2791_v5 = vld [vmem:[#allocation2 + $0x106] sm:$0xff] }
 0x308   : > { %v6641_v53 = vadd.f32 %v10562_v0, %v13240_v34  ;;  %v10565_v42 = vadd.f32 %v10564_v2, %v10563_v62  ;;  %v10894_v29 = vpop.f32.mrb[203].mxu0  ;;  %v13530_v34 = vld [vmem:[#allocation4 + $0x600] sm:$0xff]  }
 0x309   : > { %v13518_v14 = vadd.f32 %v10894_v29, %v10893_v21  ;;  %11648 = vmatprep.subr.bf16.mxu0 %v13530_v34  ;;  %v3432_v21 = vld [vmem:[#allocation2 + $0x120] sm:$0xff] }
 0x30a   : > { %9678 = vmatmul.mubr.msk.bf16.gmra.mrb[244].mxu1 %vm15651_vm7, %v9677_v4  ;;  %v6644_v55 = vadd.f32 %v10565_v42, %v13245_v16  ;;  %9873 = vmatmul.mubr.msk.bf16.gmra.mrb[52].mxu0 %vm15537_vm13, %v9674_v3  ;;  %v13528_v60 = vadd.f32 %v13247_v28, %v6641_v53  ;;  %v2890_v3 = vld [vmem:[#allocation2 + $0x11f] sm:$0xff]  ;;  %v9683_v42 = vpack.c.bf16 %v2792_v22, %v2791_v5 }
 0x30b   : > { %9681 = vmatprep.mubr.msk.bf16.mxu1 %vm15542_vm6, %v9680_v33  ;;  %7531 = vmatprep.mubr.bf16.mxu0 %v3448_v7  ;;  %v3431_v28 = vld [vmem:[#allocation2 + $0x118] sm:$0xff] }
 0x30c   : > { %15652 = vst [vmem:[#allocation100_spill] sm:$0xff] %v13528_v60  ;;  %v10566_v26 = vpop.f32.mrb[140].mxu1  ;;  %v13533_v56 = vadd.f32 %v13250_v35, %v6644_v55  ;;  %v9686_v55 = vpack.c.bf16 %v2890_v3, %v2889_v32  ;;  %v15654_v60 = vld [vmem:[#allocation52_spill] sm:$0xff] }
 0x30d   : > { %v10896_v16 = vpop.f32.mrb[204].mxu0  ;;  %v10567_v0 = vpop.f32.mrb[141].mxu1  ;;  %vm15655_vm13 = vnez %v15654_v60  ;;  %v2794_v32 = vld [vmem:[#allocation2 + $0x11e] sm:$0xff] }
 0x30e   : > { %15653 = vst [vmem:[#allocation102_spill] sm:$0xff] %v13533_v56  ;;  %v10568_v62 = vadd.f32 %v10567_v0, %v10566_v26  ;;  %v10897_v44 = vpop.f32.mrb[205].mxu0  ;;  %v10569_v38 = vpop.f32.mrb[142].mxu1  ;;  %v3449_v26 = vpack.c.bf16 %v3432_v21, %v3431_v28 }
 0x30f   : > { %v13536_v2 = vadd.f32 %v10897_v44, %v10896_v16  ;;  %v10899_v4 = vpop.f32.mrb[206].mxu0  ;;  %v10570_v53 = vpop.f32.mrb[143].mxu1  ;;  %v2793_v16 = vld [vmem:[#allocation2 + $0x116] sm:$0xff] }
 0x310   : > { %v6649_v35 = vadd.f32 %v10568_v62, %v13256_v24  ;;  %v10571_v29 = vadd.f32 %v10570_v53, %v10569_v38  ;;  %v10900_v7 = vpop.f32.mrb[207].mxu0  ;;  %v3212_v38 = vld [vmem:[#allocation2 + $0x3e] sm:$0xff]  ;;  %v9689_v53 = vpack.c.bf16 %v2794_v32, %v2793_v16 }
 0x311   : > { %v13539_v56 = vadd.f32 %v10900_v7, %v10899_v4  ;;  %v15665_v16 = vld [vmem:[#allocation44_spill] sm:$0xff] }
 0x312   : > { %9684 = vmatmul.mubr.msk.bf16.gmra.mrb[248].mxu1 %vm15655_vm13, %v9683_v42  ;;  %v6652_v0 = vadd.f32 %v10571_v29, %v13262_v39  ;;  %9876 = vmatmul.mubr.msk.bf16.gmra.mrb[56].mxu0 %vm15540_vm0, %v9680_v33  ;;  %v13549_v22 = vadd.f32 %v13264_v17, %v6649_v35  ;;  %v3211_v17 = vld [vmem:[#allocation2 + $0x36] sm:$0xff]  ;;  %v11949_v42 = vld [vmem:[#allocation2] sm:$0xff] }
 0x313   : > { %9687 = vmatprep.mubr.msk.bf16.mxu1 %vm15544_vm5, %v9686_v55  ;;  %7539 = vmatprep.mubr.bf16.mxu0 %v3449_v26  ;;  %v3450_v35 = vpack.c.bf16 %v11949_v42, %v11949_v42 }
 0x314   : > { %15656 = vst [vmem:[#allocation35_spill] sm:$0xff] %v13549_v22  ;;  %v10572_v24 = vpop.f32.mrb[144].mxu1  ;;  %v13552_v3 = vadd.f32 %v13267_v20, %v6652_v0  ;;  %v9740_v20 = vpack.c.bf16 %v3212_v38, %v3211_v17 }
 0x315   : > { %v10902_v62 = vpop.f32.mrb[208].mxu0  ;;  %v10573_v44 = vpop.f32.mrb[145].mxu1 }
 0x316   : > { %15657 = vst [vmem:[#allocation105_spill] sm:$0xff] %v13552_v3  ;;  %v10574_v39 = vadd.f32 %v10573_v44, %v10572_v24  ;;  %v10903_v5 = vpop.f32.mrb[209].mxu0  ;;  %v10575_v28 = vpop.f32.mrb[146].mxu1  ;;  %v15660_v3 = vld [vmem:[#allocation55_spill] sm:$0xff]  ;;  %v15662_v24 = vld [vmem:[#allocation61_spill] sm:$0xff] }
 0x317   : > { %v13554_v33 = vadd.f32 %v10903_v5, %v10902_v62  ;;  %v10905_v21 = vpop.f32.mrb[210].mxu0  ;;  %v10576_v4 = vpop.f32.mrb[147].mxu1  ;;  %vm15661_vm0 = vnez %v15660_v3  ;;  %v15663_v62 = vld [vmem:[#allocation8_spill] sm:$0xff] }
 0x318   : > { %v6657_v29 = vadd.f32 %v10574_v39, %v13276_v46  ;;  %v10577_v7 = vadd.f32 %v10576_v4, %v10575_v28  ;;  %v10906_v26 = vpop.f32.mrb[211].mxu0  ;;  %vm15664_vm13 = vnez %v15663_v62  ;;  %v15667_v39 = vld [vmem:[#allocation43_spill] sm:$0xff] }
 0x319   : > { %15658 = vst [vmem:[#allocation107_spill] sm:$0xff] %v13554_v33  ;;  %v13557_v0 = vadd.f32 %v10906_v26, %v10905_v21  ;;  %v3337_v21 = vld [vmem:[#allocation2 + $0x127] sm:$0xff]  ;;  %v3338_v4 = vld [vmem:[#allocation2 + $0x12f] sm:$0xff] }
 0x31a   : > { %9690 = vmatmul.mubr.msk.bf16.gmra.mrb[252].mxu1 %vm15661_vm0, %v9689_v53  ;;  %v6660_v44 = vadd.f32 %v10577_v7, %v15662_v24  ;;  %9879 = vmatmul.mubr.msk.bf16.gmra.mrb[60].mxu0 %vm15542_vm6, %v9686_v55  ;;  %v13567_v32 = vadd.f32 %v15665_v16, %v6657_v29  ;;  %v11903_v7 = vld [vmem:[#allocation4 + $0x480] sm:$0xff]  }
 0x31b   : > { %15659 = vst [vmem:[#allocation104_spill] sm:$0xff] %v13557_v0  ;;  %9741 = vmatprep.mubr.msk.bf16.mxu1 %vm15664_vm13, %v9740_v20  ;;  %7547 = vmatprep.mubr.bf16.mxu0 %v3450_v35  ;;  %v3214_v55 = vld [vmem:[#allocation2 + $0x4e] sm:$0xff] }
 0x31c   : > { %15666 = vst [vmem:[#allocation36_spill] sm:$0xff] %v13567_v32  ;;  %v10578_v46 = vpop.f32.mrb[148].mxu1  ;;  %v13570_v38 = vadd.f32 %v15667_v39, %v6660_v44  ;;  %v3756_v26 = vld [vmem:[#allocation2 + $0x4f] sm:$0xff]  ;;  %v9881_v44 = vpack.c.bf16 %v3338_v4, %v3337_v21  ;;  %v3213_v39 = vld [vmem:[#allocation2 + $0x46] sm:$0xff] }
 0x31d   : > { %v10908_v5 = vpop.f32.mrb[212].mxu0  ;;  %v10579_v28 = vpop.f32.mrb[149].mxu1  ;;  %v15670_v16 = vld [vmem:[#allocation47_spill] sm:$0xff]  ;;  %v9746_v3 = vpack.c.bf16 %v3214_v55, %v3213_v39  ;;  %v11910_v4 = vld [vmem:[#allocation4 + $0x4d0] sm:$0xff]  }
 0x31e   : > { %15668 = vst [vmem:[#allocation106_spill] sm:$0xff] %v13570_v38  ;;  %v10580_v53 = vadd.f32 %v10579_v28, %v10578_v46  ;;  %v10909_v17 = vpop.f32.mrb[213].mxu0  ;;  %v10581_v42 = vpop.f32.mrb[150].mxu1  ;;  %v3755_v38 = vld [vmem:[#allocation2 + $0x47] sm:$0xff]  ;;  %v15673_v28 = vld [vmem:[#allocation11_spill] sm:$0xff] }
 0x31f   : > { %v13572_v24 = vadd.f32 %v10909_v17, %v10908_v5  ;;  %v10911_v20 = vpop.f32.mrb[214].mxu0  ;;  %v10582_v29 = vpop.f32.mrb[151].mxu1  ;;  %v15672_v46 = vld [vmem:[#allocation17_spill] sm:$0xff]  ;;  %vm15674_vm6 = vnez %v15673_v28  ;;  %v9980_v22 = vpack.c.bf16 %v3756_v26, %v3755_v38  ;;  %v15675_v5 = vld [vmem:[#allocation48_spill] sm:$0xff]  ;;  %v15679_v38 = vld [vmem:[#allocation75_spill] sm:$0xff] }
 0x320   : > { %v6665_v35 = vadd.f32 %v10580_v53, %v15670_v16  ;;  %v10583_v32 = vadd.f32 %v10582_v29, %v10581_v42  ;;  %v10912_v0 = vpop.f32.mrb[215].mxu0  ;;  %v11909_v53 = vld [vmem:[#allocation4 + $0x488] sm:$0xff]   ;;  %v3118_v55 = vld [vmem:[#allocation2 + $0x42] sm:$0xff] }
 0x321   : > { %15669 = vst [vmem:[#allocation39_spill] sm:$0xff] %v13572_v24  ;;  %v13575_v33 = vadd.f32 %v10912_v0, %v10911_v20  ;;  %v15677_v0 = vld [vmem:[#allocation7_spill] sm:$0xff]  ;;  %v15684_v24 = vld [vmem:[#allocation13_spill] sm:$0xff] }
 0x322   : > { %9744 = vmatmul.mubr.msk.bf16.vlgmr.msra.gmra.mrb[0].mxu1 %vm15674_vm6, %v15672_v46  ;;  %v6668_v17 = vadd.f32 %v10583_v32, %v15675_v5  ;;  %9882 = vmatmul.mubr.msk.bf16.gmra.mrb[64].mxu0 %vm15544_vm5, %v9881_v44  ;;  %v13584_v21 = vadd.f32 %v13299_v61, %v6665_v35  ;;  %vm15678_vm0 = vnez %v15677_v0  ;;  %v3117_v35 = vld [vmem:[#allocation2 + $0x3a] sm:$0xff] }
 0x323   : > { %15671 = vst [vmem:[#allocation38_spill] sm:$0xff] %v13575_v33  ;;  %11205 = vmatpush3.bf16.msra.mxu1 %v11903_v7  ;;  %9747 = vmatprep.mubr.msk.bf16.mxu1 %vm15559_vm10, %v9746_v3  ;;  %v3216_v7 = vld [vmem:[#allocation2 + $0x5e] sm:$0xff]  ;;  %v9749_v5 = vpack.c.bf16 %v3118_v55, %v3117_v35  ;;  %v3215_v0 = vld [vmem:[#allocation2 + $0x56] sm:$0xff] }
 0x324   : > { %15676 = vst [vmem:[#allocation40_spill] sm:$0xff] %v13584_v21  ;;  %9981 = vmatprep.mubr.msk.bf16.mxu0 %vm15678_vm0, %v9980_v22  ;;  %v10584_v42 = vpop.f32.mrb[152].mxu1  ;;  %11206 = vmatprep.subr.bf16.mxu1 %v11908_v37  ;;  %v13591_v32 = vadd.f32 %v15679_v38, %v6668_v17  ;;  %v3758_v44 = vld [vmem:[#allocation2 + $0x5f] sm:$0xff]  ;;  %v9752_v33 = vpack.c.bf16 %v3216_v7, %v3215_v0  ;;  %vm15685_vm0 = vnez %v15684_v24  ;;  %v15694_v24 = vld [vmem:[#allocation15_spill] sm:$0xff] }
 0x325   : > { %v10914_v26 = vpop.f32.mrb[216].mxu0  ;;  %v10585_v20 = vpop.f32.mrb[153].mxu1  ;;  %v11911_v37 = vld [vmem:[#allocation4 + $0x490] sm:$0xff]  }
 0x326   : > { %15680 = vst [vmem:[#allocation41_spill] sm:$0xff] %v13591_v32  ;;  %v10586_v29 = vadd.f32 %v10585_v20, %v10584_v42  ;;  %v10915_v16 = vpop.f32.mrb[217].mxu0  ;;  %v10587_v61 = vpop.f32.mrb[154].mxu1  ;;  %v15682_v21 = vld [vmem:[#allocation77_spill] sm:$0xff]  ;;  %v11912_v42 = vld [vmem:[#allocation4 + $0x4d8] sm:$0xff]  }
 0x327   : > { %11207 = vmatpush3.bf16.msra.mxu1 %v11909_v53  ;;  %v13593_v39 = vadd.f32 %v10915_v16, %v10914_v26  ;;  %v10917_v46 = vpop.f32.mrb[218].mxu0  ;;  %v10588_v22 = vpop.f32.mrb[155].mxu1  ;;  %v9986_v53 = vpack.c.bf16 %v3758_v44, %v3757_v54  ;;  %v11921_v26 = vld [vmem:[#allocation4 + $0x608] sm:$0xff]   ;;  %v15686_v16 = vld [vmem:[#allocation79_spill] sm:$0xff]  ;;  %v15689_v55 = vld [vmem:[#allocation9_spill] sm:$0xff] }
 0x328   : > { %11208 = vmatprep.subr.bf16.mxu1 %v11910_v4  ;;  %v6673_v17 = vadd.f32 %v10586_v29, %v15682_v21  ;;  %v10589_v38 = vadd.f32 %v10588_v22, %v10587_v61  ;;  %v10918_v32 = vpop.f32.mrb[219].mxu0  ;;  %v15687_v21 = vld [vmem:[#allocation76_spill] sm:$0xff]  ;;  %vm15690_vm5 = vnez %v15689_v55  ;;  %v11914_v54 = vld [vmem:[#allocation4 + $0x4e0] sm:$0xff]   ;;  %v15691_v61 = vld [vmem:[#allocation10_spill] sm:$0xff] }
 0x329   : > { %15681 = vst [vmem:[#allocation45_spill] sm:$0xff] %v13593_v39  ;;  %v13596_v20 = vadd.f32 %v10918_v32, %v10917_v46  ;;  %v11913_v32 = vld [vmem:[#allocation4 + $0x498] sm:$0xff]   ;;  %v3120_v29 = vld [vmem:[#allocation2 + $0x52] sm:$0xff]  ;;  %v11924_v46 = vld [vmem:[#allocation4 + $0x610] sm:$0xff]  }
 0x32a   : > { %9750 = vmatmul.mubr.msk.bf16.gmra.mrb[4].mxu1 %vm15685_vm0, %v9749_v5  ;;  %v6676_v39 = vadd.f32 %v10589_v38, %v15686_v16  ;;  %9984 = vmatmul.mubr.msk.bf16.vlgmr.msra.gmra.mrb[68].mxu0 %vm15664_vm13, %v9746_v3  ;;  %v13606_v4 = vadd.f32 %v15687_v21, %v6673_v17  ;;  %v3218_v44 = vld [vmem:[#allocation2 + $0x6e] sm:$0xff]  ;;  %v3217_v21 = vld [vmem:[#allocation2 + $0x66] sm:$0xff]  ;;  %vm15697_vm13 = vnez %v15269_v36  ;;  %v3121_v36 = vld [vmem:[#allocation2 + $0x5a] sm:$0xff] }
 0x32b   : > { %15683 = vst [vmem:[#allocation49_spill] sm:$0xff] %v13596_v20  ;;  %9753 = vmatprep.mubr.msk.bf16.mxu1 %vm15567_vm15, %v9752_v33  ;;  %9987 = vmatprep.mubr.msk.bf16.mxu0 %vm15690_vm5, %v9986_v53  ;;  %v3119_v17 = vld [vmem:[#allocation2 + $0x4a] sm:$0xff]  ;;  %vm15695_vm5 = vnez %v15694_v24 }
 0x32c   : > { %15688 = vst [vmem:[#allocation52_spill] sm:$0xff] %v13606_v4  ;;  %11209 = vmatpush3.bf16.msra.mxu1 %v11911_v37  ;;  %v10590_v7 = vpop.f32.mrb[156].mxu1  ;;  %11649 = vmatpush3.bf16.msra.mxu0 %v13530_v34  ;;  %v13612_v62 = vadd.f32 %v15691_v61, %v6676_v39  ;;  %v3760_v37 = vld [vmem:[#allocation2 + $0x6f] sm:$0xff]  ;;  %v9755_v16 = vpack.c.bf16 %v3120_v29, %v3119_v17  ;;  %v3759_v20 = vld [vmem:[#allocation2 + $0x67] sm:$0xff] }
 0x32d   : > { %11210 = vmatprep.subr.bf16.mxu1 %v11912_v42  ;;  %v10920_v3 = vpop.f32.mrb[220].mxu0  ;;  %v10591_v35 = vpop.f32.mrb[157].mxu1  ;;  %11650 = vmatprep.subr.bf16.mxu0 %v11921_v26  ;;  %v11915_v34 = vld [vmem:[#allocation4 + $0x4a0] sm:$0xff]   ;;  %v15693_v39 = vld [vmem:[#allocation78_spill] sm:$0xff]  ;;  %v9758_v4 = vpack.c.bf16 %v3218_v44, %v3217_v21  ;;  %v11918_v44 = vld [vmem:[#allocation4 + $0x4f0] sm:$0xff]  }
 0x32e   : > { %15692 = vst [vmem:[#allocation61_spill] sm:$0xff] %v13612_v62  ;;  %v10592_v22 = vadd.f32 %v10591_v35, %v10590_v7  ;;  %v10921_v5 = vpop.f32.mrb[221].mxu0  ;;  %v10593_v0 = vpop.f32.mrb[158].mxu1  ;;  %v11916_v7 = vld [vmem:[#allocation4 + $0x4e8] sm:$0xff]   ;;  %v11925_v29 = vld [vmem:[#allocation4 + $0x618] sm:$0xff]   ;;  %v11926_v17 = vld [vmem:[#allocation4 + $0x620] sm:$0xff]  }
 0x32f   : > { %v13614_v38 = vadd.f32 %v10921_v5, %v10920_v3  ;;  %v10923_v53 = vpop.f32.mrb[222].mxu0  ;;  %v10594_v42 = vpop.f32.mrb[159].mxu1  ;;  %v9992_v3 = vpack.c.bf16 %v3760_v37, %v3759_v20  ;;  %v15696_v5 = vld [vmem:[#allocation80_spill] sm:$0xff]  ;;  %v3122_v20 = vld [vmem:[#allocation2 + $0x62] sm:$0xff] }
 0x330   : > { %11211 = vmatpush3.bf16.msra.mxu1 %v11913_v32  ;;  %v6681_v55 = vadd.f32 %v10592_v22, %v15693_v39  ;;  %v10595_v61 = vadd.f32 %v10594_v42, %v10593_v0  ;;  %v10924_v62 = vpop.f32.mrb[223].mxu0  ;;  %11651 = vmatpush3.bf16.msra.mxu0 %v11921_v26  ;;  %v11917_v26 = vld [vmem:[#allocation4 + $0x4a8] sm:$0xff]   ;;  %v9761_v39 = vpack.c.bf16 %v3122_v20, %v3121_v36  ;;  %v3222_v36 = vld [vmem:[#allocation2 + $0x8e] sm:$0xff] }
 0x331   : > { %11212 = vmatprep.subr.bf16.mxu1 %v11914_v54  ;;  %v13617_v35 = vadd.f32 %v10924_v62, %v10923_v53  ;;  %11652 = vmatprep.subr.bf16.mxu0 %v11924_v46  ;;  %v3220_v0 = vld [vmem:[#allocation2 + $0x7e] sm:$0xff] }
 0x332   : > { %9756 = vmatmul.mubr.msk.bf16.gmra.mrb[8].mxu1 %vm15695_vm5, %v9755_v16  ;;  %v6684_v32 = vadd.f32 %v10595_v61, %v15696_v5  ;;  %9990 = vmatmul.mubr.msk.bf16.gmra.mrb[72].mxu0 %vm15559_vm10, %v9752_v33  ;;  %v13627_v54 = vadd.f32 %v13335_v19, %v6681_v55  ;;  %v3762_v42 = vld [vmem:[#allocation2 + $0x7f] sm:$0xff]  ;;  %v3219_v55 = vld [vmem:[#allocation2 + $0x76] sm:$0xff] }
 0x333   : > { %9759 = vmatprep.mubr.msk.bf16.mxu1 %vm15575_vm1, %v9758_v4  ;;  %9993 = vmatprep.mubr.msk.bf16.mxu0 %vm15697_vm13, %v9992_v3  ;;  %v9764_v3 = vpack.c.bf16 %v3220_v0, %v3219_v55  ;;  %v3761_v5 = vld [vmem:[#allocation2 + $0x77] sm:$0xff]  ;;  %vm15701_vm13 = vnez %v15277_v50  ;;  %v3123_v50 = vld [vmem:[#allocation2 + $0x6a] sm:$0xff] }
 0x334   : > { %11213 = vmatpush3.bf16.msra.mxu1 %v11915_v34  ;;  %v10596_v62 = vpop.f32.mrb[160].mxu1  ;;  %11653 = vmatpush3.bf16.msra.mxu0 %v11924_v46  ;;  %v13632_v22 = vadd.f32 %v13338_v8, %v6684_v32  ;;  %v11919_v46 = vld [vmem:[#allocation4 + $0x4b0] sm:$0xff]   ;;  %v11922_v32 = vld [vmem:[#allocation4 + $0x4f8] sm:$0xff]   ;;  %v11927_v20 = vld [vmem:[#allocation4 + $0x628] sm:$0xff]  }
 0x335   : > { %11214 = vmatprep.subr.bf16.mxu1 %v11916_v7  ;;  %v10926_v11 = vpop.f32.mrb[224].mxu0  ;;  %v10597_v33 = vpop.f32.mrb[161].mxu1  ;;  %11654 = vmatprep.subr.bf16.mxu0 %v11925_v29  ;;  %v3124_v0 = vld [vmem:[#allocation2 + $0x72] sm:$0xff] }
 0x336   : > { %v10598_v19 = vadd.f32 %v10597_v33, %v10596_v62  ;;  %v10927_v37 = vpop.f32.mrb[225].mxu0  ;;  %v10599_v53 = vpop.f32.mrb[162].mxu1  ;;  %v15698_v33 = vld [vmem:[#allocation19_spill] sm:$0xff] }
 0x337   : > { %v13634_v16 = vadd.f32 %v10927_v37, %v10926_v11  ;;  %v10929_v21 = vpop.f32.mrb[226].mxu0  ;;  %v10600_v34 = vpop.f32.mrb[163].mxu1  ;;  %vm15699_vm10 = vnez %v15698_v33  ;;  %v9998_v11 = vpack.c.bf16 %v3762_v42, %v3761_v5  ;;  %v15700_v37 = vld [vmem:[#allocation12_spill] sm:$0xff]  ;;  %v11930_v42 = vld [vmem:[#allocation4 + $0x630] sm:$0xff]  }
 0x338   : > { %11215 = vmatpush3.bf16.msra.mxu1 %v11917_v26  ;;  %v6689_v8 = vadd.f32 %v10598_v19, %v13348_v6  ;;  %v10601_v61 = vadd.f32 %v10600_v34, %v10599_v53  ;;  %v10930_v7 = vpop.f32.mrb[227].mxu0  ;;  %11655 = vmatpush3.bf16.msra.mxu0 %v11925_v29  ;;  %v11923_v29 = vld [vmem:[#allocation4 + $0x4b8] sm:$0xff]   ;;  %v11928_v19 = vld [vmem:[#allocation4 + $0x5c0] sm:$0xff]  }
 0x339   : > { %11216 = vmatprep.subr.bf16.mxu1 %v11918_v44  ;;  %v13637_v62 = vadd.f32 %v10930_v7, %v10929_v21  ;;  %11656 = vmatprep.subr.bf16.mxu0 %v11926_v17 }
 0x33a   : > { %9762 = vmatmul.mubr.msk.bf16.gmra.mrb[12].mxu1 %vm15699_vm10, %v9761_v39  ;;  %v6692_v26 = vadd.f32 %v10601_v61, %v15700_v37  ;;  %9996 = vmatmul.mubr.msk.bf16.gmra.mrb[76].mxu0 %vm15567_vm15, %v9758_v4  ;;  %v13647_v6 = vadd.f32 %v13353_v1, %v6689_v8  ;;  %v3764_v39 = vld [vmem:[#allocation2 + $0x8f] sm:$0xff]  ;;  %v9767_v61 = vpack.c.bf16 %v3124_v0, %v3123_v50 }
 0x33b   : > { %9765 = vmatprep.mubr.msk.bf16.mxu1 %vm15579_vm2, %v9764_v3  ;;  %9999 = vmatprep.mubr.msk.bf16.mxu0 %vm15701_vm13, %v9998_v11  ;;  %v3763_v11 = vld [vmem:[#allocation2 + $0x87] sm:$0xff] }
 0x33c   : > { %11217 = vmatpush3.bf16.msra.mxu1 %v11919_v46  ;;  %v10602_v44 = vpop.f32.mrb[164].mxu1  ;;  %11657 = vmatpush3.bf16.msra.mxu0 %v11926_v17  ;;  %v13652_v53 = vadd.f32 %v13356_v48, %v6692_v26  ;;  %v3221_v17 = vld [vmem:[#allocation2 + $0x86] sm:$0xff] }
 0x33d   : > { %11218 = vmatprep.subr.bf16.mxu1 %v11922_v32  ;;  %v10932_v47 = vpop.f32.mrb[228].mxu0  ;;  %v10603_v4 = vpop.f32.mrb[165].mxu1  ;;  %11658 = vmatprep.subr.bf16.mxu0 %v11927_v20  ;;  %v9770_v32 = vpack.c.bf16 %v3222_v36, %v3221_v17  ;;  %v15702_v26 = vld [vmem:[#allocation22_spill] sm:$0xff]  ;;  %v15708_v36 = vld [vmem:[#allocation83_spill] sm:$0xff] }
 0x33e   : > { %v10604_v1 = vadd.f32 %v10603_v4, %v10602_v44  ;;  %v10933_v21 = vpop.f32.mrb[229].mxu0  ;;  %v10605_v34 = vpop.f32.mrb[166].mxu1  ;;  %vm15703_vm15 = vnez %v15702_v26  ;;  %v10004_v44 = vpack.c.bf16 %v3764_v39, %v3763_v11  ;;  %v3126_v4 = vld [vmem:[#allocation2 + $0x82] sm:$0xff]  ;;  %v3125_v39 = vld [vmem:[#allocation2 + $0x7a] sm:$0xff] }
 0x33f   : > { %v13654_v55 = vadd.f32 %v10933_v21, %v10932_v47  ;;  %v10935_v46 = vpop.f32.mrb[230].mxu0  ;;  %v10606_v8 = vpop.f32.mrb[167].mxu1  ;;  %v11931_v47 = vld [vmem:[#allocation4 + $0x638] sm:$0xff]  }
 0x340   : > { %11219 = vmatpush3.bf16.msra.mxu1 %v11923_v29  ;;  %v6697_v48 = vadd.f32 %v10604_v1, %v13366_v43  ;;  %v10607_v7 = vadd.f32 %v10606_v8, %v10605_v34  ;;  %v10936_v5 = vpop.f32.mrb[231].mxu0  ;;  %11659 = vmatpush3.bf16.msra.mxu0 %v11927_v20  ;;  %v15704_v43 = vld [vmem:[#allocation81_spill] sm:$0xff]  ;;  %v15706_v20 = vld [vmem:[#allocation16_spill] sm:$0xff] }
 0x341   : > { %11428 = vmatprep.subr.bf16.mxu1 %v11928_v19  ;;  %v13657_v37 = vadd.f32 %v10936_v5, %v10935_v46  ;;  %11660 = vmatprep.subr.bf16.mxu0 %v11930_v42  ;;  %vm15707_vm13 = vnez %v15706_v20  ;;  %v3224_v34 = vld [vmem:[#allocation2 + $0x9e] sm:$0xff] }
 0x342   : > { %9768 = vmatmul.mubr.msk.bf16.gmra.mrb[16].mxu1 %vm15703_vm15, %v9767_v61  ;;  %v6700_v0 = vadd.f32 %v10607_v7, %v13369_v41  ;;  %10002 = vmatmul.mubr.msk.bf16.gmra.mrb[80].mxu0 %vm15575_vm1, %v9764_v3  ;;  %v13667_v29 = vadd.f32 %v15704_v43, %v6697_v48  ;;  %v3766_v46 = vld [vmem:[#allocation2 + $0x9f] sm:$0xff]  ;;  %v9773_v48 = vpack.c.bf16 %v3126_v4, %v3125_v39  ;;  %v3223_v7 = vld [vmem:[#allocation2 + $0x96] sm:$0xff]  ;;  %v15716_v4 = vld [vmem:[#allocation14_spill] sm:$0xff] }
 0x343   : > { %9771 = vmatprep.mubr.msk.bf16.mxu1 %vm15584_vm3, %v9770_v32  ;;  %10005 = vmatprep.mubr.msk.bf16.mxu0 %vm15707_vm13, %v10004_v44  ;;  %v15711_v5 = vld [vmem:[#allocation85_spill] sm:$0xff]  ;;  %v3765_v43 = vld [vmem:[#allocation2 + $0x97] sm:$0xff] }
 0x344   : > { %15705 = vst [vmem:[#allocation8_spill] sm:$0xff] %v13667_v29  ;;  %v10608_v19 = vpop.f32.mrb[168].mxu1  ;;  %11661 = vmatpush3.bf16.msra.mxu0 %v11930_v42  ;;  %v13672_v1 = vadd.f32 %v15708_v36, %v6700_v0  ;;  %v9776_v0 = vpack.c.bf16 %v3224_v34, %v3223_v7  ;;  %v10010_v36 = vpack.c.bf16 %v3766_v46, %v3765_v43  ;;  %v15718_v34 = vld [vmem:[#allocation20_spill] sm:$0xff]  ;;  %v3127_v7 = vld [vmem:[#allocation2 + $0x8a] sm:$0xff] }
 0x345   : > { %v10938_v21 = vpop.f32.mrb[232].mxu0  ;;  %v10609_v41 = vpop.f32.mrb[169].mxu1  ;;  %11662 = vmatprep.subr.bf16.mxu0 %v11931_v47  ;;  %vm15719_vm13 = vnez %v15718_v34 }
 0x346   : > { %15709 = vst [vmem:[#allocation44_spill] sm:$0xff] %v13672_v1  ;;  %v10610_v9 = vadd.f32 %v10609_v41, %v10608_v19  ;;  %v10939_v3 = vpop.f32.mrb[233].mxu0  ;;  %v10611_v50 = vpop.f32.mrb[170].mxu1  ;;  %v15713_v19 = vld [vmem:[#allocation25_spill] sm:$0xff]  ;;  %v15715_v41 = vld [vmem:[#allocation82_spill] sm:$0xff] }
 0x347   : > { %v13674_v8 = vadd.f32 %v10939_v3, %v10938_v21  ;;  %v10941_v61 = vpop.f32.mrb[234].mxu0  ;;  %v10612_v17 = vpop.f32.mrb[171].mxu1  ;;  %vm15714_vm1 = vnez %v15713_v19  ;;  %v3128_v3 = vld [vmem:[#allocation2 + $0x92] sm:$0xff]  ;;  %v3477_v19 = vld [vmem:[#allocation2 + $0x89] sm:$0xff] }
 0x348   : > { %v6705_v42 = vadd.f32 %v10610_v9, %v15711_v5  ;;  %v10613_v11 = vadd.f32 %v10612_v17, %v10611_v50  ;;  %v10942_v44 = vpop.f32.mrb[235].mxu0  ;;  %11663 = vmatpush3.bf16.msra.mxu0 %v11931_v47  ;;  %v15720_v50 = vld [vmem:[#allocation84_spill] sm:$0xff]  ;;  %v3226_v17 = vld [vmem:[#allocation2 + $0xae] sm:$0xff]  ;;  %v13696_v43 = vpack.c.bf16 %v3128_v3, %v3127_v7 }
 0x349   : > { %15710 = vst [vmem:[#allocation43_spill] sm:$0xff] %v13674_v8  ;;  %v13677_v20 = vadd.f32 %v10942_v44, %v10941_v61  ;;  %v3768_v5 = vld [vmem:[#allocation2 + $0xaf] sm:$0xff] }
 0x34a   : > { %9774 = vmatmul.mubr.msk.bf16.gmra.mrb[20].mxu1 %vm15714_vm1, %v9773_v48  ;;  %v6708_v21 = vadd.f32 %v10613_v11, %v15715_v41  ;;  %10008 = vmatmul.mubr.msk.bf16.gmra.mrb[84].mxu0 %vm15579_vm2, %v9770_v32  ;;  %v13687_v9 = vadd.f32 %v15716_v4, %v6705_v42  ;;  %v15723_v41 = vld [vmem:[#allocation18_spill] sm:$0xff] }
 0x34b   : > { %15712 = vst [vmem:[#allocation47_spill] sm:$0xff] %v13677_v20  ;;  %9777 = vmatprep.mubr.msk.bf16.mxu1 %vm15594_vm4, %v9776_v0  ;;  %10011 = vmatprep.mubr.msk.bf16.mxu0 %vm15719_vm13, %v10010_v36  ;;  %v3225_v36 = vld [vmem:[#allocation2 + $0xa6] sm:$0xff] }
 0x34c   : > { %15717 = vst [vmem:[#allocation17_spill] sm:$0xff] %v13687_v9  ;;  %v10614_v47 = vpop.f32.mrb[172].mxu1  ;;  %v13692_v39 = vadd.f32 %v15720_v50, %v6708_v21  ;;  %v9782_v50 = vpack.c.bf16 %v3226_v17, %v3225_v36  ;;  %v15731_v17 = vld [vmem:[#allocation23_spill] sm:$0xff] }
 0x34d   : > { %v10944_v46 = vpop.f32.mrb[236].mxu0  ;;  %v10615_v61 = vpop.f32.mrb[173].mxu1  ;;  %vm15732_vm13 = vnez %v15731_v17  ;;  %v15736_v17 = vld [vmem:[#allocation89_spill] sm:$0xff] }
 0x34e   : > { %15721 = vst [vmem:[#allocation11_spill] sm:$0xff] %v13692_v39  ;;  %v10616_v48 = vadd.f32 %v10615_v61, %v10614_v47  ;;  %v10945_v52 = vpop.f32.mrb[237].mxu0  ;;  %v10617_v32 = vpop.f32.mrb[174].mxu1  ;;  %v3767_v39 = vld [vmem:[#allocation2 + $0xa7] sm:$0xff]  ;;  %v15725_v47 = vld [vmem:[#allocation28_spill] sm:$0xff] }
 0x34f   : > { %v13694_v11 = vadd.f32 %v10945_v52, %v10944_v46  ;;  %v10947_v42 = vpop.f32.mrb[238].mxu0  ;;  %v10618_v44 = vpop.f32.mrb[175].mxu1  ;;  %vm15726_vm2 = vnez %v15725_v47  ;;  %v10016_v61 = vpack.c.bf16 %v3768_v5, %v3767_v39  ;;  %v15727_v46 = vld [vmem:[#allocation86_spill] sm:$0xff] }
 0x350   : > { %v6713_v4 = vadd.f32 %v10616_v48, %v15723_v41  ;;  %v10619_v34 = vadd.f32 %v10618_v44, %v10617_v32  ;;  %v10948_v21 = vpop.f32.mrb[239].mxu0  ;;  %v15729_v48 = vld [vmem:[#allocation21_spill] sm:$0xff]  ;;  %v15733_v44 = vld [vmem:[#allocation87_spill] sm:$0xff] }
 0x351   : > { %15722 = vst [vmem:[#allocation48_spill] sm:$0xff] %v13694_v11  ;;  %v13699_v9 = vadd.f32 %v10948_v21, %v10947_v42  ;;  %v3130_v42 = vld [vmem:[#allocation2 + $0xa2] sm:$0xff]  ;;  %v3129_v21 = vld [vmem:[#allocation2 + $0x9a] sm:$0xff] }
 0x352   : > { %9780 = vmatmul.mubr.msk.bf16.gmra.mrb[24].mxu1 %vm15726_vm2, %v13696_v43  ;;  %v6716_v52 = vadd.f32 %v10619_v34, %v15727_v46  ;;  %10014 = vmatmul.mubr.msk.bf16.gmra.mrb[88].mxu0 %vm15584_vm3, %v9776_v0  ;;  %v13710_v32 = vadd.f32 %v15729_v48, %v6713_v4  ;;  %v3228_v41 = vld [vmem:[#allocation2 + $0xbe] sm:$0xff] }
 0x353   : > { %15724 = vst [vmem:[#allocation7_spill] sm:$0xff] %v13699_v9  ;;  %9783 = vmatprep.mubr.msk.bf16.mxu1 %vm15604_vm11, %v9782_v50  ;;  %10017 = vmatprep.mubr.msk.bf16.mxu0 %vm15732_vm13, %v10016_v61  ;;  %v3770_v46 = vld [vmem:[#allocation2 + $0xbf] sm:$0xff]  ;;  %v3227_v61 = vld [vmem:[#allocation2 + $0xb6] sm:$0xff] }
 0x354   : > { %15730 = vst [vmem:[#allocation75_spill] sm:$0xff] %v13710_v32  ;;  %v10620_v7 = vpop.f32.mrb[176].mxu1  ;;  %v13715_v36 = vadd.f32 %v15733_v44, %v6716_v52  ;;  %v13719_v32 = vpack.c.bf16 %v3130_v42, %v3129_v21  ;;  %v9788_v44 = vpack.c.bf16 %v3228_v41, %v3227_v61  ;;  %v15741_v42 = vld [vmem:[#allocation30_spill] sm:$0xff] }
 0x355   : > { %v10950_v39 = vpop.f32.mrb[240].mxu0  ;;  %v10621_v5 = vpop.f32.mrb[177].mxu1  ;;  %vm15742_vm13 = vnez %v15741_v42  ;;  %v15745_v41 = vld [vmem:[#allocation26_spill] sm:$0xff] }
 0x356   : > { %15734 = vst [vmem:[#allocation77_spill] sm:$0xff] %v13715_v36  ;;  %v10622_v34 = vadd.f32 %v10621_v5, %v10620_v7  ;;  %v10951_v31 = vpop.f32.mrb[241].mxu0  ;;  %v10623_v0 = vpop.f32.mrb[178].mxu1  ;;  %v3769_v36 = vld [vmem:[#allocation2 + $0xb7] sm:$0xff]  ;;  %vm15746_vm2 = vnez %v15745_v41  ;;  %v15750_v41 = vld [vmem:[#allocation90_spill] sm:$0xff] }
 0x357   : > { %v13717_v9 = vadd.f32 %v10951_v31, %v10950_v39  ;;  %v10953_v4 = vpop.f32.mrb[242].mxu0  ;;  %v10624_v48 = vpop.f32.mrb[179].mxu1  ;;  %v15738_v7 = vld [vmem:[#allocation31_spill] sm:$0xff]  ;;  %v10022_v5 = vpack.c.bf16 %v3770_v46, %v3769_v36 }
 0x358   : > { %v6721_v11 = vadd.f32 %v10622_v34, %v15736_v17  ;;  %v10625_v20 = vadd.f32 %v10624_v48, %v10623_v0  ;;  %v10954_v52 = vpop.f32.mrb[243].mxu0  ;;  %vm15739_vm3 = vnez %v15738_v7  ;;  %v15740_v39 = vld [vmem:[#allocation91_spill] sm:$0xff]  ;;  %v15743_v34 = vld [vmem:[#allocation88_spill] sm:$0xff] }
 0x359   : > { %15735 = vst [vmem:[#allocation79_spill] sm:$0xff] %v13717_v9  ;;  %v13722_v8 = vadd.f32 %v10954_v52, %v10953_v4  ;;  %v3132_v4 = vld [vmem:[#allocation2 + $0xb2] sm:$0xff]  ;;  %v3131_v52 = vld [vmem:[#allocation2 + $0xaa] sm:$0xff] }
 0x35a   : > { %9786 = vmatmul.mubr.msk.bf16.gmra.mrb[28].mxu1 %vm15739_vm3, %v13719_v32  ;;  %v6724_v31 = vadd.f32 %v10625_v20, %v15740_v39  ;;  %10020 = vmatmul.mubr.msk.bf16.gmra.mrb[92].mxu0 %vm15594_vm4, %v9782_v50  ;;  %v13733_v0 = vadd.f32 %v15743_v34, %v6721_v11  ;;  %v15747_v48 = vld [vmem:[#allocation24_spill] sm:$0xff]  ;;  %v3230_v20 = vld [vmem:[#allocation2 + $0xce] sm:$0xff] }
 0x35b   : > { %15737 = vst [vmem:[#allocation76_spill] sm:$0xff] %v13722_v8  ;;  %9789 = vmatprep.mubr.msk.bf16.mxu1 %vm15742_vm13, %v9788_v44  ;;  %10023 = vmatprep.mubr.msk.bf16.mxu0 %vm15746_vm2, %v10022_v5  ;;  %v3772_v39 = vld [vmem:[#allocation2 + $0xcf] sm:$0xff]  ;;  %v3229_v5 = vld [vmem:[#allocation2 + $0xc6] sm:$0xff] }
 0x35c   : > { %15744 = vst [vmem:[#allocation9_spill] sm:$0xff] %v13733_v0  ;;  %v10626_v21 = vpop.f32.mrb[180].mxu1  ;;  %v13738_v61 = vadd.f32 %v15747_v48, %v6724_v31  ;;  %v13742_v0 = vpack.c.bf16 %v3132_v4, %v3131_v52  ;;  %v9794_v48 = vpack.c.bf16 %v3230_v20, %v3229_v5  ;;  %v15758_v20 = vld [vmem:[#allocation29_spill] sm:$0xff] }
 0x35d   : > { %v10956_v36 = vpop.f32.mrb[244].mxu0  ;;  %v10627_v46 = vpop.f32.mrb[181].mxu1  ;;  %vm15759_vm2 = vnez %v15758_v20  ;;  %v15763_v20 = vld [vmem:[#allocation94_spill] sm:$0xff] }
 0x35e   : > { %15748 = vst [vmem:[#allocation10_spill] sm:$0xff] %v13738_v61  ;;  %v10628_v17 = vadd.f32 %v10627_v46, %v10626_v21  ;;  %v10957_v18 = vpop.f32.mrb[245].mxu0  ;;  %v10629_v50 = vpop.f32.mrb[182].mxu1  ;;  %v3771_v61 = vld [vmem:[#allocation2 + $0xc7] sm:$0xff] }
 0x35f   : > { %v13740_v8 = vadd.f32 %v10957_v18, %v10956_v36  ;;  %v10959_v11 = vpop.f32.mrb[246].mxu0  ;;  %v10630_v34 = vpop.f32.mrb[183].mxu1  ;;  %v15752_v21 = vld [vmem:[#allocation34_spill] sm:$0xff]  ;;  %v10028_v46 = vpack.c.bf16 %v3772_v39, %v3771_v61  ;;  %v15754_v36 = vld [vmem:[#allocation93_spill] sm:$0xff] }
 0x360   : > { %v6729_v9 = vadd.f32 %v10628_v17, %v15750_v41  ;;  %v10631_v7 = vadd.f32 %v10630_v34, %v10629_v50  ;;  %v10960_v31 = vpop.f32.mrb[247].mxu0  ;;  %vm15753_vm4 = vnez %v15752_v21  ;;  %v15756_v17 = vld [vmem:[#allocation95_spill] sm:$0xff]  ;;  %v15760_v34 = vld [vmem:[#allocation92_spill] sm:$0xff] }
 0x361   : > { %15749 = vst [vmem:[#allocation78_spill] sm:$0xff] %v13740_v8  ;;  %v13745_v1 = vadd.f32 %v10960_v31, %v10959_v11  ;;  %v3134_v11 = vld [vmem:[#allocation2 + $0xc2] sm:$0xff]  ;;  %v3133_v31 = vld [vmem:[#allocation2 + $0xba] sm:$0xff] }
 0x362   : > { %9792 = vmatmul.mubr.msk.bf16.gmra.mrb[32].mxu1 %vm15753_vm4, %v13742_v0  ;;  %v6732_v18 = vadd.f32 %v10631_v7, %v15754_v36  ;;  %10026 = vmatmul.mubr.msk.bf16.gmra.mrb[96].mxu0 %vm15604_vm11, %v9788_v44  ;;  %v13756_v50 = vadd.f32 %v15756_v17, %v6729_v9  ;;  %v3232_v7 = vld [vmem:[#allocation2 + $0xde] sm:$0xff] }
 0x363   : > { %15751 = vst [vmem:[#allocation15_spill] sm:$0xff] %v13745_v1  ;;  %9795 = vmatprep.mubr.msk.bf16.mxu1 %vm15626_vm9, %v9794_v48  ;;  %10029 = vmatprep.mubr.msk.bf16.mxu0 %vm15759_vm2, %v10028_v46  ;;  %v3774_v36 = vld [vmem:[#allocation2 + $0xdf] sm:$0xff]  ;;  %v3231_v46 = vld [vmem:[#allocation2 + $0xd6] sm:$0xff] }
 0x364   : > { %15757 = vst [vmem:[#allocation80_spill] sm:$0xff] %v13756_v50  ;;  %v10632_v52 = vpop.f32.mrb[184].mxu1  ;;  %v13761_v5 = vadd.f32 %v15760_v34, %v6732_v18  ;;  %v13765_v50 = vpack.c.bf16 %v3134_v11, %v3133_v31  ;;  %v9800_v34 = vpack.c.bf16 %v3232_v7, %v3231_v46  ;;  %v15769_v7 = vld [vmem:[#allocation32_spill] sm:$0xff]  ;;  %v15771_v31 = vld [vmem:[#allocation99_spill] sm:$0xff] }
 0x365   : > { %v10962_v61 = vpop.f32.mrb[248].mxu0  ;;  %v10633_v39 = vpop.f32.mrb[185].mxu1  ;;  %vm15770_vm2 = vnez %v15769_v7  ;;  %v3135_v46 = vld [vmem:[#allocation2 + $0xca] sm:$0xff]  ;;  %v15773_v7 = vld [vmem:[#allocation96_spill] sm:$0xff] }
 0x366   : > { %15761 = vst [vmem:[#allocation19_spill] sm:$0xff] %v13761_v5  ;;  %v10634_v41 = vadd.f32 %v10633_v39, %v10632_v52  ;;  %v10963_v3 = vpop.f32.mrb[249].mxu0  ;;  %v10635_v44 = vpop.f32.mrb[186].mxu1  ;;  %v3773_v5 = vld [vmem:[#allocation2 + $0xd7] sm:$0xff]  ;;  %v15765_v52 = vld [vmem:[#allocation37_spill] sm:$0xff] }
 0x367   : > { %v13763_v1 = vadd.f32 %v10963_v3, %v10962_v61  ;;  %v10965_v9 = vpop.f32.mrb[250].mxu0  ;;  %v10636_v17 = vpop.f32.mrb[187].mxu1  ;;  %vm15766_vm11 = vnez %v15765_v52  ;;  %v10034_v39 = vpack.c.bf16 %v3774_v36, %v3773_v5  ;;  %v15767_v61 = vld [vmem:[#allocation97_spill] sm:$0xff] }
 0x368   : > { %v6737_v8 = vadd.f32 %v10634_v41, %v15763_v20  ;;  %v10637_v21 = vadd.f32 %v10636_v17, %v10635_v44  ;;  %v10966_v18 = vpop.f32.mrb[251].mxu0  ;;  %v3136_v44 = vld [vmem:[#allocation2 + $0xd2] sm:$0xff] }
 0x369   : > { %15762 = vst [vmem:[#allocation12_spill] sm:$0xff] %v13763_v1  ;;  %v13768_v29 = vadd.f32 %v10966_v18, %v10965_v9  ;;  %v3776_v20 = vld [vmem:[#allocation2 + $0xef] sm:$0xff] }
 0x36a   : > { %9798 = vmatmul.mubr.msk.bf16.gmra.mrb[36].mxu1 %vm15766_vm11, %v13765_v50  ;;  %v6740_v3 = vadd.f32 %v10637_v21, %v15767_v61  ;;  %10032 = vmatmul.mubr.msk.bf16.gmra.mrb[100].mxu0 %vm15742_vm13, %v9794_v48  ;;  %v13779_v11 = vadd.f32 %v13461_v15, %v6737_v8  ;;  %v3234_v21 = vld [vmem:[#allocation2 + $0xee] sm:$0xff]  ;;  %v13788_v61 = vpack.c.bf16 %v3136_v44, %v3135_v46 }
 0x36b   : > { %15764 = vst [vmem:[#allocation22_spill] sm:$0xff] %v13768_v29  ;;  %9801 = vmatprep.mubr.msk.bf16.mxu1 %vm15637_vm8, %v9800_v34  ;;  %10035 = vmatprep.mubr.msk.bf16.mxu0 %vm15770_vm2, %v10034_v39  ;;  %v3233_v39 = vld [vmem:[#allocation2 + $0xe6] sm:$0xff]  ;;  %vm15777_vm2 = vnez %v15628_v13  ;;  %v3235_v13 = vld [vmem:[#allocation2 + $0xf6] sm:$0xff] }
 0x36c   : > { %15768 = vst [vmem:[#allocation81_spill] sm:$0xff] %v13779_v11  ;;  %v10638_v41 = vpop.f32.mrb[188].mxu1  ;;  %v13784_v9 = vadd.f32 %v15771_v31, %v6740_v3  ;;  %v9806_v31 = vpack.c.bf16 %v3234_v21, %v3233_v39 }
 0x36d   : > { %v10968_v5 = vpop.f32.mrb[252].mxu0  ;;  %v10639_v36 = vpop.f32.mrb[189].mxu1 }
 0x36e   : > { %15772 = vst [vmem:[#allocation16_spill] sm:$0xff] %v13784_v9  ;;  %v10640_v17 = vadd.f32 %v10639_v36, %v10638_v41  ;;  %v10969_v42 = vpop.f32.mrb[253].mxu0  ;;  %v10641_v48 = vpop.f32.mrb[190].mxu1  ;;  %v3775_v9 = vld [vmem:[#allocation2 + $0xe7] sm:$0xff] }
 0x36f   : > { %v13786_v18 = vadd.f32 %v10969_v42, %v10968_v5  ;;  %v10971_v15 = vpop.f32.mrb[254].mxu0  ;;  %v10642_v8 = vpop.f32.mrb[191].mxu1  ;;  %v15774_v41 = vld [vmem:[#allocation42_spill] sm:$0xff]  ;;  %v10040_v36 = vpack.c.bf16 %v3776_v20, %v3775_v9 }
 0x370   : > { %v6745_v11 = vadd.f32 %v10640_v17, %v15773_v7  ;;  %v10643_v29 = vadd.f32 %v10642_v8, %v10641_v48  ;;  %v10972_v3 = vpop.f32.mrb[255].mxu0  ;;  %vm15775_vm13 = vnez %v15774_v41  ;;  %v15776_v5 = vld [vmem:[#allocation98_spill] sm:$0xff]  ;;  %v3778_v8 = vld [vmem:[#allocation2 + $0xff] sm:$0xff] }
 0x371   : > { %v13791_v1 = vadd.f32 %v10972_v3, %v10971_v15  ;;  %v3138_v17 = vld [vmem:[#allocation2 + $0xe2] sm:$0xff]  ;;  %v3137_v15 = vld [vmem:[#allocation2 + $0xda] sm:$0xff] }
 0x372   : > { %9804 = vmatmul.mubr.msk.bf16.gmra.mrb[40].mxu1 %vm15775_vm13, %v13788_v61  ;;  %v6748_v42 = vadd.f32 %v10643_v29, %v15776_v5  ;;  %10038 = vmatmul.mubr.msk.bf16.gmra.mrb[104].mxu0 %vm15626_vm9, %v9800_v34  ;;  %v13802_v44 = vadd.f32 %v13479_v63, %v6745_v11  ;;  %v3236_v29 = vld [vmem:[#allocation2 + $0xfe] sm:$0xff]  ;;  %v13811_v7 = vpack.c.bf16 %v3138_v17, %v3137_v15 }
 0x373   : > { %9807 = vmatprep.mubr.msk.bf16.mxu1 %vm15644_vm12, %v9806_v31  ;;  %10041 = vmatprep.mubr.msk.bf16.mxu0 %vm15777_vm2, %v10040_v36  ;;  %v9812_v5 = vpack.c.bf16 %v3236_v29, %v3235_v13  ;;  %vm15783_vm2 = vnez %v15528_v59  ;;  %v3140_v29 = vld [vmem:[#allocation2 + $0xf2] sm:$0xff]  ;;  %v3779_v13 = vld [vmem:[#allocation2 + $0x107] sm:$0xff] }
 0x374   : > { %v10772_v21 = vpop.f32.mrb[192].mxu1  ;;  %v13807_v48 = vadd.f32 %v13482_v45, %v6748_v42  ;;  %v3777_v42 = vld [vmem:[#allocation2 + $0xf7] sm:$0xff] }
 0x375   : > { %v10974_v9 = vpop.f32.mrb[0].mxu0  ;;  %v10773_v46 = vpop.f32.mrb[193].mxu1 }
 0x376   : > { %15778 = vst [vmem:[#allocation83_spill] sm:$0xff] %v13807_v48  ;;  %v10774_v20 = vadd.f32 %v10773_v46, %v10772_v21  ;;  %v10975_v4 = vpop.f32.mrb[1].mxu0  ;;  %v10775_v34 = vpop.f32.mrb[194].mxu1  ;;  %v15779_v21 = vld [vmem:[#allocation46_spill] sm:$0xff]  ;;  %v10046_v46 = vpack.c.bf16 %v3778_v8, %v3777_v42 }
 0x377   : > { %v13809_v39 = vadd.f32 %v10975_v4, %v10974_v9  ;;  %v10977_v63 = vpop.f32.mrb[2].mxu0  ;;  %v10776_v11 = vpop.f32.mrb[195].mxu1  ;;  %vm15780_vm9 = vnez %v15779_v21  ;;  %v15781_v9 = vld [vmem:[#allocation101_spill] sm:$0xff]  ;;  %v3238_v8 = vld [vmem:[#allocation2 + $0x10e] sm:$0xff] }
 0x378   : > { %v6947_v3 = vadd.f32 %v10774_v20, %v13492_v40  ;;  %v10777_v36 = vadd.f32 %v10776_v11, %v10775_v34  ;;  %v10978_v45 = vpop.f32.mrb[3].mxu0  ;;  %v3139_v11 = vld [vmem:[#allocation2 + $0xea] sm:$0xff] }
 0x379   : > { %v13814_v48 = vadd.f32 %v10978_v45, %v10977_v63  ;;  %v13834_v59 = vpack.c.bf16 %v3140_v29, %v3139_v11  ;;  %v3237_v42 = vld [vmem:[#allocation2 + $0x106] sm:$0xff]  ;;  %v3240_v11 = vld [vmem:[#allocation2 + $0x11e] sm:$0xff] }
 0x37a   : > { %9810 = vmatmul.mubr.msk.bf16.gmra.mrb[44].mxu1 %vm15780_vm9, %v13811_v7  ;;  %v6950_v4 = vadd.f32 %v10777_v36, %v15781_v9  ;;  %10044 = vmatmul.mubr.msk.bf16.gmra.mrb[108].mxu0 %vm15637_vm8, %v9806_v31  ;;  %v13825_v40 = vadd.f32 %v13497_v10, %v6947_v3  ;;  %v3780_v36 = vld [vmem:[#allocation2 + $0x10f] sm:$0xff] }
 0x37b   : > { %9813 = vmatprep.mubr.msk.bf16.mxu1 %vm15648_vm14, %v9812_v5  ;;  %10047 = vmatprep.mubr.msk.bf16.mxu0 %vm15783_vm2, %v10046_v46  ;;  %vm15790_vm2 = vnez %v15536_v27 }
 0x37c   : > { %15782 = vst [vmem:[#allocation85_spill] sm:$0xff] %v13825_v40  ;;  %v10778_v17 = vpop.f32.mrb[196].mxu1  ;;  %v13830_v20 = vadd.f32 %v13500_v12, %v6950_v4  ;;  %v9818_v4 = vpack.c.bf16 %v3238_v8, %v3237_v42  ;;  %v15788_v40 = vld [vmem:[#allocation103_spill] sm:$0xff]  ;;  %v3142_v8 = vld [vmem:[#allocation2 + $0x102] sm:$0xff] }
 0x37d   : > { %v11108_v34 = vpop.f32.mrb[4].mxu0  ;;  %v10779_v15 = vpop.f32.mrb[197].mxu1 }
 0x37e   : > { %15784 = vst [vmem:[#allocation25_spill] sm:$0xff] %v13830_v20  ;;  %v10780_v63 = vadd.f32 %v10779_v15, %v10778_v17  ;;  %v11109_v49 = vpop.f32.mrb[5].mxu0  ;;  %v10781_v31 = vpop.f32.mrb[198].mxu1  ;;  %v15786_v17 = vld [vmem:[#allocation50_spill] sm:$0xff]  ;;  %v10052_v15 = vpack.c.bf16 %v3780_v36, %v3779_v13  ;;  %v3141_v36 = vld [vmem:[#allocation2 + $0xfa] sm:$0xff] }
 0x37f   : > { %v13832_v45 = vadd.f32 %v11109_v49, %v11108_v34  ;;  %v11111_v10 = vpop.f32.mrb[6].mxu0  ;;  %v10782_v3 = vpop.f32.mrb[199].mxu1  ;;  %vm15787_vm8 = vnez %v15786_v17 }
 0x380   : > { %v6955_v46 = vadd.f32 %v10780_v63, %v13510_v30  ;;  %v10783_v12 = vadd.f32 %v10782_v3, %v10781_v31  ;;  %v11112_v9 = vpop.f32.mrb[7].mxu0  ;;  %v3782_v3 = vld [vmem:[#allocation2 + $0x11f] sm:$0xff] }
 0x381   : > { %v13837_v20 = vadd.f32 %v11112_v9, %v11111_v10  ;;  %v3781_v10 = vld [vmem:[#allocation2 + $0x117] sm:$0xff] }
 0x382   : > { %9816 = vmatmul.mubr.msk.bf16.gmra.mrb[48].mxu1 %vm15787_vm8, %v13834_v59  ;;  %v6958_v34 = vadd.f32 %v10783_v12, %v15788_v40  ;;  %10050 = vmatmul.mubr.msk.bf16.gmra.mrb[112].mxu0 %vm15644_vm12, %v9812_v5  ;;  %v13848_v30 = vadd.f32 %v13515_v25, %v6955_v46  ;;  %v3239_v40 = vld [vmem:[#allocation2 + $0x116] sm:$0xff]  ;;  %v13857_v46 = vpack.c.bf16 %v3142_v8, %v3141_v36 }
 0x383   : > { %15785 = vst [vmem:[#allocation82_spill] sm:$0xff] %v13837_v20  ;;  %9819 = vmatprep.mubr.msk.bf16.mxu1 %vm15651_vm7, %v9818_v4  ;;  %10053 = vmatprep.mubr.msk.bf16.mxu0 %vm15790_vm2, %v10052_v15  ;;  %v15793_v12 = vld [vmem:[#allocation100_spill] sm:$0xff]  ;;  %vm15798_vm2 = vnez %v15654_v60  ;;  %vm15800_vm8 = vnez %v15539_v23 }
 0x384   : > { %15789 = vst [vmem:[#allocation14_spill] sm:$0xff] %v13848_v30  ;;  %v13853_v63 = vadd.f32 %v13518_v14, %v6958_v34  ;;  %v9824_v34 = vpack.c.bf16 %v3240_v11, %v3239_v40  ;;  %v15797_v30 = vld [vmem:[#allocation102_spill] sm:$0xff]  ;;  %v3144_v11 = vld [vmem:[#allocation2 + $0x112] sm:$0xff] }
 0x385   : > { %v10784_v29 = vpop.f32.mrb[200].mxu1  ;;  %v11114_v49 = vpop.f32.mrb[8].mxu0  ;;  %v3143_v40 = vld [vmem:[#allocation2 + $0x10a] sm:$0xff] }
 0x386   : > { %15791 = vst [vmem:[#allocation20_spill] sm:$0xff] %v13853_v63  ;;  %v10785_v31 = vpop.f32.mrb[201].mxu1  ;;  %v11115_v5 = vpop.f32.mrb[9].mxu0 }
 0x387   : > { %v10786_v51 = vadd.f32 %v10785_v31, %v10784_v29  ;;  %v10787_v13 = vpop.f32.mrb[202].mxu1  ;;  %v13855_v25 = vadd.f32 %v11115_v5, %v11114_v49  ;;  %v11117_v42 = vpop.f32.mrb[10].mxu0  ;;  %v15795_v29 = vld [vmem:[#allocation53_spill] sm:$0xff]  ;;  %v10058_v31 = vpack.c.bf16 %v3782_v3, %v3781_v10 }
 0x388   : > { %v10788_v27 = vpop.f32.mrb[203].mxu1  ;;  %v11118_v15 = vpop.f32.mrb[11].mxu0  ;;  %vm15796_vm12 = vnez %v15795_v29  ;;  %v3783_v3 = vld [vmem:[#allocation2 + $0x127] sm:$0xff] }
 0x389   : > { %15792 = vst [vmem:[#allocation84_spill] sm:$0xff] %v13855_v25  ;;  %v6963_v9 = vadd.f32 %v10786_v51, %v15793_v12  ;;  %v10789_v14 = vadd.f32 %v10788_v27, %v10787_v13  ;;  %v13860_v63 = vadd.f32 %v11118_v15, %v11117_v42  ;;  %v3241_v13 = vld [vmem:[#allocation2 + $0x126] sm:$0xff]  ;;  %v3784_v42 = vld [vmem:[#allocation2 + $0x12f] sm:$0xff]  ;;  %v13880_v12 = vpack.c.bf16 %v3144_v11, %v3143_v40 }
 0x38a   : > { %9822 = vmatmul.mubr.msk.bf16.gmra.mrb[52].mxu1 %vm15796_vm12, %v13857_v46  ;;  %10056 = vmatmul.mubr.msk.bf16.gmra.mrb[116].mxu0 %vm15648_vm14, %v9818_v4  ;;  %v15810_v40 = vld [vmem:[#allocation107_spill] sm:$0xff] }
 0x38b   : > { %15794 = vst [vmem:[#allocation18_spill] sm:$0xff] %v13860_v63  ;;  %v6966_v20 = vadd.f32 %v10789_v14, %v15797_v30  ;;  %9825 = vmatprep.mubr.msk.bf16.mxu1 %vm15798_vm2, %v9824_v34  ;;  %v13871_v8 = vadd.f32 %v13536_v2, %v6963_v9  ;;  %10059 = vmatprep.mubr.msk.bf16.mxu0 %vm15800_vm8, %v10058_v31  ;;  %v15803_v9 = vld [vmem:[#allocation35_spill] sm:$0xff] }
 0x38d   : > { %15799 = vst [vmem:[#allocation28_spill] sm:$0xff] %v13871_v8  ;;  %v10790_v49 = vpop.f32.mrb[204].mxu1  ;;  %v13876_v51 = vadd.f32 %v13539_v56, %v6966_v20  ;;  %v11120_v5 = vpop.f32.mrb[12].mxu0  ;;  %v9830_v20 = vpack.c.bf16 %v3242_v57, %v3241_v13  ;;  %v3145_v13 = vld [vmem:[#allocation2 + $0x11a] sm:$0xff] }
 0x38e   : > { %v10791_v30 = vpop.f32.mrb[205].mxu1  ;;  %v11121_v36 = vpop.f32.mrb[13].mxu0 }
 0x38f   : > { %15801 = vst [vmem:[#allocation86_spill] sm:$0xff] %v13876_v51  ;;  %v10792_v4 = vadd.f32 %v10791_v30, %v10790_v49  ;;  %v10793_v10 = vpop.f32.mrb[206].mxu1  ;;  %v13878_v2 = vadd.f32 %v11121_v36, %v11120_v5  ;;  %v11123_v27 = vpop.f32.mrb[14].mxu0  ;;  %v15805_v51 = vld [vmem:[#allocation56_spill] sm:$0xff]  ;;  %v10064_v49 = vpack.c.bf16 %v3784_v42, %v3783_v3  ;;  %v15807_v30 = vld [vmem:[#allocation105_spill] sm:$0xff]  ;;  %v15808_v5 = vld [vmem:[#allocation55_spill] sm:$0xff] }
 0x390   : > { %v10794_v23 = vpop.f32.mrb[207].mxu1  ;;  %v11124_v56 = vpop.f32.mrb[15].mxu0  ;;  %vm15806_vm14 = vnez %v15805_v51  ;;  %vm15809_vm8 = vnez %v15808_v5  ;;  %v3146_v36 = vld [vmem:[#allocation2 + $0x122] sm:$0xff]  ;;  %v15814_v3 = vld [vmem:[#allocation104_spill] sm:$0xff] }
 0x391   : > { %15802 = vst [vmem:[#allocation27_spill] sm:$0xff] %v13878_v2  ;;  %v6971_v14 = vadd.f32 %v10792_v4, %v15803_v9  ;;  %v10795_v15 = vadd.f32 %v10794_v23, %v10793_v10  ;;  %v13883_v31 = vadd.f32 %v11124_v56, %v11123_v27  ;;  %v15812_v4 = vld [vmem:[#allocation51_spill] sm:$0xff]  ;;  %v3786_v27 = vld [vmem:[#allocation2 + $0x13f] sm:$0xff] }
 0x392   : > { %9828 = vmatmul.mubr.msk.bf16.gmra.mrb[56].mxu1 %vm15806_vm14, %v13880_v12  ;;  %10062 = vmatmul.mubr.msk.bf16.gmra.mrb[120].mxu0 %vm15651_vm7, %v9824_v34  ;;  %vm15813_vm12 = vnez %v15812_v4  ;;  %v3785_v10 = vld [vmem:[#allocation2 + $0x137] sm:$0xff]  ;;  %v3564_v34 = vld [vmem:[#allocation2 + $0x42] sm:$0xff]  ;;  %v13903_v4 = vpack.c.bf16 %v3146_v36, %v3145_v13 }
 0x393   : > { %15804 = vst [vmem:[#allocation21_spill] sm:$0xff] %v13883_v31  ;;  %v6974_v8 = vadd.f32 %v10795_v15, %v15807_v30  ;;  %9831 = vmatprep.mubr.msk.bf16.mxu1 %vm15809_vm8, %v9830_v20  ;;  %v13894_v11 = vadd.f32 %v15810_v40, %v6971_v14  ;;  %10065 = vmatprep.mubr.msk.bf16.mxu0 %vm15813_vm12, %v10064_v49  ;;  %v3563_v49 = vld [vmem:[#allocation2 + $0x3a] sm:$0xff]  ;;  %v15822_v13 = vld [vmem:[#allocation39_spill] sm:$0xff] }
 0x394   : > { %v15817_v31 = vld [vmem:[#allocation36_spill] sm:$0xff] }
 0x395   : > { %15811 = vst [vmem:[#allocation23_spill] sm:$0xff] %v13894_v11  ;;  %v10796_v57 = vpop.f32.mrb[208].mxu1  ;;  %v13899_v42 = vadd.f32 %v15814_v3, %v6974_v8  ;;  %v11126_v23 = vpop.f32.mrb[16].mxu0  ;;  %v10070_v11 = vpack.c.bf16 %v3786_v27, %v3785_v10  ;;  %v9884_v8 = vpack.c.bf16 %v3564_v34, %v3563_v49  ;;  %v3690_v10 = vld [vmem:[#allocation2 + $0x13e] sm:$0xff]  ;;  %v15826_v34 = vld [vmem:[#allocation38_spill] sm:$0xff]  ;;  %v11929_v49 = vld [vmem:[#allocation4 + $0x580] sm:$0xff]  }
 0x396   : > { %v10797_v58 = vpop.f32.mrb[209].mxu1  ;;  %v11127_v15 = vpop.f32.mrb[17].mxu0 }
 0x397   : > { %15815 = vst [vmem:[#allocation87_spill] sm:$0xff] %v13899_v42  ;;  %v10798_v9 = vadd.f32 %v10797_v58, %v10796_v57  ;;  %v10799_v56 = vpop.f32.mrb[210].mxu1  ;;  %v13901_v30 = vadd.f32 %v11127_v15, %v11126_v23  ;;  %v11129_v14 = vpop.f32.mrb[18].mxu0  ;;  %v15819_v42 = vld [vmem:[#allocation58_spill] sm:$0xff] }
 0x398   : > { %v10800_v40 = vpop.f32.mrb[211].mxu1  ;;  %v11130_v25 = vpop.f32.mrb[19].mxu0  ;;  %vm15820_vm7 = vnez %v15819_v42  ;;  %v15821_v57 = vld [vmem:[#allocation106_spill] sm:$0xff] }
 0x399   : > { %15816 = vst [vmem:[#allocation89_spill] sm:$0xff] %v13901_v30  ;;  %v6979_v2 = vadd.f32 %v10798_v9, %v15817_v31  ;;  %v10801_v63 = vadd.f32 %v10800_v40, %v10799_v56  ;;  %v13906_v3 = vadd.f32 %v11130_v25, %v11129_v14  ;;  %v15824_v31 = vld [vmem:[#allocation54_spill] sm:$0xff]  ;;  %v3689_v25 = vld [vmem:[#allocation2 + $0x136] sm:$0xff] }
 0x39a   : > { %9834 = vmatmul.mubr.msk.bf16.gmra.mrb[60].mxu1 %vm15820_vm7, %v13903_v4  ;;  %10068 = vmatmul.mubr.msk.bf16.gmra.mrb[124].mxu0 %vm15798_vm2, %v9830_v20  ;;  %vm15825_vm12 = vnez %v15824_v31  ;;  %v3468_v58 = vld [vmem:[#allocation2 + $0x41] sm:$0xff]  ;;  %v3467_v14 = vld [vmem:[#allocation2 + $0x39] sm:$0xff]  ;;  %v10073_v40 = vpack.c.bf16 %v3690_v10, %v3689_v25 }
 0x39b   : > { %15818 = vst [vmem:[#allocation91_spill] sm:$0xff] %v13906_v3  ;;  %v6982_v23 = vadd.f32 %v10801_v63, %v15821_v57  ;;  %9885 = vmatprep.mubr.msk.bf16.mxu1 %vm15674_vm6, %v9884_v8  ;;  %v13917_v36 = vadd.f32 %v15822_v13, %v6979_v2  ;;  %10071 = vmatprep.mubr.msk.bf16.mxu0 %vm15825_vm12, %v10070_v11  ;;  %v3566_v2 = vld [vmem:[#allocation2 + $0x52] sm:$0xff]  ;;  %v15833_v25 = vld [vmem:[#allocation41_spill] sm:$0xff]  ;;  %vm15876_vm12 = vnez %v15786_v17 }
 0x39c   : > { %v9887_v13 = vpack.c.bf16 %v3468_v58, %v3467_v14  ;;  %v15829_v31 = vld [vmem:[#allocation40_spill] sm:$0xff]  ;;  %v15834_v58 = vld [vmem:[#allocation45_spill] sm:$0xff] }
 0x39d   : > { %15823 = vst [vmem:[#allocation30_spill] sm:$0xff] %v13917_v36  ;;  %v10802_v27 = vpop.f32.mrb[212].mxu1  ;;  %v13922_v9 = vadd.f32 %v15826_v34, %v6982_v23  ;;  %v11132_v63 = vpop.f32.mrb[20].mxu0  ;;  %v3565_v23 = vld [vmem:[#allocation2 + $0x4a] sm:$0xff]  ;;  %v11932_v34 = vld [vmem:[#allocation4 + $0x5c8] sm:$0xff]  }
 0x39e   : > { %v10803_v15 = vpop.f32.mrb[213].mxu1  ;;  %v11133_v20 = vpop.f32.mrb[21].mxu0  ;;  %v3470_v14 = vld [vmem:[#allocation2 + $0x51] sm:$0xff] }
 0x39f   : > { %15827 = vst [vmem:[#allocation88_spill] sm:$0xff] %v13922_v9  ;;  %v10804_v60 = vadd.f32 %v10803_v15, %v10802_v27  ;;  %v10805_v56 = vpop.f32.mrb[214].mxu1  ;;  %v13924_v8 = vadd.f32 %v11133_v20, %v11132_v63  ;;  %v11135_v57 = vpop.f32.mrb[22].mxu0  ;;  %v15831_v27 = vld [vmem:[#allocation57_spill] sm:$0xff]  ;;  %v9890_v15 = vpack.c.bf16 %v3566_v2, %v3565_v23  ;;  %v11933_v63 = vld [vmem:[#allocation4 + $0x588] sm:$0xff]  }
 0x3a0   : > { %v10806_v11 = vpop.f32.mrb[215].mxu1  ;;  %v11136_v30 = vpop.f32.mrb[23].mxu0  ;;  %vm15832_vm2 = vnez %v15831_v27  ;;  %v15837_v2 = vld [vmem:[#allocation49_spill] sm:$0xff] }
 0x3a1   : > { %15828 = vst [vmem:[#allocation26_spill] sm:$0xff] %v13924_v8  ;;  %v6987_v36 = vadd.f32 %v10804_v60, %v15829_v31  ;;  %v10807_v3 = vadd.f32 %v10806_v11, %v10805_v56  ;;  %v13927_v9 = vadd.f32 %v11136_v30, %v11135_v57  ;;  %v11934_v30 = vld [vmem:[#allocation4 + $0x5d0] sm:$0xff]   ;;  %v4016_v31 = vld [vmem:[#allocation2 + $0x72] sm:$0xff] }
 0x3a2   : > { %9888 = vmatmul.mubr.msk.bf16.vlgmr.msra.gmra.mrb[64].mxu1 %vm15832_vm2, %v9887_v13  ;;  %10074 = vmatmul.mubr.msk.bf16.gmra.mrb[128].mxu0 %vm15809_vm8, %v10073_v40  ;;  %v3469_v13 = vld [vmem:[#allocation2 + $0x49] sm:$0xff] }
 0x3a3   : > { %15830 = vst [vmem:[#allocation24_spill] sm:$0xff] %v13927_v9  ;;  %v6990_v10 = vadd.f32 %v10807_v3, %v15833_v25  ;;  %11429 = vmatpush3.bf16.msra.mxu1 %v11929_v49  ;;  %v13935_v20 = vadd.f32 %v15834_v58, %v6987_v36  ;;  %9891 = vmatprep.mubr.msk.bf16.mxu1 %vm15685_vm0, %v9890_v15  ;;  %v4014_v49 = vld [vmem:[#allocation2 + $0x62] sm:$0xff]  ;;  %v4013_v58 = vld [vmem:[#allocation2 + $0x5a] sm:$0xff] }
 0x3a4   : > { %11664 = vmatprep.mubr.msk.bf16.mxu0 %vm15674_vm6, %v9890_v15  ;;  %11430 = vmatprep.subr.bf16.mxu1 %v11932_v34  ;;  %v13946_v25 = vpack.c.bf16 %v3470_v14, %v3469_v13  ;;  %v11935_v34 = vld [vmem:[#allocation4 + $0x590] sm:$0xff]   ;;  %v10127_v9 = vpack.c.bf16 %v4014_v49, %v4013_v58 }
 0x3a5   : > { %15835 = vst [vmem:[#allocation90_spill] sm:$0xff] %v13935_v20  ;;  %v10808_v56 = vpop.f32.mrb[216].mxu1  ;;  %v13942_v3 = vadd.f32 %v15837_v2, %v6990_v10  ;;  %v11138_v5 = vpop.f32.mrb[24].mxu0  ;;  %v15839_v10 = vld [vmem:[#allocation52_spill] sm:$0xff] }
 0x3a6   : > { %v10809_v40 = vpop.f32.mrb[217].mxu1  ;;  %v11139_v11 = vpop.f32.mrb[25].mxu0 }
 0x3a7   : > { %15838 = vst [vmem:[#allocation93_spill] sm:$0xff] %v13942_v3  ;;  %v10810_v57 = vadd.f32 %v10809_v40, %v10808_v56  ;;  %v10811_v36 = vpop.f32.mrb[218].mxu1  ;;  %11431 = vmatpush3.bf16.msra.mxu1 %v11933_v63  ;;  %v13944_v23 = vadd.f32 %v11139_v11, %v11138_v5  ;;  %v11141_v28 = vpop.f32.mrb[26].mxu0  ;;  %v4015_v56 = vld [vmem:[#allocation2 + $0x6a] sm:$0xff]  ;;  %v15842_v11 = vld [vmem:[#allocation61_spill] sm:$0xff] }
 0x3a8   : > { %v10812_v15 = vpop.f32.mrb[219].mxu1  ;;  %11432 = vmatprep.subr.bf16.mxu1 %v11934_v30  ;;  %v11142_v20 = vpop.f32.mrb[27].mxu0  ;;  %v11936_v40 = vld [vmem:[#allocation4 + $0x5d8] sm:$0xff]   ;;  %v15840_v63 = vld [vmem:[#allocation59_spill] sm:$0xff]  ;;  %v10130_v5 = vpack.c.bf16 %v4016_v31, %v4015_v56 }
 0x3a9   : > { %v6995_v2 = vadd.f32 %v10810_v57, %v15839_v10  ;;  %v10813_v3 = vadd.f32 %v10812_v15, %v10811_v36  ;;  %v13949_v8 = vadd.f32 %v11142_v20, %v11141_v28  ;;  %vm15841_vm6 = vnez %v15840_v63  ;;  %v11937_v20 = vld [vmem:[#allocation4 + $0x598] sm:$0xff]   ;;  %v11938_v36 = vld [vmem:[#allocation4 + $0x5e0] sm:$0xff]  }
 0x3aa   : > { %9894 = vmatmul.mubr.msk.bf16.gmra.mrb[68].mxu1 %vm15841_vm6, %v13946_v25  ;;  %11665 = vmatmul.mubr.msk.bf16.vlgmr.msra.gmra.mrb[132].mxu0 %vm15685_vm0, %v10127_v9  ;;  %v3472_v57 = vld [vmem:[#allocation2 + $0x61] sm:$0xff]  ;;  %v11939_v56 = vld [vmem:[#allocation4 + $0x5a0] sm:$0xff]  }
 0x3ab   : > { %v6998_v14 = vadd.f32 %v10813_v3, %v15842_v11  ;;  %9897 = vmatprep.mubr.msk.bf16.mxu1 %vm15695_vm5, %v10127_v9  ;;  %v13960_v30 = vadd.f32 %v13614_v38, %v6995_v2  ;;  %11668 = vmatprep.mubr.msk.bf16.mxu0 %vm15695_vm5, %v10130_v5  ;;  %v4018_v31 = vld [vmem:[#allocation2 + $0x82] sm:$0xff]  ;;  %v3471_v38 = vld [vmem:[#allocation2 + $0x59] sm:$0xff] }
 0x3ac   : > { %11433 = vmatpush3.bf16.msra.mxu1 %v11935_v34  ;;  %v13969_v34 = vpack.c.bf16 %v3472_v57, %v3471_v38  ;;  %v4017_v2 = vld [vmem:[#allocation2 + $0x7a] sm:$0xff] }
 0x3ad   : > { %v10814_v49 = vpop.f32.mrb[220].mxu1  ;;  %11434 = vmatprep.subr.bf16.mxu1 %v11936_v40  ;;  %v13965_v3 = vadd.f32 %v13617_v35, %v6998_v14  ;;  %v11144_v60 = vpop.f32.mrb[28].mxu0  ;;  %v10133_v14 = vpack.c.bf16 %v4018_v31, %v4017_v2  ;;  %v11942_v31 = vld [vmem:[#allocation4 + $0x5f0] sm:$0xff]  }
 0x3ae   : > { %v10815_v13 = vpop.f32.mrb[221].mxu1  ;;  %v11145_v9 = vpop.f32.mrb[29].mxu0  ;;  %v11943_v2 = vld [vmem:[#allocation4 + $0x5b0] sm:$0xff]  }
 0x3af   : > { %15843 = vst [vmem:[#allocation33_spill] sm:$0xff] %v13965_v3  ;;  %v10816_v28 = vadd.f32 %v10815_v13, %v10814_v49  ;;  %v10817_v15 = vpop.f32.mrb[222].mxu1  ;;  %v13967_v58 = vadd.f32 %v11145_v9, %v11144_v60  ;;  %v11147_v24 = vpop.f32.mrb[30].mxu0  ;;  %v11940_v3 = vld [vmem:[#allocation4 + $0x5e8] sm:$0xff]  }
 0x3b0   : > { %v10818_v10 = vpop.f32.mrb[223].mxu1  ;;  %11435 = vmatpush3.bf16.msra.mxu1 %v11937_v20  ;;  %v11148_v11 = vpop.f32.mrb[31].mxu0  ;;  %v15844_v13 = vld [vmem:[#allocation60_spill] sm:$0xff] }
 0x3b1   : > { %v7003_v40 = vadd.f32 %v10816_v28, %v13627_v54  ;;  %v10819_v35 = vadd.f32 %v10818_v10, %v10817_v15  ;;  %11436 = vmatprep.subr.bf16.mxu1 %v11938_v36  ;;  %v13972_v49 = vadd.f32 %v11148_v11, %v11147_v24  ;;  %vm15845_vm0 = vnez %v15844_v13  ;;  %v11941_v20 = vld [vmem:[#allocation4 + $0x5a8] sm:$0xff]   ;;  %v15846_v11 = vld [vmem:[#allocation62_spill] sm:$0xff] }
 0x3b2   : > { %9900 = vmatmul.mubr.msk.bf16.gmra.mrb[72].mxu1 %vm15845_vm0, %v13969_v34  ;;  %11669 = vmatmul.mubr.msk.bf16.gmra.mrb[136].mxu0 %vm15699_vm10, %v10133_v14  ;;  %v3474_v36 = vld [vmem:[#allocation2 + $0x71] sm:$0xff]  ;;  %vm15847_vm5 = vnez %v15846_v11 }
 0x3b3   : > { %v7006_v60 = vadd.f32 %v10819_v35, %v13632_v22  ;;  %9903 = vmatprep.mubr.msk.bf16.mxu1 %vm15699_vm10, %v10130_v5  ;;  %v13983_v54 = vadd.f32 %v13634_v16, %v7003_v40  ;;  %11672 = vmatprep.mubr.msk.bf16.mxu0 %vm15703_vm15, %v13696_v43  ;;  %v3473_v16 = vld [vmem:[#allocation2 + $0x69] sm:$0xff]  ;;  %vm15848_vm10 = vnez %v15725_v47  ;;  %v3479_v47 = vld [vmem:[#allocation2 + $0x99] sm:$0xff] }
 0x3b4   : > { %11437 = vmatpush3.bf16.msra.mxu1 %v11939_v56  ;;  %v13993_v43 = vpack.c.bf16 %v3474_v36, %v3473_v16  ;;  %v3476_v36 = vld [vmem:[#allocation2 + $0x81] sm:$0xff]  ;;  %v3573_v16 = vld [vmem:[#allocation2 + $0x8a] sm:$0xff] }
 0x3b5   : > { %v10820_v57 = vpop.f32.mrb[224].mxu1  ;;  %11438 = vmatprep.subr.bf16.mxu1 %v11940_v3  ;;  %v13989_v22 = vadd.f32 %v13637_v62, %v7006_v60  ;;  %v11150_v28 = vpop.f32.mrb[32].mxu0  ;;  %v11944_v62 = vld [vmem:[#allocation4 + $0x5f8] sm:$0xff]  }
 0x3b6   : > { %v10821_v9 = vpop.f32.mrb[225].mxu1  ;;  %v11151_v5 = vpop.f32.mrb[33].mxu0 }
 0x3b7   : > { %v10822_v33 = vadd.f32 %v10821_v9, %v10820_v57  ;;  %v10823_v15 = vpop.f32.mrb[226].mxu1  ;;  %v13991_v38 = vadd.f32 %v11151_v5, %v11150_v28  ;;  %v11153_v24 = vpop.f32.mrb[34].mxu0  ;;  %v3574_v28 = vld [vmem:[#allocation2 + $0x92] sm:$0xff] }
 0x3b8   : > { %v10824_v10 = vpop.f32.mrb[227].mxu1  ;;  %11439 = vmatpush3.bf16.msra.mxu1 %v11941_v20  ;;  %v11154_v40 = vpop.f32.mrb[35].mxu0  ;;  %v11945_v20 = vld [vmem:[#allocation4 + $0x5b8] sm:$0xff]  }
 0x3b9   : > { %v7011_v3 = vadd.f32 %v10822_v33, %v13647_v6  ;;  %v10825_v56 = vadd.f32 %v10824_v10, %v10823_v15  ;;  %11440 = vmatprep.subr.bf16.mxu1 %v11942_v31  ;;  %v13996_v35 = vadd.f32 %v11154_v40, %v11153_v24  ;;  %v15849_v24 = vld [vmem:[#allocation8_spill] sm:$0xff]  ;;  %v15850_v40 = vld [vmem:[#allocation63_spill] sm:$0xff] }
 0x3ba   : > { %9906 = vmatmul.mubr.msk.bf16.gmra.mrb[76].mxu1 %vm15847_vm5, %v13993_v43  ;;  %11673 = vmatmul.mubr.msk.bf16.gmra.mrb[140].mxu0 %vm15714_vm1, %v13719_v32 }
 0x3bb   : > { %v7014_v60 = vadd.f32 %v10825_v56, %v13652_v53  ;;  %9909 = vmatprep.mubr.msk.bf16.mxu1 %vm15703_vm15, %v10133_v14  ;;  %v14008_v6 = vadd.f32 %v13654_v55, %v7011_v3  ;;  %11676 = vmatprep.mubr.msk.bf16.mxu0 %vm15848_vm10, %v13742_v0  ;;  %v3475_v55 = vld [vmem:[#allocation2 + $0x79] sm:$0xff]  ;;  %v9914_v3 = vpack.c.bf16 %v3574_v28, %v3573_v16  ;;  %v3478_v28 = vld [vmem:[#allocation2 + $0x91] sm:$0xff] }
 0x3bc   : > { %11441 = vmatpush3.bf16.msra.mxu1 %v11943_v2  ;;  %v14018_v0 = vpack.c.bf16 %v3476_v36, %v3475_v55  ;;  %vm15851_vm15 = vnez %v15850_v40 }
 0x3bd   : > { %v10826_v57 = vpop.f32.mrb[228].mxu1  ;;  %11442 = vmatprep.subr.bf16.mxu1 %v11944_v62  ;;  %v14014_v53 = vadd.f32 %v13657_v37, %v7014_v60  ;;  %v11156_v31 = vpop.f32.mrb[36].mxu0  ;;  %v15852_v62 = vld [vmem:[#allocation44_spill] sm:$0xff] }
 0x3be   : > { %v10827_v32 = vpop.f32.mrb[229].mxu1  ;;  %v11157_v14 = vpop.f32.mrb[37].mxu0 }
 0x3bf   : > { %v10828_v26 = vadd.f32 %v10827_v32, %v10826_v57  ;;  %v10829_v9 = vpop.f32.mrb[230].mxu1  ;;  %v14016_v33 = vadd.f32 %v11157_v14, %v11156_v31  ;;  %v11159_v5 = vpop.f32.mrb[38].mxu0  ;;  %v3481_v57 = vld [vmem:[#allocation2 + $0xa9] sm:$0xff]  ;;  %v3483_v31 = vld [vmem:[#allocation2 + $0xb9] sm:$0xff] }
 0x3c0   : > { %v10830_v15 = vpop.f32.mrb[231].mxu1  ;;  %11443 = vmatpush3.bf16.msra.mxu1 %v11945_v20  ;;  %v11160_v37 = vpop.f32.mrb[39].mxu0  ;;  %v15854_v20 = vld [vmem:[#allocation43_spill] sm:$0xff] }
 0x3c1   : > { %v7019_v10 = vadd.f32 %v10828_v26, %v15849_v24  ;;  %v10831_v2 = vadd.f32 %v10830_v15, %v10829_v9  ;;  %v14021_v56 = vadd.f32 %v11160_v37, %v11159_v5  ;;  %v15857_v26 = vld [vmem:[#allocation47_spill] sm:$0xff]  ;;  %v3576_v5 = vld [vmem:[#allocation2 + $0xa2] sm:$0xff]  ;;  %v14043_v37 = vpack.c.bf16 %v3478_v28, %v3477_v19  ;;  %v15864_v28 = vld [vmem:[#allocation48_spill] sm:$0xff] }
 0x3c2   : > { %9912 = vmatmul.mubr.msk.bf16.gmra.mrb[80].mxu1 %vm15851_vm15, %v14018_v0  ;;  %11677 = vmatmul.mubr.msk.bf16.gmra.mrb[144].mxu0 %vm15739_vm3, %v13765_v50 }
 0x3c3   : > { %v7022_v60 = vadd.f32 %v10831_v2, %v15852_v62  ;;  %9915 = vmatprep.mubr.msk.bf16.mxu1 %vm15714_vm1, %v9914_v3  ;;  %v14033_v36 = vadd.f32 %v15854_v20, %v7019_v10  ;;  %11680 = vmatprep.mubr.msk.bf16.mxu0 %vm15753_vm4, %v13788_v61  ;;  %v3575_v3 = vld [vmem:[#allocation2 + $0x9a] sm:$0xff] }
 0x3c4   : > { %v15859_v61 = vld [vmem:[#allocation17_spill] sm:$0xff] }
 0x3c5   : > { %15855 = vst [vmem:[#allocation95_spill] sm:$0xff] %v14033_v36  ;;  %v10832_v32 = vpop.f32.mrb[232].mxu1  ;;  %v14039_v14 = vadd.f32 %v15857_v26, %v7022_v60  ;;  %v11162_v9 = vpop.f32.mrb[40].mxu0  ;;  %v9920_v60 = vpack.c.bf16 %v3576_v5, %v3575_v3  ;;  %v3480_v5 = vld [vmem:[#allocation2 + $0xa1] sm:$0xff] }
 0x3c6   : > { %v10833_v55 = vpop.f32.mrb[233].mxu1  ;;  %v11163_v50 = vpop.f32.mrb[41].mxu0 }
 0x3c7   : > { %15858 = vst [vmem:[#allocation29_spill] sm:$0xff] %v14039_v14  ;;  %v10834_v15 = vadd.f32 %v10833_v55, %v10832_v32  ;;  %v10835_v16 = vpop.f32.mrb[234].mxu1  ;;  %v14041_v24 = vadd.f32 %v11163_v50, %v11162_v9  ;;  %v11165_v10 = vpop.f32.mrb[42].mxu0  ;;  %v15861_v14 = vld [vmem:[#allocation64_spill] sm:$0xff]  ;;  %v15863_v32 = vld [vmem:[#allocation11_spill] sm:$0xff] }
 0x3c8   : > { %v10836_v2 = vpop.f32.mrb[235].mxu1  ;;  %v11166_v36 = vpop.f32.mrb[43].mxu0  ;;  %vm15862_vm1 = vnez %v15861_v14 }
 0x3c9   : > { %v7027_v62 = vadd.f32 %v10834_v15, %v15859_v61  ;;  %v10837_v20 = vadd.f32 %v10836_v2, %v10835_v16  ;;  %v14046_v26 = vadd.f32 %v11166_v36, %v11165_v10  ;;  %v15866_v15 = vld [vmem:[#allocation7_spill] sm:$0xff] }
 0x3ca   : > { %9918 = vmatmul.mubr.msk.bf16.gmra.mrb[84].mxu1 %vm15862_vm1, %v14043_v37  ;;  %11681 = vmatmul.mubr.msk.bf16.gmra.mrb[148].mxu0 %vm15766_vm11, %v13811_v7  ;;  %v3578_v10 = vld [vmem:[#allocation2 + $0xb2] sm:$0xff] }
 0x3cb   : > { %15860 = vst [vmem:[#allocation92_spill] sm:$0xff] %v14046_v26  ;;  %v7030_v55 = vadd.f32 %v10837_v20, %v15863_v32  ;;  %9921 = vmatprep.mubr.msk.bf16.mxu1 %vm15848_vm10, %v9920_v60  ;;  %v14058_v9 = vadd.f32 %v15864_v28, %v7027_v62  ;;  %11684 = vmatprep.mubr.msk.bf16.mxu0 %vm15775_vm13, %v13834_v59  ;;  %v3577_v32 = vld [vmem:[#allocation2 + $0xaa] sm:$0xff]  ;;  %vm15885_vm10 = vnez %v15795_v29 }
 0x3cc   : > { %v14068_v60 = vpack.c.bf16 %v3480_v5, %v3479_v47  ;;  %v15869_v59 = vld [vmem:[#allocation75_spill] sm:$0xff]  ;;  %v3580_v47 = vld [vmem:[#allocation2 + $0xc2] sm:$0xff] }
 0x3cd   : > { %15865 = vst [vmem:[#allocation94_spill] sm:$0xff] %v14058_v9  ;;  %v10838_v36 = vpop.f32.mrb[236].mxu1  ;;  %v14064_v50 = vadd.f32 %v15866_v15, %v7030_v55  ;;  %v11168_v16 = vpop.f32.mrb[44].mxu0  ;;  %v9926_v55 = vpack.c.bf16 %v3578_v10, %v3577_v32  ;;  %v15874_v5 = vld [vmem:[#allocation79_spill] sm:$0xff] }
 0x3ce   : > { %v10839_v19 = vpop.f32.mrb[237].mxu1  ;;  %v11169_v7 = vpop.f32.mrb[45].mxu0  ;;  %v3482_v10 = vld [vmem:[#allocation2 + $0xb1] sm:$0xff] }
 0x3cf   : > { %15867 = vst [vmem:[#allocation37_spill] sm:$0xff] %v14064_v50  ;;  %v10840_v2 = vadd.f32 %v10839_v19, %v10838_v36  ;;  %v10841_v3 = vpop.f32.mrb[238].mxu1  ;;  %v14066_v61 = vadd.f32 %v11169_v7, %v11168_v16  ;;  %v11171_v62 = vpop.f32.mrb[46].mxu0  ;;  %v15871_v50 = vld [vmem:[#allocation65_spill] sm:$0xff]  ;;  %v3593_v32 = vld [vmem:[#allocation2 + $0x12a] sm:$0xff] }
 0x3d0   : > { %v10842_v20 = vpop.f32.mrb[239].mxu1  ;;  %v11172_v26 = vpop.f32.mrb[47].mxu0  ;;  %vm15872_vm8 = vnez %v15871_v50  ;;  %v15873_v36 = vld [vmem:[#allocation77_spill] sm:$0xff] }
 0x3d1   : > { %15868 = vst [vmem:[#allocation97_spill] sm:$0xff] %v14066_v61  ;;  %v7035_v28 = vadd.f32 %v10840_v2, %v15869_v59  ;;  %v10843_v9 = vadd.f32 %v10842_v20, %v10841_v3  ;;  %v14071_v15 = vadd.f32 %v11172_v26, %v11171_v62  ;;  %v15877_v2 = vld [vmem:[#allocation76_spill] sm:$0xff] }
 0x3d2   : > { %9924 = vmatmul.mubr.msk.bf16.gmra.mrb[88].mxu1 %vm15872_vm8, %v14068_v60  ;;  %11685 = vmatmul.mubr.msk.bf16.gmra.mrb[152].mxu0 %vm15780_vm9, %v13857_v46  ;;  %v3594_v59 = vld [vmem:[#allocation2 + $0x132] sm:$0xff] }
 0x3d3   : > { %15870 = vst [vmem:[#allocation32_spill] sm:$0xff] %v14071_v15  ;;  %v7038_v19 = vadd.f32 %v10843_v9, %v15873_v36  ;;  %9927 = vmatprep.mubr.msk.bf16.mxu1 %vm15739_vm3, %v9926_v55  ;;  %v14083_v16 = vadd.f32 %v15874_v5, %v7035_v28  ;;  %11688 = vmatprep.mubr.msk.bf16.mxu0 %vm15876_vm12, %v13880_v12  ;;  %v15880_v15 = vld [vmem:[#allocation9_spill] sm:$0xff] }
 0x3d4   : > { %v14093_v5 = vpack.c.bf16 %v3482_v10, %v3481_v57 }
 0x3d5   : > { %15875 = vst [vmem:[#allocation99_spill] sm:$0xff] %v14083_v16  ;;  %v10844_v26 = vpop.f32.mrb[240].mxu1  ;;  %v14089_v7 = vadd.f32 %v15877_v2, %v7038_v19  ;;  %v11174_v9 = vpop.f32.mrb[48].mxu0  ;;  %v3579_v16 = vld [vmem:[#allocation2 + $0xba] sm:$0xff] }
 0x3d6   : > { %v10845_v3 = vpop.f32.mrb[241].mxu1  ;;  %v11175_v46 = vpop.f32.mrb[49].mxu0 }
 0x3d7   : > { %15878 = vst [vmem:[#allocation96_spill] sm:$0xff] %v14089_v7  ;;  %v10846_v62 = vadd.f32 %v10845_v3, %v10844_v26  ;;  %v10847_v20 = vpop.f32.mrb[242].mxu1  ;;  %v14091_v28 = vadd.f32 %v11175_v46, %v11174_v9  ;;  %v11177_v55 = vpop.f32.mrb[50].mxu0  ;;  %v9932_v7 = vpack.c.bf16 %v3580_v47, %v3579_v16  ;;  %v15882_v26 = vld [vmem:[#allocation66_spill] sm:$0xff]  ;;  %v14101_v3 = vpack.c.bf16 %v3594_v59, %v3593_v32  ;;  %v3582_v59 = vld [vmem:[#allocation2 + $0xd2] sm:$0xff] }
 0x3d8   : > { %v10848_v36 = vpop.f32.mrb[243].mxu1  ;;  %v11178_v2 = vpop.f32.mrb[51].mxu0  ;;  %vm15883_vm3 = vnez %v15882_v26  ;;  %v15884_v9 = vld [vmem:[#allocation10_spill] sm:$0xff] }
 0x3d9   : > { %15879 = vst [vmem:[#allocation42_spill] sm:$0xff] %v14091_v28  ;;  %v7043_v61 = vadd.f32 %v10846_v62, %v15880_v15  ;;  %v10849_v19 = vadd.f32 %v10848_v36, %v10847_v20  ;;  %v14096_v50 = vadd.f32 %v11178_v2, %v11177_v55  ;;  %v15886_v15 = vld [vmem:[#allocation78_spill] sm:$0xff]  ;;  %v15888_v62 = vld [vmem:[#allocation15_spill] sm:$0xff] }
 0x3da   : > { %9930 = vmatmul.mubr.msk.bf16.gmra.mrb[92].mxu1 %vm15883_vm3, %v14093_v5  ;;  %11689 = vmatmul.mubr.msk.bf16.gmra.mrb[156].mxu0 %vm15885_vm10, %v13903_v4  ;;  %v3484_v47 = vld [vmem:[#allocation2 + $0xc1] sm:$0xff] }
 0x3db   : > { %15881 = vst [vmem:[#allocation98_spill] sm:$0xff] %v14096_v50  ;;  %v7046_v46 = vadd.f32 %v10849_v19, %v15884_v9  ;;  %9933 = vmatprep.mubr.msk.bf16.mxu1 %vm15753_vm4, %v9932_v7  ;;  %v14110_v10 = vadd.f32 %v15886_v15, %v7043_v61  ;;  %11692 = vmatprep.mubr.msk.bf16.mxu0 %vm15806_vm14, %v14101_v3  ;;  %v3581_v15 = vld [vmem:[#allocation2 + $0xca] sm:$0xff] }
 0x3dc   : > { %v14120_v9 = vpack.c.bf16 %v3484_v47, %v3483_v31  ;;  %v3486_v31 = vld [vmem:[#allocation2 + $0xd1] sm:$0xff] }
 0x3dd   : > { %15887 = vst [vmem:[#allocation46_spill] sm:$0xff] %v14110_v10  ;;  %v10850_v16 = vpop.f32.mrb[244].mxu1  ;;  %v14116_v20 = vadd.f32 %v15888_v62, %v7046_v46  ;;  %v11180_v57 = vpop.f32.mrb[52].mxu0  ;;  %v15891_v10 = vld [vmem:[#allocation80_spill] sm:$0xff]  ;;  %v9938_v46 = vpack.c.bf16 %v3582_v59, %v3581_v15 }
 0x3de   : > { %v10851_v32 = vpop.f32.mrb[245].mxu1  ;;  %v11181_v36 = vpop.f32.mrb[53].mxu0 }
 0x3df   : > { %15889 = vst [vmem:[#allocation101_spill] sm:$0xff] %v14116_v20  ;;  %v10852_v55 = vadd.f32 %v10851_v32, %v10850_v16  ;;  %v10853_v19 = vpop.f32.mrb[246].mxu1  ;;  %v14118_v7 = vadd.f32 %v11181_v36, %v11180_v57  ;;  %v11183_v61 = vpop.f32.mrb[54].mxu0  ;;  %v15893_v20 = vld [vmem:[#allocation67_spill] sm:$0xff]  ;;  %v15896_v57 = vld [vmem:[#allocation12_spill] sm:$0xff] }
 0x3e0   : > { %v10854_v2 = vpop.f32.mrb[247].mxu1  ;;  %v11184_v26 = vpop.f32.mrb[55].mxu0  ;;  %vm15894_vm4 = vnez %v15893_v20  ;;  %v15895_v16 = vld [vmem:[#allocation19_spill] sm:$0xff] }
 0x3e1   : > { %15890 = vst [vmem:[#allocation50_spill] sm:$0xff] %v14118_v7  ;;  %v7051_v50 = vadd.f32 %v10852_v55, %v15891_v10  ;;  %v10855_v28 = vadd.f32 %v10854_v2, %v10853_v19  ;;  %v14123_v62 = vadd.f32 %v11184_v26, %v11183_v61  ;;  %v15898_v10 = vld [vmem:[#allocation22_spill] sm:$0xff] }
 0x3e2   : > { %9936 = vmatmul.mubr.msk.bf16.gmra.mrb[96].mxu1 %vm15894_vm4, %v14120_v9  ;;  %v3584_v19 = vld [vmem:[#allocation2 + $0xe2] sm:$0xff] }
 0x3e3   : > { %15892 = vst [vmem:[#allocation103_spill] sm:$0xff] %v14123_v62  ;;  %v7054_v32 = vadd.f32 %v10855_v28, %v15895_v16  ;;  %9939 = vmatprep.mubr.msk.bf16.mxu1 %vm15766_vm11, %v9938_v46  ;;  %v14132_v47 = vadd.f32 %v15896_v57, %v7051_v50  ;;  %v3485_v62 = vld [vmem:[#allocation2 + $0xc9] sm:$0xff]  ;;  %v3583_v50 = vld [vmem:[#allocation2 + $0xda] sm:$0xff] }
 0x3e4   : > { %v14139_v46 = vpack.c.bf16 %v3486_v31, %v3485_v62  ;;  %v15900_v16 = vld [vmem:[#allocation81_spill] sm:$0xff] }
 0x3e5   : > { %15897 = vst [vmem:[#allocation100_spill] sm:$0xff] %v14132_v47  ;;  %v10856_v36 = vpop.f32.mrb[248].mxu1  ;;  %v14135_v55 = vadd.f32 %v15898_v10, %v7054_v32  ;;  %v11186_v59 = vpop.f32.mrb[56].mxu0  ;;  %v9944_v32 = vpack.c.bf16 %v3584_v19, %v3583_v50  ;;  %v3487_v50 = vld [vmem:[#allocation2 + $0xd9] sm:$0xff] }
 0x3e6   : > { %v10857_v26 = vpop.f32.mrb[249].mxu1  ;;  %v11187_v2 = vpop.f32.mrb[57].mxu0 }
 0x3e7   : > { %15899 = vst [vmem:[#allocation53_spill] sm:$0xff] %v14135_v55  ;;  %v10858_v61 = vadd.f32 %v10857_v26, %v10856_v36  ;;  %v10859_v15 = vpop.f32.mrb[250].mxu1  ;;  %v14137_v7 = vadd.f32 %v11187_v2, %v11186_v59  ;;  %v11189_v28 = vpop.f32.mrb[58].mxu0  ;;  %v15901_v55 = vld [vmem:[#allocation68_spill] sm:$0xff]  ;;  %v3488_v59 = vld [vmem:[#allocation2 + $0xe1] sm:$0xff] }
 0x3e8   : > { %v10860_v52 = vpop.f32.mrb[251].mxu1  ;;  %v11190_v20 = vpop.f32.mrb[59].mxu0  ;;  %vm15902_vm11 = vnez %v15901_v55  ;;  %v15903_v36 = vld [vmem:[#allocation16_spill] sm:$0xff] }
 0x3e9   : > { %v7059_v57 = vadd.f32 %v10858_v61, %v15900_v16  ;;  %v10861_v47 = vadd.f32 %v10860_v52, %v10859_v15  ;;  %v14142_v10 = vadd.f32 %v11190_v20, %v11189_v28  ;;  %v3586_v2 = vld [vmem:[#allocation2 + $0xf2] sm:$0xff] }
 0x3ea   : > { %9942 = vmatmul.mubr.msk.bf16.gmra.mrb[100].mxu1 %vm15902_vm11, %v14139_v46 }
 0x3eb   : > { %v7062_v26 = vadd.f32 %v10861_v47, %v15903_v36  ;;  %9945 = vmatprep.mubr.msk.bf16.mxu1 %vm15775_vm13, %v9944_v32  ;;  %v14151_v62 = vadd.f32 %v13786_v18, %v7059_v57  ;;  %v14158_v32 = vpack.c.bf16 %v3488_v59, %v3487_v50  ;;  %v3585_v18 = vld [vmem:[#allocation2 + $0xea] sm:$0xff] }
 0x3ed   : > { %15904 = vst [vmem:[#allocation102_spill] sm:$0xff] %v14151_v62  ;;  %v10862_v31 = vpop.f32.mrb[252].mxu1  ;;  %v14154_v61 = vadd.f32 %v13791_v1, %v7062_v26  ;;  %v11192_v19 = vpop.f32.mrb[60].mxu0  ;;  %v9950_v1 = vpack.c.bf16 %v3586_v2, %v3585_v18 }
 0x3ee   : > { %v10863_v20 = vpop.f32.mrb[253].mxu1  ;;  %v11193_v28 = vpop.f32.mrb[61].mxu0 }
 0x3ef   : > { %15905 = vst [vmem:[#allocation35_spill] sm:$0xff] %v14154_v61  ;;  %v10864_v15 = vadd.f32 %v10863_v20, %v10862_v31  ;;  %v10865_v52 = vpop.f32.mrb[254].mxu1  ;;  %v14156_v16 = vadd.f32 %v11193_v28, %v11192_v19  ;;  %v11195_v47 = vpop.f32.mrb[62].mxu0  ;;  %v15907_v61 = vld [vmem:[#allocation69_spill] sm:$0xff]  ;;  %v15909_v31 = vld [vmem:[#allocation83_spill] sm:$0xff] }
 0x3f0   : > { %v10866_v41 = vpop.f32.mrb[255].mxu1  ;;  %v11196_v62 = vpop.f32.mrb[63].mxu0  ;;  %vm15908_vm13 = vnez %v15907_v61  ;;  %v3490_v28 = vld [vmem:[#allocation2 + $0xf1] sm:$0xff] }
 0x3f1   : > { %v7067_v57 = vadd.f32 %v10864_v15, %v13802_v44  ;;  %v10867_v36 = vadd.f32 %v10866_v41, %v10865_v52  ;;  %v14161_v26 = vadd.f32 %v11196_v62, %v11195_v47  ;;  %v3588_v15 = vld [vmem:[#allocation2 + $0x102] sm:$0xff] }
 0x3f2   : > { %9948 = vmatmul.mubr.msk.bf16.gmra.mrb[104].mxu1 %vm15908_vm13, %v14158_v32  ;;  %v3489_v41 = vld [vmem:[#allocation2 + $0xe9] sm:$0xff] }
 0x3f3   : > { %15906 = vst [vmem:[#allocation56_spill] sm:$0xff] %v14161_v26  ;;  %v7070_v20 = vadd.f32 %v10867_v36, %v15909_v31  ;;  %9951 = vmatprep.mubr.msk.bf16.mxu1 %vm15780_vm9, %v9950_v1  ;;  %v14170_v59 = vadd.f32 %v13809_v39, %v7067_v57  ;;  %v14177_v1 = vpack.c.bf16 %v3490_v28, %v3489_v41  ;;  %v3587_v39 = vld [vmem:[#allocation2 + $0xfa] sm:$0xff] }
 0x3f4   : > { %v15912_v57 = vld [vmem:[#allocation85_spill] sm:$0xff] }
 0x3f5   : > { %15910 = vst [vmem:[#allocation105_spill] sm:$0xff] %v14170_v59  ;;  %v10996_v19 = vpop.f32.mrb[0].mxu1  ;;  %v14173_v44 = vadd.f32 %v13814_v48, %v7070_v20  ;;  %v11198_v2 = vpop.f32.mrb[64].mxu0  ;;  %v9956_v48 = vpack.c.bf16 %v3588_v15, %v3587_v39  ;;  %v3491_v39 = vld [vmem:[#allocation2 + $0xf9] sm:$0xff] }
 0x3f6   : > { %v10997_v62 = vpop.f32.mrb[1].mxu1  ;;  %v11199_v50 = vpop.f32.mrb[65].mxu0 }
 0x3f7   : > { %15911 = vst [vmem:[#allocation55_spill] sm:$0xff] %v14173_v44  ;;  %v10998_v52 = vadd.f32 %v10997_v62, %v10996_v19  ;;  %v10999_v47 = vpop.f32.mrb[2].mxu1  ;;  %v14175_v18 = vadd.f32 %v11199_v50, %v11198_v2  ;;  %v11201_v36 = vpop.f32.mrb[66].mxu0  ;;  %v15914_v44 = vld [vmem:[#allocation70_spill] sm:$0xff]  ;;  %v15916_v19 = vld [vmem:[#allocation25_spill] sm:$0xff] }
 0x3f8   : > { %v11000_v21 = vpop.f32.mrb[3].mxu1  ;;  %v11202_v26 = vpop.f32.mrb[67].mxu0  ;;  %vm15915_vm9 = vnez %v15914_v44  ;;  %v3492_v50 = vld [vmem:[#allocation2 + $0x101] sm:$0xff] }
 0x3f9   : > { %v7269_v31 = vadd.f32 %v10998_v52, %v15912_v57  ;;  %v11001_v59 = vadd.f32 %v11000_v21, %v10999_v47  ;;  %v14180_v20 = vadd.f32 %v11202_v26, %v11201_v36  ;;  %v15918_v52 = vld [vmem:[#allocation82_spill] sm:$0xff]  ;;  %v14196_v17 = vpack.c.bf16 %v3492_v50, %v3491_v39 }
 0x3fa   : > { %9954 = vmatmul.mubr.msk.bf16.gmra.mrb[108].mxu1 %vm15915_vm9, %v14177_v1 }
 0x3fb   : > { %15913 = vst [vmem:[#allocation107_spill] sm:$0xff] %v14180_v20  ;;  %v7272_v62 = vadd.f32 %v11001_v59, %v15916_v19  ;;  %9957 = vmatprep.mubr.msk.bf16.mxu1 %vm15876_vm12, %v9956_v48  ;;  %v14189_v28 = vadd.f32 %v13832_v45, %v7269_v31  ;;  %v15920_v48 = vld [vmem:[#allocation14_spill] sm:$0xff] }
 0x3fd   : > { %15917 = vst [vmem:[#allocation51_spill] sm:$0xff] %v14189_v28  ;;  %v11002_v2 = vpop.f32.mrb[4].mxu1  ;;  %v14192_v47 = vadd.f32 %v15918_v52, %v7272_v62  ;;  %v11332_v15 = vpop.f32.mrb[68].mxu0  ;;  %v15922_v62 = vld [vmem:[#allocation71_spill] sm:$0xff] }
 0x3fe   : > { %v11003_v26 = vpop.f32.mrb[5].mxu1  ;;  %v11333_v36 = vpop.f32.mrb[69].mxu0  ;;  %vm15923_vm12 = vnez %v15922_v62 }
 0x3ff   : > { %v11004_v41 = vadd.f32 %v11003_v26, %v11002_v2  ;;  %v11005_v21 = vpop.f32.mrb[6].mxu1  ;;  %v14194_v57 = vadd.f32 %v11333_v36, %v11332_v15  ;;  %v11335_v59 = vpop.f32.mrb[70].mxu0  ;;  %v15924_v2 = vld [vmem:[#allocation20_spill] sm:$0xff]  ;;  %v3493_v36 = vld [vmem:[#allocation2 + $0x109] sm:$0xff] }
 0x400   : > { %v11006_v19 = vpop.f32.mrb[7].mxu1  ;;  %v11336_v28 = vpop.f32.mrb[71].mxu0  ;;  %v15925_v15 = vld [vmem:[#allocation84_spill] sm:$0xff] }
 0x401   : > { %15919 = vst [vmem:[#allocation104_spill] sm:$0xff] %v14194_v57  ;;  %v7277_v45 = vadd.f32 %v11004_v41, %v15920_v48  ;;  %v11007_v31 = vadd.f32 %v11006_v19, %v11005_v21  ;;  %v14199_v20 = vadd.f32 %v11336_v28, %v11335_v59  ;;  %v3494_v41 = vld [vmem:[#allocation2 + $0x111] sm:$0xff]  ;;  %v15927_v21 = vld [vmem:[#allocation18_spill] sm:$0xff] }
 0x402   : > { %9960 = vmatmul.mubr.msk.bf16.gmra.mrb[112].mxu1 %vm15923_vm12, %v14196_v17  ;;  %v14216_v29 = vpack.c.bf16 %v3494_v41, %v3493_v36  ;;  %v3495_v41 = vld [vmem:[#allocation2 + $0x119] sm:$0xff] }
 0x403   : > { %15921 = vst [vmem:[#allocation36_spill] sm:$0xff] %v14199_v20  ;;  %v7280_v52 = vadd.f32 %v11007_v31, %v15924_v2  ;;  %9963 = vmatprep.mubr.msk.bf16.mxu1 %vm15885_vm10, %v13880_v12  ;;  %v14209_v26 = vadd.f32 %v15925_v15, %v7277_v45  ;;  %v15930_v12 = vld [vmem:[#allocation28_spill] sm:$0xff] }
 0x405   : > { %15926 = vst [vmem:[#allocation58_spill] sm:$0xff] %v14209_v26  ;;  %v11008_v50 = vpop.f32.mrb[8].mxu1  ;;  %v14212_v39 = vadd.f32 %v15927_v21, %v7280_v52  ;;  %v11338_v28 = vpop.f32.mrb[72].mxu0  ;;  %v15932_v52 = vld [vmem:[#allocation72_spill] sm:$0xff]  ;;  %v15934_v21 = vld [vmem:[#allocation86_spill] sm:$0xff] }
 0x406   : > { %v11009_v59 = vpop.f32.mrb[9].mxu1  ;;  %v11339_v48 = vpop.f32.mrb[73].mxu0  ;;  %vm15933_vm10 = vnez %v15932_v52 }
 0x407   : > { %15928 = vst [vmem:[#allocation106_spill] sm:$0xff] %v14212_v39  ;;  %v11010_v19 = vadd.f32 %v11009_v59, %v11008_v50  ;;  %v11011_v20 = vpop.f32.mrb[10].mxu1  ;;  %v14214_v57 = vadd.f32 %v11339_v48, %v11338_v28  ;;  %v11341_v31 = vpop.f32.mrb[74].mxu0  ;;  %v15935_v28 = vld [vmem:[#allocation27_spill] sm:$0xff] }
 0x408   : > { %v11012_v2 = vpop.f32.mrb[11].mxu1  ;;  %v11342_v26 = vpop.f32.mrb[75].mxu0 }
 0x409   : > { %15929 = vst [vmem:[#allocation39_spill] sm:$0xff] %v14214_v57  ;;  %v7285_v45 = vadd.f32 %v11010_v19, %v15930_v12  ;;  %v11013_v15 = vadd.f32 %v11012_v2, %v11011_v20  ;;  %v14219_v62 = vadd.f32 %v11342_v26, %v11341_v31  ;;  %v3496_v19 = vld [vmem:[#allocation2 + $0x121] sm:$0xff] }
 0x40a   : > { %9966 = vmatmul.mubr.msk.bf16.gmra.mrb[116].mxu1 %vm15933_vm10, %v14216_v29  ;;  %v15937_v20 = vld [vmem:[#allocation21_spill] sm:$0xff]  ;;  %v14236_v51 = vpack.c.bf16 %v3496_v19, %v3495_v41 }
 0x40b   : > { %15931 = vst [vmem:[#allocation54_spill] sm:$0xff] %v14219_v62  ;;  %v7288_v50 = vadd.f32 %v11013_v15, %v15934_v21  ;;  %9969 = vmatprep.mubr.msk.bf16.mxu1 %vm15806_vm14, %v13903_v4  ;;  %v14229_v59 = vadd.f32 %v15935_v28, %v7285_v45  ;;  %v15941_v4 = vld [vmem:[#allocation23_spill] sm:$0xff]  ;;  %v15946_v41 = vld [vmem:[#allocation89_spill] sm:$0xff] }
 0x40c   : > { %15940 = vst [vmem:[#allocation41_spill] sm:$0xff] %v14236_v51 }
 0x40d   : > { %15936 = vst [vmem:[#allocation38_spill] sm:$0xff] %v14229_v59  ;;  %v11014_v36 = vpop.f32.mrb[12].mxu1  ;;  %v14232_v48 = vadd.f32 %v15937_v20, %v7288_v50  ;;  %v11344_v26 = vpop.f32.mrb[76].mxu0  ;;  %v15943_v50 = vld [vmem:[#allocation73_spill] sm:$0xff]  ;;  %v15945_v20 = vld [vmem:[#allocation87_spill] sm:$0xff] }
 0x40e   : > { %v11015_v31 = vpop.f32.mrb[13].mxu1  ;;  %v11345_v12 = vpop.f32.mrb[77].mxu0  ;;  %vm15944_vm14 = vnez %v15943_v50  ;;  %v15949_v50 = vld [vmem:[#allocation30_spill] sm:$0xff] }
 0x40f   : > { %15938 = vst [vmem:[#allocation40_spill] sm:$0xff] %v14232_v48  ;;  %v11016_v2 = vadd.f32 %v11015_v31, %v11014_v36  ;;  %v11017_v62 = vpop.f32.mrb[14].mxu1  ;;  %v14234_v57 = vadd.f32 %v11345_v12, %v11344_v26  ;;  %v11347_v15 = vpop.f32.mrb[78].mxu0  ;;  %v3497_v26 = vld [vmem:[#allocation2 + $0x129] sm:$0xff]  ;;  %v3498_v31 = vld [vmem:[#allocation2 + $0x131] sm:$0xff] }
 0x410   : > { %v11018_v21 = vpop.f32.mrb[15].mxu1  ;;  %v11348_v59 = vpop.f32.mrb[79].mxu0 }
 0x411   : > { %15939 = vst [vmem:[#allocation57_spill] sm:$0xff] %v14234_v57  ;;  %v7293_v45 = vadd.f32 %v11016_v2, %v15941_v4  ;;  %v11019_v28 = vadd.f32 %v11018_v21, %v11017_v62  ;;  %v14239_v52 = vadd.f32 %v11348_v59, %v11347_v15  ;;  %v15948_v62 = vld [vmem:[#allocation91_spill] sm:$0xff]  ;;  %v14254_v21 = vpack.c.bf16 %v3498_v31, %v3497_v26  ;;  %v15952_v31 = vld [vmem:[#allocation88_spill] sm:$0xff] }
 0x412   : > { %9972 = vmatmul.mubr.msk.bf16.gmra.mrb[120].mxu1 %vm15944_vm14, %v14236_v51 }
 0x413   : > { %15942 = vst [vmem:[#allocation45_spill] sm:$0xff] %v14239_v52  ;;  %v7296_v36 = vadd.f32 %v11019_v28, %v15945_v20  ;;  %9975 = vmatprep.mubr.msk.bf16.mxu1 %vm15820_vm7, %v14101_v3  ;;  %v14249_v19 = vadd.f32 %v15946_v41, %v7293_v45  ;;  %v4041_v41 = vld [vmem:[#allocation2 + $0x13a] sm:$0xff] }
 0x415   : > { %15947 = vst [vmem:[#allocation13_spill] sm:$0xff] %v14249_v19  ;;  %v11020_v2 = vpop.f32.mrb[16].mxu1  ;;  %v14252_v12 = vadd.f32 %v15948_v62, %v7296_v36  ;;  %v11350_v59 = vpop.f32.mrb[80].mxu0  ;;  %v4042_v19 = vld [vmem:[#allocation2 + $0x142] sm:$0xff] }
 0x416   : > { %v11021_v15 = vpop.f32.mrb[17].mxu1  ;;  %v11351_v52 = vpop.f32.mrb[81].mxu0  ;;  %v15950_v36 = vld [vmem:[#allocation74_spill] sm:$0xff]  ;;  %v10169_v26 = vpack.c.bf16 %v4042_v19, %v4041_v41 }
 0x417   : > { %v11022_v4 = vadd.f32 %v11021_v15, %v11020_v2  ;;  %v11023_v28 = vpop.f32.mrb[18].mxu1  ;;  %v14256_v20 = vadd.f32 %v11351_v52, %v11350_v59  ;;  %v11353_v57 = vpop.f32.mrb[82].mxu0  ;;  %vm15951_vm14 = vnez %v15950_v36  ;;  %v15953_v52 = vld [vmem:[#allocation26_spill] sm:$0xff]  ;;  %v15955_v59 = vld [vmem:[#allocation24_spill] sm:$0xff] }
 0x418   : > { %v11024_v3 = vpop.f32.mrb[19].mxu1  ;;  %v11354_v45 = vpop.f32.mrb[83].mxu0  ;;  %11693 = vmatmul.mubr.msk.bf16.gmra.mrb[160].mxu0 %vm15820_vm7, %v10169_v26 }
 0x419   : > { %v7301_v48 = vadd.f32 %v11022_v4, %v15949_v50  ;;  %v11025_v51 = vadd.f32 %v11024_v3, %v11023_v28  ;;  %v14259_v39 = vadd.f32 %v11354_v45, %v11353_v57  ;;  %v3852_v57 = vld [vmem:[#allocation2 + $0x50] sm:$0xff]  ;;  %v3851_v45 = vld [vmem:[#allocation2 + $0x48] sm:$0xff] }
 0x41a   : > { %9978 = vmatmul.mubr.msk.bf16.gmra.mrb[124].mxu1 %vm15951_vm14, %v14254_v21 }
 0x41b   : > { %v7304_v2 = vadd.f32 %v11025_v51, %v15952_v31  ;;  %10077 = vmatprep.mubr.msk.bf16.mxu1 %vm15832_vm2, %v13946_v25  ;;  %v14269_v62 = vadd.f32 %v15953_v52, %v7301_v48  ;;  %v3883_v48 = vpack.c.bf16 %v3852_v57, %v3851_v45  ;;  %v15956_v31 = vld [vmem:[#allocation90_spill] sm:$0xff] }
 0x41d   : > { %15954 = vst [vmem:[#allocation49_spill] sm:$0xff] %v14269_v62  ;;  %v11026_v50 = vpop.f32.mrb[20].mxu1  ;;  %v14274_v15 = vadd.f32 %v15955_v59, %v7304_v2  ;;  %v11356_v4 = vpop.f32.mrb[84].mxu0  ;;  %v15957_v2 = vld [vmem:[#allocation93_spill] sm:$0xff] }
 0x41e   : > { %v11027_v28 = vpop.f32.mrb[21].mxu1  ;;  %v11357_v3 = vpop.f32.mrb[85].mxu0 }
 0x41f   : > { %v11028_v19 = vadd.f32 %v11027_v28, %v11026_v50  ;;  %v11029_v51 = vpop.f32.mrb[22].mxu1  ;;  %v14276_v41 = vadd.f32 %v11357_v3, %v11356_v4  ;;  %v11359_v27 = vpop.f32.mrb[86].mxu0  ;;  %v3854_v28 = vld [vmem:[#allocation2 + $0x60] sm:$0xff] }
 0x420   : > { %v11030_v25 = vpop.f32.mrb[23].mxu1  ;;  %v11360_v26 = vpop.f32.mrb[87].mxu0 }
 0x421   : > { %v7309_v52 = vadd.f32 %v11028_v19, %v15956_v31  ;;  %v11031_v42 = vadd.f32 %v11030_v25, %v11029_v51  ;;  %v14279_v62 = vadd.f32 %v11360_v26, %v11359_v27  ;;  %v3853_v25 = vld [vmem:[#allocation2 + $0x58] sm:$0xff] }
 0x422   : > { %7911 = vmatmul.mubr.bf16.vlgmr.msra.gmra.mrb[128].mxu1 %v3883_v48  ;;  %v3884_v63 = vpack.c.bf16 %v3854_v28, %v3853_v25  ;;  %v3855_v25 = vld [vmem:[#allocation2 + $0x68] sm:$0xff] }
 0x423   : > { %v7312_v59 = vadd.f32 %v11031_v42, %v15957_v2  ;;  %10080 = vmatprep.mubr.msk.bf16.mxu1 %vm15841_vm6, %v13969_v34  ;;  %v14286_v50 = vadd.f32 %v13944_v23, %v7309_v52 }
 0x425   : > { %v11032_v4 = vpop.f32.mrb[24].mxu1  ;;  %v14289_v57 = vadd.f32 %v13949_v8, %v7312_v59  ;;  %v11362_v19 = vpop.f32.mrb[88].mxu0  ;;  %v15958_v8 = vld [vmem:[#allocation33_spill] sm:$0xff] }
 0x426   : > { %v11033_v3 = vpop.f32.mrb[25].mxu1  ;;  %v11363_v45 = vpop.f32.mrb[89].mxu0 }
 0x427   : > { %v11034_v51 = vadd.f32 %v11033_v3, %v11032_v4  ;;  %v11035_v27 = vpop.f32.mrb[26].mxu1  ;;  %v14291_v48 = vadd.f32 %v11363_v45, %v11362_v19  ;;  %v11365_v31 = vpop.f32.mrb[90].mxu0  ;;  %v3856_v19 = vld [vmem:[#allocation2 + $0x70] sm:$0xff] }
 0x428   : > { %v11036_v42 = vpop.f32.mrb[27].mxu1  ;;  %v11366_v52 = vpop.f32.mrb[91].mxu0  ;;  %v3885_v13 = vpack.c.bf16 %v3856_v19, %v3855_v25 }
 0x429   : > { %v7317_v34 = vadd.f32 %v11034_v51, %v13960_v30  ;;  %v11037_v23 = vadd.f32 %v11036_v42, %v11035_v27  ;;  %v14294_v26 = vadd.f32 %v11366_v52, %v11365_v31 }
 0x42a   : > { %7919 = vmatmul.mubr.bf16.gmra.mrb[132].mxu1 %v3884_v63 }
 0x42b   : > { %v7320_v2 = vadd.f32 %v11037_v23, %v15958_v8  ;;  %10083 = vmatprep.mubr.msk.bf16.mxu1 %vm15845_vm0, %v13993_v43  ;;  %v14301_v59 = vadd.f32 %v13967_v58, %v7317_v34 }
 0x42d   : > { %v11038_v4 = vpop.f32.mrb[28].mxu1  ;;  %v14304_v28 = vadd.f32 %v13972_v49, %v7320_v2  ;;  %v11368_v30 = vpop.f32.mrb[92].mxu0  ;;  %v3858_v2 = vld [vmem:[#allocation2 + $0x80] sm:$0xff] }
 0x42e   : > { %v11039_v3 = vpop.f32.mrb[29].mxu1  ;;  %v11369_v45 = vpop.f32.mrb[93].mxu0 }
 0x42f   : > { %v11040_v51 = vadd.f32 %v11039_v3, %v11038_v4  ;;  %v11041_v27 = vpop.f32.mrb[30].mxu1  ;;  %v14306_v31 = vadd.f32 %v11369_v45, %v11368_v30  ;;  %v11371_v42 = vpop.f32.mrb[94].mxu0  ;;  %v3857_v45 = vld [vmem:[#allocation2 + $0x78] sm:$0xff] }
 0x430   : > { %v11042_v63 = vpop.f32.mrb[31].mxu1  ;;  %v11372_v34 = vpop.f32.mrb[95].mxu0  ;;  %v3886_v11 = vpack.c.bf16 %v3858_v2, %v3857_v45 }
 0x431   : > { %v7325_v43 = vadd.f32 %v11040_v51, %v13983_v54  ;;  %v11043_v58 = vadd.f32 %v11042_v63, %v11041_v27  ;;  %v14309_v23 = vadd.f32 %v11372_v34, %v11371_v42 }
 0x432   : > { %7927 = vmatmul.mubr.bf16.gmra.mrb[136].mxu1 %v3885_v13 }
 0x433   : > { %v7328_v49 = vadd.f32 %v11043_v58, %v13989_v22  ;;  %10086 = vmatprep.mubr.msk.bf16.mxu1 %vm15847_vm5, %v14018_v0  ;;  %v14316_v52 = vadd.f32 %v13991_v38, %v7325_v43  ;;  %v3860_v58 = vld [vmem:[#allocation2 + $0x90] sm:$0xff] }
 0x435   : > { %v11044_v8 = vpop.f32.mrb[32].mxu1  ;;  %v14319_v4 = vadd.f32 %v13996_v35, %v7328_v49  ;;  %v11374_v54 = vpop.f32.mrb[96].mxu0 }
 0x436   : > { %v11045_v19 = vpop.f32.mrb[33].mxu1  ;;  %v11375_v3 = vpop.f32.mrb[97].mxu0 }
 0x437   : > { %v11046_v30 = vadd.f32 %v11045_v19, %v11044_v8  ;;  %v11047_v51 = vpop.f32.mrb[34].mxu1  ;;  %v14321_v27 = vadd.f32 %v11375_v3, %v11374_v54  ;;  %v11377_v22 = vpop.f32.mrb[98].mxu0  ;;  %v3859_v19 = vld [vmem:[#allocation2 + $0x88] sm:$0xff] }
 0x438   : > { %v11048_v25 = vpop.f32.mrb[35].mxu1  ;;  %v11378_v42 = vpop.f32.mrb[99].mxu0  ;;  %v3887_v40 = vpack.c.bf16 %v3860_v58, %v3859_v19 }
 0x439   : > { %v7333_v0 = vadd.f32 %v11046_v30, %v14008_v6  ;;  %v11049_v38 = vadd.f32 %v11048_v25, %v11047_v51  ;;  %v14324_v63 = vadd.f32 %v11378_v42, %v11377_v22  ;;  %v15961_v42 = vld [vmem:[#allocation92_spill] sm:$0xff] }
 0x43a   : > { %7935 = vmatmul.mubr.bf16.gmra.mrb[140].mxu1 %v3886_v11 }
 0x43b   : > { %v7336_v35 = vadd.f32 %v11049_v38, %v14014_v53  ;;  %10089 = vmatprep.mubr.msk.bf16.mxu1 %vm15851_vm15, %v14043_v37  ;;  %v14331_v13 = vadd.f32 %v14016_v33, %v7333_v0  ;;  %v15959_v37 = vld [vmem:[#allocation95_spill] sm:$0xff]  ;;  %v3862_v38 = vld [vmem:[#allocation2 + $0xa0] sm:$0xff] }
 0x43d   : > { %v11050_v43 = vpop.f32.mrb[36].mxu1  ;;  %v14334_v34 = vadd.f32 %v14021_v56, %v7336_v35  ;;  %v11380_v6 = vpop.f32.mrb[100].mxu0  ;;  %v15960_v56 = vld [vmem:[#allocation29_spill] sm:$0xff] }
 0x43e   : > { %v11051_v49 = vpop.f32.mrb[37].mxu1  ;;  %v11381_v2 = vpop.f32.mrb[101].mxu0 }
 0x43f   : > { %v11052_v8 = vadd.f32 %v11051_v49, %v11050_v43  ;;  %v11053_v54 = vpop.f32.mrb[38].mxu1  ;;  %v14336_v30 = vadd.f32 %v11381_v2, %v11380_v6  ;;  %v11383_v53 = vpop.f32.mrb[102].mxu0  ;;  %v3861_v2 = vld [vmem:[#allocation2 + $0x98] sm:$0xff] }
 0x440   : > { %v11054_v3 = vpop.f32.mrb[39].mxu1  ;;  %v11384_v45 = vpop.f32.mrb[103].mxu0  ;;  %v3888_v14 = vpack.c.bf16 %v3862_v38, %v3861_v2 }
 0x441   : > { %v7341_v51 = vadd.f32 %v11052_v8, %v15959_v37  ;;  %v11055_v33 = vadd.f32 %v11054_v3, %v11053_v54  ;;  %v14339_v22 = vadd.f32 %v11384_v45, %v11383_v53 }
 0x442   : > { %7943 = vmatmul.mubr.bf16.gmra.mrb[144].mxu1 %v3887_v40 }
 0x443   : > { %v7344_v25 = vadd.f32 %v11055_v33, %v15960_v56  ;;  %10092 = vmatprep.mubr.msk.bf16.mxu1 %vm15862_vm1, %v14068_v60  ;;  %v14346_v11 = vadd.f32 %v14041_v24, %v7341_v51  ;;  %v15962_v60 = vld [vmem:[#allocation94_spill] sm:$0xff]  ;;  %v15963_v51 = vld [vmem:[#allocation37_spill] sm:$0xff] }
 0x444   : > { %v15965_v56 = vld [vmem:[#allocation97_spill] sm:$0xff] }
 0x445   : > { %v11056_v0 = vpop.f32.mrb[40].mxu1  ;;  %v14349_v35 = vadd.f32 %v15961_v42, %v7344_v25  ;;  %v11386_v43 = vpop.f32.mrb[104].mxu0  ;;  %v3864_v42 = vld [vmem:[#allocation2 + $0xb0] sm:$0xff] }
 0x446   : > { %v11057_v58 = vpop.f32.mrb[41].mxu1  ;;  %v11387_v49 = vpop.f32.mrb[105].mxu0 }
 0x447   : > { %v11058_v6 = vadd.f32 %v11057_v58, %v11056_v0  ;;  %v11059_v8 = vpop.f32.mrb[42].mxu1  ;;  %v14351_v54 = vadd.f32 %v11387_v49, %v11386_v43  ;;  %v11389_v19 = vpop.f32.mrb[106].mxu0  ;;  %v15966_v43 = vld [vmem:[#allocation32_spill] sm:$0xff] }
 0x448   : > { %v11060_v53 = vpop.f32.mrb[43].mxu1  ;;  %v11390_v40 = vpop.f32.mrb[107].mxu0 }
 0x449   : > { %v7349_v3 = vadd.f32 %v11058_v6, %v15962_v60  ;;  %v11061_v24 = vadd.f32 %v11060_v53, %v11059_v8  ;;  %v14354_v37 = vadd.f32 %v11390_v40, %v11389_v19  ;;  %v3863_v19 = vld [vmem:[#allocation2 + $0xa8] sm:$0xff] }
 0x44a   : > { %7951 = vmatmul.mubr.bf16.gmra.mrb[148].mxu1 %v3888_v14 }
 0x44b   : > { %v7352_v33 = vadd.f32 %v11061_v24, %v15963_v51  ;;  %10095 = vmatprep.mubr.msk.bf16.mxu1 %vm15872_vm8, %v14093_v5  ;;  %v14361_v25 = vadd.f32 %v15965_v56, %v7349_v3  ;;  %v3889_v24 = vpack.c.bf16 %v3864_v42, %v3863_v19  ;;  %v15968_v5 = vld [vmem:[#allocation99_spill] sm:$0xff] }
 0x44d   : > { %v11062_v0 = vpop.f32.mrb[44].mxu1  ;;  %v14364_v38 = vadd.f32 %v15966_v43, %v7352_v33  ;;  %v11392_v58 = vpop.f32.mrb[108].mxu0  ;;  %v15969_v33 = vld [vmem:[#allocation96_spill] sm:$0xff] }
 0x44e   : > { %v11063_v6 = vpop.f32.mrb[45].mxu1  ;;  %v11393_v8 = vpop.f32.mrb[109].mxu0 }
 0x44f   : > { %v11064_v49 = vadd.f32 %v11063_v6, %v11062_v0  ;;  %v11065_v2 = vpop.f32.mrb[46].mxu1  ;;  %v14366_v53 = vadd.f32 %v11393_v8, %v11392_v58  ;;  %v11395_v14 = vpop.f32.mrb[110].mxu0  ;;  %v15971_v0 = vld [vmem:[#allocation42_spill] sm:$0xff]  ;;  %v3866_v8 = vld [vmem:[#allocation2 + $0xc0] sm:$0xff] }
 0x450   : > { %v11066_v60 = vpop.f32.mrb[47].mxu1  ;;  %v11396_v51 = vpop.f32.mrb[111].mxu0 }
 0x451   : > { %15967 = vst [vmem:[#allocation52_spill] sm:$0xff] %v14366_v53  ;;  %v7357_v40 = vadd.f32 %v11064_v49, %v15968_v5  ;;  %v11067_v3 = vadd.f32 %v11066_v60, %v11065_v2  ;;  %v14369_v45 = vadd.f32 %v11396_v51, %v11395_v14  ;;  %v15973_v53 = vld [vmem:[#allocation98_spill] sm:$0xff] }
 0x452   : > { %7959 = vmatmul.mubr.bf16.gmra.mrb[152].mxu1 %v3889_v24  ;;  %v3865_v24 = vld [vmem:[#allocation2 + $0xb8] sm:$0xff] }
 0x453   : > { %v7360_v56 = vadd.f32 %v11067_v3, %v15969_v33  ;;  %10098 = vmatprep.mubr.msk.bf16.mxu1 %vm15883_vm3, %v14120_v9  ;;  %v14376_v6 = vadd.f32 %v15971_v0, %v7357_v40  ;;  %v3890_v33 = vpack.c.bf16 %v3866_v8, %v3865_v24  ;;  %v15976_v9 = vld [vmem:[#allocation46_spill] sm:$0xff] }
 0x455   : > { %15972 = vst [vmem:[#allocation59_spill] sm:$0xff] %v14376_v6  ;;  %v11068_v58 = vpop.f32.mrb[48].mxu1  ;;  %v14379_v42 = vadd.f32 %v15973_v53, %v7360_v56  ;;  %v11398_v49 = vpop.f32.mrb[112].mxu0  ;;  %v15977_v53 = vld [vmem:[#allocation101_spill] sm:$0xff] }
 0x456   : > { %v11069_v2 = vpop.f32.mrb[49].mxu1  ;;  %v11399_v14 = vpop.f32.mrb[113].mxu0 }
 0x457   : > { %15974 = vst [vmem:[#allocation61_spill] sm:$0xff] %v14379_v42  ;;  %v11070_v19 = vadd.f32 %v11069_v2, %v11068_v58  ;;  %v11071_v60 = vpop.f32.mrb[50].mxu1  ;;  %v14381_v5 = vadd.f32 %v11399_v14, %v11398_v49  ;;  %v11401_v3 = vpop.f32.mrb[114].mxu0  ;;  %v15979_v58 = vld [vmem:[#allocation50_spill] sm:$0xff]  ;;  %v3868_v14 = vld [vmem:[#allocation2 + $0xd0] sm:$0xff] }
 0x458   : > { %v11072_v51 = vpop.f32.mrb[51].mxu1  ;;  %v11402_v0 = vpop.f32.mrb[115].mxu0 }
 0x459   : > { %15975 = vst [vmem:[#allocation60_spill] sm:$0xff] %v14381_v5  ;;  %v7365_v43 = vadd.f32 %v11070_v19, %v15976_v9  ;;  %v11073_v40 = vadd.f32 %v11072_v51, %v11071_v60  ;;  %v14384_v6 = vadd.f32 %v11402_v0, %v11401_v3  ;;  %v15981_v5 = vld [vmem:[#allocation103_spill] sm:$0xff] }
 0x45a   : > { %7967 = vmatmul.mubr.bf16.gmra.mrb[156].mxu1 %v3890_v33  ;;  %v3867_v33 = vld [vmem:[#allocation2 + $0xc8] sm:$0xff] }
 0x45b   : > { %v7368_v56 = vadd.f32 %v11073_v40, %v15977_v53  ;;  %10101 = vmatprep.mubr.msk.bf16.mxu1 %vm15894_vm4, %v14139_v46  ;;  %v14391_v2 = vadd.f32 %v15979_v58, %v7365_v43  ;;  %v3891_v42 = vpack.c.bf16 %v3868_v14, %v3867_v33  ;;  %v15982_v46 = vld [vmem:[#allocation100_spill] sm:$0xff] }
 0x45d   : > { %15980 = vst [vmem:[#allocation62_spill] sm:$0xff] %v14391_v2  ;;  %v11074_v49 = vpop.f32.mrb[52].mxu1  ;;  %v14394_v8 = vadd.f32 %v15981_v5, %v7368_v56  ;;  %v11404_v19 = vpop.f32.mrb[116].mxu0  ;;  %v15983_v5 = vld [vmem:[#allocation53_spill] sm:$0xff] }
 0x45e   : > { %v11075_v60 = vpop.f32.mrb[53].mxu1  ;;  %v11405_v3 = vpop.f32.mrb[117].mxu0 }
 0x45f   : > { %v11076_v24 = vadd.f32 %v11075_v60, %v11074_v49  ;;  %v11077_v51 = vpop.f32.mrb[54].mxu1  ;;  %v14396_v9 = vadd.f32 %v11405_v3, %v11404_v19  ;;  %v11407_v40 = vpop.f32.mrb[118].mxu0  ;;  %v3870_v60 = vld [vmem:[#allocation2 + $0xe0] sm:$0xff] }
 0x460   : > { %v11078_v0 = vpop.f32.mrb[55].mxu1  ;;  %v11408_v58 = vpop.f32.mrb[119].mxu0 }
 0x461   : > { %v7373_v53 = vadd.f32 %v11076_v24, %v15982_v46  ;;  %v11079_v43 = vadd.f32 %v11078_v0, %v11077_v51  ;;  %v14399_v2 = vadd.f32 %v11408_v58, %v11407_v40  ;;  %v3869_v0 = vld [vmem:[#allocation2 + $0xd8] sm:$0xff] }
 0x462   : > { %7975 = vmatmul.mubr.bf16.gmra.mrb[160].mxu1 %v3891_v42  ;;  %v3892_v55 = vpack.c.bf16 %v3870_v60, %v3869_v0 }
 0x463   : > { %v7376_v56 = vadd.f32 %v11079_v43, %v15983_v5  ;;  %10104 = vmatprep.mubr.msk.bf16.mxu1 %vm15902_vm11, %v14158_v32  ;;  %v14406_v49 = vadd.f32 %v14137_v7, %v7373_v53  ;;  %v15984_v32 = vld [vmem:[#allocation102_spill] sm:$0xff] }
 0x465   : > { %v11080_v19 = vpop.f32.mrb[56].mxu1  ;;  %v14409_v14 = vadd.f32 %v14142_v10, %v7376_v56  ;;  %v11410_v24 = vpop.f32.mrb[120].mxu0  ;;  %v15985_v10 = vld [vmem:[#allocation35_spill] sm:$0xff] }
 0x466   : > { %v11081_v3 = vpop.f32.mrb[57].mxu1  ;;  %v11411_v33 = vpop.f32.mrb[121].mxu0 }
 0x467   : > { %v11082_v51 = vadd.f32 %v11081_v3, %v11080_v19  ;;  %v11083_v40 = vpop.f32.mrb[58].mxu1  ;;  %v14411_v42 = vadd.f32 %v11411_v33, %v11410_v24  ;;  %v11413_v46 = vpop.f32.mrb[122].mxu0  ;;  %v3872_v3 = vld [vmem:[#allocation2 + $0xf0] sm:$0xff]  ;;  %v15987_v33 = vld [vmem:[#allocation56_spill] sm:$0xff] }
 0x468   : > { %v11084_v43 = vpop.f32.mrb[59].mxu1  ;;  %v11414_v53 = vpop.f32.mrb[123].mxu0 }
 0x469   : > { %v7381_v58 = vadd.f32 %v11082_v51, %v15984_v32  ;;  %v11085_v7 = vadd.f32 %v11084_v43, %v11083_v40  ;;  %v14414_v5 = vadd.f32 %v11414_v53, %v11413_v46 }
 0x46a   : > { %7983 = vmatmul.mubr.bf16.gmra.mrb[164].mxu1 %v3892_v55  ;;  %v3871_v55 = vld [vmem:[#allocation2 + $0xe8] sm:$0xff] }
 0x46b   : > { %v7384_v56 = vadd.f32 %v11085_v7, %v15985_v10  ;;  %10107 = vmatprep.mubr.msk.bf16.mxu1 %vm15908_vm13, %v14177_v1  ;;  %v14421_v19 = vadd.f32 %v14156_v16, %v7381_v58  ;;  %v3893_v61 = vpack.c.bf16 %v3872_v3, %v3871_v55  ;;  %v15988_v1 = vld [vmem:[#allocation105_spill] sm:$0xff] }
 0x46d   : > { %15986 = vst [vmem:[#allocation8_spill] sm:$0xff] %v14421_v19  ;;  %v11086_v24 = vpop.f32.mrb[60].mxu1  ;;  %v14424_v60 = vadd.f32 %v15987_v33, %v7384_v56  ;;  %v11416_v51 = vpop.f32.mrb[124].mxu0  ;;  %v15989_v56 = vld [vmem:[#allocation55_spill] sm:$0xff] }
 0x46e   : > { %v11087_v40 = vpop.f32.mrb[61].mxu1  ;;  %v11417_v46 = vpop.f32.mrb[125].mxu0 }
 0x46f   : > { %v11088_v0 = vadd.f32 %v11087_v40, %v11086_v24  ;;  %v11089_v43 = vpop.f32.mrb[62].mxu1  ;;  %v14426_v32 = vadd.f32 %v11417_v46, %v11416_v51  ;;  %v11419_v7 = vpop.f32.mrb[126].mxu0  ;;  %v3874_v40 = vld [vmem:[#allocation2 + $0x100] sm:$0xff]  ;;  %v15991_v46 = vld [vmem:[#allocation107_spill] sm:$0xff] }
 0x470   : > { %v11090_v53 = vpop.f32.mrb[63].mxu1  ;;  %v11420_v58 = vpop.f32.mrb[127].mxu0 }
 0x471   : > { %v7389_v10 = vadd.f32 %v11088_v0, %v15988_v1  ;;  %v11091_v16 = vadd.f32 %v11090_v53, %v11089_v43  ;;  %v14429_v19 = vadd.f32 %v11420_v58, %v11419_v7 }
 0x472   : > { %7991 = vmatmul.mubr.bf16.gmra.mrb[168].mxu1 %v3893_v61  ;;  %v3873_v61 = vld [vmem:[#allocation2 + $0xf8] sm:$0xff] }
 0x473   : > { %v7392_v33 = vadd.f32 %v11091_v16, %v15989_v56  ;;  %10110 = vmatprep.mubr.msk.bf16.mxu1 %vm15915_vm9, %v14196_v17  ;;  %v14436_v24 = vadd.f32 %v14175_v18, %v7389_v10  ;;  %v3894_v58 = vpack.c.bf16 %v3874_v40, %v3873_v61  ;;  %v15993_v17 = vld [vmem:[#allocation51_spill] sm:$0xff]  ;;  %v15997_v61 = vld [vmem:[#allocation36_spill] sm:$0xff] }
 0x474   : > { %v3876_v40 = vld [vmem:[#allocation2 + $0x110] sm:$0xff] }
 0x475   : > { %15990 = vst [vmem:[#allocation63_spill] sm:$0xff] %v14436_v24  ;;  %v11220_v51 = vpop.f32.mrb[64].mxu1  ;;  %v14439_v3 = vadd.f32 %v15991_v46, %v7392_v33  ;;  %v11422_v43 = vpop.f32.mrb[128].mxu0 }
 0x476   : > { %v11221_v0 = vpop.f32.mrb[65].mxu1  ;;  %v11423_v53 = vpop.f32.mrb[129].mxu0 }
 0x477   : > { %v11222_v55 = vadd.f32 %v11221_v0, %v11220_v51  ;;  %v11223_v7 = vpop.f32.mrb[66].mxu1  ;;  %v14441_v16 = vadd.f32 %v11423_v53, %v11422_v43  ;;  %v11425_v44 = vpop.f32.mrb[130].mxu0  ;;  %v15995_v51 = vld [vmem:[#allocation104_spill] sm:$0xff]  ;;  %v3875_v53 = vld [vmem:[#allocation2 + $0x108] sm:$0xff] }
 0x478   : > { %v11224_v1 = vpop.f32.mrb[67].mxu1  ;;  %v11426_v10 = vpop.f32.mrb[131].mxu0 }
 0x479   : > { %15992 = vst [vmem:[#allocation44_spill] sm:$0xff] %v14441_v16  ;;  %v7591_v56 = vadd.f32 %v11222_v55, %v15993_v17  ;;  %v11225_v18 = vadd.f32 %v11224_v1, %v11223_v7  ;;  %v14444_v24 = vadd.f32 %v11426_v10, %v11425_v44 }
 0x47a   : > { %7999 = vmatmul.mubr.bf16.gmra.mrb[172].mxu1 %v3894_v58 }
 0x47b   : > { %v7594_v33 = vadd.f32 %v11225_v18, %v14192_v47  ;;  %10113 = vmatprep.mubr.msk.bf16.mxu1 %vm15923_vm12, %v14216_v29  ;;  %v14451_v0 = vadd.f32 %v15995_v51, %v7591_v56  ;;  %v3895_v29 = vpack.c.bf16 %v3876_v40, %v3875_v53  ;;  %v16002_v18 = vld [vmem:[#allocation58_spill] sm:$0xff] }
 0x47c   : > { %v16003_v51 = vld [vmem:[#allocation106_spill] sm:$0xff] }
 0x47d   : > { %15996 = vst [vmem:[#allocation31_spill] sm:$0xff] %v14451_v0  ;;  %v11226_v43 = vpop.f32.mrb[68].mxu1  ;;  %v14454_v16 = vadd.f32 %v15997_v61, %v7594_v33  ;;  %v14456_v55 = vpop.f32.mrb[132].mxu0  ;;  %v16004_v61 = vld [vmem:[#allocation41_spill] sm:$0xff]  ;;  %v16008_v0 = vld [vmem:[#allocation54_spill] sm:$0xff] }
 0x47e   : > { %15999 = vst [vmem:[#allocation34_spill] sm:$0xff] %v14456_v55  ;;  %v11227_v7 = vpop.f32.mrb[69].mxu1  ;;  %v14458_v58 = vpop.f32.mrb[133].mxu0 }
 0x47f   : > { %15998 = vst [vmem:[#allocation43_spill] sm:$0xff] %v14454_v16  ;;  %v11228_v1 = vadd.f32 %v11227_v7, %v11226_v43  ;;  %16000 = vst [vmem:[#allocation47_spill] sm:$0xff] %v14458_v58  ;;  %v11229_v47 = vpop.f32.mrb[70].mxu1  ;;  %v14460_v44 = vpop.f32.mrb[134].mxu0  ;;  %v16006_v43 = vld [vmem:[#allocation39_spill] sm:$0xff]  ;;  %v3877_v58 = vld [vmem:[#allocation2 + $0x118] sm:$0xff] }
 0x480   : > { %16001 = vst [vmem:[#allocation17_spill] sm:$0xff] %v14460_v44  ;;  %v11230_v17 = vpop.f32.mrb[71].mxu1  ;;  %v14463_v46 = vpop.f32.mrb[135].mxu0  ;;  %v3878_v44 = vld [vmem:[#allocation2 + $0x120] sm:$0xff] }
 0x481   : > { %v7599_v56 = vadd.f32 %v11228_v1, %v16002_v18  ;;  %v11231_v10 = vadd.f32 %v11230_v17, %v11229_v47 }
 0x482   : > { %8007 = vmatmul.mubr.bf16.gmra.mrb[176].mxu1 %v3895_v29 }
 0x483   : > { %v7602_v33 = vadd.f32 %v11231_v10, %v16003_v51  ;;  %10116 = vmatprep.mubr.msk.bf16.mxu1 %vm15933_vm10, %v16004_v61  ;;  %v14470_v7 = vadd.f32 %v16006_v43, %v7599_v56  ;;  %v3896_v10 = vpack.c.bf16 %v3878_v44, %v3877_v58  ;;  %v16013_v51 = vld [vmem:[#allocation38_spill] sm:$0xff] }
 0x485   : > { %16007 = vst [vmem:[#allocation64_spill] sm:$0xff] %v14470_v7  ;;  %v11232_v55 = vpop.f32.mrb[72].mxu1  ;;  %v14473_v53 = vadd.f32 %v16008_v0, %v7602_v33  ;;  %v14475_v40 = vpop.f32.mrb[136].mxu0  ;;  %v16015_v7 = vld [vmem:[#allocation40_spill] sm:$0xff]  ;;  %v16016_v33 = vld [vmem:[#allocation73_spill] sm:$0xff] }
 0x486   : > { %16010 = vst [vmem:[#allocation48_spill] sm:$0xff] %v14475_v40  ;;  %v11233_v1 = vpop.f32.mrb[73].mxu1  ;;  %v14477_v17 = vpop.f32.mrb[137].mxu0  ;;  %vm16017_vm7 = vnez %v16016_v33  ;;  %v3945_v40 = vld [vmem:[#allocation2 + $0x139] sm:$0xff] }
 0x487   : > { %16009 = vst [vmem:[#allocation11_spill] sm:$0xff] %v14473_v53  ;;  %v11234_v47 = vadd.f32 %v11233_v1, %v11232_v55  ;;  %16011 = vst [vmem:[#allocation7_spill] sm:$0xff] %v14477_v17  ;;  %v11235_v29 = vpop.f32.mrb[74].mxu1  ;;  %v14479_v18 = vpop.f32.mrb[138].mxu0  ;;  %v16018_v55 = vld [vmem:[#allocation57_spill] sm:$0xff] }
 0x488   : > { %16012 = vst [vmem:[#allocation75_spill] sm:$0xff] %v14479_v18  ;;  %v11236_v16 = vpop.f32.mrb[75].mxu1  ;;  %v14482_v43 = vpop.f32.mrb[139].mxu0  ;;  %v3946_v17 = vld [vmem:[#allocation2 + $0x141] sm:$0xff] }
 0x489   : > { %v7607_v56 = vadd.f32 %v11234_v47, %v16013_v51  ;;  %v11237_v61 = vadd.f32 %v11236_v16, %v11235_v29  ;;  %16014 = vst [vmem:[#allocation77_spill] sm:$0xff] %v14482_v43  ;;  %v16020_v53 = vld [vmem:[#allocation45_spill] sm:$0xff] }
 0x48a   : > { %8015 = vmatmul.mubr.bf16.gmra.mrb[180].mxu1 %v3896_v10  ;;  %v11950_v29 = vld [vmem:[#allocation2] sm:$0xff] }
 0x48b   : > { %v7610_v0 = vadd.f32 %v11237_v61, %v16015_v7  ;;  %10119 = vmatprep.mubr.msk.bf16.mxu1 %vm16017_vm7, %v14254_v21  ;;  %v14489_v1 = vadd.f32 %v16018_v55, %v7607_v56  ;;  %v3897_v16 = vpack.c.bf16 %v11950_v29, %v11950_v29  ;;  %v10121_v61 = vpack.c.bf16 %v3946_v17, %v3945_v40  ;;  %v16021_v33 = vld [vmem:[#allocation13_spill] sm:$0xff] }
 0x48d   : > { %16019 = vst [vmem:[#allocation79_spill] sm:$0xff] %v14489_v1  ;;  %v11238_v18 = vpop.f32.mrb[76].mxu1  ;;  %v14492_v58 = vadd.f32 %v16020_v53, %v7610_v0  ;;  %v14494_v44 = vpop.f32.mrb[140].mxu0 }
 0x48e   : > { %v11239_v47 = vpop.f32.mrb[77].mxu1  ;;  %v14496_v7 = vpop.f32.mrb[141].mxu0 }
 0x48f   : > { %v11240_v10 = vadd.f32 %v11239_v47, %v11238_v18  ;;  %v11241_v51 = vpop.f32.mrb[78].mxu1  ;;  %v14498_v21 = vpop.f32.mrb[142].mxu0 }
 0x490   : > { %v11242_v56 = vpop.f32.mrb[79].mxu1  ;;  %v14501_v1 = vpop.f32.mrb[143].mxu0 }
 0x491   : > { %v7615_v55 = vadd.f32 %v11240_v10, %v16021_v33  ;;  %v11243_v43 = vadd.f32 %v11242_v56, %v11241_v51 }
 0x492   : > { %8023 = vmatmul.mubr.bf16.gmra.mrb[184].mxu1 %v3897_v16 }
 0x493   : > { %v7618_v53 = vadd.f32 %v11243_v43, %v14252_v12  ;;  %10122 = vmatprep.mubr.msk.bf16.mxu1 %vm15951_vm14, %v10121_v61  ;;  %v14507_v18 = vadd.f32 %v14256_v20, %v7615_v55  ;;  %v16024_v43 = vld [vmem:[#allocation49_spill] sm:$0xff] }
 0x495   : > { %v11244_v0 = vpop.f32.mrb[80].mxu1  ;;  %v14510_v40 = vadd.f32 %v14259_v39, %v7618_v53  ;;  %v14512_v17 = vpop.f32.mrb[144].mxu0 }
 0x496   : > { %16022 = vst [vmem:[#allocation76_spill] sm:$0xff] %v14512_v17  ;;  %v11245_v47 = vpop.f32.mrb[81].mxu1  ;;  %v14514_v10 = vpop.f32.mrb[145].mxu0 }
 0x497   : > { %v11246_v29 = vadd.f32 %v11245_v47, %v11244_v0  ;;  %v11247_v51 = vpop.f32.mrb[82].mxu1  ;;  %v14516_v56 = vpop.f32.mrb[146].mxu0 }
 0x498   : > { %16023 = vst [vmem:[#allocation9_spill] sm:$0xff] %v14516_v56  ;;  %v11248_v12 = vpop.f32.mrb[83].mxu1  ;;  %v14519_v33 = vpop.f32.mrb[147].mxu0 }
 0x499   : > { %v7623_v36 = vadd.f32 %v11246_v29, %v16024_v43  ;;  %v11249_v61 = vadd.f32 %v11248_v12, %v11247_v51 }
 0x49a   : > { %8031 = vmatmul.mubr.bf16.gmra.mrb[188].mxu1 %v3897_v16 }
 0x49b   : > { %v7626_v20 = vadd.f32 %v11249_v61, %v14274_v15  ;;  %v14523_v39 = vadd.f32 %v14276_v41, %v7623_v36 }
 0x49d   : > { %v11250_v55 = vpop.f32.mrb[84].mxu1  ;;  %v14526_v53 = vadd.f32 %v14279_v62, %v7626_v20  ;;  %v14528_v0 = vpop.f32.mrb[148].mxu0 }
 0x49e   : > { %16025 = vst [vmem:[#allocation10_spill] sm:$0xff] %v14528_v0  ;;  %v11251_v47 = vpop.f32.mrb[85].mxu1  ;;  %v14530_v17 = vpop.f32.mrb[149].mxu0 }
 0x49f   : > { %v11252_v56 = vadd.f32 %v11251_v47, %v11250_v55  ;;  %v11253_v29 = vpop.f32.mrb[86].mxu1  ;;  %v14532_v51 = vpop.f32.mrb[150].mxu0 }
 0x4a0   : > { %16026 = vst [vmem:[#allocation78_spill] sm:$0xff] %v14532_v51  ;;  %v11254_v12 = vpop.f32.mrb[87].mxu1  ;;  %v14535_v43 = vpop.f32.mrb[151].mxu0 }
 0x4a1   : > { %v7631_v16 = vadd.f32 %v11252_v56, %v14286_v50  ;;  %v11255_v15 = vadd.f32 %v11254_v12, %v11253_v29 }
 0x4a3   : > { %v7634_v41 = vadd.f32 %v11255_v15, %v14289_v57  ;;  %v14539_v62 = vadd.f32 %v14291_v48, %v7631_v16 }
 0x4a5   : > { %v11256_v36 = vpop.f32.mrb[88].mxu1  ;;  %v14542_v61 = vadd.f32 %v14294_v26, %v7634_v41  ;;  %v14544_v20 = vpop.f32.mrb[152].mxu0 }
 0x4a6   : > { %16027 = vst [vmem:[#allocation15_spill] sm:$0xff] %v14544_v20  ;;  %v11257_v55 = vpop.f32.mrb[89].mxu1  ;;  %v14546_v51 = vpop.f32.mrb[153].mxu0 }
 0x4a7   : > { %v11258_v47 = vadd.f32 %v11257_v55, %v11256_v36  ;;  %v11259_v0 = vpop.f32.mrb[90].mxu1  ;;  %v14548_v50 = vpop.f32.mrb[154].mxu0 }
 0x4a8   : > { %16028 = vst [vmem:[#allocation80_spill] sm:$0xff] %v14548_v50  ;;  %v11260_v56 = vpop.f32.mrb[91].mxu1  ;;  %v14551_v12 = vpop.f32.mrb[155].mxu0 }
 0x4a9   : > { %v7639_v29 = vadd.f32 %v11258_v47, %v14301_v59  ;;  %v11261_v57 = vadd.f32 %v11260_v56, %v11259_v0 }
 0x4ab   : > { %v7642_v48 = vadd.f32 %v11261_v57, %v14304_v28  ;;  %v14555_v26 = vadd.f32 %v14306_v31, %v7639_v29 }
 0x4ad   : > { %v11262_v16 = vpop.f32.mrb[92].mxu1  ;;  %v14558_v15 = vadd.f32 %v14309_v23, %v7642_v48  ;;  %v14560_v41 = vpop.f32.mrb[156].mxu0 }
 0x4ae   : > { %16029 = vst [vmem:[#allocation19_spill] sm:$0xff] %v14560_v41  ;;  %v11263_v36 = vpop.f32.mrb[93].mxu1  ;;  %v14562_v50 = vpop.f32.mrb[157].mxu0 }
 0x4af   : > { %v11264_v55 = vadd.f32 %v11263_v36, %v11262_v16  ;;  %16030 = vst [vmem:[#allocation12_spill] sm:$0xff] %v14562_v50  ;;  %v11265_v20 = vpop.f32.mrb[94].mxu1  ;;  %v14564_v59 = vpop.f32.mrb[158].mxu0 }
 0x4b0   : > { %16031 = vst [vmem:[#allocation22_spill] sm:$0xff] %v14564_v59  ;;  %v11266_v0 = vpop.f32.mrb[95].mxu1  ;;  %v14567_v56 = vpop.f32.mrb[159].mxu0 }
 0x4b1   : > { %v7647_v47 = vadd.f32 %v11264_v55, %v14316_v52  ;;  %v11267_v28 = vadd.f32 %v11266_v0, %v11265_v20 }
 0x4b3   : > { %v7650_v31 = vadd.f32 %v11267_v28, %v14319_v4  ;;  %v14571_v23 = vadd.f32 %v14321_v27, %v7647_v47 }
 0x4b5   : > { %v11268_v29 = vpop.f32.mrb[96].mxu1  ;;  %v14574_v57 = vadd.f32 %v14324_v63, %v7650_v31 }
 0x4b6   : > { %v11269_v48 = vpop.f32.mrb[97].mxu1 }
 0x4b7   : > { %v11270_v16 = vadd.f32 %v11269_v48, %v11268_v29  ;;  %v11271_v36 = vpop.f32.mrb[98].mxu1 }
 0x4b8   : > { %v11272_v41 = vpop.f32.mrb[99].mxu1 }
 0x4b9   : > { %v7655_v59 = vadd.f32 %v11270_v16, %v14331_v13  ;;  %v11273_v50 = vadd.f32 %v11272_v41, %v11271_v36 }
 0x4bb   : > { %v7658_v52 = vadd.f32 %v11273_v50, %v14334_v34  ;;  %v14579_v20 = vadd.f32 %v14336_v30, %v7655_v59 }
 0x4bd   : > { %v11274_v4 = vpop.f32.mrb[100].mxu1  ;;  %v14582_v27 = vadd.f32 %v14339_v22, %v7658_v52 }
 0x4be   : > { %v11275_v55 = vpop.f32.mrb[101].mxu1 }
 0x4bf   : > { %v11276_v0 = vadd.f32 %v11275_v55, %v11274_v4  ;;  %v11277_v63 = vpop.f32.mrb[102].mxu1 }
 0x4c0   : > { %v11278_v47 = vpop.f32.mrb[103].mxu1 }
 0x4c1   : > { %v7663_v28 = vadd.f32 %v11276_v0, %v14346_v11  ;;  %v11279_v31 = vadd.f32 %v11278_v47, %v11277_v63  ;;  %v16032_v11 = vld [vmem:[#allocation52_spill] sm:$0xff]  ;;  %v16033_v63 = vld [vmem:[#allocation59_spill] sm:$0xff] }
 0x4c3   : > { %v7666_v29 = vadd.f32 %v11279_v31, %v14349_v35  ;;  %v14587_v13 = vadd.f32 %v14351_v54, %v7663_v28  ;;  %v16034_v31 = vld [vmem:[#allocation61_spill] sm:$0xff] }
 0x4c5   : > { %v11280_v34 = vpop.f32.mrb[104].mxu1  ;;  %v14590_v30 = vadd.f32 %v14354_v37, %v7666_v29 }
 0x4c6   : > { %v11281_v50 = vpop.f32.mrb[105].mxu1 }
 0x4c7   : > { %v11282_v41 = vadd.f32 %v11281_v50, %v11280_v34  ;;  %v11283_v22 = vpop.f32.mrb[106].mxu1 }
 0x4c8   : > { %v11284_v59 = vpop.f32.mrb[107].mxu1 }
 0x4c9   : > { %v7671_v48 = vadd.f32 %v11282_v41, %v14361_v25  ;;  %v11285_v16 = vadd.f32 %v11284_v59, %v11283_v22  ;;  %v16035_v25 = vld [vmem:[#allocation60_spill] sm:$0xff] }
 0x4cb   : > { %v7674_v36 = vadd.f32 %v11285_v16, %v14364_v38  ;;  %v14595_v52 = vadd.f32 %v16032_v11, %v7671_v48  ;;  %v16036_v48 = vld [vmem:[#allocation62_spill] sm:$0xff] }
 0x4cd   : > { %v11286_v35 = vpop.f32.mrb[108].mxu1  ;;  %v14598_v54 = vadd.f32 %v14369_v45, %v7674_v36 }
 0x4ce   : > { %v11287_v4 = vpop.f32.mrb[109].mxu1 }
 0x4cf   : > { %v11288_v55 = vadd.f32 %v11287_v4, %v11286_v35  ;;  %v11289_v37 = vpop.f32.mrb[110].mxu1 }
 0x4d0   : > { %v11290_v0 = vpop.f32.mrb[111].mxu1 }
 0x4d1   : > { %v7679_v47 = vadd.f32 %v11288_v55, %v16033_v63  ;;  %v11291_v28 = vadd.f32 %v11290_v0, %v11289_v37 }
 0x4d3   : > { %v7682_v29 = vadd.f32 %v11291_v28, %v16034_v31  ;;  %v14603_v34 = vadd.f32 %v16035_v25, %v7679_v47 }
 0x4d5   : > { %v11292_v38 = vpop.f32.mrb[112].mxu1  ;;  %v14606_v50 = vadd.f32 %v14384_v6, %v7682_v29 }
 0x4d6   : > { %v11293_v41 = vpop.f32.mrb[113].mxu1 }
 0x4d7   : > { %v11294_v22 = vadd.f32 %v11293_v41, %v11292_v38  ;;  %v11295_v45 = vpop.f32.mrb[114].mxu1 }
 0x4d8   : > { %v11296_v59 = vpop.f32.mrb[115].mxu1 }
 0x4d9   : > { %v7687_v16 = vadd.f32 %v11294_v22, %v16036_v48  ;;  %v11297_v36 = vadd.f32 %v11296_v59, %v11295_v45  ;;  %v16037_v22 = vld [vmem:[#allocation8_spill] sm:$0xff] }
 0x4db   : > { %v7690_v11 = vadd.f32 %v11297_v36, %v14394_v8  ;;  %v14611_v35 = vadd.f32 %v14396_v9, %v7687_v16 }
 0x4dd   : > { %v11298_v4 = vpop.f32.mrb[116].mxu1  ;;  %v14614_v55 = vadd.f32 %v14399_v2, %v7690_v11 }
 0x4de   : > { %v11299_v37 = vpop.f32.mrb[117].mxu1 }
 0x4df   : > { %v11300_v0 = vadd.f32 %v11299_v37, %v11298_v4  ;;  %v11301_v6 = vpop.f32.mrb[118].mxu1 }
 0x4e0   : > { %v11302_v63 = vpop.f32.mrb[119].mxu1 }
 0x4e1   : > { %v7695_v47 = vadd.f32 %v11300_v0, %v14406_v49  ;;  %v11303_v28 = vadd.f32 %v11302_v63, %v11301_v6  ;;  %v16038_v0 = vld [vmem:[#allocation63_spill] sm:$0xff] }
 0x4e3   : > { %v7698_v31 = vadd.f32 %v11303_v28, %v14409_v14  ;;  %v14619_v29 = vadd.f32 %v14411_v42, %v7695_v47 }
 0x4e5   : > { %v11304_v8 = vpop.f32.mrb[120].mxu1  ;;  %v14622_v9 = vadd.f32 %v14414_v5, %v7698_v31 }
 0x4e6   : > { %v11305_v25 = vpop.f32.mrb[121].mxu1 }
 0x4e7   : > { %v11306_v38 = vadd.f32 %v11305_v25, %v11304_v8  ;;  %v11307_v2 = vpop.f32.mrb[122].mxu1 }
 0x4e8   : > { %v11308_v41 = vpop.f32.mrb[123].mxu1 }
 0x4e9   : > { %v7703_v45 = vadd.f32 %v11306_v38, %v16037_v22  ;;  %v11309_v59 = vadd.f32 %v11308_v41, %v11307_v2  ;;  %v16040_v22 = vld [vmem:[#allocation31_spill] sm:$0xff] }
 0x4eb   : > { %v7706_v48 = vadd.f32 %v11309_v59, %v14424_v60  ;;  %v14627_v49 = vadd.f32 %v14426_v32, %v7703_v45  ;;  %v14632_v11 = vpop.f32.mrb[160].mxu0 }
 0x4ec   : > { %v14634_v37 = vpop.f32.mrb[161].mxu0 }
 0x4ed   : > { %v11310_v14 = vpop.f32.mrb[124].mxu1  ;;  %v14630_v42 = vadd.f32 %v14429_v19, %v7706_v48  ;;  %v14637_v60 = vpop.f32.mrb[162].mxu0  ;;  %v16039_v19 = vld [vmem:[#allocation44_spill] sm:$0xff]  ;;  %v16041_v48 = vld [vmem:[#allocation47_spill] sm:$0xff] }
 0x4ee   : > { %v11311_v16 = vpop.f32.mrb[125].mxu1  ;;  %v14639_v32 = vpop.f32.mrb[163].mxu0 }
 0x4ef   : > { %v11312_v36 = vadd.f32 %v11311_v16, %v11310_v14  ;;  %v11313_v5 = vpop.f32.mrb[126].mxu1  ;;  %v16042_v16 = vld [vmem:[#allocation43_spill] sm:$0xff] }
 0x4f0   : > { %v11314_v4 = vpop.f32.mrb[127].mxu1 }
 0x4f1   : > { %v7711_v6 = vadd.f32 %v11312_v36, %v16038_v0  ;;  %v11315_v63 = vadd.f32 %v11314_v4, %v11313_v5 }
 0x4f3   : > { %v7714_v47 = vadd.f32 %v11315_v63, %v14439_v3  ;;  %v14643_v28 = vadd.f32 %v16039_v19, %v7711_v6 }
 0x4f5   : > { %v11444_v31 = vpop.f32.mrb[128].mxu1  ;;  %v14646_v8 = vadd.f32 %v14444_v24, %v7714_v47  ;;  %v16043_v47 = vld [vmem:[#allocation64_spill] sm:$0xff] }
 0x4f6   : > { %v11445_v25 = vpop.f32.mrb[129].mxu1 }
 0x4f7   : > { %v11446_v38 = vadd.f32 %v11445_v25, %v11444_v31  ;;  %v11447_v2 = vpop.f32.mrb[130].mxu1  ;;  %v16044_v31 = vld [vmem:[#allocation34_spill] sm:$0xff] }
 0x4f8   : > { %v11448_v41 = vpop.f32.mrb[131].mxu1 }
 0x4f9   : > { %v7913_v45 = vadd.f32 %v11446_v38, %v16040_v22  ;;  %v11449_v59 = vadd.f32 %v11448_v41, %v11447_v2  ;;  %v16045_v38 = vld [vmem:[#allocation11_spill] sm:$0xff]  ;;  %v16046_v41 = vld [vmem:[#allocation17_spill] sm:$0xff] }
 0x4fb   : > { %v14650_v14 = vadd.f32 %v16041_v48, %v7913_v45  ;;  %v7916_v3 = vadd.f32 %v11449_v59, %v16042_v16 }
 0x4fd   : > { %v14655_v36 = vadd.f32 %v14463_v46, %v7916_v3  ;;  %v11450_v5 = vpop.f32.mrb[132].mxu1 }
 0x4fe   : > { %v11451_v24 = vpop.f32.mrb[133].mxu1 }
 0x4ff   : > { %v9104_v4 = vpack.c.bf16 %v14655_v36, %v14650_v14  ;;  %v11452_v0 = vadd.f32 %v11451_v24, %v11450_v5  ;;  %v11453_v6 = vpop.f32.mrb[134].mxu1  ;;  %v16047_v24 = vld [vmem:[#allocation79_spill] sm:$0xff] }
 0x500   : > { %v11454_v63 = vpop.f32.mrb[135].mxu1 }
 0x501   : > { %9105 = vst [vmem:[%s14660_s30] sm:$0xff] %v9104_v4   ;;  %v7921_v19 = vadd.f32 %v11452_v0, %v16043_v47  ;;  %v11455_v46 = vadd.f32 %v11454_v63, %v11453_v6  ;;  %v16048_v6 = vld [vmem:[#allocation7_spill] sm:$0xff] }
 0x503   : > { %v14667_v25 = vadd.f32 %v16044_v31, %v7921_v19  ;;  %v7924_v2 = vadd.f32 %v11455_v46, %v16045_v38  ;;  %v16049_v19 = vld [vmem:[#allocation77_spill] sm:$0xff] }
 0x505   : > { %v14671_v22 = vadd.f32 %v16046_v41, %v7924_v2  ;;  %v11456_v45 = vpop.f32.mrb[136].mxu1 }
 0x506   : > { %v11457_v59 = vpop.f32.mrb[137].mxu1 }
 0x507   : > { %v9109_v48 = vpack.c.bf16 %v14671_v22, %v14667_v25  ;;  %v11458_v16 = vadd.f32 %v11457_v59, %v11456_v45  ;;  %v11459_v3 = vpop.f32.mrb[138].mxu1 }
 0x508   : > { %v11460_v5 = vpop.f32.mrb[139].mxu1 }
 0x509   : > { %9196 = vst [vmem:[%s14660_s30 + $0x8] sm:$0xff] %v9109_v48   ;;  %v7929_v4 = vadd.f32 %v11458_v16, %v16047_v24  ;;  %v11461_v0 = vadd.f32 %v11460_v5, %v11459_v3  ;;  %v16050_v3 = vld [vmem:[#allocation48_spill] sm:$0xff]  ;;  %v8360_v24 = vadd.f32 %v14655_v36, %v14650_v14 }
 0x50b   : > { %v14678_v63 = vadd.f32 %v16048_v6, %v7929_v4  ;;  %v7932_v47 = vadd.f32 %v11461_v0, %v14492_v58  ;;  %v16051_v4 = vld [vmem:[#allocation75_spill] sm:$0xff] }
 0x50d   : > { %v14682_v46 = vadd.f32 %v16049_v19, %v7932_v47  ;;  %v11462_v31 = vpop.f32.mrb[140].mxu1  ;;  %v8361_v19 = vadd.f32 %v8360_v24, %v14667_v25 }
 0x50e   : > { %v11463_v38 = vpop.f32.mrb[141].mxu1 }
 0x50f   : > { %v9114_v2 = vpack.c.bf16 %v14682_v46, %v14678_v63  ;;  %v11464_v41 = vadd.f32 %v11463_v38, %v11462_v31  ;;  %v11465_v45 = vpop.f32.mrb[142].mxu1 }
 0x510   : > { %v11466_v59 = vpop.f32.mrb[143].mxu1 }
 0x511   : > { %9197 = vst [vmem:[%s14660_s30 + $0x10] sm:$0xff] %v9114_v2   ;;  %v7937_v48 = vadd.f32 %v11464_v41, %v14507_v18  ;;  %v11467_v16 = vadd.f32 %v11466_v59, %v11465_v45  ;;  %v8362_v45 = vadd.f32 %v8361_v19, %v14671_v22 }
 0x513   : > { %v14689_v5 = vadd.f32 %v16050_v3, %v7937_v48  ;;  %v7940_v58 = vadd.f32 %v11467_v16, %v14510_v40  ;;  %v8363_v16 = vadd.f32 %v8362_v45, %v14678_v63 }
 0x515   : > { %v14695_v0 = vadd.f32 %v16051_v4, %v7940_v58  ;;  %v11468_v6 = vpop.f32.mrb[144].mxu1  ;;  %v8364_v19 = vadd.f32 %v8363_v16, %v14682_v46 }
 0x516   : > { %v11469_v47 = vpop.f32.mrb[145].mxu1 }
 0x517   : > { %v9119_v31 = vpack.c.bf16 %v14695_v0, %v14689_v5  ;;  %v11470_v18 = vadd.f32 %v11469_v47, %v11468_v6  ;;  %v11471_v38 = vpop.f32.mrb[146].mxu1 }
 0x518   : > { %v11472_v2 = vpop.f32.mrb[147].mxu1 }
 0x519   : > { %9198 = vst [vmem:[%s14660_s30 + $0x18] sm:$0xff] %v9119_v31   ;;  %v7945_v40 = vadd.f32 %v11470_v18, %v14523_v39  ;;  %v11473_v41 = vadd.f32 %v11472_v2, %v11471_v38  ;;  %v8365_v31 = vadd.f32 %v8364_v19, %v14689_v5 }
 0x51b   : > { %v14704_v59 = vadd.f32 %v14496_v7, %v7945_v40  ;;  %v7948_v48 = vadd.f32 %v11473_v41, %v14526_v53  ;;  %v8366_v41 = vadd.f32 %v8365_v31, %v14695_v0 }
 0x51d   : > { %v14709_v3 = vadd.f32 %v14501_v1, %v7948_v48  ;;  %v11474_v58 = vpop.f32.mrb[148].mxu1 }
 0x51e   : > { %v11475_v24 = vpop.f32.mrb[149].mxu1 }
 0x51f   : > { %v9124_v4 = vpack.c.bf16 %v14709_v3, %v14704_v59  ;;  %v11476_v6 = vadd.f32 %v11475_v24, %v11474_v58  ;;  %v11477_v39 = vpop.f32.mrb[150].mxu1  ;;  %v8367_v58 = vadd.f32 %v8366_v41, %v14704_v59 }
 0x520   : > { %v11478_v47 = vpop.f32.mrb[151].mxu1 }
 0x521   : > { %9199 = vst [vmem:[%s14660_s30 + $0x20] sm:$0xff] %v9124_v4   ;;  %v7953_v7 = vadd.f32 %v11476_v6, %v14539_v62  ;;  %v11479_v53 = vadd.f32 %v11478_v47, %v11477_v39  ;;  %v8368_v4 = vadd.f32 %v8367_v58, %v14709_v3 }
 0x523   : > { %v14718_v1 = vadd.f32 %v14494_v44, %v7953_v7  ;;  %v7956_v18 = vadd.f32 %v11479_v53, %v14542_v61 }
 0x525   : > { %v14722_v38 = vadd.f32 %v14498_v21, %v7956_v18  ;;  %v11480_v2 = vpop.f32.mrb[152].mxu1  ;;  %v8369_v19 = vadd.f32 %v8368_v4, %v14718_v1 }
 0x526   : > { %v11481_v40 = vpop.f32.mrb[153].mxu1 }
 0x527   : > { %v9129_v45 = vpack.c.bf16 %v14722_v38, %v14718_v1  ;;  %v11482_v48 = vadd.f32 %v11481_v40, %v11480_v2  ;;  %v11483_v62 = vpop.f32.mrb[154].mxu1  ;;  %v8370_v18 = vadd.f32 %v8369_v19, %v14722_v38  ;;  %v16052_v2 = vld [vmem:[#allocation76_spill] sm:$0xff] }
 0x528   : > { %v11484_v16 = vpop.f32.mrb[155].mxu1 }
 0x529   : > { %9200 = vst [vmem:[%s14660_s30 + $0x28] sm:$0xff] %v9129_v45   ;;  %v7961_v44 = vadd.f32 %v11482_v48, %v14555_v26  ;;  %v11485_v61 = vadd.f32 %v11484_v16, %v11483_v62  ;;  %v16053_v45 = vld [vmem:[#allocation9_spill] sm:$0xff] }
 0x52b   : > { %v14731_v21 = vadd.f32 %v14514_v10, %v7961_v44  ;;  %v7964_v24 = vadd.f32 %v11485_v61, %v14558_v15 }
 0x52d   : > { %v14736_v6 = vadd.f32 %v14519_v33, %v7964_v24  ;;  %v11486_v39 = vpop.f32.mrb[156].mxu1  ;;  %v8371_v41 = vadd.f32 %v8370_v18, %v14731_v21 }
 0x52e   : > { %v11487_v47 = vpop.f32.mrb[157].mxu1 }
 0x52f   : > { %v9134_v7 = vpack.c.bf16 %v14736_v6, %v14731_v21  ;;  %v11488_v53 = vadd.f32 %v11487_v47, %v11486_v39  ;;  %v11489_v26 = vpop.f32.mrb[158].mxu1  ;;  %v8372_v24 = vadd.f32 %v8371_v41, %v14736_v6 }
 0x530   : > { %v11490_v31 = vpop.f32.mrb[159].mxu1 }
 0x531   : > { %9201 = vst [vmem:[%s14660_s30 + $0x30] sm:$0xff] %v9134_v7   ;;  %v7969_v10 = vadd.f32 %v11488_v53, %v14571_v23  ;;  %v11491_v15 = vadd.f32 %v11490_v31, %v11489_v26 }
 0x533   : > { %v14745_v33 = vadd.f32 %v16052_v2, %v7969_v10  ;;  %v7972_v40 = vadd.f32 %v11491_v15, %v14574_v57 }
 0x535   : > { %v14750_v48 = vadd.f32 %v16053_v45, %v7972_v40  ;;  %v11492_v62 = vpop.f32.mrb[160].mxu1  ;;  %v8373_v39 = vadd.f32 %v8372_v24, %v14745_v33  ;;  %v16054_v40 = vld [vmem:[#allocation10_spill] sm:$0xff] }
 0x536   : > { %v11493_v16 = vpop.f32.mrb[161].mxu1 }
 0x537   : > { %v9139_v58 = vpack.c.bf16 %v14750_v48, %v14745_v33  ;;  %v11494_v44 = vadd.f32 %v11493_v16, %v11492_v62  ;;  %v11495_v23 = vpop.f32.mrb[162].mxu1  ;;  %v8374_v31 = vadd.f32 %v8373_v39, %v14750_v48  ;;  %v16055_v62 = vld [vmem:[#allocation78_spill] sm:$0xff] }
 0x538   : > { %v11496_v61 = vpop.f32.mrb[163].mxu1 }
 0x539   : > { %9202 = vst [vmem:[%s14660_s30 + $0x38] sm:$0xff] %v9139_v58   ;;  %v7977_v4 = vadd.f32 %v11494_v44, %v14579_v20  ;;  %v11497_v57 = vadd.f32 %v11496_v61, %v11495_v23 }
 0x53b   : > { %v14759_v47 = vadd.f32 %v14530_v17, %v7977_v4  ;;  %v7980_v19 = vadd.f32 %v11497_v57, %v14582_v27 }
 0x53d   : > { %v14763_v7 = vadd.f32 %v14535_v43, %v7980_v19  ;;  %v11498_v53 = vpop.f32.mrb[164].mxu1  ;;  %v8375_v2 = vadd.f32 %v8374_v31, %v14759_v47 }
 0x53e   : > { %v11499_v26 = vpop.f32.mrb[165].mxu1 }
 0x53f   : > { %v9144_v10 = vpack.c.bf16 %v14763_v7, %v14759_v47  ;;  %v11500_v15 = vadd.f32 %v11499_v26, %v11498_v53  ;;  %v11501_v20 = vpop.f32.mrb[166].mxu1  ;;  %v8376_v45 = vadd.f32 %v8375_v2, %v14763_v7 }
 0x540   : > { %v11502_v18 = vpop.f32.mrb[167].mxu1 }
 0x541   : > { %9203 = vst [vmem:[%s14660_s30 + $0x40] sm:$0xff] %v9144_v10   ;;  %v7985_v17 = vadd.f32 %v11500_v15, %v14587_v13  ;;  %v11503_v27 = vadd.f32 %v11502_v18, %v11501_v20 }
 0x543   : > { %v14772_v43 = vadd.f32 %v16054_v40, %v7985_v17  ;;  %v7988_v41 = vadd.f32 %v11503_v27, %v14590_v30  ;;  %v16056_v27 = vld [vmem:[#allocation15_spill] sm:$0xff] }
 0x545   : > { %v14777_v16 = vadd.f32 %v16055_v62, %v7988_v41  ;;  %v11504_v58 = vpop.f32.mrb[168].mxu1  ;;  %v8377_v23 = vadd.f32 %v8376_v45, %v14772_v43  ;;  %v16057_v45 = vld [vmem:[#allocation80_spill] sm:$0xff] }
 0x546   : > { %v11505_v44 = vpop.f32.mrb[169].mxu1 }
 0x547   : > { %v9149_v61 = vpack.c.bf16 %v14777_v16, %v14772_v43  ;;  %v11506_v24 = vadd.f32 %v11505_v44, %v11504_v58  ;;  %v11507_v13 = vpop.f32.mrb[170].mxu1  ;;  %v8378_v39 = vadd.f32 %v8377_v23, %v14777_v16 }
 0x548   : > { %v11508_v4 = vpop.f32.mrb[171].mxu1 }
 0x549   : > { %9204 = vst [vmem:[%s14660_s30 + $0x48] sm:$0xff] %v9149_v61   ;;  %v7993_v57 = vadd.f32 %v11506_v24, %v14595_v52  ;;  %v11509_v30 = vadd.f32 %v11508_v4, %v11507_v13 }
 0x54b   : > { %v14786_v19 = vadd.f32 %v14546_v51, %v7993_v57  ;;  %v7996_v53 = vadd.f32 %v11509_v30, %v14598_v54  ;;  %v16058_v57 = vld [vmem:[#allocation12_spill] sm:$0xff] }
 0x54d   : > { %v8379_v26 = vadd.f32 %v8378_v39, %v14786_v19  ;;  %v14791_v31 = vadd.f32 %v14551_v12, %v7996_v53  ;;  %v11510_v10 = vpop.f32.mrb[172].mxu1 }
 0x54e   : > { %v11511_v15 = vpop.f32.mrb[173].mxu1 }
 0x54f   : > { %v9154_v20 = vpack.c.bf16 %v14791_v31, %v14786_v19  ;;  %v8380_v52 = vadd.f32 %v8379_v26, %v14791_v31  ;;  %v11512_v18 = vadd.f32 %v11511_v15, %v11510_v10  ;;  %v11513_v2 = vpop.f32.mrb[174].mxu1 }
 0x550   : > { %v11514_v17 = vpop.f32.mrb[175].mxu1 }
 0x551   : > { %9205 = vst [vmem:[%s14660_s30 + $0x50] sm:$0xff] %v9154_v20   ;;  %v8001_v51 = vadd.f32 %v11512_v18, %v14603_v34  ;;  %v11515_v54 = vadd.f32 %v11514_v17, %v11513_v2 }
 0x553   : > { %v14799_v40 = vadd.f32 %v16056_v27, %v8001_v51  ;;  %v8004_v12 = vadd.f32 %v11515_v54, %v14606_v50  ;;  %v16059_v54 = vld [vmem:[#allocation19_spill] sm:$0xff] }
 0x555   : > { %v8381_v41 = vadd.f32 %v8380_v52, %v14799_v40  ;;  %v14804_v62 = vadd.f32 %v16057_v45, %v8004_v12  ;;  %v11516_v58 = vpop.f32.mrb[176].mxu1 }
 0x556   : > { %v11517_v44 = vpop.f32.mrb[177].mxu1 }
 0x557   : > { %v9159_v23 = vpack.c.bf16 %v14804_v62, %v14799_v40  ;;  %v8382_v61 = vadd.f32 %v8381_v41, %v14804_v62  ;;  %v11518_v24 = vadd.f32 %v11517_v44, %v11516_v58  ;;  %v11519_v34 = vpop.f32.mrb[178].mxu1 }
 0x558   : > { %v11520_v13 = vpop.f32.mrb[179].mxu1 }
 0x559   : > { %9206 = vst [vmem:[%s14660_s30 + $0x58] sm:$0xff] %v9159_v23   ;;  %v8009_v4 = vadd.f32 %v11518_v24, %v14611_v35  ;;  %v11521_v50 = vadd.f32 %v11520_v13, %v11519_v34 }
 0x55b   : > { %v8170_v30 = vadd.f32 %v16058_v57, %v8009_v4  ;;  %v8012_v39 = vadd.f32 %v11521_v50, %v14614_v55  ;;  %v16060_v55 = vld [vmem:[#allocation22_spill] sm:$0xff] }
 0x55d   : > { %v8383_v53 = vadd.f32 %v8382_v61, %v8170_v30  ;;  %v8173_v26 = vadd.f32 %v14567_v56, %v8012_v39  ;;  %v11522_v10 = vpop.f32.mrb[180].mxu1 }
 0x55e   : > { %v11523_v15 = vpop.f32.mrb[181].mxu1 }
 0x55f   : > { %v9164_v20 = vpack.c.bf16 %v8173_v26, %v8170_v30  ;;  %v8384_v52 = vadd.f32 %v8383_v53, %v8173_v26  ;;  %v11524_v18 = vadd.f32 %v11523_v15, %v11522_v10  ;;  %v11525_v2 = vpop.f32.mrb[182].mxu1 }
 0x560   : > { %v11526_v17 = vpop.f32.mrb[183].mxu1 }
 0x561   : > { %9207 = vst [vmem:[%s14660_s30 + $0x60] sm:$0xff] %v9164_v20   ;;  %v8017_v51 = vadd.f32 %v11524_v18, %v14619_v29  ;;  %v11527_v35 = vadd.f32 %v11526_v17, %v11525_v2 }
 0x563   : > { %v8178_v27 = vadd.f32 %v16059_v54, %v8017_v51  ;;  %v8020_v12 = vadd.f32 %v11527_v35, %v14622_v9 }
 0x565   : > { %v8181_v41 = vadd.f32 %v16060_v55, %v8020_v12  ;;  %v11528_v45 = vpop.f32.mrb[184].mxu1  ;;  %v8385_v56 = vadd.f32 %v8384_v52, %v8178_v27 }
 0x566   : > { %v11529_v58 = vpop.f32.mrb[185].mxu1 }
 0x567   : > { %v9169_v44 = vpack.c.bf16 %v8181_v41, %v8178_v27  ;;  %v11530_v23 = vadd.f32 %v11529_v58, %v11528_v45  ;;  %v11531_v61 = vpop.f32.mrb[186].mxu1  ;;  %v8386_v24 = vadd.f32 %v8385_v56, %v8181_v41 }
 0x568   : > { %v11532_v34 = vpop.f32.mrb[187].mxu1 }
 0x569   : > { %9208 = vst [vmem:[%s14660_s30 + $0x68] sm:$0xff] %v9169_v44   ;;  %v11533_v13 = vadd.f32 %v11532_v34, %v11531_v61  ;;  %v8025_v29 = vadd.f32 %v11530_v23, %v14627_v49 }
 0x56b   : > { %v8186_v4 = vadd.f32 %v14634_v37, %v8025_v29  ;;  %v8028_v50 = vadd.f32 %v11533_v13, %v14630_v42 }
 0x56d   : > { %v8387_v9 = vadd.f32 %v8386_v24, %v8186_v4  ;;  %v8189_v57 = vadd.f32 %v14639_v32, %v8028_v50  ;;  %v11534_v39 = vpop.f32.mrb[188].mxu1 }
 0x56e   : > { %v11535_v53 = vpop.f32.mrb[189].mxu1 }
 0x56f   : > { %v9174_v10 = vpack.c.bf16 %v8189_v57, %v8186_v4  ;;  %v8388_v15 = vadd.f32 %v8387_v9, %v8189_v57  ;;  %v11536_v20 = vadd.f32 %v11535_v53, %v11534_v39  ;;  %v11537_v52 = vpop.f32.mrb[190].mxu1 }
 0x570   : > { %v11538_v18 = vpop.f32.mrb[191].mxu1 }
 0x571   : > { %9209 = vst [vmem:[%s14660_s30 + $0x70] sm:$0xff] %v9174_v10   ;;  %v8033_v2 = vadd.f32 %v11536_v20, %v14643_v28  ;;  %v11539_v49 = vadd.f32 %v11538_v18, %v11537_v52 }
 0x573   : > { %v8194_v37 = vadd.f32 %v14632_v11, %v8033_v2  ;;  %v8036_v42 = vadd.f32 %v11539_v49, %v14646_v8 }
 0x575   : > { %v8389_v17 = vadd.f32 %v8388_v15, %v8194_v37  ;;  %v8197_v32 = vadd.f32 %v14637_v60, %v8036_v42 }
 0x577   : > { %v9179_v51 = vpack.c.bf16 %v8197_v32, %v8194_v37  ;;  %v8390_v35 = vadd.f32 %v8389_v17, %v8197_v32 }
 0x579   : > { %9210 = vst [vmem:[%s14660_s30 + $0x78] sm:$0xff] %v9179_v51   ;;  %v8391_v54 = vrot.slane %v8390_v35, 4 }
 0x57b   : > { %v8392_v12 = vadd.f32 %v8391_v54, %v8390_v35 }
 0x57d   : > { %v8393_v55 = vrot.slane %v8392_v12, 2 }
 0x57f   : > { %v8394_v45 = vadd.f32 %v8393_v55, %v8392_v12 }
 0x581   : > { %v8395_v56 = vrot.slane %v8394_v45, 1 }
 0x583   : > { %v8396_v58 = vadd.f32 %v8395_v56, %v8394_v45 }
 0x585   : > { %v14834_v28 = vmul.f32 0.00390625, %v8396_v58 }
 0x587   : > { %8430 = vst [vmem:[%s319_s10] sm:$0x1] %v14834_v28  ;;  %v14839_v11 = vsub.f32 %v14786_v19, %v14834_v28  ;;  %v14843_v60 = vsub.f32 %v14791_v31, %v14834_v28  ;;  %v14847_v8 = vsub.f32 %v14799_v40, %v14834_v28  ;;  %v14851_v44 = vsub.f32 %v14804_v62, %v14834_v28 }
 0x588   : > { %v14854_v23 = vsub.f32 %v8170_v30, %v14834_v28  ;;  %v14857_v61 = vsub.f32 %v8173_v26, %v14834_v28  ;;  %v14860_v19 = vsub.f32 %v8178_v27, %v14834_v28  ;;  %v14863_v31 = vsub.f32 %v8181_v41, %v14834_v28 }
 0x589   : > { %v14866_v24 = vsub.f32 %v8186_v4, %v14834_v28  ;;  %v14869_v40 = vsub.f32 %v8189_v57, %v14834_v28  ;;  %v14872_v62 = vsub.f32 %v8194_v37, %v14834_v28  ;;  %v14875_v30 = vsub.f32 %v8197_v32, %v14834_v28 }
 0x58a   : > { %v8398_v26 = vsub.f32 %v14650_v14, %v14834_v28  ;;  %v8399_v27 = vsub.f32 %v14655_v36, %v14834_v28  ;;  %v8400_v41 = vsub.f32 %v14667_v25, %v14834_v28  ;;  %v8401_v29 = vsub.f32 %v14671_v22, %v14834_v28 }
 0x58b   : > { %v8402_v4 = vsub.f32 %v14678_v63, %v14834_v28  ;;  %v8403_v57 = vsub.f32 %v14682_v46, %v14834_v28  ;;  %v8404_v36 = vsub.f32 %v14689_v5, %v14834_v28  ;;  %v8405_v10 = vsub.f32 %v14695_v0, %v14834_v28 }
 0x58c   : > { %v8431_v34 = vmul.f32 %v8398_v26, %v8398_v26  ;;  %v8432_v13 = vmul.f32 %v8399_v27, %v8399_v27  ;;  %v8433_v50 = vmul.f32 %v8400_v41, %v8400_v41  ;;  %v8434_v14 = vmul.f32 %v8401_v29, %v8401_v29 }
 0x58d   : > { %v8435_v53 = vmul.f32 %v8402_v4, %v8402_v4  ;;  %v8436_v15 = vmul.f32 %v8403_v57, %v8403_v57  ;;  %v8406_v63 = vsub.f32 %v14704_v59, %v14834_v28  ;;  %v8437_v20 = vmul.f32 %v8404_v36, %v8404_v36 }
 0x58e   : > { %v8463_v9 = vadd.f32 %v8432_v13, %v8431_v34  ;;  %v8407_v46 = vsub.f32 %v14709_v3, %v14834_v28  ;;  %v8438_v18 = vmul.f32 %v8405_v10, %v8405_v10  ;;  %v8408_v5 = vsub.f32 %v14718_v1, %v14834_v28 }
 0x58f   : > { %v8439_v49 = vmul.f32 %v8406_v63, %v8406_v63  ;;  %v8409_v0 = vsub.f32 %v14722_v38, %v14834_v28  ;;  %v8410_v59 = vsub.f32 %v14731_v21, %v14834_v28  ;;  %v8411_v3 = vsub.f32 %v14736_v6, %v14834_v28 }
 0x590   : > { %v8464_v39 = vadd.f32 %v8463_v9, %v8433_v50  ;;  %v8440_v42 = vmul.f32 %v8407_v46, %v8407_v46  ;;  %v8441_v32 = vmul.f32 %v8408_v5, %v8408_v5  ;;  %v8412_v1 = vsub.f32 %v14745_v33, %v14834_v28 }
 0x591   : > { %v8442_v35 = vmul.f32 %v8409_v0, %v8409_v0  ;;  %v8443_v12 = vmul.f32 %v8410_v59, %v8410_v59  ;;  %v8413_v38 = vsub.f32 %v14750_v48, %v14834_v28  ;;  %v8444_v45 = vmul.f32 %v8411_v3, %v8411_v3 }
 0x592   : > { %v8465_v25 = vadd.f32 %v8464_v39, %v8434_v14  ;;  %v8414_v21 = vsub.f32 %v14759_v47, %v14834_v28  ;;  %v8445_v58 = vmul.f32 %v8412_v1, %v8412_v1  ;;  %v8415_v6 = vsub.f32 %v14763_v7, %v14834_v28 }
 0x593   : > { %v8446_v27 = vmul.f32 %v8413_v38, %v8413_v38  ;;  %v8416_v33 = vsub.f32 %v14772_v43, %v14834_v28  ;;  %v8417_v48 = vsub.f32 %v14777_v16, %v14834_v28  ;;  %v8451_v14 = vmul.f32 %v14839_v11, %v14839_v11 }
 0x594   : > { %v8466_v22 = vadd.f32 %v8465_v25, %v8435_v53  ;;  %v8447_v34 = vmul.f32 %v8414_v21, %v8414_v21  ;;  %v8448_v29 = vmul.f32 %v8415_v6, %v8415_v6  ;;  %v8452_v39 = vmul.f32 %v14843_v60, %v14843_v60 }
 0x595   : > { %v8449_v50 = vmul.f32 %v8416_v33, %v8416_v33  ;;  %v8450_v47 = vmul.f32 %v8417_v48, %v8417_v48  ;;  %v8453_v43 = vmul.f32 %v14847_v8, %v14847_v8  ;;  %v8454_v16 = vmul.f32 %v14851_v44, %v14851_v44 }
 0x596   : > { %v8467_v52 = vadd.f32 %v8466_v22, %v8436_v15  ;;  %v8455_v25 = vmul.f32 %v14854_v23, %v14854_v23  ;;  %v8456_v11 = vmul.f32 %v14857_v61, %v14857_v61  ;;  %v8457_v60 = vmul.f32 %v14860_v19, %v14860_v19 }
 0x597   : > { %v8458_v8 = vmul.f32 %v14863_v31, %v14863_v31  ;;  %v8459_v44 = vmul.f32 %v14866_v24, %v14866_v24  ;;  %v8460_v23 = vmul.f32 %v14869_v40, %v14869_v40  ;;  %v8461_v61 = vmul.f32 %v14872_v62, %v14872_v62 }
 0x598   : > { %v8468_v2 = vadd.f32 %v8467_v52, %v8437_v20  ;;  %v8462_v19 = vmul.f32 %v14875_v30, %v14875_v30 }
 0x59a   : > { %v8469_v37 = vadd.f32 %v8468_v2, %v8438_v18 }
 0x59c   : > { %v8470_v17 = vadd.f32 %v8469_v37, %v8439_v49 }
 0x59e   : > { %v8471_v51 = vadd.f32 %v8470_v17, %v8440_v42 }
 0x5a0   : > { %v8472_v54 = vadd.f32 %v8471_v51, %v8441_v32 }
 0x5a2   : > { %v8473_v55 = vadd.f32 %v8472_v54, %v8442_v35 }
 0x5a4   : > { %v8474_v56 = vadd.f32 %v8473_v55, %v8443_v12 }
 0x5a6   : > { %v8475_v26 = vadd.f32 %v8474_v56, %v8444_v45 }
 0x5a8   : > { %v8476_v41 = vadd.f32 %v8475_v26, %v8445_v58 }
 0x5aa   : > { %v8477_v13 = vadd.f32 %v8476_v41, %v8446_v27 }
 0x5ac   : > { %v8478_v4 = vadd.f32 %v8477_v13, %v8447_v34 }
 0x5ae   : > { %v8479_v9 = vadd.f32 %v8478_v4, %v8448_v29 }
 0x5b0   : > { %v8480_v57 = vadd.f32 %v8479_v9, %v8449_v50 }
 0x5b2   : > { %v8481_v7 = vadd.f32 %v8480_v57, %v8450_v47 }
 0x5b4   : > { %v8482_v36 = vadd.f32 %v8481_v7, %v8451_v14 }
 0x5b6   : > { %v8483_v53 = vadd.f32 %v8482_v36, %v8452_v39 }
 0x5b8   : > { %v8484_v28 = vadd.f32 %v8483_v53, %v8453_v43 }
 0x5ba   : > { %v8485_v10 = vadd.f32 %v8484_v28, %v8454_v16 }
 0x5bc   : > { %v8486_v15 = vadd.f32 %v8485_v10, %v8455_v25 }
 0x5be   : > { %v8487_v22 = vadd.f32 %v8486_v15, %v8456_v11 }
 0x5c0   : > { %v8488_v63 = vadd.f32 %v8487_v22, %v8457_v60 }
 0x5c2   : > { %v8489_v20 = vadd.f32 %v8488_v63, %v8458_v8 }
 0x5c4   : > { %v8490_v52 = vadd.f32 %v8489_v20, %v8459_v44 }
 0x5c6   : > { %v8491_v46 = vadd.f32 %v8490_v52, %v8460_v23 }
 0x5c8   : > { %v8492_v18 = vadd.f32 %v8491_v46, %v8461_v61 }
 0x5ca   : > { %v8493_v2 = vadd.f32 %v8492_v18, %v8462_v19 }
 0x5cc   : > { %v8494_v31 = vrot.slane %v8493_v2, 4 }
 0x5ce   : > { %v8495_v5 = vadd.f32 %v8494_v31, %v8493_v2 }
 0x5d0   : > { %v8496_v49 = vrot.slane %v8495_v5, 2 }
 0x5d2   : > { %v8497_v37 = vadd.f32 %v8496_v49, %v8495_v5 }
 0x5d4   : > { %v8498_v0 = vrot.slane %v8497_v37, 1 }
 0x5d6   : > { %v8499_v24 = vadd.f32 %v8498_v0, %v8497_v37 }
 0x5d8   : > { %8500 = vst [vmem:[%s322_s13] sm:$0x1] %v8499_v24 }
 0x5d9 PF: > { %s19_s24 = sadd.s32 1, %s11989_s24  }
 0x5da   : > { %p16_p3 = scmp.ge.s32.totalorder %s19_s24, 4  }
 0x5dc   :  { %18 = sbr.rel (!%p16_p3) target bundleno = 1 (0x1), region = 107 }
 0x5e3   :  { %8562 = vsyncpa [#allocation5], 1 }
 0x5e4   :  { %8564 = vsyncpa [#allocation5 + $0x1], 1 }

</bundles_post_ra>
